<compile_context>
chip_gen: v6e
topology: v6e:2x2x1
jax: 0.10.0
libtpu: 0.0.40
codegen_flags: <defaults>
</compile_context>

<pallas_src>
import functools

import numpy as np
import jax
import jax.numpy as jnp
from jax import lax
from jax.experimental import pallas as pl
from jax.experimental.pallas import tpu as pltpu


# ----------------------------------------------------------------------------
# Fused Pallas kernel: 2 bi-GRU layers (+ per-sentence passes) + 2 scores
# ----------------------------------------------------------------------------
def _fused_classifier_kernel(
    # ---- inputs (21) ----
    x2d_ref, mask_f_ref, mask_b_ref,
    wih1_f_ref, wih1_b_ref, bih1_f_ref, bih1_b_ref, whh1_ref, bhh1_ref,
    wih2x_f_ref, wih2x_b_ref, wih2m_f_ref, wih2m_b_ref,
    bih2_f_ref, bih2_b_ref, whh2_ref, bhh2_ref,
    w1_ref, b1_ref, w2_ref, b2_ref,
    # ---- outputs (2) ----
    lp1_ref, lp2_ref,
    # ---- region-0 scratch (2): layer-1 hidden states, alive through layer 2 ----
    p1_fwd_ref, p1_bwd_ref):
  """x2d_ref: (T*Bp, 2H) time-major-flattened, batch-padded input.

  mask_f/mask_b: (T,) f32 in SMEM; 0.0 where the sentence-level GRU restarts
  (sentence start for the forward chain, sentence end for the backward chain).

  p*_fwd/p*_bwd: (T, 2*Bp, H) hidden states, rows [0:Bp] = full-sequence chain,
  rows [Bp:2Bp] = per-sentence chain.
  """
  T, two_bp, H = p1_fwd_ref.shape
  Bp = two_bp // 2

  def gru_block(gi, gh, h_prev):
    """torch.nn.GRU cell on one chain block, gate order [r, z, n].
    gi already includes x@W_ih + b_ih; gh already includes h@W_hh + b_hh."""
    r = jax.nn.sigmoid(gi[:, 0:H] + gh[:, 0:H])
    z = jax.nn.sigmoid(gi[:, H:2 * H] + gh[:, H:2 * H])
    n = jnp.tanh(gi[:, 2 * H:3 * H] + r * gh[:, 2 * H:3 * H])
    return (1.0 - z) * n + z * h_prev

  def run_layer(gi_f_ref, gi_b_ref, whh_cat, bhh_cat, fwd_ref, bwd_ref):
    """One bi-GRU layer. Four serial chains (full fwd, sentence fwd, full bwd,
    sentence bwd) are carried in a single (4*Bp, H) state and advanced by ONE
    recurrent MXU push per step against the lane-concatenated [whh_f | whh_b]
    weight (fwd rows read the [:, :3H] half, bwd rows the [:, 3H:] half)."""

    def body(i, h):
      t = i
      tb = T - 1 - i
      rf = pl.multiple_of(t * Bp, Bp)
      rb = pl.multiple_of(tb * Bp, Bp)
      gi_f = gi_f_ref[pl.ds(rf, Bp), :]       # (Bp, 3H) hoisted projection @ t
      gi_b = gi_b_ref[pl.ds(rb, Bp), :]       # (Bp, 3H) hoisted projection @ tb
      mf = mask_f_ref[t]                      # 0.0 -> sentence chain restarts
      mb = mask_b_ref[tb]

      h_af = h[0:Bp]                          # full-seq forward chain
      h_sf = h[Bp:2 * Bp] * mf                # per-sentence forward chain
      h_ab = h[2 * Bp:3 * Bp]                 # full-seq backward chain
      h_sb = h[3 * Bp:4 * Bp] * mb            # per-sentence backward chain
      h_in = jnp.concatenate([h_af, h_sf, h_ab, h_sb], axis=0)   # (4Bp, H)

      gh = jnp.dot(h_in, whh_cat,
                   preferred_element_type=jnp.float32) + bhh_cat  # (4Bp, 6H)

      n_af = gru_block(gi_f, gh[0:Bp, 0:3 * H], h_af)
      n_sf = gru_block(gi_f, gh[Bp:2 * Bp, 0:3 * H], h_sf)
      n_ab = gru_block(gi_b, gh[2 * Bp:3 * Bp, 3 * H:6 * H], h_ab)
      n_sb = gru_block(gi_b, gh[3 * Bp:4 * Bp, 3 * H:6 * H], h_sb)
      h_new = jnp.concatenate([n_af, n_sf, n_ab, n_sb], axis=0)

      # One full-width, sublane-aligned store per direction per step.
      fwd_ref[t] = h_new[0:2 * Bp]
      bwd_ref[tb] = h_new[2 * Bp:4 * Bp]
      return h_new

    h0 = jnp.zeros((4 * Bp, H), jnp.float32)
    unroll = T if T <= 16 else 4
    lax.fori_loop(0, T, body, h0, unroll=unroll)

  def score(fwd_ref, bwd_ref, w_ref, b_ref, out_ref):
    """Fused Linear(4H -> 1) + LogSoftmax over the length dim.

    phi = [all_fwd, all_bwd, sent_fwd, sent_bwd]: the weight is split into its
    4 chain chunks, so phi is never concatenated/materialized."""
    w = w_ref[...]                                          # (1, 4H)
    af = fwd_ref[:, 0:Bp, :]
    sf = fwd_ref[:, Bp:2 * Bp, :]
    ab = bwd_ref[:, 0:Bp, :]
    sb = bwd_ref[:, Bp:2 * Bp, :]
    s = (jnp.sum(af * w[:, 0:H], axis=-1)
         + jnp.sum(ab * w[:, H:2 * H], axis=-1)
         + jnp.sum(sf * w[:, 2 * H:3 * H], axis=-1)
         + jnp.sum(sb * w[:, 3 * H:4 * H], axis=-1)
         + b_ref[...])                                      # (T, Bp)
    s = jnp.transpose(s, (1, 0))                            # (Bp, T)
    m = jnp.max(s, axis=-1, keepdims=True)
    lse = m + jnp.log(jnp.sum(jnp.exp(s - m), axis=-1, keepdims=True))
    res = s - lse                                           # (Bp, T)
    t_pad = out_ref.shape[1]
    if t_pad > T:
      # Lane-dense, full-width output store (padding sliced off in the wrapper).
      res = jnp.concatenate(
          [res, jnp.zeros((Bp, t_pad - T), jnp.float32)], axis=1)
    out_ref[...] = res

  # --------------------------- layer 1 ---------------------------
  # gi1 scratch lives only for layer 1; sequential run_scoped scopes reuse the
  # same VMEM region as layer 2 (peak = max(layer1, layer2), not the sum).
  def layer1_scope(gi1_f_ref, gi1_b_ref):
    gi1_f_ref[...] = jnp.dot(x2d_ref[...], wih1_f_ref[...],
                             preferred_element_type=jnp.float32) + bih1_f_ref[...]
    gi1_b_ref[...] = jnp.dot(x2d_ref[...], wih1_b_ref[...],
                             preferred_element_type=jnp.float32) + bih1_b_ref[...]
    run_layer(gi1_f_ref, gi1_b_ref, whh1_ref[...], bhh1_ref[...],
              p1_fwd_ref, p1_bwd_ref)

  pl.run_scoped(layer1_scope,
                pltpu.VMEM((T * Bp, 3 * H), jnp.float32),
                pltpu.VMEM((T * Bp, 3 * H), jnp.float32))
  score(p1_fwd_ref, p1_bwd_ref, w1_ref, b1_ref, lp1_ref)

  # --------------------------- layer 2 ---------------------------
  def layer2_scope(gi2_f_ref, gi2_b_ref, p2_fwd_ref, p2_bwd_ref):
    # Layer-2 input is [M, M1_all]; BOTH halves of its input->gate projection
    # (M via bf16 wih2x, M1_all via f32 wih2m) are hoisted out of the
    # recurrence as dense MXU matmuls -> nothing data-dependent stays in-loop.
    m1f = p1_fwd_ref[:, 0:Bp, :].reshape(T * Bp, H)        # full-seq fwd states
    m1b = p1_bwd_ref[:, 0:Bp, :].reshape(T * Bp, H)        # full-seq bwd states
    gi2_f_ref[...] = (
        jnp.dot(x2d_ref[...], wih2x_f_ref[...],
                preferred_element_type=jnp.float32)
        + jnp.dot(m1f, wih2m_f_ref[0:H, :], preferred_element_type=jnp.float32)
        + jnp.dot(m1b, wih2m_f_ref[H:2 * H, :],
                  preferred_element_type=jnp.float32)
        + bih2_f_ref[...])
    gi2_b_ref[...] = (
        jnp.dot(x2d_ref[...], wih2x_b_ref[...],
                preferred_element_type=jnp.float32)
        + jnp.dot(m1f, wih2m_b_ref[0:H, :], preferred_element_type=jnp.float32)
        + jnp.dot(m1b, wih2m_b_ref[H:2 * H, :],
                  preferred_element_type=jnp.float32)
        + bih2_b_ref[...])
    run_layer(gi2_f_ref, gi2_b_ref, whh2_ref[...], bhh2_ref[...],
              p2_fwd_ref, p2_bwd_ref)
    score(p2_fwd_ref, p2_bwd_ref, w2_ref, b2_ref, lp2_ref)

  pl.run_scoped(layer2_scope,
                pltpu.VMEM((T * Bp, 3 * H), jnp.float32),
                pltpu.VMEM((T * Bp, 3 * H), jnp.float32),
                pltpu.VMEM((T, 2 * Bp, H), jnp.float32),
                pltpu.VMEM((T, 2 * Bp, H), jnp.float32))


# ----------------------------------------------------------------------------
# Wrapper
# ----------------------------------------------------------------------------
def boundary_fine_read_classifier_forward(M, G, params, context_sent_l,
                                          input_proj_dtype=jnp.bfloat16):
  """Pallas implementation of BoundaryFineReadClassifier.forward."""
  del G  # G is accepted but never used by the PyTorch forward.
  assert context_sent_l[0] == context_sent_l[-1]
  # TODO(synk): dropout (nn.Dropout / LockedDropout) treated as identity (eval mode).

  B, T, D_in = M.shape
  H = params['rnn1']['whh_f'].shape[0]
  assert D_in == 2 * H
  assert sum(context_sent_l) == T

  # Pad the batch to a multiple of 8 sublanes so every per-step slice/store in
  # the kernel is sublane-aligned; pad the output length to a lane-dense
  # multiple of 128. Both paddings are sliced off on return.
  Bp = ((B + 7) // 8) * 8
  Tpad = ((T + 127) // 128) * 128

  # Single layout op: time-major-flattened, batch-padded input. The hoisted
  # input->gate projections use bf16 operands (f32 accumulation); the
  # recurrence stays f32.
  Mp = jnp.pad(M, ((0, Bp - B), (0, 0), (0, 0)))
  x2d = jnp.transpose(Mp, (1, 0, 2)).reshape(T * Bp, 2 * H).astype(input_proj_dtype)

  # Sentence-restart masks (0.0 where the per-sentence GRU state resets).
  mask_f = np.ones((T,), np.float32)
  mask_b = np.ones((T,), np.float32)
  acc = 0
  for l in context_sent_l:
    mask_f[acc] = 0.0
    mask_b[acc + l - 1] = 0.0
    acc += l

  p1, p2 = params['rnn1'], params['rnn2']
  wih1_f = p1['wih_f'].astype(input_proj_dtype)
  wih1_b = p1['wih_b'].astype(input_proj_dtype)
  whh1_cat = jnp.concatenate([p1['whh_f'], p1['whh_b']], axis=1)   # (H, 6H)
  bhh1_cat = jnp.concatenate([p1['bhh_f'], p1['bhh_b']], axis=1)   # (1, 6H)
  # rnn2 input weight rows: [0:2H] multiply M (bf16 path), [2H:4H] multiply
  # M1_all (f32 activation path).
  wih2x_f = p2['wih_f'][0:2 * H, :].astype(input_proj_dtype)
  wih2x_b = p2['wih_b'][0:2 * H, :].astype(input_proj_dtype)
  wih2m_f = p2['wih_f'][2 * H:4 * H, :]
  wih2m_b = p2['wih_b'][2 * H:4 * H, :]
  whh2_cat = jnp.concatenate([p2['whh_f'], p2['whh_b']], axis=1)
  bhh2_cat = jnp.concatenate([p2['bhh_f'], p2['bhh_b']], axis=1)
  w1 = params['linear1_w']
  b1 = params['linear1_b'].reshape(1, 1)
  w2 = params['linear2_w']
  b2 = params['linear2_b'].reshape(1, 1)

  vmem_spec = pl.BlockSpec(memory_space=pltpu.MemorySpace.VMEM)
  smem_spec = pl.BlockSpec(memory_space=pltpu.MemorySpace.SMEM)

  # ---- VMEM budget, clamped to the hardware (v7x has only 64 MiB per TC) ----
  in_itemsize = jnp.dtype(input_proj_dtype).itemsize
  phi_bytes = 2 * T * (2 * Bp) * H * 4                              # region-0 states
  scope_bytes = 2 * T * Bp * 3 * H * 4 + 2 * T * (2 * Bp) * H * 4   # worst scope (layer 2)
  in_bytes = T * Bp * 2 * H * in_itemsize
  out_bytes = 2 * Bp * Tpad * 4
  w_bytes = (4 * (2 * H) * (3 * H) * in_itemsize
             + 2 * (2 * H) * (3 * H) * 4
             + 2 * H * 6 * H * 4 + 2 * 6 * H * 4
             + 4 * 3 * H * 4 + 2 * (4 * H + 1) * 4)
  need = phi_bytes + scope_bytes + in_bytes + out_bytes + w_bytes
  cap = 64 * 2 ** 20
  try:
    cap = int(getattr(pltpu.get_tpu_info(), 'vmem_capacity_bytes', cap))
  except Exception:
    pass
  vmem_limit = int(min(int(0.9 * cap),
                       max(32 * 2 ** 20, int(1.5 * need) + (16 << 20))))
  # TODO(synk): for long sequences (need ~> 0.9*cap, esp. v7x's 64 MiB VMEM),
  # tile the T axis with a grid carrying h in scratch instead of keeping all
  # activations resident.
  # TODO(synk): on v7x, split fwd/bwd chains across the two TensorCores
  # (pl.core_map over pltpu.create_tensorcore_mesh) for up to ~2x on the
  # recurrence portion.

  fused = pl.pallas_call(
      _fused_classifier_kernel,
      out_shape=(jax.ShapeDtypeStruct((Bp, Tpad), jnp.float32),
                 jax.ShapeDtypeStruct((Bp, Tpad), jnp.float32)),
      in_specs=[vmem_spec, smem_spec, smem_spec] + [vmem_spec] * 18,
      out_specs=(vmem_spec, vmem_spec),
      scratch_shapes=[
          pltpu.VMEM((T, 2 * Bp, H), jnp.float32),   # layer-1 fwd states [all; sent]
          pltpu.VMEM((T, 2 * Bp, H), jnp.float32),   # layer-1 bwd states [all; sent]
      ],
      compiler_params=pltpu.CompilerParams(vmem_limit_bytes=vmem_limit),
  )

  log_p1, log_p2 = fused(
      x2d, jnp.asarray(mask_f), jnp.asarray(mask_b),
      wih1_f, wih1_b, p1['bih_f'], p1['bih_b'], whh1_cat, bhh1_cat,
      wih2x_f, wih2x_b, wih2m_f, wih2m_b,
      p2['bih_f'], p2['bih_b'], whh2_cat, bhh2_cat,
      w1, b1, w2, b2)
  return log_p1[:B, :T], log_p2[:B, :T]


# ----------------------------------------------------------------------------
# Deterministic parameter init (PyTorch-style U(-1/sqrt(fan), 1/sqrt(fan)))
# ----------------------------------------------------------------------------
def init_params(key, hidden_size):
  H = hidden_size

  def gru_dir(k, d_in):
    ks = jax.random.split(k, 4)
    b = H ** -0.5
    u = lambda kk, shp: jax.random.uniform(kk, shp, jnp.float32, -b, b)
    return dict(wih=u(ks[0], (d_in, 3 * H)), whh=u(ks[1], (H, 3 * H)),
                bih=u(ks[2], (1, 3 * H)), bhh=u(ks[3], (1, 3 * H)))

  def bigru(k, d_in):
    kf, kb = jax.random.split(k)
    f, r = gru_dir(kf, d_in), gru_dir(kb, d_in)
    return {'wih_f': f['wih'], 'whh_f': f['whh'], 'bih_f': f['bih'], 'bhh_f': f['bhh'],
            'wih_b': r['wih'], 'whh_b': r['whh'], 'bih_b': r['bih'], 'bhh_b': r['bhh']}

  k1, k2, k3, k4 = jax.random.split(key, 4)
  lb = (4 * H) ** -0.5
  return {
      'rnn1': bigru(k1, 2 * H),          # rnn1 input size = 2H
      'rnn2': bigru(k2, 4 * H),          # rnn2 input size = 4H
      'linear1_w': jax.random.uniform(k3, (1, 4 * H), jnp.float32, -lb, lb),
      'linear1_b': jax.random.uniform(jax.random.fold_in(k3, 1), (1,), jnp.float32, -lb, lb),
      'linear2_w': jax.random.uniform(k4, (1, 4 * H), jnp.float32, -lb, lb),
      'linear2_b': jax.random.uniform(jax.random.fold_in(k4, 1), (1,), jnp.float32, -lb, lb),
  }


# ----------------------------------------------------------------------------
# Plain-JAX reference (for a correctness sanity check)
# ----------------------------------------------------------------------------
def _bigru_ref(x, p):
  H = p['whh_f'].shape[0]
  B, T, _ = x.shape

  def cell(x_t, h, s):
    gi = jnp.einsum('bd,dg->bg', x_t, p['wih' + s],
                    precision=lax.Precision.HIGHEST) + p['bih' + s][0]
    gh = jnp.einsum('bh,hg->bg', h, p['whh' + s],
                    precision=lax.Precision.HIGHEST) + p['bhh' + s][0]
    r = jax.nn.sigmoid(gi[:, :H] + gh[:, :H])
    z = jax.nn.sigmoid(gi[:, H:2 * H] + gh[:, H:2 * H])
    n = jnp.tanh(gi[:, 2 * H:] + r * gh[:, 2 * H:])
    return (1.0 - z) * n + z * h

  h = jnp.zeros((B, H), jnp.float32)
  outs_f = []
  for t in range(T):
    h = cell(x[:, t], h, '_f')
    outs_f.append(h)
  h = jnp.zeros((B, H), jnp.float32)
  outs_b = [None] * T
  for t in range(T - 1, -1, -1):
    h = cell(x[:, t], h, '_b')
    outs_b[t] = h
  return jnp.concatenate([jnp.stack(outs_f, 1), jnp.stack(outs_b, 1)], axis=-1)


def _score_ref(phi, w, b):
  s = jnp.einsum('bld,d->bl', phi, w[0], precision=lax.Precision.HIGHEST) + b[0]
  return jax.nn.log_softmax(s, axis=1)


def _forward_ref(M, G, params, context_sent_l):
  del G

  def rnn_over_sent(p, x):
    acc, sents = 0, []
    for l in context_sent_l:
      sents.append(_bigru_ref(x[:, acc:acc + l, :], p))
      acc += l
    return jnp.concatenate(sents, axis=1)

  M1_all = _bigru_ref(M, params['rnn1'])
  phi1 = jnp.concatenate([M1_all, rnn_over_sent(params['rnn1'], M)], axis=2)
  lp1 = _score_ref(phi1, params['linear1_w'], params['linear1_b'])
  M2 = jnp.concatenate([M, M1_all], axis=2)
  M2_all = _bigru_ref(M2, params['rnn2'])
  phi2 = jnp.concatenate([M2_all, rnn_over_sent(params['rnn2'], M2)], axis=2)
  lp2 = _score_ref(phi2, params['linear2_w'], params['linear2_b'])
  return lp1, lp2


# ----------------------------------------------------------------------------
if __name__ == "__main__":
  hidden_size = 8                 # opt.hidden_size
  B, L = 2, 8                     # shared.batch_l, shared.context_l
  context_sent_l = [4, 4]         # shared.context_sent_l (first == last)

  key = jax.random.PRNGKey(0)
  k_m, k_g, k_p = jax.random.split(key, 3)
  M = jax.random.normal(k_m, (B, L, 2 * hidden_size), jnp.float32)
  G = jax.random.normal(k_g, (B, L, 2 * hidden_size), jnp.float32)  # unused
  params = init_params(k_p, hidden_size)

  # Default (performance) configuration: bf16 hoisted input projections.
  fwd = jax.jit(functools.partial(boundary_fine_read_classifier_forward,
                                  context_sent_l=context_sent_l))
  log_p1, log_p2 = fwd(M, G, params)
  jax.block_until_ready((log_p1, log_p2))

  r1, r2 = _forward_ref(M, G, params, context_sent_l)
  assert log_p1.shape == (B, L) and log_p2.shape == (B, L)
  # bf16 input projections -> slightly looser tolerance vs the f32 reference.
  assert jnp.allclose(log_p1, r1, atol=5e-2, rtol=5e-2)
  assert jnp.allclose(log_p2, r2, atol=5e-2, rtol=5e-2)
  # log-softmax rows must normalize
  assert jnp.allclose(jnp.sum(jnp.exp(log_p1), axis=1), 1.0, atol=1e-3)
  assert jnp.allclose(jnp.sum(jnp.exp(log_p2), axis=1), 1.0, atol=1e-3)

  # Full-f32 configuration: tight check of the kernel math itself.
  fwd_f32 = jax.jit(functools.partial(boundary_fine_read_classifier_forward,
                                      context_sent_l=context_sent_l,
                                      input_proj_dtype=jnp.float32))
  q1, q2 = fwd_f32(M, G, params)
  jax.block_until_ready((q1, q2))
  assert jnp.allclose(q1, r1, atol=1e-2, rtol=1e-2)
  assert jnp.allclose(q2, r2, atol=1e-2, rtol=1e-2)

  print("KERNEL_OK")
</pallas_src>

<mosaic_0001>
module attributes {stable_mosaic.version = 11 : i64} {
  func.func @_fused_classifier_kernel(%arg0: memref<64x16xbf16, #tpu.memory_space<vmem>>, %arg1: memref<8xf32, #tpu.memory_space<smem>>, %arg2: memref<8xf32, #tpu.memory_space<smem>>, %arg3: memref<16x24xbf16, #tpu.memory_space<vmem>>, %arg4: memref<16x24xbf16, #tpu.memory_space<vmem>>, %arg5: memref<1x24xf32, #tpu.memory_space<vmem>>, %arg6: memref<1x24xf32, #tpu.memory_space<vmem>>, %arg7: memref<8x48xf32, #tpu.memory_space<vmem>>, %arg8: memref<1x48xf32, #tpu.memory_space<vmem>>, %arg9: memref<16x24xbf16, #tpu.memory_space<vmem>>, %arg10: memref<16x24xbf16, #tpu.memory_space<vmem>>, %arg11: memref<16x24xf32, #tpu.memory_space<vmem>>, %arg12: memref<16x24xf32, #tpu.memory_space<vmem>>, %arg13: memref<1x24xf32, #tpu.memory_space<vmem>>, %arg14: memref<1x24xf32, #tpu.memory_space<vmem>>, %arg15: memref<8x48xf32, #tpu.memory_space<vmem>>, %arg16: memref<1x48xf32, #tpu.memory_space<vmem>>, %arg17: memref<1x32xf32, #tpu.memory_space<vmem>>, %arg18: memref<1x1xf32, #tpu.memory_space<vmem>>, %arg19: memref<1x32xf32, #tpu.memory_space<vmem>>, %arg20: memref<1x1xf32, #tpu.memory_space<vmem>>, %arg21: memref<8x128xf32, #tpu.memory_space<vmem>>, %arg22: memref<8x128xf32, #tpu.memory_space<vmem>>, %arg23: memref<8x16x8xf32, #tpu.memory_space<vmem>>, %arg24: memref<8x16x8xf32, #tpu.memory_space<vmem>>) attributes {dimension_semantics = [], scalar_prefetch = 0 : i64, scratch_operands = 2 : i64, tpu.core_type = #tpu.core_type<tc>} {
    "tpu.region"() ({
      %alloca = memref.alloca() : memref<64x24xf32, #tpu.memory_space<vmem>>
      %alloca_22 = memref.alloca() : memref<64x24xf32, #tpu.memory_space<vmem>>
      %c0_23 = arith.constant 0 : index
      %c0_24 = arith.constant 0 : index
      %46 = vector.load %arg0[%c0_23, %c0_24] : memref<64x16xbf16, #tpu.memory_space<vmem>>, vector<64x16xbf16>
      %c0_25 = arith.constant 0 : index
      %c0_26 = arith.constant 0 : index
      %47 = vector.load %arg3[%c0_25, %c0_26] : memref<16x24xbf16, #tpu.memory_space<vmem>>, vector<16x24xbf16>
      %cst_27 = arith.constant dense<0.000000e+00> : vector<64x24xf32>
      %48 = tpu.matmul %46, %47, %cst_27 {dimension_numbers = #tpu.dot_dimension_numbers<[1], [0], [0], [1], [0, 0, 1, 1], [], []>} : vector<64x16xbf16>, vector<16x24xbf16>, vector<64x24xf32> -> vector<64x24xf32>
      %c0_28 = arith.constant 0 : index
      %c0_29 = arith.constant 0 : index
      %49 = vector.load %arg5[%c0_28, %c0_29] : memref<1x24xf32, #tpu.memory_space<vmem>>, vector<1x24xf32>
      %50 = vector.broadcast %49 : vector<1x24xf32> to vector<64x24xf32>
      %51 = arith.addf %48, %50 : vector<64x24xf32>
      %c0_30 = arith.constant 0 : index
      %c0_31 = arith.constant 0 : index
      %52 = vector.load %alloca[%c0_30, %c0_31] : memref<64x24xf32, #tpu.memory_space<vmem>>, vector<64x24xf32>
      tpu.vector_store %alloca[%c0_30, %c0_31], %51 {strides = array<i32>} : memref<64x24xf32, #tpu.memory_space<vmem>>, vector<64x24xf32>,
      %c0_32 = arith.constant 0 : index
      %c0_33 = arith.constant 0 : index
      %53 = vector.load %arg0[%c0_32, %c0_33] : memref<64x16xbf16, #tpu.memory_space<vmem>>, vector<64x16xbf16>
      %c0_34 = arith.constant 0 : index
      %c0_35 = arith.constant 0 : index
      %54 = vector.load %arg4[%c0_34, %c0_35] : memref<16x24xbf16, #tpu.memory_space<vmem>>, vector<16x24xbf16>
      %cst_36 = arith.constant dense<0.000000e+00> : vector<64x24xf32>
      %55 = tpu.matmul %53, %54, %cst_36 {dimension_numbers = #tpu.dot_dimension_numbers<[1], [0], [0], [1], [0, 0, 1, 1], [], []>} : vector<64x16xbf16>, vector<16x24xbf16>, vector<64x24xf32> -> vector<64x24xf32>
      %c0_37 = arith.constant 0 : index
      %c0_38 = arith.constant 0 : index
      %56 = vector.load %arg6[%c0_37, %c0_38] : memref<1x24xf32, #tpu.memory_space<vmem>>, vector<1x24xf32>
      %57 = vector.broadcast %56 : vector<1x24xf32> to vector<64x24xf32>
      %58 = arith.addf %55, %57 : vector<64x24xf32>
      %c0_39 = arith.constant 0 : index
      %c0_40 = arith.constant 0 : index
      %59 = vector.load %alloca_22[%c0_39, %c0_40] : memref<64x24xf32, #tpu.memory_space<vmem>>, vector<64x24xf32>
      tpu.vector_store %alloca_22[%c0_39, %c0_40], %58 {strides = array<i32>} : memref<64x24xf32, #tpu.memory_space<vmem>>, vector<64x24xf32>,
      %c0_41 = arith.constant 0 : index
      %c0_42 = arith.constant 0 : index
      %60 = vector.load %arg7[%c0_41, %c0_42] : memref<8x48xf32, #tpu.memory_space<vmem>>, vector<8x48xf32>
      %c0_43 = arith.constant 0 : index
      %c0_44 = arith.constant 0 : index
      %61 = vector.load %arg8[%c0_43, %c0_44] : memref<1x48xf32, #tpu.memory_space<vmem>>, vector<1x48xf32>
      %cst_45 = arith.constant 0.000000e+00 : f32
      %62 = vector.broadcast %cst_45 : f32 to vector<32x8xf32>
      %c0_i32 = arith.constant 0 : i32
      %c7_i32 = arith.constant 7 : i32
      %63 = arith.subi %c7_i32, %c0_i32 : i32
      %c8_i32 = arith.constant 8 : i32
      %64 = arith.muli %c0_i32, %c8_i32 : i32
      %65 = tpu.assume_multiple %64, 8 : i32
      %c8_i32_46 = arith.constant 8 : i32
      %66 = arith.muli %63, %c8_i32_46 : i32
      %67 = tpu.assume_multiple %66, 8 : i32
      %68 = arith.index_cast %65 : i32 to index
      %c0_47 = arith.constant 0 : index
      %69 = vector.load %alloca[%68, %c0_47] : memref<64x24xf32, #tpu.memory_space<vmem>>, vector<8x24xf32>
      %70 = arith.index_cast %67 : i32 to index
      %c0_48 = arith.constant 0 : index
      %71 = vector.load %alloca_22[%70, %c0_48] : memref<64x24xf32, #tpu.memory_space<vmem>>, vector<8x24xf32>
      %72 = arith.index_cast %c0_i32 : i32 to index
      %73 = memref.load %arg1[%72] : memref<8xf32, #tpu.memory_space<smem>>
      %74 = arith.index_cast %63 : i32 to index
      %75 = memref.load %arg2[%74] : memref<8xf32, #tpu.memory_space<smem>>
      %76 = vector.extract_strided_slice %62 {offsets = [0, 0], sizes = [8, 8], strides = [1, 1]} : vector<32x8xf32> to vector<8x8xf32>
      %77 = vector.extract_strided_slice %62 {offsets = [8, 0], sizes = [8, 8], strides = [1, 1]} : vector<32x8xf32> to vector<8x8xf32>
      %78 = vector.broadcast %73 : f32 to vector<8x8xf32>
      %79 = arith.mulf %77, %78 : vector<8x8xf32>
      %80 = vector.extract_strided_slice %62 {offsets = [16, 0], sizes = [8, 8], strides = [1, 1]} : vector<32x8xf32> to vector<8x8xf32>
      %81 = vector.extract_strided_slice %62 {offsets = [24, 0], sizes = [8, 8], strides = [1, 1]} : vector<32x8xf32> to vector<8x8xf32>
      %82 = vector.broadcast %75 : f32 to vector<8x8xf32>
      %83 = arith.mulf %81, %82 : vector<8x8xf32>
      %84 = tpu.concatenate %76, %79, %80, %83 in 0 : vector<8x8xf32>, vector<8x8xf32>, vector<8x8xf32>, vector<8x8xf32> -> vector<32x8xf32>
      %cst_49 = arith.constant dense<0.000000e+00> : vector<32x48xf32>
      %85 = tpu.matmul %84, %60, %cst_49 {dimension_numbers = #tpu.dot_dimension_numbers<[1], [0], [0], [1], [0, 0, 1, 1], [], []>} : vector<32x8xf32>, vector<8x48xf32>, vector<32x48xf32> -> vector<32x48xf32>
      %86 = vector.broadcast %61 : vector<1x48xf32> to vector<32x48xf32>
      %87 = arith.addf %85, %86 : vector<32x48xf32>
      %88 = vector.extract_strided_slice %87 {offsets = [0, 0], sizes = [8, 24], strides = [1, 1]} : vector<32x48xf32> to vector<8x24xf32>
      %89 = vector.extract_strided_slice %69 {offsets = [0, 0], sizes = [8, 8], strides = [1, 1]} : vector<8x24xf32> to vector<8x8xf32>
      %90 = vector.extract_strided_slice %88 {offsets = [0, 0], sizes = [8, 8], strides = [1, 1]} : vector<8x24xf32> to vector<8x8xf32>
      %91 = arith.addf %89, %90 : vector<8x8xf32>
      %92 = arith.negf %91 : vector<8x8xf32>
      %93 = math.exp %92 : vector<8x8xf32>
      %cst_50 = arith.constant 1.000000e+00 : f32
      %94 = vector.broadcast %cst_50 : f32 to vector<8x8xf32>
      %95 = arith.addf %94, %93 : vector<8x8xf32>
      %96 = arith.divf %94, %95 : vector<8x8xf32>
      %97 = vector.extract_strided_slice %69 {offsets = [0, 8], sizes = [8, 8], strides = [1, 1]} : vector<8x24xf32> to vector<8x8xf32>
      %98 = vector.extract_strided_slice %88 {offsets = [0, 8], sizes = [8, 8], strides = [1, 1]} : vector<8x24xf32> to vector<8x8xf32>
      %99 = arith.addf %97, %98 : vector<8x8xf32>
      %100 = arith.negf %99 : vector<8x8xf32>
      %101 = math.exp %100 : vector<8x8xf32>
      %cst_51 = arith.constant 1.000000e+00 : f32
      %102 = vector.broadcast %cst_51 : f32 to vector<8x8xf32>
      %103 = arith.addf %102, %101 : vector<8x8xf32>
      %104 = arith.divf %102, %103 : vector<8x8xf32>
      %105 = vector.extract_strided_slice %69 {offsets = [0, 16], sizes = [8, 8], strides = [1, 1]} : vector<8x24xf32> to vector<8x8xf32>
      %106 = vector.extract_strided_slice %88 {offsets = [0, 16], sizes = [8, 8], strides = [1, 1]} : vector<8x24xf32> to vector<8x8xf32>
      %107 = arith.mulf %96, %106 : vector<8x8xf32>
      %108 = arith.addf %105, %107 : vector<8x8xf32>
      %109 = math.tanh %108 : vector<8x8xf32>
      %cst_52 = arith.constant 1.000000e+00 : f32
      %110 = vector.broadcast %cst_52 : f32 to vector<8x8xf32>
      %111 = arith.subf %110, %104 : vector<8x8xf32>
      %112 = arith.mulf %111, %109 : vector<8x8xf32>
      %113 = arith.mulf %104, %76 : vector<8x8xf32>
      %114 = arith.addf %112, %113 : vector<8x8xf32>
      %115 = vector.extract_strided_slice %87 {offsets = [8, 0], sizes = [8, 24], strides = [1, 1]} : vector<32x48xf32> to vector<8x24xf32>
      %116 = vector.extract_strided_slice %69 {offsets = [0, 0], sizes = [8, 8], strides = [1, 1]} : vector<8x24xf32> to vector<8x8xf32>
      %117 = vector.extract_strided_slice %115 {offsets = [0, 0], sizes = [8, 8], strides = [1, 1]} : vector<8x24xf32> to vector<8x8xf32>
      %118 = arith.addf %116, %117 : vector<8x8xf32>
      %119 = arith.negf %118 : vector<8x8xf32>
      %120 = math.exp %119 : vector<8x8xf32>
      %cst_53 = arith.constant 1.000000e+00 : f32
      %121 = vector.broadcast %cst_53 : f32 to vector<8x8xf32>
      %122 = arith.addf %121, %120 : vector<8x8xf32>
      %123 = arith.divf %121, %122 : vector<8x8xf32>
      %124 = vector.extract_strided_slice %69 {offsets = [0, 8], sizes = [8, 8], strides = [1, 1]} : vector<8x24xf32> to vector<8x8xf32>
      %125 = vector.extract_strided_slice %115 {offsets = [0, 8], sizes = [8, 8], strides = [1, 1]} : vector<8x24xf32> to vector<8x8xf32>
      %126 = arith.addf %124, %125 : vector<8x8xf32>
      %127 = arith.negf %126 : vector<8x8xf32>
      %128 = math.exp %127 : vector<8x8xf32>
      %cst_54 = arith.constant 1.000000e+00 : f32
      %129 = vector.broadcast %cst_54 : f32 to vector<8x8xf32>
      %130 = arith.addf %129, %128 : vector<8x8xf32>
      %131 = arith.divf %129, %130 : vector<8x8xf32>
      %132 = vector.extract_strided_slice %69 {offsets = [0, 16], sizes = [8, 8], strides = [1, 1]} : vector<8x24xf32> to vector<8x8xf32>
      %133 = vector.extract_strided_slice %115 {offsets = [0, 16], sizes = [8, 8], strides = [1, 1]} : vector<8x24xf32> to vector<8x8xf32>
      %134 = arith.mulf %123, %133 : vector<8x8xf32>
      %135 = arith.addf %132, %134 : vector<8x8xf32>
      %136 = math.tanh %135 : vector<8x8xf32>
      %cst_55 = arith.constant 1.000000e+00 : f32
      %137 = vector.broadcast %cst_55 : f32 to vector<8x8xf32>
      %138 = arith.subf %137, %131 : vector<8x8xf32>
      %139 = arith.mulf %138, %136 : vector<8x8xf32>
      %140 = arith.mulf %131, %79 : vector<8x8xf32>
      %141 = arith.addf %139, %140 : vector<8x8xf32>
      %142 = vector.extract_strided_slice %87 {offsets = [16, 24], sizes = [8, 24], strides = [1, 1]} : vector<32x48xf32> to vector<8x24xf32>
      %143 = vector.extract_strided_slice %71 {offsets = [0, 0], sizes = [8, 8], strides = [1, 1]} : vector<8x24xf32> to vector<8x8xf32>
      %144 = vector.extract_strided_slice %142 {offsets = [0, 0], sizes = [8, 8], strides = [1, 1]} : vector<8x24xf32> to vector<8x8xf32>
      %145 = arith.addf %143, %144 : vector<8x8xf32>
      %146 = arith.negf %145 : vector<8x8xf32>
      %147 = math.exp %146 : vector<8x8xf32>
      %cst_56 = arith.constant 1.000000e+00 : f32
      %148 = vector.broadcast %cst_56 : f32 to vector<8x8xf32>
      %149 = arith.addf %148, %147 : vector<8x8xf32>
      %150 = arith.divf %148, %149 : vector<8x8xf32>
      %151 = vector.extract_strided_slice %71 {offsets = [0, 8], sizes = [8, 8], strides = [1, 1]} : vector<8x24xf32> to vector<8x8xf32>
      %152 = vector.extract_strided_slice %142 {offsets = [0, 8], sizes = [8, 8], strides = [1, 1]} : vector<8x24xf32> to vector<8x8xf32>
      %153 = arith.addf %151, %152 : vector<8x8xf32>
      %154 = arith.negf %153 : vector<8x8xf32>
      %155 = math.exp %154 : vector<8x8xf32>
      %cst_57 = arith.constant 1.000000e+00 : f32
      %156 = vector.broadcast %cst_57 : f32 to vector<8x8xf32>
      %157 = arith.addf %156, %155 : vector<8x8xf32>
      %158 = arith.divf %156, %157 : vector<8x8xf32>
      %159 = vector.extract_strided_slice %71 {offsets = [0, 16], sizes = [8, 8], strides = [1, 1]} : vector<8x24xf32> to vector<8x8xf32>
      %160 = vector.extract_strided_slice %142 {offsets = [0, 16], sizes = [8, 8], strides = [1, 1]} : vector<8x24xf32> to vector<8x8xf32>
      %161 = arith.mulf %150, %160 : vector<8x8xf32>
      %162 = arith.addf %159, %161 : vector<8x8xf32>
      %163 = math.tanh %162 : vector<8x8xf32>
      %cst_58 = arith.constant 1.000000e+00 : f32
      %164 = vector.broadcast %cst_58 : f32 to vector<8x8xf32>
      %165 = arith.subf %164, %158 : vector<8x8xf32>
      %166 = arith.mulf %165, %163 : vector<8x8xf32>
      %167 = arith.mulf %158, %80 : vector<8x8xf32>
      %168 = arith.addf %166, %167 : vector<8x8xf32>
      %169 = vector.extract_strided_slice %87 {offsets = [24, 24], sizes = [8, 24], strides = [1, 1]} : vector<32x48xf32> to vector<8x24xf32>
      %170 = vector.extract_strided_slice %71 {offsets = [0, 0], sizes = [8, 8], strides = [1, 1]} : vector<8x24xf32> to vector<8x8xf32>
      %171 = vector.extract_strided_slice %169 {offsets = [0, 0], sizes = [8, 8], strides = [1, 1]} : vector<8x24xf32> to vector<8x8xf32>
      %172 = arith.addf %170, %171 : vector<8x8xf32>
      %173 = arith.negf %172 : vector<8x8xf32>
      %174 = math.exp %173 : vector<8x8xf32>
      %cst_59 = arith.constant 1.000000e+00 : f32
      %175 = vector.broadcast %cst_59 : f32 to vector<8x8xf32>
      %176 = arith.addf %175, %174 : vector<8x8xf32>
      %177 = arith.divf %175, %176 : vector<8x8xf32>
      %178 = vector.extract_strided_slice %71 {offsets = [0, 8], sizes = [8, 8], strides = [1, 1]} : vector<8x24xf32> to vector<8x8xf32>
      %179 = vector.extract_strided_slice %169 {offsets = [0, 8], sizes = [8, 8], strides = [1, 1]} : vector<8x24xf32> to vector<8x8xf32>
      %180 = arith.addf %178, %179 : vector<8x8xf32>
      %181 = arith.negf %180 : vector<8x8xf32>
      %182 = math.exp %181 : vector<8x8xf32>
      %cst_60 = arith.constant 1.000000e+00 : f32
      %183 = vector.broadcast %cst_60 : f32 to vector<8x8xf32>
      %184 = arith.addf %183, %182 : vector<8x8xf32>
      %185 = arith.divf %183, %184 : vector<8x8xf32>
      %186 = vector.extract_strided_slice %71 {offsets = [0, 16], sizes = [8, 8], strides = [1, 1]} : vector<8x24xf32> to vector<8x8xf32>
      %187 = vector.extract_strided_slice %169 {offsets = [0, 16], sizes = [8, 8], strides = [1, 1]} : vector<8x24xf32> to vector<8x8xf32>
      %188 = arith.mulf %177, %187 : vector<8x8xf32>
      %189 = arith.addf %186, %188 : vector<8x8xf32>
      %190 = math.tanh %189 : vector<8x8xf32>
      %cst_61 = arith.constant 1.000000e+00 : f32
      %191 = vector.broadcast %cst_61 : f32 to vector<8x8xf32>
      %192 = arith.subf %191, %185 : vector<8x8xf32>
      %193 = arith.mulf %192, %190 : vector<8x8xf32>
      %194 = arith.mulf %185, %83 : vector<8x8xf32>
      %195 = arith.addf %193, %194 : vector<8x8xf32>
      %196 = tpu.concatenate %114, %141, %168, %195 in 0 : vector<8x8xf32>, vector<8x8xf32>, vector<8x8xf32>, vector<8x8xf32> -> vector<32x8xf32>
      %197 = vector.extract_strided_slice %196 {offsets = [0, 0], sizes = [16, 8], strides = [1, 1]} : vector<32x8xf32> to vector<16x8xf32>
      %198 = arith.index_cast %c0_i32 : i32 to index
      %c0_62 = arith.constant 0 : index
      %c0_63 = arith.constant 0 : index
      %199 = vector.load %arg23[%198, %c0_62, %c0_63] : memref<8x16x8xf32, #tpu.memory_space<vmem>>, vector<1x16x8xf32>
      %200 = vector.shape_cast %199 : vector<1x16x8xf32> to vector<16x8xf32>
      %201 = vector.shape_cast %197 : vector<16x8xf32> to vector<1x16x8xf32>
      tpu.vector_store %arg23[%198, %c0_62, %c0_63], %201 {strides = array<i32>} : memref<8x16x8xf32, #tpu.memory_space<vmem>>, vector<1x16x8xf32>,
      %202 = vector.extract_strided_slice %196 {offsets = [16, 0], sizes = [16, 8], strides = [1, 1]} : vector<32x8xf32> to vector<16x8xf32>
      %203 = arith.index_cast %63 : i32 to index
      %c0_64 = arith.constant 0 : index
      %c0_65 = arith.constant 0 : index
      %204 = vector.load %arg24[%203, %c0_64, %c0_65] : memref<8x16x8xf32, #tpu.memory_space<vmem>>, vector<1x16x8xf32>
      %205 = vector.shape_cast %204 : vector<1x16x8xf32> to vector<16x8xf32>
      %206 = vector.shape_cast %202 : vector<16x8xf32> to vector<1x16x8xf32>
      tpu.vector_store %arg24[%203, %c0_64, %c0_65], %206 {strides = array<i32>} : memref<8x16x8xf32, #tpu.memory_space<vmem>>, vector<1x16x8xf32>,
      %c1_i32 = arith.constant 1 : i32
      %c7_i32_66 = arith.constant 7 : i32
      %207 = arith.subi %c7_i32_66, %c1_i32 : i32
      %c8_i32_67 = arith.constant 8 : i32
      %208 = arith.muli %c1_i32, %c8_i32_67 : i32
      %209 = tpu.assume_multiple %208, 8 : i32
      %c8_i32_68 = arith.constant 8 : i32
      %210 = arith.muli %207, %c8_i32_68 : i32
      %211 = tpu.assume_multiple %210, 8 : i32
      %212 = arith.index_cast %209 : i32 to index
      %c0_69 = arith.constant 0 : index
      %213 = vector.load %alloca[%212, %c0_69] : memref<64x24xf32, #tpu.memory_space<vmem>>, vector<8x24xf32>
      %214 = arith.index_cast %211 : i32 to index
      %c0_70 = arith.constant 0 : index
      %215 = vector.load %alloca_22[%214, %c0_70] : memref<64x24xf32, #tpu.memory_space<vmem>>, vector<8x24xf32>
      %216 = arith.index_cast %c1_i32 : i32 to index
      %217 = memref.load %arg1[%216] : memref<8xf32, #tpu.memory_space<smem>>
      %218 = arith.index_cast %207 : i32 to index
      %219 = memref.load %arg2[%218] : memref<8xf32, #tpu.memory_space<smem>>
      %220 = vector.extract_strided_slice %196 {offsets = [0, 0], sizes = [8, 8], strides = [1, 1]} : vector<32x8xf32> to vector<8x8xf32>
      %221 = vector.extract_strided_slice %196 {offsets = [8, 0], sizes = [8, 8], strides = [1, 1]} : vector<32x8xf32> to vector<8x8xf32>
      %222 = vector.broadcast %217 : f32 to vector<8x8xf32>
      %223 = arith.mulf %221, %222 : vector<8x8xf32>
      %224 = vector.extract_strided_slice %196 {offsets = [16, 0], sizes = [8, 8], strides = [1, 1]} : vector<32x8xf32> to vector<8x8xf32>
      %225 = vector.extract_strided_slice %196 {offsets = [24, 0], sizes = [8, 8], strides = [1, 1]} : vector<32x8xf32> to vector<8x8xf32>
      %226 = vector.broadcast %219 : f32 to vector<8x8xf32>
      %227 = arith.mulf %225, %226 : vector<8x8xf32>
      %228 = tpu.concatenate %220, %223, %224, %227 in 0 : vector<8x8xf32>, vector<8x8xf32>, vector<8x8xf32>, vector<8x8xf32> -> vector<32x8xf32>
      %cst_71 = arith.constant dense<0.000000e+00> : vector<32x48xf32>
      %229 = tpu.matmul %228, %60, %cst_71 {dimension_numbers = #tpu.dot_dimension_numbers<[1], [0], [0], [1], [0, 0, 1, 1], [], []>} : vector<32x8xf32>, vector<8x48xf32>, vector<32x48xf32> -> vector<32x48xf32>
      %230 = vector.broadcast %61 : vector<1x48xf32> to vector<32x48xf32>
      %231 = arith.addf %229, %230 : vector<32x48xf32>
      %232 = vector.extract_strided_slice %231 {offsets = [0, 0], sizes = [8, 24], strides = [1, 1]} : vector<32x48xf32> to vector<8x24xf32>
      %233 = vector.extract_strided_slice %213 {offsets = [0, 0], sizes = [8, 8], strides = [1, 1]} : vector<8x24xf32> to vector<8x8xf32>
      %234 = vector.extract_strided_slice %232 {offsets = [0, 0], sizes = [8, 8], strides = [1, 1]} : vector<8x24xf32> to vector<8x8xf32>
      %235 = arith.addf %233, %234 : vector<8x8xf32>
      %236 = arith.negf %235 : vector<8x8xf32>
      %237 = math.exp %236 : vector<8x8xf32>
      %cst_72 = arith.constant 1.000000e+00 : f32
      %238 = vector.broadcast %cst_72 : f32 to vector<8x8xf32>
      %239 = arith.addf %238, %237 : vector<8x8xf32>
      %240 = arith.divf %238, %239 : vector<8x8xf32>
      %241 = vector.extract_strided_slice %213 {offsets = [0, 8], sizes = [8, 8], strides = [1, 1]} : vector<8x24xf32> to vector<8x8xf32>
      %242 = vector.extract_strided_slice %232 {offsets = [0, 8], sizes = [8, 8], strides = [1, 1]} : vector<8x24xf32> to vector<8x8xf32>
      %243 = arith.addf %241, %242 : vector<8x8xf32>
      %244 = arith.negf %243 : vector<8x8xf32>
      %245 = math.exp %244 : vector<8x8xf32>
      %cst_73 = arith.constant 1.000000e+00 : f32
      %246 = vector.broadcast %cst_73 : f32 to vector<8x8xf32>
      %247 = arith.addf %246, %245 : vector<8x8xf32>
      %248 = arith.divf %246, %247 : vector<8x8xf32>
      %249 = vector.extract_strided_slice %213 {offsets = [0, 16], sizes = [8, 8], strides = [1, 1]} : vector<8x24xf32> to vector<8x8xf32>
      %250 = vector.extract_strided_slice %232 {offsets = [0, 16], sizes = [8, 8], strides = [1, 1]} : vector<8x24xf32> to vector<8x8xf32>
      %251 = arith.mulf %240, %250 : vector<8x8xf32>
      %252 = arith.addf %249, %251 : vector<8x8xf32>
      %253 = math.tanh %252 : vector<8x8xf32>
      %cst_74 = arith.constant 1.000000e+00 : f32
      %254 = vector.broadcast %cst_74 : f32 to vector<8x8xf32>
      %255 = arith.subf %254, %248 : vector<8x8xf32>
      %256 = arith.mulf %255, %253 : vector<8x8xf32>
      %257 = arith.mulf %248, %220 : vector<8x8xf32>
      %258 = arith.addf %256, %257 : vector<8x8xf32>
      %259 = vector.extract_strided_slice %231 {offsets = [8, 0], sizes = [8, 24], strides = [1, 1]} : vector<32x48xf32> to vector<8x24xf32>
      %260 = vector.extract_strided_slice %213 {offsets = [0, 0], sizes = [8, 8], strides = [1, 1]} : vector<8x24xf32> to vector<8x8xf32>
      %261 = vector.extract_strided_slice %259 {offsets = [0, 0], sizes = [8, 8], strides = [1, 1]} : vector<8x24xf32> to vector<8x8xf32>
      %262 = arith.addf %260, %261 : vector<8x8xf32>
      %263 = arith.negf %262 : vector<8x8xf32>
      %264 = math.exp %263 : vector<8x8xf32>
      %cst_75 = arith.constant 1.000000e+00 : f32
      %265 = vector.broadcast %cst_75 : f32 to vector<8x8xf32>
      %266 = arith.addf %265, %264 : vector<8x8xf32>
      %267 = arith.divf %265, %266 : vector<8x8xf32>
      %268 = vector.extract_strided_slice %213 {offsets = [0, 8], sizes = [8, 8], strides = [1, 1]} : vector<8x24xf32> to vector<8x8xf32>
      %269 = vector.extract_strided_slice %259 {offsets = [0, 8], sizes = [8, 8], strides = [1, 1]} : vector<8x24xf32> to vector<8x8xf32>
      %270 = arith.addf %268, %269 : vector<8x8xf32>
      %271 = arith.negf %270 : vector<8x8xf32>
      %272 = math.exp %271 : vector<8x8xf32>
      %cst_76 = arith.constant 1.000000e+00 : f32
      %273 = vector.broadcast %cst_76 : f32 to vector<8x8xf32>
      %274 = arith.addf %273, %272 : vector<8x8xf32>
      %275 = arith.divf %273, %274 : vector<8x8xf32>
      %276 = vector.extract_strided_slice %213 {offsets = [0, 16], sizes = [8, 8], strides = [1, 1]} : vector<8x24xf32> to vector<8x8xf32>
      %277 = vector.extract_strided_slice %259 {offsets = [0, 16], sizes = [8, 8], strides = [1, 1]} : vector<8x24xf32> to vector<8x8xf32>
      %278 = arith.mulf %267, %277 : vector<8x8xf32>
      %279 = arith.addf %276, %278 : vector<8x8xf32>
      %280 = math.tanh %279 : vector<8x8xf32>
      %cst_77 = arith.constant 1.000000e+00 : f32
      %281 = vector.broadcast %cst_77 : f32 to vector<8x8xf32>
      %282 = arith.subf %281, %275 : vector<8x8xf32>
      %283 = arith.mulf %282, %280 : vector<8x8xf32>
      %284 = arith.mulf %275, %223 : vector<8x8xf32>
      %285 = arith.addf %283, %284 : vector<8x8xf32>
      %286 = vector.extract_strided_slice %231 {offsets = [16, 24], sizes = [8, 24], strides = [1, 1]} : vector<32x48xf32> to vector<8x24xf32>
      %287 = vector.extract_strided_slice %215 {offsets = [0, 0], sizes = [8, 8], strides = [1, 1]} : vector<8x24xf32> to vector<8x8xf32>
      %288 = vector.extract_strided_slice %286 {offsets = [0, 0], sizes = [8, 8], strides = [1, 1]} : vector<8x24xf32> to vector<8x8xf32>
      %289 = arith.addf %287, %288 : vector<8x8xf32>
      %290 = arith.negf %289 : vector<8x8xf32>
      %291 = math.exp %290 : vector<8x8xf32>
      %cst_78 = arith.constant 1.000000e+00 : f32
      %292 = vector.broadcast %cst_78 : f32 to vector<8x8xf32>
      %293 = arith.addf %292, %291 : vector<8x8xf32>
      %294 = arith.divf %292, %293 : vector<8x8xf32>
      %295 = vector.extract_strided_slice %215 {offsets = [0, 8], sizes = [8, 8], strides = [1, 1]} : vector<8x24xf32> to vector<8x8xf32>
      %296 = vector.extract_strided_slice %286 {offsets = [0, 8], sizes = [8, 8], strides = [1, 1]} : vector<8x24xf32> to vector<8x8xf32>
      %297 = arith.addf %295, %296 : vector<8x8xf32>
      %298 = arith.negf %297 : vector<8x8xf32>
      %299 = math.exp %298 : vector<8x8xf32>
      %cst_79 = arith.constant 1.000000e+00 : f32
      %300 = vector.broadcast %cst_79 : f32 to vector<8x8xf32>
      %301 = arith.addf %300, %299 : vector<8x8xf32>
      %302 = arith.divf %300, %301 : vector<8x8xf32>
      %303 = vector.extract_strided_slice %215 {offsets = [0, 16], sizes = [8, 8], strides = [1, 1]} : vector<8x24xf32> to vector<8x8xf32>
      %304 = vector.extract_strided_slice %286 {offsets = [0, 16], sizes = [8, 8], strides = [1, 1]} : vector<8x24xf32> to vector<8x8xf32>
      %305 = arith.mulf %294, %304 : vector<8x8xf32>
      %306 = arith.addf %303, %305 : vector<8x8xf32>
      %307 = math.tanh %306 : vector<8x8xf32>
      %cst_80 = arith.constant 1.000000e+00 : f32
      %308 = vector.broadcast %cst_80 : f32 to vector<8x8xf32>
      %309 = arith.subf %308, %302 : vector<8x8xf32>
      %310 = arith.mulf %309, %307 : vector<8x8xf32>
      %311 = arith.mulf %302, %224 : vector<8x8xf32>
      %312 = arith.addf %310, %311 : vector<8x8xf32>
      %313 = vector.extract_strided_slice %231 {offsets = [24, 24], sizes = [8, 24], strides = [1, 1]} : vector<32x48xf32> to vector<8x24xf32>
      %314 = vector.extract_strided_slice %215 {offsets = [0, 0], sizes = [8, 8], strides = [1, 1]} : vector<8x24xf32> to vector<8x8xf32>
      %315 = vector.extract_strided_slice %313 {offsets = [0, 0], sizes = [8, 8], strides = [1, 1]} : vector<8x24xf32> to vector<8x8xf32>
      %316 = arith.addf %314, %315 : vector<8x8xf32>
      %317 = arith.negf %316 : vector<8x8xf32>
      %318 = math.exp %317 : vector<8x8xf32>
      %cst_81 = arith.constant 1.000000e+00 : f32
      %319 = vector.broadcast %cst_81 : f32 to vector<8x8xf32>
      %320 = arith.addf %319, %318 : vector<8x8xf32>
      %321 = arith.divf %319, %320 : vector<8x8xf32>
      %322 = vector.extract_strided_slice %215 {offsets = [0, 8], sizes = [8, 8], strides = [1, 1]} : vector<8x24xf32> to vector<8x8xf32>
      %323 = vector.extract_strided_slice %313 {offsets = [0, 8], sizes = [8, 8], strides = [1, 1]} : vector<8x24xf32> to vector<8x8xf32>
      %324 = arith.addf %322, %323 : vector<8x8xf32>
      %325 = arith.negf %324 : vector<8x8xf32>
      %326 = math.exp %325 : vector<8x8xf32>
      %cst_82 = arith.constant 1.000000e+00 : f32
      %327 = vector.broadcast %cst_82 : f32 to vector<8x8xf32>
      %328 = arith.addf %327, %326 : vector<8x8xf32>
      %329 = arith.divf %327, %328 : vector<8x8xf32>
      %330 = vector.extract_strided_slice %215 {offsets = [0, 16], sizes = [8, 8], strides = [1, 1]} : vector<8x24xf32> to vector<8x8xf32>
      %331 = vector.extract_strided_slice %313 {offsets = [0, 16], sizes = [8, 8], strides = [1, 1]} : vector<8x24xf32> to vector<8x8xf32>
      %332 = arith.mulf %321, %331 : vector<8x8xf32>
      %333 = arith.addf %330, %332 : vector<8x8xf32>
      %334 = math.tanh %333 : vector<8x8xf32>
      %cst_83 = arith.constant 1.000000e+00 : f32
      %335 = vector.broadcast %cst_83 : f32 to vector<8x8xf32>
      %336 = arith.subf %335, %329 : vector<8x8xf32>
      %337 = arith.mulf %336, %334 : vector<8x8xf32>
      %338 = arith.mulf %329, %227 : vector<8x8xf32>
      %339 = arith.addf %337, %338 : vector<8x8xf32>
      %340 = tpu.concatenate %258, %285, %312, %339 in 0 : vector<8x8xf32>, vector<8x8xf32>, vector<8x8xf32>, vector<8x8xf32> -> vector<32x8xf32>
      %341 = vector.extract_strided_slice %340 {offsets = [0, 0], sizes = [16, 8], strides = [1, 1]} : vector<32x8xf32> to vector<16x8xf32>
      %342 = arith.index_cast %c1_i32 : i32 to index
      %c0_84 = arith.constant 0 : index
      %c0_85 = arith.constant 0 : index
      %343 = vector.load %arg23[%342, %c0_84, %c0_85] : memref<8x16x8xf32, #tpu.memory_space<vmem>>, vector<1x16x8xf32>
      %344 = vector.shape_cast %343 : vector<1x16x8xf32> to vector<16x8xf32>
      %345 = vector.shape_cast %341 : vector<16x8xf32> to vector<1x16x8xf32>
      tpu.vector_store %arg23[%342, %c0_84, %c0_85], %345 {strides = array<i32>} : memref<8x16x8xf32, #tpu.memory_space<vmem>>, vector<1x16x8xf32>,
      %346 = vector.extract_strided_slice %340 {offsets = [16, 0], sizes = [16, 8], strides = [1, 1]} : vector<32x8xf32> to vector<16x8xf32>
      %347 = arith.index_cast %207 : i32 to index
      %c0_86 = arith.constant 0 : index
      %c0_87 = arith.constant 0 : index
      %348 = vector.load %arg24[%347, %c0_86, %c0_87] : memref<8x16x8xf32, #tpu.memory_space<vmem>>, vector<1x16x8xf32>
      %349 = vector.shape_cast %348 : vector<1x16x8xf32> to vector<16x8xf32>
      %350 = vector.shape_cast %346 : vector<16x8xf32> to vector<1x16x8xf32>
      tpu.vector_store %arg24[%347, %c0_86, %c0_87], %350 {strides = array<i32>} : memref<8x16x8xf32, #tpu.memory_space<vmem>>, vector<1x16x8xf32>,
      %c2_i32 = arith.constant 2 : i32
      %c7_i32_88 = arith.constant 7 : i32
      %351 = arith.subi %c7_i32_88, %c2_i32 : i32
      %c8_i32_89 = arith.constant 8 : i32
      %352 = arith.muli %c2_i32, %c8_i32_89 : i32
      %353 = tpu.assume_multiple %352, 8 : i32
      %c8_i32_90 = arith.constant 8 : i32
      %354 = arith.muli %351, %c8_i32_90 : i32
      %355 = tpu.assume_multiple %354, 8 : i32
      %356 = arith.index_cast %353 : i32 to index
      %c0_91 = arith.constant 0 : index
      %357 = vector.load %alloca[%356, %c0_91] : memref<64x24xf32, #tpu.memory_space<vmem>>, vector<8x24xf32>
      %358 = arith.index_cast %355 : i32 to index
      %c0_92 = arith.constant 0 : index
      %359 = vector.load %alloca_22[%358, %c0_92] : memref<64x24xf32, #tpu.memory_space<vmem>>, vector<8x24xf32>
      %360 = arith.index_cast %c2_i32 : i32 to index
      %361 = memref.load %arg1[%360] : memref<8xf32, #tpu.memory_space<smem>>
      %362 = arith.index_cast %351 : i32 to index
      %363 = memref.load %arg2[%362] : memref<8xf32, #tpu.memory_space<smem>>
      %364 = vector.extract_strided_slice %340 {offsets = [0, 0], sizes = [8, 8], strides = [1, 1]} : vector<32x8xf32> to vector<8x8xf32>
      %365 = vector.extract_strided_slice %340 {offsets = [8, 0], sizes = [8, 8], strides = [1, 1]} : vector<32x8xf32> to vector<8x8xf32>
      %366 = vector.broadcast %361 : f32 to vector<8x8xf32>
      %367 = arith.mulf %365, %366 : vector<8x8xf32>
      %368 = vector.extract_strided_slice %340 {offsets = [16, 0], sizes = [8, 8], strides = [1, 1]} : vector<32x8xf32> to vector<8x8xf32>
      %369 = vector.extract_strided_slice %340 {offsets = [24, 0], sizes = [8, 8], strides = [1, 1]} : vector<32x8xf32> to vector<8x8xf32>
      %370 = vector.broadcast %363 : f32 to vector<8x8xf32>
      %371 = arith.mulf %369, %370 : vector<8x8xf32>
      %372 = tpu.concatenate %364, %367, %368, %371 in 0 : vector<8x8xf32>, vector<8x8xf32>, vector<8x8xf32>, vector<8x8xf32> -> vector<32x8xf32>
      %cst_93 = arith.constant dense<0.000000e+00> : vector<32x48xf32>
      %373 = tpu.matmul %372, %60, %cst_93 {dimension_numbers = #tpu.dot_dimension_numbers<[1], [0], [0], [1], [0, 0, 1, 1], [], []>} : vector<32x8xf32>, vector<8x48xf32>, vector<32x48xf32> -> vector<32x48xf32>
      %374 = vector.broadcast %61 : vector<1x48xf32> to vector<32x48xf32>
      %375 = arith.addf %373, %374 : vector<32x48xf32>
      %376 = vector.extract_strided_slice %375 {offsets = [0, 0], sizes = [8, 24], strides = [1, 1]} : vector<32x48xf32> to vector<8x24xf32>
      %377 = vector.extract_strided_slice %357 {offsets = [0, 0], sizes = [8, 8], strides = [1, 1]} : vector<8x24xf32> to vector<8x8xf32>
      %378 = vector.extract_strided_slice %376 {offsets = [0, 0], sizes = [8, 8], strides = [1, 1]} : vector<8x24xf32> to vector<8x8xf32>
      %379 = arith.addf %377, %378 : vector<8x8xf32>
      %380 = arith.negf %379 : vector<8x8xf32>
      %381 = math.exp %380 : vector<8x8xf32>
      %cst_94 = arith.constant 1.000000e+00 : f32
      %382 = vector.broadcast %cst_94 : f32 to vector<8x8xf32>
      %383 = arith.addf %382, %381 : vector<8x8xf32>
      %384 = arith.divf %382, %383 : vector<8x8xf32>
      %385 = vector.extract_strided_slice %357 {offsets = [0, 8], sizes = [8, 8], strides = [1, 1]} : vector<8x24xf32> to vector<8x8xf32>
      %386 = vector.extract_strided_slice %376 {offsets = [0, 8], sizes = [8, 8], strides = [1, 1]} : vector<8x24xf32> to vector<8x8xf32>
      %387 = arith.addf %385, %386 : vector<8x8xf32>
      %388 = arith.negf %387 : vector<8x8xf32>
      %389 = math.exp %388 : vector<8x8xf32>
      %cst_95 = arith.constant 1.000000e+00 : f32
      %390 = vector.broadcast %cst_95 : f32 to vector<8x8xf32>
      %391 = arith.addf %390, %389 : vector<8x8xf32>
      %392 = arith.divf %390, %391 : vector<8x8xf32>
      %393 = vector.extract_strided_slice %357 {offsets = [0, 16], sizes = [8, 8], strides = [1, 1]} : vector<8x24xf32> to vector<8x8xf32>
      %394 = vector.extract_strided_slice %376 {offsets = [0, 16], sizes = [8, 8], strides = [1, 1]} : vector<8x24xf32> to vector<8x8xf32>
      %395 = arith.mulf %384, %394 : vector<8x8xf32>
      %396 = arith.addf %393, %395 : vector<8x8xf32>
      %397 = math.tanh %396 : vector<8x8xf32>
      %cst_96 = arith.constant 1.000000e+00 : f32
      %398 = vector.broadcast %cst_96 : f32 to vector<8x8xf32>
      %399 = arith.subf %398, %392 : vector<8x8xf32>
      %400 = arith.mulf %399, %397 : vector<8x8xf32>
      %401 = arith.mulf %392, %364 : vector<8x8xf32>
      %402 = arith.addf %400, %401 : vector<8x8xf32>
      %403 = vector.extract_strided_slice %375 {offsets = [8, 0], sizes = [8, 24], strides = [1, 1]} : vector<32x48xf32> to vector<8x24xf32>
      %404 = vector.extract_strided_slice %357 {offsets = [0, 0], sizes = [8, 8], strides = [1, 1]} : vector<8x24xf32> to vector<8x8xf32>
      %405 = vector.extract_strided_slice %403 {offsets = [0, 0], sizes = [8, 8], strides = [1, 1]} : vector<8x24xf32> to vector<8x8xf32>
      %406 = arith.addf %404, %405 : vector<8x8xf32>
      %407 = arith.negf %406 : vector<8x8xf32>
      %408 = math.exp %407 : vector<8x8xf32>
      %cst_97 = arith.constant 1.000000e+00 : f32
      %409 = vector.broadcast %cst_97 : f32 to vector<8x8xf32>
      %410 = arith.addf %409, %408 : vector<8x8xf32>
      %411 = arith.divf %409, %410 : vector<8x8xf32>
      %412 = vector.extract_strided_slice %357 {offsets = [0, 8], sizes = [8, 8], strides = [1, 1]} : vector<8x24xf32> to vector<8x8xf32>
      %413 = vector.extract_strided_slice %403 {offsets = [0, 8], sizes = [8, 8], strides = [1, 1]} : vector<8x24xf32> to vector<8x8xf32>
      %414 = arith.addf %412, %413 : vector<8x8xf32>
      %415 = arith.negf %414 : vector<8x8xf32>
      %416 = math.exp %415 : vector<8x8xf32>
      %cst_98 = arith.constant 1.000000e+00 : f32
      %417 = vector.broadcast %cst_98 : f32 to vector<8x8xf32>
      %418 = arith.addf %417, %416 : vector<8x8xf32>
      %419 = arith.divf %417, %418 : vector<8x8xf32>
      %420 = vector.extract_strided_slice %357 {offsets = [0, 16], sizes = [8, 8], strides = [1, 1]} : vector<8x24xf32> to vector<8x8xf32>
      %421 = vector.extract_strided_slice %403 {offsets = [0, 16], sizes = [8, 8], strides = [1, 1]} : vector<8x24xf32> to vector<8x8xf32>
      %422 = arith.mulf %411, %421 : vector<8x8xf32>
      %423 = arith.addf %420, %422 : vector<8x8xf32>
      %424 = math.tanh %423 : vector<8x8xf32>
      %cst_99 = arith.constant 1.000000e+00 : f32
      %425 = vector.broadcast %cst_99 : f32 to vector<8x8xf32>
      %426 = arith.subf %425, %419 : vector<8x8xf32>
      %427 = arith.mulf %426, %424 : vector<8x8xf32>
      %428 = arith.mulf %419, %367 : vector<8x8xf32>
      %429 = arith.addf %427, %428 : vector<8x8xf32>
      %430 = vector.extract_strided_slice %375 {offsets = [16, 24], sizes = [8, 24], strides = [1, 1]} : vector<32x48xf32> to vector<8x24xf32>
      %431 = vector.extract_strided_slice %359 {offsets = [0, 0], sizes = [8, 8], strides = [1, 1]} : vector<8x24xf32> to vector<8x8xf32>
      %432 = vector.extract_strided_slice %430 {offsets = [0, 0], sizes = [8, 8], strides = [1, 1]} : vector<8x24xf32> to vector<8x8xf32>
      %433 = arith.addf %431, %432 : vector<8x8xf32>
      %434 = arith.negf %433 : vector<8x8xf32>
      %435 = math.exp %434 : vector<8x8xf32>
      %cst_100 = arith.constant 1.000000e+00 : f32
      %436 = vector.broadcast %cst_100 : f32 to vector<8x8xf32>
      %437 = arith.addf %436, %435 : vector<8x8xf32>
      %438 = arith.divf %436, %437 : vector<8x8xf32>
      %439 = vector.extract_strided_slice %359 {offsets = [0, 8], sizes = [8, 8], strides = [1, 1]} : vector<8x24xf32> to vector<8x8xf32>
      %440 = vector.extract_strided_slice %430 {offsets = [0, 8], sizes = [8, 8], strides = [1, 1]} : vector<8x24xf32> to vector<8x8xf32>
      %441 = arith.addf %439, %440 : vector<8x8xf32>
      %442 = arith.negf %441 : vector<8x8xf32>
      %443 = math.exp %442 : vector<8x8xf32>
      %cst_101 = arith.constant 1.000000e+00 : f32
      %444 = vector.broadcast %cst_101 : f32 to vector<8x8xf32>
      %445 = arith.addf %444, %443 : vector<8x8xf32>
      %446 = arith.divf %444, %445 : vector<8x8xf32>
      %447 = vector.extract_strided_slice %359 {offsets = [0, 16], sizes = [8, 8], strides = [1, 1]} : vector<8x24xf32> to vector<8x8xf32>
      %448 = vector.extract_strided_slice %430 {offsets = [0, 16], sizes = [8, 8], strides = [1, 1]} : vector<8x24xf32> to vector<8x8xf32>
      %449 = arith.mulf %438, %448 : vector<8x8xf32>
      %450 = arith.addf %447, %449 : vector<8x8xf32>
      %451 = math.tanh %450 : vector<8x8xf32>
      %cst_102 = arith.constant 1.000000e+00 : f32
      %452 = vector.broadcast %cst_102 : f32 to vector<8x8xf32>
      %453 = arith.subf %452, %446 : vector<8x8xf32>
      %454 = arith.mulf %453, %451 : vector<8x8xf32>
      %455 = arith.mulf %446, %368 : vector<8x8xf32>
      %456 = arith.addf %454, %455 : vector<8x8xf32>
      %457 = vector.extract_strided_slice %375 {offsets = [24, 24], sizes = [8, 24], strides = [1, 1]} : vector<32x48xf32> to vector<8x24xf32>
      %458 = vector.extract_strided_slice %359 {offsets = [0, 0], sizes = [8, 8], strides = [1, 1]} : vector<8x24xf32> to vector<8x8xf32>
      %459 = vector.extract_strided_slice %457 {offsets = [0, 0], sizes = [8, 8], strides = [1, 1]} : vector<8x24xf32> to vector<8x8xf32>
      %460 = arith.addf %458, %459 : vector<8x8xf32>
      %461 = arith.negf %460 : vector<8x8xf32>
      %462 = math.exp %461 : vector<8x8xf32>
      %cst_103 = arith.constant 1.000000e+00 : f32
      %463 = vector.broadcast %cst_103 : f32 to vector<8x8xf32>
      %464 = arith.addf %463, %462 : vector<8x8xf32>
      %465 = arith.divf %463, %464 : vector<8x8xf32>
      %466 = vector.extract_strided_slice %359 {offsets = [0, 8], sizes = [8, 8], strides = [1, 1]} : vector<8x24xf32> to vector<8x8xf32>
      %467 = vector.extract_strided_slice %457 {offsets = [0, 8], sizes = [8, 8], strides = [1, 1]} : vector<8x24xf32> to vector<8x8xf32>
      %468 = arith.addf %466, %467 : vector<8x8xf32>
      %469 = arith.negf %468 : vector<8x8xf32>
      %470 = math.exp %469 : vector<8x8xf32>
      %cst_104 = arith.constant 1.000000e+00 : f32
      %471 = vector.broadcast %cst_104 : f32 to vector<8x8xf32>
      %472 = arith.addf %471, %470 : vector<8x8xf32>
      %473 = arith.divf %471, %472 : vector<8x8xf32>
      %474 = vector.extract_strided_slice %359 {offsets = [0, 16], sizes = [8, 8], strides = [1, 1]} : vector<8x24xf32> to vector<8x8xf32>
      %475 = vector.extract_strided_slice %457 {offsets = [0, 16], sizes = [8, 8], strides = [1, 1]} : vector<8x24xf32> to vector<8x8xf32>
      %476 = arith.mulf %465, %475 : vector<8x8xf32>
      %477 = arith.addf %474, %476 : vector<8x8xf32>
      %478 = math.tanh %477 : vector<8x8xf32>
      %cst_105 = arith.constant 1.000000e+00 : f32
      %479 = vector.broadcast %cst_105 : f32 to vector<8x8xf32>
      %480 = arith.subf %479, %473 : vector<8x8xf32>
      %481 = arith.mulf %480, %478 : vector<8x8xf32>
      %482 = arith.mulf %473, %371 : vector<8x8xf32>
      %483 = arith.addf %481, %482 : vector<8x8xf32>
      %484 = tpu.concatenate %402, %429, %456, %483 in 0 : vector<8x8xf32>, vector<8x8xf32>, vector<8x8xf32>, vector<8x8xf32> -> vector<32x8xf32>
      %485 = vector.extract_strided_slice %484 {offsets = [0, 0], sizes = [16, 8], strides = [1, 1]} : vector<32x8xf32> to vector<16x8xf32>
      %486 = arith.index_cast %c2_i32 : i32 to index
      %c0_106 = arith.constant 0 : index
      %c0_107 = arith.constant 0 : index
      %487 = vector.load %arg23[%486, %c0_106, %c0_107] : memref<8x16x8xf32, #tpu.memory_space<vmem>>, vector<1x16x8xf32>
      %488 = vector.shape_cast %487 : vector<1x16x8xf32> to vector<16x8xf32>
      %489 = vector.shape_cast %485 : vector<16x8xf32> to vector<1x16x8xf32>
      tpu.vector_store %arg23[%486, %c0_106, %c0_107], %489 {strides = array<i32>} : memref<8x16x8xf32, #tpu.memory_space<vmem>>, vector<1x16x8xf32>,
      %490 = vector.extract_strided_slice %484 {offsets = [16, 0], sizes = [16, 8], strides = [1, 1]} : vector<32x8xf32> to vector<16x8xf32>
      %491 = arith.index_cast %351 : i32 to index
      %c0_108 = arith.constant 0 : index
      %c0_109 = arith.constant 0 : index
      %492 = vector.load %arg24[%491, %c0_108, %c0_109] : memref<8x16x8xf32, #tpu.memory_space<vmem>>, vector<1x16x8xf32>
      %493 = vector.shape_cast %492 : vector<1x16x8xf32> to vector<16x8xf32>
      %494 = vector.shape_cast %490 : vector<16x8xf32> to vector<1x16x8xf32>
      tpu.vector_store %arg24[%491, %c0_108, %c0_109], %494 {strides = array<i32>} : memref<8x16x8xf32, #tpu.memory_space<vmem>>, vector<1x16x8xf32>,
      %c3_i32 = arith.constant 3 : i32
      %c7_i32_110 = arith.constant 7 : i32
      %495 = arith.subi %c7_i32_110, %c3_i32 : i32
      %c8_i32_111 = arith.constant 8 : i32
      %496 = arith.muli %c3_i32, %c8_i32_111 : i32
      %497 = tpu.assume_multiple %496, 8 : i32
      %c8_i32_112 = arith.constant 8 : i32
      %498 = arith.muli %495, %c8_i32_112 : i32
      %499 = tpu.assume_multiple %498, 8 : i32
      %500 = arith.index_cast %497 : i32 to index
      %c0_113 = arith.constant 0 : index
      %501 = vector.load %alloca[%500, %c0_113] : memref<64x24xf32, #tpu.memory_space<vmem>>, vector<8x24xf32>
      %502 = arith.index_cast %499 : i32 to index
      %c0_114 = arith.constant 0 : index
      %503 = vector.load %alloca_22[%502, %c0_114] : memref<64x24xf32, #tpu.memory_space<vmem>>, vector<8x24xf32>
      %504 = arith.index_cast %c3_i32 : i32 to index
      %505 = memref.load %arg1[%504] : memref<8xf32, #tpu.memory_space<smem>>
      %506 = arith.index_cast %495 : i32 to index
      %507 = memref.load %arg2[%506] : memref<8xf32, #tpu.memory_space<smem>>
      %508 = vector.extract_strided_slice %484 {offsets = [0, 0], sizes = [8, 8], strides = [1, 1]} : vector<32x8xf32> to vector<8x8xf32>
      %509 = vector.extract_strided_slice %484 {offsets = [8, 0], sizes = [8, 8], strides = [1, 1]} : vector<32x8xf32> to vector<8x8xf32>
      %510 = vector.broadcast %505 : f32 to vector<8x8xf32>
      %511 = arith.mulf %509, %510 : vector<8x8xf32>
      %512 = vector.extract_strided_slice %484 {offsets = [16, 0], sizes = [8, 8], strides = [1, 1]} : vector<32x8xf32> to vector<8x8xf32>
      %513 = vector.extract_strided_slice %484 {offsets = [24, 0], sizes = [8, 8], strides = [1, 1]} : vector<32x8xf32> to vector<8x8xf32>
      %514 = vector.broadcast %507 : f32 to vector<8x8xf32>
      %515 = arith.mulf %513, %514 : vector<8x8xf32>
      %516 = tpu.concatenate %508, %511, %512, %515 in 0 : vector<8x8xf32>, vector<8x8xf32>, vector<8x8xf32>, vector<8x8xf32> -> vector<32x8xf32>
      %cst_115 = arith.constant dense<0.000000e+00> : vector<32x48xf32>
      %517 = tpu.matmul %516, %60, %cst_115 {dimension_numbers = #tpu.dot_dimension_numbers<[1], [0], [0], [1], [0, 0, 1, 1], [], []>} : vector<32x8xf32>, vector<8x48xf32>, vector<32x48xf32> -> vector<32x48xf32>
      %518 = vector.broadcast %61 : vector<1x48xf32> to vector<32x48xf32>
      %519 = arith.addf %517, %518 : vector<32x48xf32>
      %520 = vector.extract_strided_slice %519 {offsets = [0, 0], sizes = [8, 24], strides = [1, 1]} : vector<32x48xf32> to vector<8x24xf32>
      %521 = vector.extract_strided_slice %501 {offsets = [0, 0], sizes = [8, 8], strides = [1, 1]} : vector<8x24xf32> to vector<8x8xf32>
      %522 = vector.extract_strided_slice %520 {offsets = [0, 0], sizes = [8, 8], strides = [1, 1]} : vector<8x24xf32> to vector<8x8xf32>
      %523 = arith.addf %521, %522 : vector<8x8xf32>
      %524 = arith.negf %523 : vector<8x8xf32>
      %525 = math.exp %524 : vector<8x8xf32>
      %cst_116 = arith.constant 1.000000e+00 : f32
      %526 = vector.broadcast %cst_116 : f32 to vector<8x8xf32>
      %527 = arith.addf %526, %525 : vector<8x8xf32>
      %528 = arith.divf %526, %527 : vector<8x8xf32>
      %529 = vector.extract_strided_slice %501 {offsets = [0, 8], sizes = [8, 8], strides = [1, 1]} : vector<8x24xf32> to vector<8x8xf32>
      %530 = vector.extract_strided_slice %520 {offsets = [0, 8], sizes = [8, 8], strides = [1, 1]} : vector<8x24xf32> to vector<8x8xf32>
      %531 = arith.addf %529, %530 : vector<8x8xf32>
      %532 = arith.negf %531 : vector<8x8xf32>
      %533 = math.exp %532 : vector<8x8xf32>
      %cst_117 = arith.constant 1.000000e+00 : f32
      %534 = vector.broadcast %cst_117 : f32 to vector<8x8xf32>
      %535 = arith.addf %534, %533 : vector<8x8xf32>
      %536 = arith.divf %534, %535 : vector<8x8xf32>
      %537 = vector.extract_strided_slice %501 {offsets = [0, 16], sizes = [8, 8], strides = [1, 1]} : vector<8x24xf32> to vector<8x8xf32>
      %538 = vector.extract_strided_slice %520 {offsets = [0, 16], sizes = [8, 8], strides = [1, 1]} : vector<8x24xf32> to vector<8x8xf32>
      %539 = arith.mulf %528, %538 : vector<8x8xf32>
      %540 = arith.addf %537, %539 : vector<8x8xf32>
      %541 = math.tanh %540 : vector<8x8xf32>
      %cst_118 = arith.constant 1.000000e+00 : f32
      %542 = vector.broadcast %cst_118 : f32 to vector<8x8xf32>
      %543 = arith.subf %542, %536 : vector<8x8xf32>
      %544 = arith.mulf %543, %541 : vector<8x8xf32>
      %545 = arith.mulf %536, %508 : vector<8x8xf32>
      %546 = arith.addf %544, %545 : vector<8x8xf32>
      %547 = vector.extract_strided_slice %519 {offsets = [8, 0], sizes = [8, 24], strides = [1, 1]} : vector<32x48xf32> to vector<8x24xf32>
      %548 = vector.extract_strided_slice %501 {offsets = [0, 0], sizes = [8, 8], strides = [1, 1]} : vector<8x24xf32> to vector<8x8xf32>
      %549 = vector.extract_strided_slice %547 {offsets = [0, 0], sizes = [8, 8], strides = [1, 1]} : vector<8x24xf32> to vector<8x8xf32>
      %550 = arith.addf %548, %549 : vector<8x8xf32>
      %551 = arith.negf %550 : vector<8x8xf32>
      %552 = math.exp %551 : vector<8x8xf32>
      %cst_119 = arith.constant 1.000000e+00 : f32
      %553 = vector.broadcast %cst_119 : f32 to vector<8x8xf32>
      %554 = arith.addf %553, %552 : vector<8x8xf32>
      %555 = arith.divf %553, %554 : vector<8x8xf32>
      %556 = vector.extract_strided_slice %501 {offsets = [0, 8], sizes = [8, 8], strides = [1, 1]} : vector<8x24xf32> to vector<8x8xf32>
      %557 = vector.extract_strided_slice %547 {offsets = [0, 8], sizes = [8, 8], strides = [1, 1]} : vector<8x24xf32> to vector<8x8xf32>
      %558 = arith.addf %556, %557 : vector<8x8xf32>
      %559 = arith.negf %558 : vector<8x8xf32>
      %560 = math.exp %559 : vector<8x8xf32>
      %cst_120 = arith.constant 1.000000e+00 : f32
      %561 = vector.broadcast %cst_120 : f32 to vector<8x8xf32>
      %562 = arith.addf %561, %560 : vector<8x8xf32>
      %563 = arith.divf %561, %562 : vector<8x8xf32>
      %564 = vector.extract_strided_slice %501 {offsets = [0, 16], sizes = [8, 8], strides = [1, 1]} : vector<8x24xf32> to vector<8x8xf32>
      %565 = vector.extract_strided_slice %547 {offsets = [0, 16], sizes = [8, 8], strides = [1, 1]} : vector<8x24xf32> to vector<8x8xf32>
      %566 = arith.mulf %555, %565 : vector<8x8xf32>
      %567 = arith.addf %564, %566 : vector<8x8xf32>
      %568 = math.tanh %567 : vector<8x8xf32>
      %cst_121 = arith.constant 1.000000e+00 : f32
      %569 = vector.broadcast %cst_121 : f32 to vector<8x8xf32>
      %570 = arith.subf %569, %563 : vector<8x8xf32>
      %571 = arith.mulf %570, %568 : vector<8x8xf32>
      %572 = arith.mulf %563, %511 : vector<8x8xf32>
      %573 = arith.addf %571, %572 : vector<8x8xf32>
      %574 = vector.extract_strided_slice %519 {offsets = [16, 24], sizes = [8, 24], strides = [1, 1]} : vector<32x48xf32> to vector<8x24xf32>
      %575 = vector.extract_strided_slice %503 {offsets = [0, 0], sizes = [8, 8], strides = [1, 1]} : vector<8x24xf32> to vector<8x8xf32>
      %576 = vector.extract_strided_slice %574 {offsets = [0, 0], sizes = [8, 8], strides = [1, 1]} : vector<8x24xf32> to vector<8x8xf32>
      %577 = arith.addf %575, %576 : vector<8x8xf32>
      %578 = arith.negf %577 : vector<8x8xf32>
      %579 = math.exp %578 : vector<8x8xf32>
      %cst_122 = arith.constant 1.000000e+00 : f32
      %580 = vector.broadcast %cst_122 : f32 to vector<8x8xf32>
      %581 = arith.addf %580, %579 : vector<8x8xf32>
      %582 = arith.divf %580, %581 : vector<8x8xf32>
      %583 = vector.extract_strided_slice %503 {offsets = [0, 8], sizes = [8, 8], strides = [1, 1]} : vector<8x24xf32> to vector<8x8xf32>
      %584 = vector.extract_strided_slice %574 {offsets = [0, 8], sizes = [8, 8], strides = [1, 1]} : vector<8x24xf32> to vector<8x8xf32>
      %585 = arith.addf %583, %584 : vector<8x8xf32>
      %586 = arith.negf %585 : vector<8x8xf32>
      %587 = math.exp %586 : vector<8x8xf32>
      %cst_123 = arith.constant 1.000000e+00 : f32
      %588 = vector.broadcast %cst_123 : f32 to vector<8x8xf32>
      %589 = arith.addf %588, %587 : vector<8x8xf32>
      %590 = arith.divf %588, %589 : vector<8x8xf32>
      %591 = vector.extract_strided_slice %503 {offsets = [0, 16], sizes = [8, 8], strides = [1, 1]} : vector<8x24xf32> to vector<8x8xf32>
      %592 = vector.extract_strided_slice %574 {offsets = [0, 16], sizes = [8, 8], strides = [1, 1]} : vector<8x24xf32> to vector<8x8xf32>
      %593 = arith.mulf %582, %592 : vector<8x8xf32>
      %594 = arith.addf %591, %593 : vector<8x8xf32>
      %595 = math.tanh %594 : vector<8x8xf32>
      %cst_124 = arith.constant 1.000000e+00 : f32
      %596 = vector.broadcast %cst_124 : f32 to vector<8x8xf32>
      %597 = arith.subf %596, %590 : vector<8x8xf32>
      %598 = arith.mulf %597, %595 : vector<8x8xf32>
      %599 = arith.mulf %590, %512 : vector<8x8xf32>
      %600 = arith.addf %598, %599 : vector<8x8xf32>
      %601 = vector.extract_strided_slice %519 {offsets = [24, 24], sizes = [8, 24], strides = [1, 1]} : vector<32x48xf32> to vector<8x24xf32>
      %602 = vector.extract_strided_slice %503 {offsets = [0, 0], sizes = [8, 8], strides = [1, 1]} : vector<8x24xf32> to vector<8x8xf32>
      %603 = vector.extract_strided_slice %601 {offsets = [0, 0], sizes = [8, 8], strides = [1, 1]} : vector<8x24xf32> to vector<8x8xf32>
      %604 = arith.addf %602, %603 : vector<8x8xf32>
      %605 = arith.negf %604 : vector<8x8xf32>
      %606 = math.exp %605 : vector<8x8xf32>
      %cst_125 = arith.constant 1.000000e+00 : f32
      %607 = vector.broadcast %cst_125 : f32 to vector<8x8xf32>
      %608 = arith.addf %607, %606 : vector<8x8xf32>
      %609 = arith.divf %607, %608 : vector<8x8xf32>
      %610 = vector.extract_strided_slice %503 {offsets = [0, 8], sizes = [8, 8], strides = [1, 1]} : vector<8x24xf32> to vector<8x8xf32>
      %611 = vector.extract_strided_slice %601 {offsets = [0, 8], sizes = [8, 8], strides = [1, 1]} : vector<8x24xf32> to vector<8x8xf32>
      %612 = arith.addf %610, %611 : vector<8x8xf32>
      %613 = arith.negf %612 : vector<8x8xf32>
      %614 = math.exp %613 : vector<8x8xf32>
      %cst_126 = arith.constant 1.000000e+00 : f32
      %615 = vector.broadcast %cst_126 : f32 to vector<8x8xf32>
      %616 = arith.addf %615, %614 : vector<8x8xf32>
      %617 = arith.divf %615, %616 : vector<8x8xf32>
      %618 = vector.extract_strided_slice %503 {offsets = [0, 16], sizes = [8, 8], strides = [1, 1]} : vector<8x24xf32> to vector<8x8xf32>
      %619 = vector.extract_strided_slice %601 {offsets = [0, 16], sizes = [8, 8], strides = [1, 1]} : vector<8x24xf32> to vector<8x8xf32>
      %620 = arith.mulf %609, %619 : vector<8x8xf32>
      %621 = arith.addf %618, %620 : vector<8x8xf32>
      %622 = math.tanh %621 : vector<8x8xf32>
      %cst_127 = arith.constant 1.000000e+00 : f32
      %623 = vector.broadcast %cst_127 : f32 to vector<8x8xf32>
      %624 = arith.subf %623, %617 : vector<8x8xf32>
      %625 = arith.mulf %624, %622 : vector<8x8xf32>
      %626 = arith.mulf %617, %515 : vector<8x8xf32>
      %627 = arith.addf %625, %626 : vector<8x8xf32>
      %628 = tpu.concatenate %546, %573, %600, %627 in 0 : vector<8x8xf32>, vector<8x8xf32>, vector<8x8xf32>, vector<8x8xf32> -> vector<32x8xf32>
      %629 = vector.extract_strided_slice %628 {offsets = [0, 0], sizes = [16, 8], strides = [1, 1]} : vector<32x8xf32> to vector<16x8xf32>
      %630 = arith.index_cast %c3_i32 : i32 to index
      %c0_128 = arith.constant 0 : index
      %c0_129 = arith.constant 0 : index
      %631 = vector.load %arg23[%630, %c0_128, %c0_129] : memref<8x16x8xf32, #tpu.memory_space<vmem>>, vector<1x16x8xf32>
      %632 = vector.shape_cast %631 : vector<1x16x8xf32> to vector<16x8xf32>
      %633 = vector.shape_cast %629 : vector<16x8xf32> to vector<1x16x8xf32>
      tpu.vector_store %arg23[%630, %c0_128, %c0_129], %633 {strides = array<i32>} : memref<8x16x8xf32, #tpu.memory_space<vmem>>, vector<1x16x8xf32>,
      %634 = vector.extract_strided_slice %628 {offsets = [16, 0], sizes = [16, 8], strides = [1, 1]} : vector<32x8xf32> to vector<16x8xf32>
      %635 = arith.index_cast %495 : i32 to index
      %c0_130 = arith.constant 0 : index
      %c0_131 = arith.constant 0 : index
      %636 = vector.load %arg24[%635, %c0_130, %c0_131] : memref<8x16x8xf32, #tpu.memory_space<vmem>>, vector<1x16x8xf32>
      %637 = vector.shape_cast %636 : vector<1x16x8xf32> to vector<16x8xf32>
      %638 = vector.shape_cast %634 : vector<16x8xf32> to vector<1x16x8xf32>
      tpu.vector_store %arg24[%635, %c0_130, %c0_131], %638 {strides = array<i32>} : memref<8x16x8xf32, #tpu.memory_space<vmem>>, vector<1x16x8xf32>,
      %c4_i32 = arith.constant 4 : i32
      %c7_i32_132 = arith.constant 7 : i32
      %639 = arith.subi %c7_i32_132, %c4_i32 : i32
      %c8_i32_133 = arith.constant 8 : i32
      %640 = arith.muli %c4_i32, %c8_i32_133 : i32
      %641 = tpu.assume_multiple %640, 8 : i32
      %c8_i32_134 = arith.constant 8 : i32
      %642 = arith.muli %639, %c8_i32_134 : i32
      %643 = tpu.assume_multiple %642, 8 : i32
      %644 = arith.index_cast %641 : i32 to index
      %c0_135 = arith.constant 0 : index
      %645 = vector.load %alloca[%644, %c0_135] : memref<64x24xf32, #tpu.memory_space<vmem>>, vector<8x24xf32>
      %646 = arith.index_cast %643 : i32 to index
      %c0_136 = arith.constant 0 : index
      %647 = vector.load %alloca_22[%646, %c0_136] : memref<64x24xf32, #tpu.memory_space<vmem>>, vector<8x24xf32>
      %648 = arith.index_cast %c4_i32 : i32 to index
      %649 = memref.load %arg1[%648] : memref<8xf32, #tpu.memory_space<smem>>
      %650 = arith.index_cast %639 : i32 to index
      %651 = memref.load %arg2[%650] : memref<8xf32, #tpu.memory_space<smem>>
      %652 = vector.extract_strided_slice %628 {offsets = [0, 0], sizes = [8, 8], strides = [1, 1]} : vector<32x8xf32> to vector<8x8xf32>
      %653 = vector.extract_strided_slice %628 {offsets = [8, 0], sizes = [8, 8], strides = [1, 1]} : vector<32x8xf32> to vector<8x8xf32>
      %654 = vector.broadcast %649 : f32 to vector<8x8xf32>
      %655 = arith.mulf %653, %654 : vector<8x8xf32>
      %656 = vector.extract_strided_slice %628 {offsets = [16, 0], sizes = [8, 8], strides = [1, 1]} : vector<32x8xf32> to vector<8x8xf32>
      %657 = vector.extract_strided_slice %628 {offsets = [24, 0], sizes = [8, 8], strides = [1, 1]} : vector<32x8xf32> to vector<8x8xf32>
      %658 = vector.broadcast %651 : f32 to vector<8x8xf32>
      %659 = arith.mulf %657, %658 : vector<8x8xf32>
      %660 = tpu.concatenate %652, %655, %656, %659 in 0 : vector<8x8xf32>, vector<8x8xf32>, vector<8x8xf32>, vector<8x8xf32> -> vector<32x8xf32>
      %cst_137 = arith.constant dense<0.000000e+00> : vector<32x48xf32>
      %661 = tpu.matmul %660, %60, %cst_137 {dimension_numbers = #tpu.dot_dimension_numbers<[1], [0], [0], [1], [0, 0, 1, 1], [], []>} : vector<32x8xf32>, vector<8x48xf32>, vector<32x48xf32> -> vector<32x48xf32>
      %662 = vector.broadcast %61 : vector<1x48xf32> to vector<32x48xf32>
      %663 = arith.addf %661, %662 : vector<32x48xf32>
      %664 = vector.extract_strided_slice %663 {offsets = [0, 0], sizes = [8, 24], strides = [1, 1]} : vector<32x48xf32> to vector<8x24xf32>
      %665 = vector.extract_strided_slice %645 {offsets = [0, 0], sizes = [8, 8], strides = [1, 1]} : vector<8x24xf32> to vector<8x8xf32>
      %666 = vector.extract_strided_slice %664 {offsets = [0, 0], sizes = [8, 8], strides = [1, 1]} : vector<8x24xf32> to vector<8x8xf32>
      %667 = arith.addf %665, %666 : vector<8x8xf32>
      %668 = arith.negf %667 : vector<8x8xf32>
      %669 = math.exp %668 : vector<8x8xf32>
      %cst_138 = arith.constant 1.000000e+00 : f32
      %670 = vector.broadcast %cst_138 : f32 to vector<8x8xf32>
      %671 = arith.addf %670, %669 : vector<8x8xf32>
      %672 = arith.divf %670, %671 : vector<8x8xf32>
      %673 = vector.extract_strided_slice %645 {offsets = [0, 8], sizes = [8, 8], strides = [1, 1]} : vector<8x24xf32> to vector<8x8xf32>
      %674 = vector.extract_strided_slice %664 {offsets = [0, 8], sizes = [8, 8], strides = [1, 1]} : vector<8x24xf32> to vector<8x8xf32>
      %675 = arith.addf %673, %674 : vector<8x8xf32>
      %676 = arith.negf %675 : vector<8x8xf32>
      %677 = math.exp %676 : vector<8x8xf32>
      %cst_139 = arith.constant 1.000000e+00 : f32
      %678 = vector.broadcast %cst_139 : f32 to vector<8x8xf32>
      %679 = arith.addf %678, %677 : vector<8x8xf32>
      %680 = arith.divf %678, %679 : vector<8x8xf32>
      %681 = vector.extract_strided_slice %645 {offsets = [0, 16], sizes = [8, 8], strides = [1, 1]} : vector<8x24xf32> to vector<8x8xf32>
      %682 = vector.extract_strided_slice %664 {offsets = [0, 16], sizes = [8, 8], strides = [1, 1]} : vector<8x24xf32> to vector<8x8xf32>
      %683 = arith.mulf %672, %682 : vector<8x8xf32>
      %684 = arith.addf %681, %683 : vector<8x8xf32>
      %685 = math.tanh %684 : vector<8x8xf32>
      %cst_140 = arith.constant 1.000000e+00 : f32
      %686 = vector.broadcast %cst_140 : f32 to vector<8x8xf32>
      %687 = arith.subf %686, %680 : vector<8x8xf32>
      %688 = arith.mulf %687, %685 : vector<8x8xf32>
      %689 = arith.mulf %680, %652 : vector<8x8xf32>
      %690 = arith.addf %688, %689 : vector<8x8xf32>
      %691 = vector.extract_strided_slice %663 {offsets = [8, 0], sizes = [8, 24], strides = [1, 1]} : vector<32x48xf32> to vector<8x24xf32>
      %692 = vector.extract_strided_slice %645 {offsets = [0, 0], sizes = [8, 8], strides = [1, 1]} : vector<8x24xf32> to vector<8x8xf32>
      %693 = vector.extract_strided_slice %691 {offsets = [0, 0], sizes = [8, 8], strides = [1, 1]} : vector<8x24xf32> to vector<8x8xf32>
      %694 = arith.addf %692, %693 : vector<8x8xf32>
      %695 = arith.negf %694 : vector<8x8xf32>
      %696 = math.exp %695 : vector<8x8xf32>
      %cst_141 = arith.constant 1.000000e+00 : f32
      %697 = vector.broadcast %cst_141 : f32 to vector<8x8xf32>
      %698 = arith.addf %697, %696 : vector<8x8xf32>
      %699 = arith.divf %697, %698 : vector<8x8xf32>
      %700 = vector.extract_strided_slice %645 {offsets = [0, 8], sizes = [8, 8], strides = [1, 1]} : vector<8x24xf32> to vector<8x8xf32>
      %701 = vector.extract_strided_slice %691 {offsets = [0, 8], sizes = [8, 8], strides = [1, 1]} : vector<8x24xf32> to vector<8x8xf32>
      %702 = arith.addf %700, %701 : vector<8x8xf32>
      %703 = arith.negf %702 : vector<8x8xf32>
      %704 = math.exp %703 : vector<8x8xf32>
      %cst_142 = arith.constant 1.000000e+00 : f32
      %705 = vector.broadcast %cst_142 : f32 to vector<8x8xf32>
      %706 = arith.addf %705, %704 : vector<8x8xf32>
      %707 = arith.divf %705, %706 : vector<8x8xf32>
      %708 = vector.extract_strided_slice %645 {offsets = [0, 16], sizes = [8, 8], strides = [1, 1]} : vector<8x24xf32> to vector<8x8xf32>
      %709 = vector.extract_strided_slice %691 {offsets = [0, 16], sizes = [8, 8], strides = [1, 1]} : vector<8x24xf32> to vector<8x8xf32>
      %710 = arith.mulf %699, %709 : vector<8x8xf32>
      %711 = arith.addf %708, %710 : vector<8x8xf32>
      %712 = math.tanh %711 : vector<8x8xf32>
      %cst_143 = arith.constant 1.000000e+00 : f32
      %713 = vector.broadcast %cst_143 : f32 to vector<8x8xf32>
      %714 = arith.subf %713, %707 : vector<8x8xf32>
      %715 = arith.mulf %714, %712 : vector<8x8xf32>
      %716 = arith.mulf %707, %655 : vector<8x8xf32>
      %717 = arith.addf %715, %716 : vector<8x8xf32>
      %718 = vector.extract_strided_slice %663 {offsets = [16, 24], sizes = [8, 24], strides = [1, 1]} : vector<32x48xf32> to vector<8x24xf32>
      %719 = vector.extract_strided_slice %647 {offsets = [0, 0], sizes = [8, 8], strides = [1, 1]} : vector<8x24xf32> to vector<8x8xf32>
      %720 = vector.extract_strided_slice %718 {offsets = [0, 0], sizes = [8, 8], strides = [1, 1]} : vector<8x24xf32> to vector<8x8xf32>
      %721 = arith.addf %719, %720 : vector<8x8xf32>
      %722 = arith.negf %721 : vector<8x8xf32>
      %723 = math.exp %722 : vector<8x8xf32>
      %cst_144 = arith.constant 1.000000e+00 : f32
      %724 = vector.broadcast %cst_144 : f32 to vector<8x8xf32>
      %725 = arith.addf %724, %723 : vector<8x8xf32>
      %726 = arith.divf %724, %725 : vector<8x8xf32>
      %727 = vector.extract_strided_slice %647 {offsets = [0, 8], sizes = [8, 8], strides = [1, 1]} : vector<8x24xf32> to vector<8x8xf32>
      %728 = vector.extract_strided_slice %718 {offsets = [0, 8], sizes = [8, 8], strides = [1, 1]} : vector<8x24xf32> to vector<8x8xf32>
      %729 = arith.addf %727, %728 : vector<8x8xf32>
      %730 = arith.negf %729 : vector<8x8xf32>
      %731 = math.exp %730 : vector<8x8xf32>
      %cst_145 = arith.constant 1.000000e+00 : f32
      %732 = vector.broadcast %cst_145 : f32 to vector<8x8xf32>
      %733 = arith.addf %732, %731 : vector<8x8xf32>
      %734 = arith.divf %732, %733 : vector<8x8xf32>
      %735 = vector.extract_strided_slice %647 {offsets = [0, 16], sizes = [8, 8], strides = [1, 1]} : vector<8x24xf32> to vector<8x8xf32>
      %736 = vector.extract_strided_slice %718 {offsets = [0, 16], sizes = [8, 8], strides = [1, 1]} : vector<8x24xf32> to vector<8x8xf32>
      %737 = arith.mulf %726, %736 : vector<8x8xf32>
      %738 = arith.addf %735, %737 : vector<8x8xf32>
      %739 = math.tanh %738 : vector<8x8xf32>
      %cst_146 = arith.constant 1.000000e+00 : f32
      %740 = vector.broadcast %cst_146 : f32 to vector<8x8xf32>
      %741 = arith.subf %740, %734 : vector<8x8xf32>
      %742 = arith.mulf %741, %739 : vector<8x8xf32>
      %743 = arith.mulf %734, %656 : vector<8x8xf32>
      %744 = arith.addf %742, %743 : vector<8x8xf32>
      %745 = vector.extract_strided_slice %663 {offsets = [24, 24], sizes = [8, 24], strides = [1, 1]} : vector<32x48xf32> to vector<8x24xf32>
      %746 = vector.extract_strided_slice %647 {offsets = [0, 0], sizes = [8, 8], strides = [1, 1]} : vector<8x24xf32> to vector<8x8xf32>
      %747 = vector.extract_strided_slice %745 {offsets = [0, 0], sizes = [8, 8], strides = [1, 1]} : vector<8x24xf32> to vector<8x8xf32>
      %748 = arith.addf %746, %747 : vector<8x8xf32>
      %749 = arith.negf %748 : vector<8x8xf32>
      %750 = math.exp %749 : vector<8x8xf32>
      %cst_147 = arith.constant 1.000000e+00 : f32
      %751 = vector.broadcast %cst_147 : f32 to vector<8x8xf32>
      %752 = arith.addf %751, %750 : vector<8x8xf32>
      %753 = arith.divf %751, %752 : vector<8x8xf32>
      %754 = vector.extract_strided_slice %647 {offsets = [0, 8], sizes = [8, 8], strides = [1, 1]} : vector<8x24xf32> to vector<8x8xf32>
      %755 = vector.extract_strided_slice %745 {offsets = [0, 8], sizes = [8, 8], strides = [1, 1]} : vector<8x24xf32> to vector<8x8xf32>
      %756 = arith.addf %754, %755 : vector<8x8xf32>
      %757 = arith.negf %756 : vector<8x8xf32>
      %758 = math.exp %757 : vector<8x8xf32>
      %cst_148 = arith.constant 1.000000e+00 : f32
      %759 = vector.broadcast %cst_148 : f32 to vector<8x8xf32>
      %760 = arith.addf %759, %758 : vector<8x8xf32>
      %761 = arith.divf %759, %760 : vector<8x8xf32>
      %762 = vector.extract_strided_slice %647 {offsets = [0, 16], sizes = [8, 8], strides = [1, 1]} : vector<8x24xf32> to vector<8x8xf32>
      %763 = vector.extract_strided_slice %745 {offsets = [0, 16], sizes = [8, 8], strides = [1, 1]} : vector<8x24xf32> to vector<8x8xf32>
      %764 = arith.mulf %753, %763 : vector<8x8xf32>
      %765 = arith.addf %762, %764 : vector<8x8xf32>
      %766 = math.tanh %765 : vector<8x8xf32>
      %cst_149 = arith.constant 1.000000e+00 : f32
      %767 = vector.broadcast %cst_149 : f32 to vector<8x8xf32>
      %768 = arith.subf %767, %761 : vector<8x8xf32>
      %769 = arith.mulf %768, %766 : vector<8x8xf32>
      %770 = arith.mulf %761, %659 : vector<8x8xf32>
      %771 = arith.addf %769, %770 : vector<8x8xf32>
      %772 = tpu.concatenate %690, %717, %744, %771 in 0 : vector<8x8xf32>, vector<8x8xf32>, vector<8x8xf32>, vector<8x8xf32> -> vector<32x8xf32>
      %773 = vector.extract_strided_slice %772 {offsets = [0, 0], sizes = [16, 8], strides = [1, 1]} : vector<32x8xf32> to vector<16x8xf32>
      %774 = arith.index_cast %c4_i32 : i32 to index
      %c0_150 = arith.constant 0 : index
      %c0_151 = arith.constant 0 : index
      %775 = vector.load %arg23[%774, %c0_150, %c0_151] : memref<8x16x8xf32, #tpu.memory_space<vmem>>, vector<1x16x8xf32>
      %776 = vector.shape_cast %775 : vector<1x16x8xf32> to vector<16x8xf32>
      %777 = vector.shape_cast %773 : vector<16x8xf32> to vector<1x16x8xf32>
      tpu.vector_store %arg23[%774, %c0_150, %c0_151], %777 {strides = array<i32>} : memref<8x16x8xf32, #tpu.memory_space<vmem>>, vector<1x16x8xf32>,
      %778 = vector.extract_strided_slice %772 {offsets = [16, 0], sizes = [16, 8], strides = [1, 1]} : vector<32x8xf32> to vector<16x8xf32>
      %779 = arith.index_cast %639 : i32 to index
      %c0_152 = arith.constant 0 : index
      %c0_153 = arith.constant 0 : index
      %780 = vector.load %arg24[%779, %c0_152, %c0_153] : memref<8x16x8xf32, #tpu.memory_space<vmem>>, vector<1x16x8xf32>
      %781 = vector.shape_cast %780 : vector<1x16x8xf32> to vector<16x8xf32>
      %782 = vector.shape_cast %778 : vector<16x8xf32> to vector<1x16x8xf32>
      tpu.vector_store %arg24[%779, %c0_152, %c0_153], %782 {strides = array<i32>} : memref<8x16x8xf32, #tpu.memory_space<vmem>>, vector<1x16x8xf32>,
      %c5_i32 = arith.constant 5 : i32
      %c7_i32_154 = arith.constant 7 : i32
      %783 = arith.subi %c7_i32_154, %c5_i32 : i32
      %c8_i32_155 = arith.constant 8 : i32
      %784 = arith.muli %c5_i32, %c8_i32_155 : i32
      %785 = tpu.assume_multiple %784, 8 : i32
      %c8_i32_156 = arith.constant 8 : i32
      %786 = arith.muli %783, %c8_i32_156 : i32
      %787 = tpu.assume_multiple %786, 8 : i32
      %788 = arith.index_cast %785 : i32 to index
      %c0_157 = arith.constant 0 : index
      %789 = vector.load %alloca[%788, %c0_157] : memref<64x24xf32, #tpu.memory_space<vmem>>, vector<8x24xf32>
      %790 = arith.index_cast %787 : i32 to index
      %c0_158 = arith.constant 0 : index
      %791 = vector.load %alloca_22[%790, %c0_158] : memref<64x24xf32, #tpu.memory_space<vmem>>, vector<8x24xf32>
      %792 = arith.index_cast %c5_i32 : i32 to index
      %793 = memref.load %arg1[%792] : memref<8xf32, #tpu.memory_space<smem>>
      %794 = arith.index_cast %783 : i32 to index
      %795 = memref.load %arg2[%794] : memref<8xf32, #tpu.memory_space<smem>>
      %796 = vector.extract_strided_slice %772 {offsets = [0, 0], sizes = [8, 8], strides = [1, 1]} : vector<32x8xf32> to vector<8x8xf32>
      %797 = vector.extract_strided_slice %772 {offsets = [8, 0], sizes = [8, 8], strides = [1, 1]} : vector<32x8xf32> to vector<8x8xf32>
      %798 = vector.broadcast %793 : f32 to vector<8x8xf32>
      %799 = arith.mulf %797, %798 : vector<8x8xf32>
      %800 = vector.extract_strided_slice %772 {offsets = [16, 0], sizes = [8, 8], strides = [1, 1]} : vector<32x8xf32> to vector<8x8xf32>
      %801 = vector.extract_strided_slice %772 {offsets = [24, 0], sizes = [8, 8], strides = [1, 1]} : vector<32x8xf32> to vector<8x8xf32>
      %802 = vector.broadcast %795 : f32 to vector<8x8xf32>
      %803 = arith.mulf %801, %802 : vector<8x8xf32>
      %804 = tpu.concatenate %796, %799, %800, %803 in 0 : vector<8x8xf32>, vector<8x8xf32>, vector<8x8xf32>, vector<8x8xf32> -> vector<32x8xf32>
      %cst_159 = arith.constant dense<0.000000e+00> : vector<32x48xf32>
      %805 = tpu.matmul %804, %60, %cst_159 {dimension_numbers = #tpu.dot_dimension_numbers<[1], [0], [0], [1], [0, 0, 1, 1], [], []>} : vector<32x8xf32>, vector<8x48xf32>, vector<32x48xf32> -> vector<32x48xf32>
      %806 = vector.broadcast %61 : vector<1x48xf32> to vector<32x48xf32>
      %807 = arith.addf %805, %806 : vector<32x48xf32>
      %808 = vector.extract_strided_slice %807 {offsets = [0, 0], sizes = [8, 24], strides = [1, 1]} : vector<32x48xf32> to vector<8x24xf32>
      %809 = vector.extract_strided_slice %789 {offsets = [0, 0], sizes = [8, 8], strides = [1, 1]} : vector<8x24xf32> to vector<8x8xf32>
      %810 = vector.extract_strided_slice %808 {offsets = [0, 0], sizes = [8, 8], strides = [1, 1]} : vector<8x24xf32> to vector<8x8xf32>
      %811 = arith.addf %809, %810 : vector<8x8xf32>
      %812 = arith.negf %811 : vector<8x8xf32>
      %813 = math.exp %812 : vector<8x8xf32>
      %cst_160 = arith.constant 1.000000e+00 : f32
      %814 = vector.broadcast %cst_160 : f32 to vector<8x8xf32>
      %815 = arith.addf %814, %813 : vector<8x8xf32>
      %816 = arith.divf %814, %815 : vector<8x8xf32>
      %817 = vector.extract_strided_slice %789 {offsets = [0, 8], sizes = [8, 8], strides = [1, 1]} : vector<8x24xf32> to vector<8x8xf32>
      %818 = vector.extract_strided_slice %808 {offsets = [0, 8], sizes = [8, 8], strides = [1, 1]} : vector<8x24xf32> to vector<8x8xf32>
      %819 = arith.addf %817, %818 : vector<8x8xf32>
      %820 = arith.negf %819 : vector<8x8xf32>
      %821 = math.exp %820 : vector<8x8xf32>
      %cst_161 = arith.constant 1.000000e+00 : f32
      %822 = vector.broadcast %cst_161 : f32 to vector<8x8xf32>
      %823 = arith.addf %822, %821 : vector<8x8xf32>
      %824 = arith.divf %822, %823 : vector<8x8xf32>
      %825 = vector.extract_strided_slice %789 {offsets = [0, 16], sizes = [8, 8], strides = [1, 1]} : vector<8x24xf32> to vector<8x8xf32>
      %826 = vector.extract_strided_slice %808 {offsets = [0, 16], sizes = [8, 8], strides = [1, 1]} : vector<8x24xf32> to vector<8x8xf32>
      %827 = arith.mulf %816, %826 : vector<8x8xf32>
      %828 = arith.addf %825, %827 : vector<8x8xf32>
      %829 = math.tanh %828 : vector<8x8xf32>
      %cst_162 = arith.constant 1.000000e+00 : f32
      %830 = vector.broadcast %cst_162 : f32 to vector<8x8xf32>
      %831 = arith.subf %830, %824 : vector<8x8xf32>
      %832 = arith.mulf %831, %829 : vector<8x8xf32>
      %833 = arith.mulf %824, %796 : vector<8x8xf32>
      %834 = arith.addf %832, %833 : vector<8x8xf32>
      %835 = vector.extract_strided_slice %807 {offsets = [8, 0], sizes = [8, 24], strides = [1, 1]} : vector<32x48xf32> to vector<8x24xf32>
      %836 = vector.extract_strided_slice %789 {offsets = [0, 0], sizes = [8, 8], strides = [1, 1]} : vector<8x24xf32> to vector<8x8xf32>
      %837 = vector.extract_strided_slice %835 {offsets = [0, 0], sizes = [8, 8], strides = [1, 1]} : vector<8x24xf32> to vector<8x8xf32>
      %838 = arith.addf %836, %837 : vector<8x8xf32>
      %839 = arith.negf %838 : vector<8x8xf32>
      %840 = math.exp %839 : vector<8x8xf32>
      %cst_163 = arith.constant 1.000000e+00 : f32
      %841 = vector.broadcast %cst_163 : f32 to vector<8x8xf32>
      %842 = arith.addf %841, %840 : vector<8x8xf32>
      %843 = arith.divf %841, %842 : vector<8x8xf32>
      %844 = vector.extract_strided_slice %789 {offsets = [0, 8], sizes = [8, 8], strides = [1, 1]} : vector<8x24xf32> to vector<8x8xf32>
      %845 = vector.extract_strided_slice %835 {offsets = [0, 8], sizes = [8, 8], strides = [1, 1]} : vector<8x24xf32> to vector<8x8xf32>
      %846 = arith.addf %844, %845 : vector<8x8xf32>
      %847 = arith.negf %846 : vector<8x8xf32>
      %848 = math.exp %847 : vector<8x8xf32>
      %cst_164 = arith.constant 1.000000e+00 : f32
      %849 = vector.broadcast %cst_164 : f32 to vector<8x8xf32>
      %850 = arith.addf %849, %848 : vector<8x8xf32>
      %851 = arith.divf %849, %850 : vector<8x8xf32>
      %852 = vector.extract_strided_slice %789 {offsets = [0, 16], sizes = [8, 8], strides = [1, 1]} : vector<8x24xf32> to vector<8x8xf32>
      %853 = vector.extract_strided_slice %835 {offsets = [0, 16], sizes = [8, 8], strides = [1, 1]} : vector<8x24xf32> to vector<8x8xf32>
      %854 = arith.mulf %843, %853 : vector<8x8xf32>
      %855 = arith.addf %852, %854 : vector<8x8xf32>
      %856 = math.tanh %855 : vector<8x8xf32>
      %cst_165 = arith.constant 1.000000e+00 : f32
      %857 = vector.broadcast %cst_165 : f32 to vector<8x8xf32>
      %858 = arith.subf %857, %851 : vector<8x8xf32>
      %859 = arith.mulf %858, %856 : vector<8x8xf32>
      %860 = arith.mulf %851, %799 : vector<8x8xf32>
      %861 = arith.addf %859, %860 : vector<8x8xf32>
      %862 = vector.extract_strided_slice %807 {offsets = [16, 24], sizes = [8, 24], strides = [1, 1]} : vector<32x48xf32> to vector<8x24xf32>
      %863 = vector.extract_strided_slice %791 {offsets = [0, 0], sizes = [8, 8], strides = [1, 1]} : vector<8x24xf32> to vector<8x8xf32>
      %864 = vector.extract_strided_slice %862 {offsets = [0, 0], sizes = [8, 8], strides = [1, 1]} : vector<8x24xf32> to vector<8x8xf32>
      %865 = arith.addf %863, %864 : vector<8x8xf32>
      %866 = arith.negf %865 : vector<8x8xf32>
      %867 = math.exp %866 : vector<8x8xf32>
      %cst_166 = arith.constant 1.000000e+00 : f32
      %868 = vector.broadcast %cst_166 : f32 to vector<8x8xf32>
      %869 = arith.addf %868, %867 : vector<8x8xf32>
      %870 = arith.divf %868, %869 : vector<8x8xf32>
      %871 = vector.extract_strided_slice %791 {offsets = [0, 8], sizes = [8, 8], strides = [1, 1]} : vector<8x24xf32> to vector<8x8xf32>
      %872 = vector.extract_strided_slice %862 {offsets = [0, 8], sizes = [8, 8], strides = [1, 1]} : vector<8x24xf32> to vector<8x8xf32>
      %873 = arith.addf %871, %872 : vector<8x8xf32>
      %874 = arith.negf %873 : vector<8x8xf32>
      %875 = math.exp %874 : vector<8x8xf32>
      %cst_167 = arith.constant 1.000000e+00 : f32
      %876 = vector.broadcast %cst_167 : f32 to vector<8x8xf32>
      %877 = arith.addf %876, %875 : vector<8x8xf32>
      %878 = arith.divf %876, %877 : vector<8x8xf32>
      %879 = vector.extract_strided_slice %791 {offsets = [0, 16], sizes = [8, 8], strides = [1, 1]} : vector<8x24xf32> to vector<8x8xf32>
      %880 = vector.extract_strided_slice %862 {offsets = [0, 16], sizes = [8, 8], strides = [1, 1]} : vector<8x24xf32> to vector<8x8xf32>
      %881 = arith.mulf %870, %880 : vector<8x8xf32>
      %882 = arith.addf %879, %881 : vector<8x8xf32>
      %883 = math.tanh %882 : vector<8x8xf32>
      %cst_168 = arith.constant 1.000000e+00 : f32
      %884 = vector.broadcast %cst_168 : f32 to vector<8x8xf32>
      %885 = arith.subf %884, %878 : vector<8x8xf32>
      %886 = arith.mulf %885, %883 : vector<8x8xf32>
      %887 = arith.mulf %878, %800 : vector<8x8xf32>
      %888 = arith.addf %886, %887 : vector<8x8xf32>
      %889 = vector.extract_strided_slice %807 {offsets = [24, 24], sizes = [8, 24], strides = [1, 1]} : vector<32x48xf32> to vector<8x24xf32>
      %890 = vector.extract_strided_slice %791 {offsets = [0, 0], sizes = [8, 8], strides = [1, 1]} : vector<8x24xf32> to vector<8x8xf32>
      %891 = vector.extract_strided_slice %889 {offsets = [0, 0], sizes = [8, 8], strides = [1, 1]} : vector<8x24xf32> to vector<8x8xf32>
      %892 = arith.addf %890, %891 : vector<8x8xf32>
      %893 = arith.negf %892 : vector<8x8xf32>
      %894 = math.exp %893 : vector<8x8xf32>
      %cst_169 = arith.constant 1.000000e+00 : f32
      %895 = vector.broadcast %cst_169 : f32 to vector<8x8xf32>
      %896 = arith.addf %895, %894 : vector<8x8xf32>
      %897 = arith.divf %895, %896 : vector<8x8xf32>
      %898 = vector.extract_strided_slice %791 {offsets = [0, 8], sizes = [8, 8], strides = [1, 1]} : vector<8x24xf32> to vector<8x8xf32>
      %899 = vector.extract_strided_slice %889 {offsets = [0, 8], sizes = [8, 8], strides = [1, 1]} : vector<8x24xf32> to vector<8x8xf32>
      %900 = arith.addf %898, %899 : vector<8x8xf32>
      %901 = arith.negf %900 : vector<8x8xf32>
      %902 = math.exp %901 : vector<8x8xf32>
      %cst_170 = arith.constant 1.000000e+00 : f32
      %903 = vector.broadcast %cst_170 : f32 to vector<8x8xf32>
      %904 = arith.addf %903, %902 : vector<8x8xf32>
      %905 = arith.divf %903, %904 : vector<8x8xf32>
      %906 = vector.extract_strided_slice %791 {offsets = [0, 16], sizes = [8, 8], strides = [1, 1]} : vector<8x24xf32> to vector<8x8xf32>
      %907 = vector.extract_strided_slice %889 {offsets = [0, 16], sizes = [8, 8], strides = [1, 1]} : vector<8x24xf32> to vector<8x8xf32>
      %908 = arith.mulf %897, %907 : vector<8x8xf32>
      %909 = arith.addf %906, %908 : vector<8x8xf32>
      %910 = math.tanh %909 : vector<8x8xf32>
      %cst_171 = arith.constant 1.000000e+00 : f32
      %911 = vector.broadcast %cst_171 : f32 to vector<8x8xf32>
      %912 = arith.subf %911, %905 : vector<8x8xf32>
      %913 = arith.mulf %912, %910 : vector<8x8xf32>
      %914 = arith.mulf %905, %803 : vector<8x8xf32>
      %915 = arith.addf %913, %914 : vector<8x8xf32>
      %916 = tpu.concatenate %834, %861, %888, %915 in 0 : vector<8x8xf32>, vector<8x8xf32>, vector<8x8xf32>, vector<8x8xf32> -> vector<32x8xf32>
      %917 = vector.extract_strided_slice %916 {offsets = [0, 0], sizes = [16, 8], strides = [1, 1]} : vector<32x8xf32> to vector<16x8xf32>
      %918 = arith.index_cast %c5_i32 : i32 to index
      %c0_172 = arith.constant 0 : index
      %c0_173 = arith.constant 0 : index
      %919 = vector.load %arg23[%918, %c0_172, %c0_173] : memref<8x16x8xf32, #tpu.memory_space<vmem>>, vector<1x16x8xf32>
      %920 = vector.shape_cast %919 : vector<1x16x8xf32> to vector<16x8xf32>
      %921 = vector.shape_cast %917 : vector<16x8xf32> to vector<1x16x8xf32>
      tpu.vector_store %arg23[%918, %c0_172, %c0_173], %921 {strides = array<i32>} : memref<8x16x8xf32, #tpu.memory_space<vmem>>, vector<1x16x8xf32>,
      %922 = vector.extract_strided_slice %916 {offsets = [16, 0], sizes = [16, 8], strides = [1, 1]} : vector<32x8xf32> to vector<16x8xf32>
      %923 = arith.index_cast %783 : i32 to index
      %c0_174 = arith.constant 0 : index
      %c0_175 = arith.constant 0 : index
      %924 = vector.load %arg24[%923, %c0_174, %c0_175] : memref<8x16x8xf32, #tpu.memory_space<vmem>>, vector<1x16x8xf32>
      %925 = vector.shape_cast %924 : vector<1x16x8xf32> to vector<16x8xf32>
      %926 = vector.shape_cast %922 : vector<16x8xf32> to vector<1x16x8xf32>
      tpu.vector_store %arg24[%923, %c0_174, %c0_175], %926 {strides = array<i32>} : memref<8x16x8xf32, #tpu.memory_space<vmem>>, vector<1x16x8xf32>,
      %c6_i32 = arith.constant 6 : i32
      %c7_i32_176 = arith.constant 7 : i32
      %927 = arith.subi %c7_i32_176, %c6_i32 : i32
      %c8_i32_177 = arith.constant 8 : i32
      %928 = arith.muli %c6_i32, %c8_i32_177 : i32
      %929 = tpu.assume_multiple %928, 8 : i32
      %c8_i32_178 = arith.constant 8 : i32
      %930 = arith.muli %927, %c8_i32_178 : i32
      %931 = tpu.assume_multiple %930, 8 : i32
      %932 = arith.index_cast %929 : i32 to index
      %c0_179 = arith.constant 0 : index
      %933 = vector.load %alloca[%932, %c0_179] : memref<64x24xf32, #tpu.memory_space<vmem>>, vector<8x24xf32>
      %934 = arith.index_cast %931 : i32 to index
      %c0_180 = arith.constant 0 : index
      %935 = vector.load %alloca_22[%934, %c0_180] : memref<64x24xf32, #tpu.memory_space<vmem>>, vector<8x24xf32>
      %936 = arith.index_cast %c6_i32 : i32 to index
      %937 = memref.load %arg1[%936] : memref<8xf32, #tpu.memory_space<smem>>
      %938 = arith.index_cast %927 : i32 to index
      %939 = memref.load %arg2[%938] : memref<8xf32, #tpu.memory_space<smem>>
      %940 = vector.extract_strided_slice %916 {offsets = [0, 0], sizes = [8, 8], strides = [1, 1]} : vector<32x8xf32> to vector<8x8xf32>
      %941 = vector.extract_strided_slice %916 {offsets = [8, 0], sizes = [8, 8], strides = [1, 1]} : vector<32x8xf32> to vector<8x8xf32>
      %942 = vector.broadcast %937 : f32 to vector<8x8xf32>
      %943 = arith.mulf %941, %942 : vector<8x8xf32>
      %944 = vector.extract_strided_slice %916 {offsets = [16, 0], sizes = [8, 8], strides = [1, 1]} : vector<32x8xf32> to vector<8x8xf32>
      %945 = vector.extract_strided_slice %916 {offsets = [24, 0], sizes = [8, 8], strides = [1, 1]} : vector<32x8xf32> to vector<8x8xf32>
      %946 = vector.broadcast %939 : f32 to vector<8x8xf32>
      %947 = arith.mulf %945, %946 : vector<8x8xf32>
      %948 = tpu.concatenate %940, %943, %944, %947 in 0 : vector<8x8xf32>, vector<8x8xf32>, vector<8x8xf32>, vector<8x8xf32> -> vector<32x8xf32>
      %cst_181 = arith.constant dense<0.000000e+00> : vector<32x48xf32>
      %949 = tpu.matmul %948, %60, %cst_181 {dimension_numbers = #tpu.dot_dimension_numbers<[1], [0], [0], [1], [0, 0, 1, 1], [], []>} : vector<32x8xf32>, vector<8x48xf32>, vector<32x48xf32> -> vector<32x48xf32>
      %950 = vector.broadcast %61 : vector<1x48xf32> to vector<32x48xf32>
      %951 = arith.addf %949, %950 : vector<32x48xf32>
      %952 = vector.extract_strided_slice %951 {offsets = [0, 0], sizes = [8, 24], strides = [1, 1]} : vector<32x48xf32> to vector<8x24xf32>
      %953 = vector.extract_strided_slice %933 {offsets = [0, 0], sizes = [8, 8], strides = [1, 1]} : vector<8x24xf32> to vector<8x8xf32>
      %954 = vector.extract_strided_slice %952 {offsets = [0, 0], sizes = [8, 8], strides = [1, 1]} : vector<8x24xf32> to vector<8x8xf32>
      %955 = arith.addf %953, %954 : vector<8x8xf32>
      %956 = arith.negf %955 : vector<8x8xf32>
      %957 = math.exp %956 : vector<8x8xf32>
      %cst_182 = arith.constant 1.000000e+00 : f32
      %958 = vector.broadcast %cst_182 : f32 to vector<8x8xf32>
      %959 = arith.addf %958, %957 : vector<8x8xf32>
      %960 = arith.divf %958, %959 : vector<8x8xf32>
      %961 = vector.extract_strided_slice %933 {offsets = [0, 8], sizes = [8, 8], strides = [1, 1]} : vector<8x24xf32> to vector<8x8xf32>
      %962 = vector.extract_strided_slice %952 {offsets = [0, 8], sizes = [8, 8], strides = [1, 1]} : vector<8x24xf32> to vector<8x8xf32>
      %963 = arith.addf %961, %962 : vector<8x8xf32>
      %964 = arith.negf %963 : vector<8x8xf32>
      %965 = math.exp %964 : vector<8x8xf32>
      %cst_183 = arith.constant 1.000000e+00 : f32
      %966 = vector.broadcast %cst_183 : f32 to vector<8x8xf32>
      %967 = arith.addf %966, %965 : vector<8x8xf32>
      %968 = arith.divf %966, %967 : vector<8x8xf32>
      %969 = vector.extract_strided_slice %933 {offsets = [0, 16], sizes = [8, 8], strides = [1, 1]} : vector<8x24xf32> to vector<8x8xf32>
      %970 = vector.extract_strided_slice %952 {offsets = [0, 16], sizes = [8, 8], strides = [1, 1]} : vector<8x24xf32> to vector<8x8xf32>
      %971 = arith.mulf %960, %970 : vector<8x8xf32>
      %972 = arith.addf %969, %971 : vector<8x8xf32>
      %973 = math.tanh %972 : vector<8x8xf32>
      %cst_184 = arith.constant 1.000000e+00 : f32
      %974 = vector.broadcast %cst_184 : f32 to vector<8x8xf32>
      %975 = arith.subf %974, %968 : vector<8x8xf32>
      %976 = arith.mulf %975, %973 : vector<8x8xf32>
      %977 = arith.mulf %968, %940 : vector<8x8xf32>
      %978 = arith.addf %976, %977 : vector<8x8xf32>
      %979 = vector.extract_strided_slice %951 {offsets = [8, 0], sizes = [8, 24], strides = [1, 1]} : vector<32x48xf32> to vector<8x24xf32>
      %980 = vector.extract_strided_slice %933 {offsets = [0, 0], sizes = [8, 8], strides = [1, 1]} : vector<8x24xf32> to vector<8x8xf32>
      %981 = vector.extract_strided_slice %979 {offsets = [0, 0], sizes = [8, 8], strides = [1, 1]} : vector<8x24xf32> to vector<8x8xf32>
      %982 = arith.addf %980, %981 : vector<8x8xf32>
      %983 = arith.negf %982 : vector<8x8xf32>
      %984 = math.exp %983 : vector<8x8xf32>
      %cst_185 = arith.constant 1.000000e+00 : f32
      %985 = vector.broadcast %cst_185 : f32 to vector<8x8xf32>
      %986 = arith.addf %985, %984 : vector<8x8xf32>
      %987 = arith.divf %985, %986 : vector<8x8xf32>
      %988 = vector.extract_strided_slice %933 {offsets = [0, 8], sizes = [8, 8], strides = [1, 1]} : vector<8x24xf32> to vector<8x8xf32>
      %989 = vector.extract_strided_slice %979 {offsets = [0, 8], sizes = [8, 8], strides = [1, 1]} : vector<8x24xf32> to vector<8x8xf32>
      %990 = arith.addf %988, %989 : vector<8x8xf32>
      %991 = arith.negf %990 : vector<8x8xf32>
      %992 = math.exp %991 : vector<8x8xf32>
      %cst_186 = arith.constant 1.000000e+00 : f32
      %993 = vector.broadcast %cst_186 : f32 to vector<8x8xf32>
      %994 = arith.addf %993, %992 : vector<8x8xf32>
      %995 = arith.divf %993, %994 : vector<8x8xf32>
      %996 = vector.extract_strided_slice %933 {offsets = [0, 16], sizes = [8, 8], strides = [1, 1]} : vector<8x24xf32> to vector<8x8xf32>
      %997 = vector.extract_strided_slice %979 {offsets = [0, 16], sizes = [8, 8], strides = [1, 1]} : vector<8x24xf32> to vector<8x8xf32>
      %998 = arith.mulf %987, %997 : vector<8x8xf32>
      %999 = arith.addf %996, %998 : vector<8x8xf32>
      %1000 = math.tanh %999 : vector<8x8xf32>
      %cst_187 = arith.constant 1.000000e+00 : f32
      %1001 = vector.broadcast %cst_187 : f32 to vector<8x8xf32>
      %1002 = arith.subf %1001, %995 : vector<8x8xf32>
      %1003 = arith.mulf %1002, %1000 : vector<8x8xf32>
      %1004 = arith.mulf %995, %943 : vector<8x8xf32>
      %1005 = arith.addf %1003, %1004 : vector<8x8xf32>
      %1006 = vector.extract_strided_slice %951 {offsets = [16, 24], sizes = [8, 24], strides = [1, 1]} : vector<32x48xf32> to vector<8x24xf32>
      %1007 = vector.extract_strided_slice %935 {offsets = [0, 0], sizes = [8, 8], strides = [1, 1]} : vector<8x24xf32> to vector<8x8xf32>
      %1008 = vector.extract_strided_slice %1006 {offsets = [0, 0], sizes = [8, 8], strides = [1, 1]} : vector<8x24xf32> to vector<8x8xf32>
      %1009 = arith.addf %1007, %1008 : vector<8x8xf32>
      %1010 = arith.negf %1009 : vector<8x8xf32>
      %1011 = math.exp %1010 : vector<8x8xf32>
      %cst_188 = arith.constant 1.000000e+00 : f32
      %1012 = vector.broadcast %cst_188 : f32 to vector<8x8xf32>
      %1013 = arith.addf %1012, %1011 : vector<8x8xf32>
      %1014 = arith.divf %1012, %1013 : vector<8x8xf32>
      %1015 = vector.extract_strided_slice %935 {offsets = [0, 8], sizes = [8, 8], strides = [1, 1]} : vector<8x24xf32> to vector<8x8xf32>
      %1016 = vector.extract_strided_slice %1006 {offsets = [0, 8], sizes = [8, 8], strides = [1, 1]} : vector<8x24xf32> to vector<8x8xf32>
      %1017 = arith.addf %1015, %1016 : vector<8x8xf32>
      %1018 = arith.negf %1017 : vector<8x8xf32>
      %1019 = math.exp %1018 : vector<8x8xf32>
      %cst_189 = arith.constant 1.000000e+00 : f32
      %1020 = vector.broadcast %cst_189 : f32 to vector<8x8xf32>
      %1021 = arith.addf %1020, %1019 : vector<8x8xf32>
      %1022 = arith.divf %1020, %1021 : vector<8x8xf32>
      %1023 = vector.extract_strided_slice %935 {offsets = [0, 16], sizes = [8, 8], strides = [1, 1]} : vector<8x24xf32> to vector<8x8xf32>
      %1024 = vector.extract_strided_slice %1006 {offsets = [0, 16], sizes = [8, 8], strides = [1, 1]} : vector<8x24xf32> to vector<8x8xf32>
      %1025 = arith.mulf %1014, %1024 : vector<8x8xf32>
      %1026 = arith.addf %1023, %1025 : vector<8x8xf32>
      %1027 = math.tanh %1026 : vector<8x8xf32>
      %cst_190 = arith.constant 1.000000e+00 : f32
      %1028 = vector.broadcast %cst_190 : f32 to vector<8x8xf32>
      %1029 = arith.subf %1028, %1022 : vector<8x8xf32>
      %1030 = arith.mulf %1029, %1027 : vector<8x8xf32>
      %1031 = arith.mulf %1022, %944 : vector<8x8xf32>
      %1032 = arith.addf %1030, %1031 : vector<8x8xf32>
      %1033 = vector.extract_strided_slice %951 {offsets = [24, 24], sizes = [8, 24], strides = [1, 1]} : vector<32x48xf32> to vector<8x24xf32>
      %1034 = vector.extract_strided_slice %935 {offsets = [0, 0], sizes = [8, 8], strides = [1, 1]} : vector<8x24xf32> to vector<8x8xf32>
      %1035 = vector.extract_strided_slice %1033 {offsets = [0, 0], sizes = [8, 8], strides = [1, 1]} : vector<8x24xf32> to vector<8x8xf32>
      %1036 = arith.addf %1034, %1035 : vector<8x8xf32>
      %1037 = arith.negf %1036 : vector<8x8xf32>
      %1038 = math.exp %1037 : vector<8x8xf32>
      %cst_191 = arith.constant 1.000000e+00 : f32
      %1039 = vector.broadcast %cst_191 : f32 to vector<8x8xf32>
      %1040 = arith.addf %1039, %1038 : vector<8x8xf32>
      %1041 = arith.divf %1039, %1040 : vector<8x8xf32>
      %1042 = vector.extract_strided_slice %935 {offsets = [0, 8], sizes = [8, 8], strides = [1, 1]} : vector<8x24xf32> to vector<8x8xf32>
      %1043 = vector.extract_strided_slice %1033 {offsets = [0, 8], sizes = [8, 8], strides = [1, 1]} : vector<8x24xf32> to vector<8x8xf32>
      %1044 = arith.addf %1042, %1043 : vector<8x8xf32>
      %1045 = arith.negf %1044 : vector<8x8xf32>
      %1046 = math.exp %1045 : vector<8x8xf32>
      %cst_192 = arith.constant 1.000000e+00 : f32
      %1047 = vector.broadcast %cst_192 : f32 to vector<8x8xf32>
      %1048 = arith.addf %1047, %1046 : vector<8x8xf32>
      %1049 = arith.divf %1047, %1048 : vector<8x8xf32>
      %1050 = vector.extract_strided_slice %935 {offsets = [0, 16], sizes = [8, 8], strides = [1, 1]} : vector<8x24xf32> to vector<8x8xf32>
      %1051 = vector.extract_strided_slice %1033 {offsets = [0, 16], sizes = [8, 8], strides = [1, 1]} : vector<8x24xf32> to vector<8x8xf32>
      %1052 = arith.mulf %1041, %1051 : vector<8x8xf32>
      %1053 = arith.addf %1050, %1052 : vector<8x8xf32>
      %1054 = math.tanh %1053 : vector<8x8xf32>
      %cst_193 = arith.constant 1.000000e+00 : f32
      %1055 = vector.broadcast %cst_193 : f32 to vector<8x8xf32>
      %1056 = arith.subf %1055, %1049 : vector<8x8xf32>
      %1057 = arith.mulf %1056, %1054 : vector<8x8xf32>
      %1058 = arith.mulf %1049, %947 : vector<8x8xf32>
      %1059 = arith.addf %1057, %1058 : vector<8x8xf32>
      %1060 = tpu.concatenate %978, %1005, %1032, %1059 in 0 : vector<8x8xf32>, vector<8x8xf32>, vector<8x8xf32>, vector<8x8xf32> -> vector<32x8xf32>
      %1061 = vector.extract_strided_slice %1060 {offsets = [0, 0], sizes = [16, 8], strides = [1, 1]} : vector<32x8xf32> to vector<16x8xf32>
      %1062 = arith.index_cast %c6_i32 : i32 to index
      %c0_194 = arith.constant 0 : index
      %c0_195 = arith.constant 0 : index
      %1063 = vector.load %arg23[%1062, %c0_194, %c0_195] : memref<8x16x8xf32, #tpu.memory_space<vmem>>, vector<1x16x8xf32>
      %1064 = vector.shape_cast %1063 : vector<1x16x8xf32> to vector<16x8xf32>
      %1065 = vector.shape_cast %1061 : vector<16x8xf32> to vector<1x16x8xf32>
      tpu.vector_store %arg23[%1062, %c0_194, %c0_195], %1065 {strides = array<i32>} : memref<8x16x8xf32, #tpu.memory_space<vmem>>, vector<1x16x8xf32>,
      %1066 = vector.extract_strided_slice %1060 {offsets = [16, 0], sizes = [16, 8], strides = [1, 1]} : vector<32x8xf32> to vector<16x8xf32>
      %1067 = arith.index_cast %927 : i32 to index
      %c0_196 = arith.constant 0 : index
      %c0_197 = arith.constant 0 : index
      %1068 = vector.load %arg24[%1067, %c0_196, %c0_197] : memref<8x16x8xf32, #tpu.memory_space<vmem>>, vector<1x16x8xf32>
      %1069 = vector.shape_cast %1068 : vector<1x16x8xf32> to vector<16x8xf32>
      %1070 = vector.shape_cast %1066 : vector<16x8xf32> to vector<1x16x8xf32>
      tpu.vector_store %arg24[%1067, %c0_196, %c0_197], %1070 {strides = array<i32>} : memref<8x16x8xf32, #tpu.memory_space<vmem>>, vector<1x16x8xf32>,
      %c7_i32_198 = arith.constant 7 : i32
      %c7_i32_199 = arith.constant 7 : i32
      %1071 = arith.subi %c7_i32_199, %c7_i32_198 : i32
      %c8_i32_200 = arith.constant 8 : i32
      %1072 = arith.muli %c7_i32_198, %c8_i32_200 : i32
      %1073 = tpu.assume_multiple %1072, 8 : i32
      %c8_i32_201 = arith.constant 8 : i32
      %1074 = arith.muli %1071, %c8_i32_201 : i32
      %1075 = tpu.assume_multiple %1074, 8 : i32
      %1076 = arith.index_cast %1073 : i32 to index
      %c0_202 = arith.constant 0 : index
      %1077 = vector.load %alloca[%1076, %c0_202] : memref<64x24xf32, #tpu.memory_space<vmem>>, vector<8x24xf32>
      %1078 = arith.index_cast %1075 : i32 to index
      %c0_203 = arith.constant 0 : index
      %1079 = vector.load %alloca_22[%1078, %c0_203] : memref<64x24xf32, #tpu.memory_space<vmem>>, vector<8x24xf32>
      %1080 = arith.index_cast %c7_i32_198 : i32 to index
      %1081 = memref.load %arg1[%1080] : memref<8xf32, #tpu.memory_space<smem>>
      %1082 = arith.index_cast %1071 : i32 to index
      %1083 = memref.load %arg2[%1082] : memref<8xf32, #tpu.memory_space<smem>>
      %1084 = vector.extract_strided_slice %1060 {offsets = [0, 0], sizes = [8, 8], strides = [1, 1]} : vector<32x8xf32> to vector<8x8xf32>
      %1085 = vector.extract_strided_slice %1060 {offsets = [8, 0], sizes = [8, 8], strides = [1, 1]} : vector<32x8xf32> to vector<8x8xf32>
      %1086 = vector.broadcast %1081 : f32 to vector<8x8xf32>
      %1087 = arith.mulf %1085, %1086 : vector<8x8xf32>
      %1088 = vector.extract_strided_slice %1060 {offsets = [16, 0], sizes = [8, 8], strides = [1, 1]} : vector<32x8xf32> to vector<8x8xf32>
      %1089 = vector.extract_strided_slice %1060 {offsets = [24, 0], sizes = [8, 8], strides = [1, 1]} : vector<32x8xf32> to vector<8x8xf32>
      %1090 = vector.broadcast %1083 : f32 to vector<8x8xf32>
      %1091 = arith.mulf %1089, %1090 : vector<8x8xf32>
      %1092 = tpu.concatenate %1084, %1087, %1088, %1091 in 0 : vector<8x8xf32>, vector<8x8xf32>, vector<8x8xf32>, vector<8x8xf32> -> vector<32x8xf32>
      %cst_204 = arith.constant dense<0.000000e+00> : vector<32x48xf32>
      %1093 = tpu.matmul %1092, %60, %cst_204 {dimension_numbers = #tpu.dot_dimension_numbers<[1], [0], [0], [1], [0, 0, 1, 1], [], []>} : vector<32x8xf32>, vector<8x48xf32>, vector<32x48xf32> -> vector<32x48xf32>
      %1094 = vector.broadcast %61 : vector<1x48xf32> to vector<32x48xf32>
      %1095 = arith.addf %1093, %1094 : vector<32x48xf32>
      %1096 = vector.extract_strided_slice %1095 {offsets = [0, 0], sizes = [8, 24], strides = [1, 1]} : vector<32x48xf32> to vector<8x24xf32>
      %1097 = vector.extract_strided_slice %1077 {offsets = [0, 0], sizes = [8, 8], strides = [1, 1]} : vector<8x24xf32> to vector<8x8xf32>
      %1098 = vector.extract_strided_slice %1096 {offsets = [0, 0], sizes = [8, 8], strides = [1, 1]} : vector<8x24xf32> to vector<8x8xf32>
      %1099 = arith.addf %1097, %1098 : vector<8x8xf32>
      %1100 = arith.negf %1099 : vector<8x8xf32>
      %1101 = math.exp %1100 : vector<8x8xf32>
      %cst_205 = arith.constant 1.000000e+00 : f32
      %1102 = vector.broadcast %cst_205 : f32 to vector<8x8xf32>
      %1103 = arith.addf %1102, %1101 : vector<8x8xf32>
      %1104 = arith.divf %1102, %1103 : vector<8x8xf32>
      %1105 = vector.extract_strided_slice %1077 {offsets = [0, 8], sizes = [8, 8], strides = [1, 1]} : vector<8x24xf32> to vector<8x8xf32>
      %1106 = vector.extract_strided_slice %1096 {offsets = [0, 8], sizes = [8, 8], strides = [1, 1]} : vector<8x24xf32> to vector<8x8xf32>
      %1107 = arith.addf %1105, %1106 : vector<8x8xf32>
      %1108 = arith.negf %1107 : vector<8x8xf32>
      %1109 = math.exp %1108 : vector<8x8xf32>
      %cst_206 = arith.constant 1.000000e+00 : f32
      %1110 = vector.broadcast %cst_206 : f32 to vector<8x8xf32>
      %1111 = arith.addf %1110, %1109 : vector<8x8xf32>
      %1112 = arith.divf %1110, %1111 : vector<8x8xf32>
      %1113 = vector.extract_strided_slice %1077 {offsets = [0, 16], sizes = [8, 8], strides = [1, 1]} : vector<8x24xf32> to vector<8x8xf32>
      %1114 = vector.extract_strided_slice %1096 {offsets = [0, 16], sizes = [8, 8], strides = [1, 1]} : vector<8x24xf32> to vector<8x8xf32>
      %1115 = arith.mulf %1104, %1114 : vector<8x8xf32>
      %1116 = arith.addf %1113, %1115 : vector<8x8xf32>
      %1117 = math.tanh %1116 : vector<8x8xf32>
      %cst_207 = arith.constant 1.000000e+00 : f32
      %1118 = vector.broadcast %cst_207 : f32 to vector<8x8xf32>
      %1119 = arith.subf %1118, %1112 : vector<8x8xf32>
      %1120 = arith.mulf %1119, %1117 : vector<8x8xf32>
      %1121 = arith.mulf %1112, %1084 : vector<8x8xf32>
      %1122 = arith.addf %1120, %1121 : vector<8x8xf32>
      %1123 = vector.extract_strided_slice %1095 {offsets = [8, 0], sizes = [8, 24], strides = [1, 1]} : vector<32x48xf32> to vector<8x24xf32>
      %1124 = vector.extract_strided_slice %1077 {offsets = [0, 0], sizes = [8, 8], strides = [1, 1]} : vector<8x24xf32> to vector<8x8xf32>
      %1125 = vector.extract_strided_slice %1123 {offsets = [0, 0], sizes = [8, 8], strides = [1, 1]} : vector<8x24xf32> to vector<8x8xf32>
      %1126 = arith.addf %1124, %1125 : vector<8x8xf32>
      %1127 = arith.negf %1126 : vector<8x8xf32>
      %1128 = math.exp %1127 : vector<8x8xf32>
      %cst_208 = arith.constant 1.000000e+00 : f32
      %1129 = vector.broadcast %cst_208 : f32 to vector<8x8xf32>
      %1130 = arith.addf %1129, %1128 : vector<8x8xf32>
      %1131 = arith.divf %1129, %1130 : vector<8x8xf32>
      %1132 = vector.extract_strided_slice %1077 {offsets = [0, 8], sizes = [8, 8], strides = [1, 1]} : vector<8x24xf32> to vector<8x8xf32>
      %1133 = vector.extract_strided_slice %1123 {offsets = [0, 8], sizes = [8, 8], strides = [1, 1]} : vector<8x24xf32> to vector<8x8xf32>
      %1134 = arith.addf %1132, %1133 : vector<8x8xf32>
      %1135 = arith.negf %1134 : vector<8x8xf32>
      %1136 = math.exp %1135 : vector<8x8xf32>
      %cst_209 = arith.constant 1.000000e+00 : f32
      %1137 = vector.broadcast %cst_209 : f32 to vector<8x8xf32>
      %1138 = arith.addf %1137, %1136 : vector<8x8xf32>
      %1139 = arith.divf %1137, %1138 : vector<8x8xf32>
      %1140 = vector.extract_strided_slice %1077 {offsets = [0, 16], sizes = [8, 8], strides = [1, 1]} : vector<8x24xf32> to vector<8x8xf32>
      %1141 = vector.extract_strided_slice %1123 {offsets = [0, 16], sizes = [8, 8], strides = [1, 1]} : vector<8x24xf32> to vector<8x8xf32>
      %1142 = arith.mulf %1131, %1141 : vector<8x8xf32>
      %1143 = arith.addf %1140, %1142 : vector<8x8xf32>
      %1144 = math.tanh %1143 : vector<8x8xf32>
      %cst_210 = arith.constant 1.000000e+00 : f32
      %1145 = vector.broadcast %cst_210 : f32 to vector<8x8xf32>
      %1146 = arith.subf %1145, %1139 : vector<8x8xf32>
      %1147 = arith.mulf %1146, %1144 : vector<8x8xf32>
      %1148 = arith.mulf %1139, %1087 : vector<8x8xf32>
      %1149 = arith.addf %1147, %1148 : vector<8x8xf32>
      %1150 = vector.extract_strided_slice %1095 {offsets = [16, 24], sizes = [8, 24], strides = [1, 1]} : vector<32x48xf32> to vector<8x24xf32>
      %1151 = vector.extract_strided_slice %1079 {offsets = [0, 0], sizes = [8, 8], strides = [1, 1]} : vector<8x24xf32> to vector<8x8xf32>
      %1152 = vector.extract_strided_slice %1150 {offsets = [0, 0], sizes = [8, 8], strides = [1, 1]} : vector<8x24xf32> to vector<8x8xf32>
      %1153 = arith.addf %1151, %1152 : vector<8x8xf32>
      %1154 = arith.negf %1153 : vector<8x8xf32>
      %1155 = math.exp %1154 : vector<8x8xf32>
      %cst_211 = arith.constant 1.000000e+00 : f32
      %1156 = vector.broadcast %cst_211 : f32 to vector<8x8xf32>
      %1157 = arith.addf %1156, %1155 : vector<8x8xf32>
      %1158 = arith.divf %1156, %1157 : vector<8x8xf32>
      %1159 = vector.extract_strided_slice %1079 {offsets = [0, 8], sizes = [8, 8], strides = [1, 1]} : vector<8x24xf32> to vector<8x8xf32>
      %1160 = vector.extract_strided_slice %1150 {offsets = [0, 8], sizes = [8, 8], strides = [1, 1]} : vector<8x24xf32> to vector<8x8xf32>
      %1161 = arith.addf %1159, %1160 : vector<8x8xf32>
      %1162 = arith.negf %1161 : vector<8x8xf32>
      %1163 = math.exp %1162 : vector<8x8xf32>
      %cst_212 = arith.constant 1.000000e+00 : f32
      %1164 = vector.broadcast %cst_212 : f32 to vector<8x8xf32>
      %1165 = arith.addf %1164, %1163 : vector<8x8xf32>
      %1166 = arith.divf %1164, %1165 : vector<8x8xf32>
      %1167 = vector.extract_strided_slice %1079 {offsets = [0, 16], sizes = [8, 8], strides = [1, 1]} : vector<8x24xf32> to vector<8x8xf32>
      %1168 = vector.extract_strided_slice %1150 {offsets = [0, 16], sizes = [8, 8], strides = [1, 1]} : vector<8x24xf32> to vector<8x8xf32>
      %1169 = arith.mulf %1158, %1168 : vector<8x8xf32>
      %1170 = arith.addf %1167, %1169 : vector<8x8xf32>
      %1171 = math.tanh %1170 : vector<8x8xf32>
      %cst_213 = arith.constant 1.000000e+00 : f32
      %1172 = vector.broadcast %cst_213 : f32 to vector<8x8xf32>
      %1173 = arith.subf %1172, %1166 : vector<8x8xf32>
      %1174 = arith.mulf %1173, %1171 : vector<8x8xf32>
      %1175 = arith.mulf %1166, %1088 : vector<8x8xf32>
      %1176 = arith.addf %1174, %1175 : vector<8x8xf32>
      %1177 = vector.extract_strided_slice %1095 {offsets = [24, 24], sizes = [8, 24], strides = [1, 1]} : vector<32x48xf32> to vector<8x24xf32>
      %1178 = vector.extract_strided_slice %1079 {offsets = [0, 0], sizes = [8, 8], strides = [1, 1]} : vector<8x24xf32> to vector<8x8xf32>
      %1179 = vector.extract_strided_slice %1177 {offsets = [0, 0], sizes = [8, 8], strides = [1, 1]} : vector<8x24xf32> to vector<8x8xf32>
      %1180 = arith.addf %1178, %1179 : vector<8x8xf32>
      %1181 = arith.negf %1180 : vector<8x8xf32>
      %1182 = math.exp %1181 : vector<8x8xf32>
      %cst_214 = arith.constant 1.000000e+00 : f32
      %1183 = vector.broadcast %cst_214 : f32 to vector<8x8xf32>
      %1184 = arith.addf %1183, %1182 : vector<8x8xf32>
      %1185 = arith.divf %1183, %1184 : vector<8x8xf32>
      %1186 = vector.extract_strided_slice %1079 {offsets = [0, 8], sizes = [8, 8], strides = [1, 1]} : vector<8x24xf32> to vector<8x8xf32>
      %1187 = vector.extract_strided_slice %1177 {offsets = [0, 8], sizes = [8, 8], strides = [1, 1]} : vector<8x24xf32> to vector<8x8xf32>
      %1188 = arith.addf %1186, %1187 : vector<8x8xf32>
      %1189 = arith.negf %1188 : vector<8x8xf32>
      %1190 = math.exp %1189 : vector<8x8xf32>
      %cst_215 = arith.constant 1.000000e+00 : f32
      %1191 = vector.broadcast %cst_215 : f32 to vector<8x8xf32>
      %1192 = arith.addf %1191, %1190 : vector<8x8xf32>
      %1193 = arith.divf %1191, %1192 : vector<8x8xf32>
      %1194 = vector.extract_strided_slice %1079 {offsets = [0, 16], sizes = [8, 8], strides = [1, 1]} : vector<8x24xf32> to vector<8x8xf32>
      %1195 = vector.extract_strided_slice %1177 {offsets = [0, 16], sizes = [8, 8], strides = [1, 1]} : vector<8x24xf32> to vector<8x8xf32>
      %1196 = arith.mulf %1185, %1195 : vector<8x8xf32>
      %1197 = arith.addf %1194, %1196 : vector<8x8xf32>
      %1198 = math.tanh %1197 : vector<8x8xf32>
      %cst_216 = arith.constant 1.000000e+00 : f32
      %1199 = vector.broadcast %cst_216 : f32 to vector<8x8xf32>
      %1200 = arith.subf %1199, %1193 : vector<8x8xf32>
      %1201 = arith.mulf %1200, %1198 : vector<8x8xf32>
      %1202 = arith.mulf %1193, %1091 : vector<8x8xf32>
      %1203 = arith.addf %1201, %1202 : vector<8x8xf32>
      %1204 = tpu.concatenate %1122, %1149, %1176, %1203 in 0 : vector<8x8xf32>, vector<8x8xf32>, vector<8x8xf32>, vector<8x8xf32> -> vector<32x8xf32>
      %1205 = vector.extract_strided_slice %1204 {offsets = [0, 0], sizes = [16, 8], strides = [1, 1]} : vector<32x8xf32> to vector<16x8xf32>
      %1206 = arith.index_cast %c7_i32_198 : i32 to index
      %c0_217 = arith.constant 0 : index
      %c0_218 = arith.constant 0 : index
      %1207 = vector.load %arg23[%1206, %c0_217, %c0_218] : memref<8x16x8xf32, #tpu.memory_space<vmem>>, vector<1x16x8xf32>
      %1208 = vector.shape_cast %1207 : vector<1x16x8xf32> to vector<16x8xf32>
      %1209 = vector.shape_cast %1205 : vector<16x8xf32> to vector<1x16x8xf32>
      tpu.vector_store %arg23[%1206, %c0_217, %c0_218], %1209 {strides = array<i32>} : memref<8x16x8xf32, #tpu.memory_space<vmem>>, vector<1x16x8xf32>,
      %1210 = vector.extract_strided_slice %1204 {offsets = [16, 0], sizes = [16, 8], strides = [1, 1]} : vector<32x8xf32> to vector<16x8xf32>
      %1211 = arith.index_cast %1071 : i32 to index
      %c0_219 = arith.constant 0 : index
      %c0_220 = arith.constant 0 : index
      %1212 = vector.load %arg24[%1211, %c0_219, %c0_220] : memref<8x16x8xf32, #tpu.memory_space<vmem>>, vector<1x16x8xf32>
      %1213 = vector.shape_cast %1212 : vector<1x16x8xf32> to vector<16x8xf32>
      %1214 = vector.shape_cast %1210 : vector<16x8xf32> to vector<1x16x8xf32>
      tpu.vector_store %arg24[%1211, %c0_219, %c0_220], %1214 {strides = array<i32>} : memref<8x16x8xf32, #tpu.memory_space<vmem>>, vector<1x16x8xf32>,
      %c8_i32_221 = arith.constant 8 : i32
      tpu.yield
    }) : () -> ()
    %c0 = arith.constant 0 : index
    %c0_0 = arith.constant 0 : index
    %0 = vector.load %arg17[%c0, %c0_0] : memref<1x32xf32, #tpu.memory_space<vmem>>, vector<1x32xf32>
    %c0_1 = arith.constant 0 : index
    %c0_2 = arith.constant 0 : index
    %c0_3 = arith.constant 0 : index
    %1 = vector.load %arg23[%c0_1, %c0_2, %c0_3] : memref<8x16x8xf32, #tpu.memory_space<vmem>>, vector<8x8x8xf32>
    %c0_4 = arith.constant 0 : index
    %c8 = arith.constant 8 : index
    %c0_5 = arith.constant 0 : index
    %2 = vector.load %arg23[%c0_4, %c8, %c0_5] : memref<8x16x8xf32, #tpu.memory_space<vmem>>, vector<8x8x8xf32>
    %c0_6 = arith.constant 0 : index
    %c0_7 = arith.constant 0 : index
    %c0_8 = arith.constant 0 : index
    %3 = vector.load %arg24[%c0_6, %c0_7, %c0_8] : memref<8x16x8xf32, #tpu.memory_space<vmem>>, vector<8x8x8xf32>
    %c0_9 = arith.constant 0 : index
    %c8_10 = arith.constant 8 : index
    %c0_11 = arith.constant 0 : index
    %4 = vector.load %arg24[%c0_9, %c8_10, %c0_11] : memref<8x16x8xf32, #tpu.memory_space<vmem>>, vector<8x8x8xf32>
    %5 = vector.extract_strided_slice %0 {offsets = [0, 0], sizes = [1, 8], strides = [1, 1]} : vector<1x32xf32> to vector<1x8xf32>
    %6 = vector.shape_cast %5 : vector<1x8xf32> to vector<1x1x8xf32>
    %7 = vector.broadcast %6 : vector<1x1x8xf32> to vector<8x8x8xf32>
    %8 = arith.mulf %1, %7 : vector<8x8x8xf32>
    %cst = arith.constant dense<0.000000e+00> : vector<8x8xf32>
    %9 = vector.multi_reduction <add>, %8, %cst [2] : vector<8x8x8xf32> to vector<8x8xf32>
    %10 = vector.extract_strided_slice %0 {offsets = [0, 8], sizes = [1, 8], strides = [1, 1]} : vector<1x32xf32> to vector<1x8xf32>
    %11 = vector.shape_cast %10 : vector<1x8xf32> to vector<1x1x8xf32>
    %12 = vector.broadcast %11 : vector<1x1x8xf32> to vector<8x8x8xf32>
    %13 = arith.mulf %3, %12 : vector<8x8x8xf32>
    %cst_12 = arith.constant dense<0.000000e+00> : vector<8x8xf32>
    %14 = vector.multi_reduction <add>, %13, %cst_12 [2] : vector<8x8x8xf32> to vector<8x8xf32>
    %15 = arith.addf %9, %14 : vector<8x8xf32>
    %16 = vector.extract_strided_slice %0 {offsets = [0, 16], sizes = [1, 8], strides = [1, 1]} : vector<1x32xf32> to vector<1x8xf32>
    %17 = vector.shape_cast %16 : vector<1x8xf32> to vector<1x1x8xf32>
    %18 = vector.broadcast %17 : vector<1x1x8xf32> to vector<8x8x8xf32>
    %19 = arith.mulf %2, %18 : vector<8x8x8xf32>
    %cst_13 = arith.constant dense<0.000000e+00> : vector<8x8xf32>
    %20 = vector.multi_reduction <add>, %19, %cst_13 [2] : vector<8x8x8xf32> to vector<8x8xf32>
    %21 = arith.addf %15, %20 : vector<8x8xf32>
    %22 = vector.extract_strided_slice %0 {offsets = [0, 24], sizes = [1, 8], strides = [1, 1]} : vector<1x32xf32> to vector<1x8xf32>
    %23 = vector.shape_cast %22 : vector<1x8xf32> to vector<1x1x8xf32>
    %24 = vector.broadcast %23 : vector<1x1x8xf32> to vector<8x8x8xf32>
    %25 = arith.mulf %4, %24 : vector<8x8x8xf32>
    %cst_14 = arith.constant dense<0.000000e+00> : vector<8x8xf32>
    %26 = vector.multi_reduction <add>, %25, %cst_14 [2] : vector<8x8x8xf32> to vector<8x8xf32>
    %27 = arith.addf %21, %26 : vector<8x8xf32>
    %c0_15 = arith.constant 0 : index
    %c0_16 = arith.constant 0 : index
    %28 = vector.load %arg18[%c0_15, %c0_16] : memref<1x1xf32, #tpu.memory_space<vmem>>, vector<1x1xf32>
    %29 = vector.broadcast %28 : vector<1x1xf32> to vector<8x8xf32>
    %30 = arith.addf %27, %29 : vector<8x8xf32>
    %31 = tpu.transpose %30, [1, 0] : vector<8x8xf32> -> vector<8x8xf32>
    %cst_17 = arith.constant dense<0xFF800000> : vector<8xf32>
    %32 = vector.multi_reduction <maximumf>, %31, %cst_17 [1] : vector<8x8xf32> to vector<8xf32>
    %33 = vector.shape_cast %32 : vector<8xf32> to vector<8x1xf32>
    %34 = vector.broadcast %33 : vector<8x1xf32> to vector<8x8xf32>
    %35 = arith.subf %31, %34 : vector<8x8xf32>
    %36 = math.exp %35 : vector<8x8xf32>
    %cst_18 = arith.constant dense<0.000000e+00> : vector<8xf32>
    %37 = vector.multi_reduction <add>, %36, %cst_18 [1] : vector<8x8xf32> to vector<8xf32>
    %38 = vector.shape_cast %37 : vector<8xf32> to vector<8x1xf32>
    %39 = math.log %38 : vector<8x1xf32>
    %40 = arith.addf %33, %39 : vector<8x1xf32>
    %41 = vector.broadcast %40 : vector<8x1xf32> to vector<8x8xf32>
    %42 = arith.subf %31, %41 : vector<8x8xf32>
    %cst_19 = arith.constant 0.000000e+00 : f32
    %43 = vector.broadcast %cst_19 : f32 to vector<8x120xf32>
    %44 = tpu.concatenate %42, %43 in 1 : vector<8x8xf32>, vector<8x120xf32> -> vector<8x128xf32>
    %c0_20 = arith.constant 0 : index
    %c0_21 = arith.constant 0 : index
    %45 = vector.load %arg21[%c0_20, %c0_21] : memref<8x128xf32, #tpu.memory_space<vmem>>, vector<8x128xf32>
    tpu.vector_store %arg21[%c0_20, %c0_21], %44 {strides = array<i32>} : memref<8x128xf32, #tpu.memory_space<vmem>>, vector<8x128xf32>,
    "tpu.region"() ({
      %alloca = memref.alloca() : memref<64x24xf32, #tpu.memory_space<vmem>>
      %alloca_22 = memref.alloca() : memref<64x24xf32, #tpu.memory_space<vmem>>
      %alloca_23 = memref.alloca() : memref<8x16x8xf32, #tpu.memory_space<vmem>>
      %alloca_24 = memref.alloca() : memref<8x16x8xf32, #tpu.memory_space<vmem>>
      %c0_25 = arith.constant 0 : index
      %c0_26 = arith.constant 0 : index
      %c0_27 = arith.constant 0 : index
      %46 = vector.load %arg23[%c0_25, %c0_26, %c0_27] : memref<8x16x8xf32, #tpu.memory_space<vmem>>, vector<8x8x8xf32>
      %47 = vector.shape_cast %46 : vector<8x8x8xf32> to vector<64x8xf32>
      %c0_28 = arith.constant 0 : index
      %c0_29 = arith.constant 0 : index
      %c0_30 = arith.constant 0 : index
      %48 = vector.load %arg24[%c0_28, %c0_29, %c0_30] : memref<8x16x8xf32, #tpu.memory_space<vmem>>, vector<8x8x8xf32>
      %49 = vector.shape_cast %48 : vector<8x8x8xf32> to vector<64x8xf32>
      %c0_31 = arith.constant 0 : index
      %c0_32 = arith.constant 0 : index
      %50 = vector.load %arg0[%c0_31, %c0_32] : memref<64x16xbf16, #tpu.memory_space<vmem>>, vector<64x16xbf16>
      %c0_33 = arith.constant 0 : index
      %c0_34 = arith.constant 0 : index
      %51 = vector.load %arg9[%c0_33, %c0_34] : memref<16x24xbf16, #tpu.memory_space<vmem>>, vector<16x24xbf16>
      %cst_35 = arith.constant dense<0.000000e+00> : vector<64x24xf32>
      %52 = tpu.matmul %50, %51, %cst_35 {dimension_numbers = #tpu.dot_dimension_numbers<[1], [0], [0], [1], [0, 0, 1, 1], [], []>} : vector<64x16xbf16>, vector<16x24xbf16>, vector<64x24xf32> -> vector<64x24xf32>
      %c0_36 = arith.constant 0 : index
      %c0_37 = arith.constant 0 : index
      %53 = vector.load %arg11[%c0_36, %c0_37] : memref<16x24xf32, #tpu.memory_space<vmem>>, vector<8x24xf32>
      %cst_38 = arith.constant dense<0.000000e+00> : vector<64x24xf32>
      %54 = tpu.matmul %47, %53, %cst_38 {dimension_numbers = #tpu.dot_dimension_numbers<[1], [0], [0], [1], [0, 0, 1, 1], [], []>} : vector<64x8xf32>, vector<8x24xf32>, vector<64x24xf32> -> vector<64x24xf32>
      %55 = arith.addf %52, %54 : vector<64x24xf32>
      %c8_39 = arith.constant 8 : index
      %c0_40 = arith.constant 0 : index
      %56 = vector.load %arg11[%c8_39, %c0_40] : memref<16x24xf32, #tpu.memory_space<vmem>>, vector<8x24xf32>
      %cst_41 = arith.constant dense<0.000000e+00> : vector<64x24xf32>
      %57 = tpu.matmul %49, %56, %cst_41 {dimension_numbers = #tpu.dot_dimension_numbers<[1], [0], [0], [1], [0, 0, 1, 1], [], []>} : vector<64x8xf32>, vector<8x24xf32>, vector<64x24xf32> -> vector<64x24xf32>
      %58 = arith.addf %55, %57 : vector<64x24xf32>
      %c0_42 = arith.constant 0 : index
      %c0_43 = arith.constant 0 : index
      %59 = vector.load %arg13[%c0_42, %c0_43] : memref<1x24xf32, #tpu.memory_space<vmem>>, vector<1x24xf32>
      %60 = vector.broadcast %59 : vector<1x24xf32> to vector<64x24xf32>
      %61 = arith.addf %58, %60 : vector<64x24xf32>
      %c0_44 = arith.constant 0 : index
      %c0_45 = arith.constant 0 : index
      %62 = vector.load %alloca[%c0_44, %c0_45] : memref<64x24xf32, #tpu.memory_space<vmem>>, vector<64x24xf32>
      tpu.vector_store %alloca[%c0_44, %c0_45], %61 {strides = array<i32>} : memref<64x24xf32, #tpu.memory_space<vmem>>, vector<64x24xf32>,
      %c0_46 = arith.constant 0 : index
      %c0_47 = arith.constant 0 : index
      %63 = vector.load %arg0[%c0_46, %c0_47] : memref<64x16xbf16, #tpu.memory_space<vmem>>, vector<64x16xbf16>
      %c0_48 = arith.constant 0 : index
      %c0_49 = arith.constant 0 : index
      %64 = vector.load %arg10[%c0_48, %c0_49] : memref<16x24xbf16, #tpu.memory_space<vmem>>, vector<16x24xbf16>
      %cst_50 = arith.constant dense<0.000000e+00> : vector<64x24xf32>
      %65 = tpu.matmul %63, %64, %cst_50 {dimension_numbers = #tpu.dot_dimension_numbers<[1], [0], [0], [1], [0, 0, 1, 1], [], []>} : vector<64x16xbf16>, vector<16x24xbf16>, vector<64x24xf32> -> vector<64x24xf32>
      %c0_51 = arith.constant 0 : index
      %c0_52 = arith.constant 0 : index
      %66 = vector.load %arg12[%c0_51, %c0_52] : memref<16x24xf32, #tpu.memory_space<vmem>>, vector<8x24xf32>
      %cst_53 = arith.constant dense<0.000000e+00> : vector<64x24xf32>
      %67 = tpu.matmul %47, %66, %cst_53 {dimension_numbers = #tpu.dot_dimension_numbers<[1], [0], [0], [1], [0, 0, 1, 1], [], []>} : vector<64x8xf32>, vector<8x24xf32>, vector<64x24xf32> -> vector<64x24xf32>
      %68 = arith.addf %65, %67 : vector<64x24xf32>
      %c8_54 = arith.constant 8 : index
      %c0_55 = arith.constant 0 : index
      %69 = vector.load %arg12[%c8_54, %c0_55] : memref<16x24xf32, #tpu.memory_space<vmem>>, vector<8x24xf32>
      %cst_56 = arith.constant dense<0.000000e+00> : vector<64x24xf32>
      %70 = tpu.matmul %49, %69, %cst_56 {dimension_numbers = #tpu.dot_dimension_numbers<[1], [0], [0], [1], [0, 0, 1, 1], [], []>} : vector<64x8xf32>, vector<8x24xf32>, vector<64x24xf32> -> vector<64x24xf32>
      %71 = arith.addf %68, %70 : vector<64x24xf32>
      %c0_57 = arith.constant 0 : index
      %c0_58 = arith.constant 0 : index
      %72 = vector.load %arg14[%c0_57, %c0_58] : memref<1x24xf32, #tpu.memory_space<vmem>>, vector<1x24xf32>
      %73 = vector.broadcast %72 : vector<1x24xf32> to vector<64x24xf32>
      %74 = arith.addf %71, %73 : vector<64x24xf32>
      %c0_59 = arith.constant 0 : index
      %c0_60 = arith.constant 0 : index
      %75 = vector.load %alloca_22[%c0_59, %c0_60] : memref<64x24xf32, #tpu.memory_space<vmem>>, vector<64x24xf32>
      tpu.vector_store %alloca_22[%c0_59, %c0_60], %74 {strides = array<i32>} : memref<64x24xf32, #tpu.memory_space<vmem>>, vector<64x24xf32>,
      %c0_61 = arith.constant 0 : index
      %c0_62 = arith.constant 0 : index
      %76 = vector.load %arg15[%c0_61, %c0_62] : memref<8x48xf32, #tpu.memory_space<vmem>>, vector<8x48xf32>
      %c0_63 = arith.constant 0 : index
      %c0_64 = arith.constant 0 : index
      %77 = vector.load %arg16[%c0_63, %c0_64] : memref<1x48xf32, #tpu.memory_space<vmem>>, vector<1x48xf32>
      %cst_65 = arith.constant 0.000000e+00 : f32
      %78 = vector.broadcast %cst_65 : f32 to vector<32x8xf32>
      %c0_i32 = arith.constant 0 : i32
      %c7_i32 = arith.constant 7 : i32
      %79 = arith.subi %c7_i32, %c0_i32 : i32
      %c8_i32 = arith.constant 8 : i32
      %80 = arith.muli %c0_i32, %c8_i32 : i32
      %81 = tpu.assume_multiple %80, 8 : i32
      %c8_i32_66 = arith.constant 8 : i32
      %82 = arith.muli %79, %c8_i32_66 : i32
      %83 = tpu.assume_multiple %82, 8 : i32
      %84 = arith.index_cast %81 : i32 to index
      %c0_67 = arith.constant 0 : index
      %85 = vector.load %alloca[%84, %c0_67] : memref<64x24xf32, #tpu.memory_space<vmem>>, vector<8x24xf32>
      %86 = arith.index_cast %83 : i32 to index
      %c0_68 = arith.constant 0 : index
      %87 = vector.load %alloca_22[%86, %c0_68] : memref<64x24xf32, #tpu.memory_space<vmem>>, vector<8x24xf32>
      %88 = arith.index_cast %c0_i32 : i32 to index
      %89 = memref.load %arg1[%88] : memref<8xf32, #tpu.memory_space<smem>>
      %90 = arith.index_cast %79 : i32 to index
      %91 = memref.load %arg2[%90] : memref<8xf32, #tpu.memory_space<smem>>
      %92 = vector.extract_strided_slice %78 {offsets = [0, 0], sizes = [8, 8], strides = [1, 1]} : vector<32x8xf32> to vector<8x8xf32>
      %93 = vector.extract_strided_slice %78 {offsets = [8, 0], sizes = [8, 8], strides = [1, 1]} : vector<32x8xf32> to vector<8x8xf32>
      %94 = vector.broadcast %89 : f32 to vector<8x8xf32>
      %95 = arith.mulf %93, %94 : vector<8x8xf32>
      %96 = vector.extract_strided_slice %78 {offsets = [16, 0], sizes = [8, 8], strides = [1, 1]} : vector<32x8xf32> to vector<8x8xf32>
      %97 = vector.extract_strided_slice %78 {offsets = [24, 0], sizes = [8, 8], strides = [1, 1]} : vector<32x8xf32> to vector<8x8xf32>
      %98 = vector.broadcast %91 : f32 to vector<8x8xf32>
      %99 = arith.mulf %97, %98 : vector<8x8xf32>
      %100 = tpu.concatenate %92, %95, %96, %99 in 0 : vector<8x8xf32>, vector<8x8xf32>, vector<8x8xf32>, vector<8x8xf32> -> vector<32x8xf32>
      %cst_69 = arith.constant dense<0.000000e+00> : vector<32x48xf32>
      %101 = tpu.matmul %100, %76, %cst_69 {dimension_numbers = #tpu.dot_dimension_numbers<[1], [0], [0], [1], [0, 0, 1, 1], [], []>} : vector<32x8xf32>, vector<8x48xf32>, vector<32x48xf32> -> vector<32x48xf32>
      %102 = vector.broadcast %77 : vector<1x48xf32> to vector<32x48xf32>
      %103 = arith.addf %101, %102 : vector<32x48xf32>
      %104 = vector.extract_strided_slice %103 {offsets = [0, 0], sizes = [8, 24], strides = [1, 1]} : vector<32x48xf32> to vector<8x24xf32>
      %105 = vector.extract_strided_slice %85 {offsets = [0, 0], sizes = [8, 8], strides = [1, 1]} : vector<8x24xf32> to vector<8x8xf32>
      %106 = vector.extract_strided_slice %104 {offsets = [0, 0], sizes = [8, 8], strides = [1, 1]} : vector<8x24xf32> to vector<8x8xf32>
      %107 = arith.addf %105, %106 : vector<8x8xf32>
      %108 = arith.negf %107 : vector<8x8xf32>
      %109 = math.exp %108 : vector<8x8xf32>
      %cst_70 = arith.constant 1.000000e+00 : f32
      %110 = vector.broadcast %cst_70 : f32 to vector<8x8xf32>
      %111 = arith.addf %110, %109 : vector<8x8xf32>
      %112 = arith.divf %110, %111 : vector<8x8xf32>
      %113 = vector.extract_strided_slice %85 {offsets = [0, 8], sizes = [8, 8], strides = [1, 1]} : vector<8x24xf32> to vector<8x8xf32>
      %114 = vector.extract_strided_slice %104 {offsets = [0, 8], sizes = [8, 8], strides = [1, 1]} : vector<8x24xf32> to vector<8x8xf32>
      %115 = arith.addf %113, %114 : vector<8x8xf32>
      %116 = arith.negf %115 : vector<8x8xf32>
      %117 = math.exp %116 : vector<8x8xf32>
      %cst_71 = arith.constant 1.000000e+00 : f32
      %118 = vector.broadcast %cst_71 : f32 to vector<8x8xf32>
      %119 = arith.addf %118, %117 : vector<8x8xf32>
      %120 = arith.divf %118, %119 : vector<8x8xf32>
      %121 = vector.extract_strided_slice %85 {offsets = [0, 16], sizes = [8, 8], strides = [1, 1]} : vector<8x24xf32> to vector<8x8xf32>
      %122 = vector.extract_strided_slice %104 {offsets = [0, 16], sizes = [8, 8], strides = [1, 1]} : vector<8x24xf32> to vector<8x8xf32>
      %123 = arith.mulf %112, %122 : vector<8x8xf32>
      %124 = arith.addf %121, %123 : vector<8x8xf32>
      %125 = math.tanh %124 : vector<8x8xf32>
      %cst_72 = arith.constant 1.000000e+00 : f32
      %126 = vector.broadcast %cst_72 : f32 to vector<8x8xf32>
      %127 = arith.subf %126, %120 : vector<8x8xf32>
      %128 = arith.mulf %127, %125 : vector<8x8xf32>
      %129 = arith.mulf %120, %92 : vector<8x8xf32>
      %130 = arith.addf %128, %129 : vector<8x8xf32>
      %131 = vector.extract_strided_slice %103 {offsets = [8, 0], sizes = [8, 24], strides = [1, 1]} : vector<32x48xf32> to vector<8x24xf32>
      %132 = vector.extract_strided_slice %85 {offsets = [0, 0], sizes = [8, 8], strides = [1, 1]} : vector<8x24xf32> to vector<8x8xf32>
      %133 = vector.extract_strided_slice %131 {offsets = [0, 0], sizes = [8, 8], strides = [1, 1]} : vector<8x24xf32> to vector<8x8xf32>
      %134 = arith.addf %132, %133 : vector<8x8xf32>
      %135 = arith.negf %134 : vector<8x8xf32>
      %136 = math.exp %135 : vector<8x8xf32>
      %cst_73 = arith.constant 1.000000e+00 : f32
      %137 = vector.broadcast %cst_73 : f32 to vector<8x8xf32>
      %138 = arith.addf %137, %136 : vector<8x8xf32>
      %139 = arith.divf %137, %138 : vector<8x8xf32>
      %140 = vector.extract_strided_slice %85 {offsets = [0, 8], sizes = [8, 8], strides = [1, 1]} : vector<8x24xf32> to vector<8x8xf32>
      %141 = vector.extract_strided_slice %131 {offsets = [0, 8], sizes = [8, 8], strides = [1, 1]} : vector<8x24xf32> to vector<8x8xf32>
      %142 = arith.addf %140, %141 : vector<8x8xf32>
      %143 = arith.negf %142 : vector<8x8xf32>
      %144 = math.exp %143 : vector<8x8xf32>
      %cst_74 = arith.constant 1.000000e+00 : f32
      %145 = vector.broadcast %cst_74 : f32 to vector<8x8xf32>
      %146 = arith.addf %145, %144 : vector<8x8xf32>
      %147 = arith.divf %145, %146 : vector<8x8xf32>
      %148 = vector.extract_strided_slice %85 {offsets = [0, 16], sizes = [8, 8], strides = [1, 1]} : vector<8x24xf32> to vector<8x8xf32>
      %149 = vector.extract_strided_slice %131 {offsets = [0, 16], sizes = [8, 8], strides = [1, 1]} : vector<8x24xf32> to vector<8x8xf32>
      %150 = arith.mulf %139, %149 : vector<8x8xf32>
      %151 = arith.addf %148, %150 : vector<8x8xf32>
      %152 = math.tanh %151 : vector<8x8xf32>
      %cst_75 = arith.constant 1.000000e+00 : f32
      %153 = vector.broadcast %cst_75 : f32 to vector<8x8xf32>
      %154 = arith.subf %153, %147 : vector<8x8xf32>
      %155 = arith.mulf %154, %152 : vector<8x8xf32>
      %156 = arith.mulf %147, %95 : vector<8x8xf32>
      %157 = arith.addf %155, %156 : vector<8x8xf32>
      %158 = vector.extract_strided_slice %103 {offsets = [16, 24], sizes = [8, 24], strides = [1, 1]} : vector<32x48xf32> to vector<8x24xf32>
      %159 = vector.extract_strided_slice %87 {offsets = [0, 0], sizes = [8, 8], strides = [1, 1]} : vector<8x24xf32> to vector<8x8xf32>
      %160 = vector.extract_strided_slice %158 {offsets = [0, 0], sizes = [8, 8], strides = [1, 1]} : vector<8x24xf32> to vector<8x8xf32>
      %161 = arith.addf %159, %160 : vector<8x8xf32>
      %162 = arith.negf %161 : vector<8x8xf32>
      %163 = math.exp %162 : vector<8x8xf32>
      %cst_76 = arith.constant 1.000000e+00 : f32
      %164 = vector.broadcast %cst_76 : f32 to vector<8x8xf32>
      %165 = arith.addf %164, %163 : vector<8x8xf32>
      %166 = arith.divf %164, %165 : vector<8x8xf32>
      %167 = vector.extract_strided_slice %87 {offsets = [0, 8], sizes = [8, 8], strides = [1, 1]} : vector<8x24xf32> to vector<8x8xf32>
      %168 = vector.extract_strided_slice %158 {offsets = [0, 8], sizes = [8, 8], strides = [1, 1]} : vector<8x24xf32> to vector<8x8xf32>
      %169 = arith.addf %167, %168 : vector<8x8xf32>
      %170 = arith.negf %169 : vector<8x8xf32>
      %171 = math.exp %170 : vector<8x8xf32>
      %cst_77 = arith.constant 1.000000e+00 : f32
      %172 = vector.broadcast %cst_77 : f32 to vector<8x8xf32>
      %173 = arith.addf %172, %171 : vector<8x8xf32>
      %174 = arith.divf %172, %173 : vector<8x8xf32>
      %175 = vector.extract_strided_slice %87 {offsets = [0, 16], sizes = [8, 8], strides = [1, 1]} : vector<8x24xf32> to vector<8x8xf32>
      %176 = vector.extract_strided_slice %158 {offsets = [0, 16], sizes = [8, 8], strides = [1, 1]} : vector<8x24xf32> to vector<8x8xf32>
      %177 = arith.mulf %166, %176 : vector<8x8xf32>
      %178 = arith.addf %175, %177 : vector<8x8xf32>
      %179 = math.tanh %178 : vector<8x8xf32>
      %cst_78 = arith.constant 1.000000e+00 : f32
      %180 = vector.broadcast %cst_78 : f32 to vector<8x8xf32>
      %181 = arith.subf %180, %174 : vector<8x8xf32>
      %182 = arith.mulf %181, %179 : vector<8x8xf32>
      %183 = arith.mulf %174, %96 : vector<8x8xf32>
      %184 = arith.addf %182, %183 : vector<8x8xf32>
      %185 = vector.extract_strided_slice %103 {offsets = [24, 24], sizes = [8, 24], strides = [1, 1]} : vector<32x48xf32> to vector<8x24xf32>
      %186 = vector.extract_strided_slice %87 {offsets = [0, 0], sizes = [8, 8], strides = [1, 1]} : vector<8x24xf32> to vector<8x8xf32>
      %187 = vector.extract_strided_slice %185 {offsets = [0, 0], sizes = [8, 8], strides = [1, 1]} : vector<8x24xf32> to vector<8x8xf32>
      %188 = arith.addf %186, %187 : vector<8x8xf32>
      %189 = arith.negf %188 : vector<8x8xf32>
      %190 = math.exp %189 : vector<8x8xf32>
      %cst_79 = arith.constant 1.000000e+00 : f32
      %191 = vector.broadcast %cst_79 : f32 to vector<8x8xf32>
      %192 = arith.addf %191, %190 : vector<8x8xf32>
      %193 = arith.divf %191, %192 : vector<8x8xf32>
      %194 = vector.extract_strided_slice %87 {offsets = [0, 8], sizes = [8, 8], strides = [1, 1]} : vector<8x24xf32> to vector<8x8xf32>
      %195 = vector.extract_strided_slice %185 {offsets = [0, 8], sizes = [8, 8], strides = [1, 1]} : vector<8x24xf32> to vector<8x8xf32>
      %196 = arith.addf %194, %195 : vector<8x8xf32>
      %197 = arith.negf %196 : vector<8x8xf32>
      %198 = math.exp %197 : vector<8x8xf32>
      %cst_80 = arith.constant 1.000000e+00 : f32
      %199 = vector.broadcast %cst_80 : f32 to vector<8x8xf32>
      %200 = arith.addf %199, %198 : vector<8x8xf32>
      %201 = arith.divf %199, %200 : vector<8x8xf32>
      %202 = vector.extract_strided_slice %87 {offsets = [0, 16], sizes = [8, 8], strides = [1, 1]} : vector<8x24xf32> to vector<8x8xf32>
      %203 = vector.extract_strided_slice %185 {offsets = [0, 16], sizes = [8, 8], strides = [1, 1]} : vector<8x24xf32> to vector<8x8xf32>
      %204 = arith.mulf %193, %203 : vector<8x8xf32>
      %205 = arith.addf %202, %204 : vector<8x8xf32>
      %206 = math.tanh %205 : vector<8x8xf32>
      %cst_81 = arith.constant 1.000000e+00 : f32
      %207 = vector.broadcast %cst_81 : f32 to vector<8x8xf32>
      %208 = arith.subf %207, %201 : vector<8x8xf32>
      %209 = arith.mulf %208, %206 : vector<8x8xf32>
      %210 = arith.mulf %201, %99 : vector<8x8xf32>
      %211 = arith.addf %209, %210 : vector<8x8xf32>
      %212 = tpu.concatenate %130, %157, %184, %211 in 0 : vector<8x8xf32>, vector<8x8xf32>, vector<8x8xf32>, vector<8x8xf32> -> vector<32x8xf32>
      %213 = vector.extract_strided_slice %212 {offsets = [0, 0], sizes = [16, 8], strides = [1, 1]} : vector<32x8xf32> to vector<16x8xf32>
      %214 = arith.index_cast %c0_i32 : i32 to index
      %c0_82 = arith.constant 0 : index
      %c0_83 = arith.constant 0 : index
      %215 = vector.load %alloca_23[%214, %c0_82, %c0_83] : memref<8x16x8xf32, #tpu.memory_space<vmem>>, vector<1x16x8xf32>
      %216 = vector.shape_cast %215 : vector<1x16x8xf32> to vector<16x8xf32>
      %217 = vector.shape_cast %213 : vector<16x8xf32> to vector<1x16x8xf32>
      tpu.vector_store %alloca_23[%214, %c0_82, %c0_83], %217 {strides = array<i32>} : memref<8x16x8xf32, #tpu.memory_space<vmem>>, vector<1x16x8xf32>,
      %218 = vector.extract_strided_slice %212 {offsets = [16, 0], sizes = [16, 8], strides = [1, 1]} : vector<32x8xf32> to vector<16x8xf32>
      %219 = arith.index_cast %79 : i32 to index
      %c0_84 = arith.constant 0 : index
      %c0_85 = arith.constant 0 : index
      %220 = vector.load %alloca_24[%219, %c0_84, %c0_85] : memref<8x16x8xf32, #tpu.memory_space<vmem>>, vector<1x16x8xf32>
      %221 = vector.shape_cast %220 : vector<1x16x8xf32> to vector<16x8xf32>
      %222 = vector.shape_cast %218 : vector<16x8xf32> to vector<1x16x8xf32>
      tpu.vector_store %alloca_24[%219, %c0_84, %c0_85], %222 {strides = array<i32>} : memref<8x16x8xf32, #tpu.memory_space<vmem>>, vector<1x16x8xf32>,
      %c1_i32 = arith.constant 1 : i32
      %c7_i32_86 = arith.constant 7 : i32
      %223 = arith.subi %c7_i32_86, %c1_i32 : i32
      %c8_i32_87 = arith.constant 8 : i32
      %224 = arith.muli %c1_i32, %c8_i32_87 : i32
      %225 = tpu.assume_multiple %224, 8 : i32
      %c8_i32_88 = arith.constant 8 : i32
      %226 = arith.muli %223, %c8_i32_88 : i32
      %227 = tpu.assume_multiple %226, 8 : i32
      %228 = arith.index_cast %225 : i32 to index
      %c0_89 = arith.constant 0 : index
      %229 = vector.load %alloca[%228, %c0_89] : memref<64x24xf32, #tpu.memory_space<vmem>>, vector<8x24xf32>
      %230 = arith.index_cast %227 : i32 to index
      %c0_90 = arith.constant 0 : index
      %231 = vector.load %alloca_22[%230, %c0_90] : memref<64x24xf32, #tpu.memory_space<vmem>>, vector<8x24xf32>
      %232 = arith.index_cast %c1_i32 : i32 to index
      %233 = memref.load %arg1[%232] : memref<8xf32, #tpu.memory_space<smem>>
      %234 = arith.index_cast %223 : i32 to index
      %235 = memref.load %arg2[%234] : memref<8xf32, #tpu.memory_space<smem>>
      %236 = vector.extract_strided_slice %212 {offsets = [0, 0], sizes = [8, 8], strides = [1, 1]} : vector<32x8xf32> to vector<8x8xf32>
      %237 = vector.extract_strided_slice %212 {offsets = [8, 0], sizes = [8, 8], strides = [1, 1]} : vector<32x8xf32> to vector<8x8xf32>
      %238 = vector.broadcast %233 : f32 to vector<8x8xf32>
      %239 = arith.mulf %237, %238 : vector<8x8xf32>
      %240 = vector.extract_strided_slice %212 {offsets = [16, 0], sizes = [8, 8], strides = [1, 1]} : vector<32x8xf32> to vector<8x8xf32>
      %241 = vector.extract_strided_slice %212 {offsets = [24, 0], sizes = [8, 8], strides = [1, 1]} : vector<32x8xf32> to vector<8x8xf32>
      %242 = vector.broadcast %235 : f32 to vector<8x8xf32>
      %243 = arith.mulf %241, %242 : vector<8x8xf32>
      %244 = tpu.concatenate %236, %239, %240, %243 in 0 : vector<8x8xf32>, vector<8x8xf32>, vector<8x8xf32>, vector<8x8xf32> -> vector<32x8xf32>
      %cst_91 = arith.constant dense<0.000000e+00> : vector<32x48xf32>
      %245 = tpu.matmul %244, %76, %cst_91 {dimension_numbers = #tpu.dot_dimension_numbers<[1], [0], [0], [1], [0, 0, 1, 1], [], []>} : vector<32x8xf32>, vector<8x48xf32>, vector<32x48xf32> -> vector<32x48xf32>
      %246 = vector.broadcast %77 : vector<1x48xf32> to vector<32x48xf32>
      %247 = arith.addf %245, %246 : vector<32x48xf32>
      %248 = vector.extract_strided_slice %247 {offsets = [0, 0], sizes = [8, 24], strides = [1, 1]} : vector<32x48xf32> to vector<8x24xf32>
      %249 = vector.extract_strided_slice %229 {offsets = [0, 0], sizes = [8, 8], strides = [1, 1]} : vector<8x24xf32> to vector<8x8xf32>
      %250 = vector.extract_strided_slice %248 {offsets = [0, 0], sizes = [8, 8], strides = [1, 1]} : vector<8x24xf32> to vector<8x8xf32>
      %251 = arith.addf %249, %250 : vector<8x8xf32>
      %252 = arith.negf %251 : vector<8x8xf32>
      %253 = math.exp %252 : vector<8x8xf32>
      %cst_92 = arith.constant 1.000000e+00 : f32
      %254 = vector.broadcast %cst_92 : f32 to vector<8x8xf32>
      %255 = arith.addf %254, %253 : vector<8x8xf32>
      %256 = arith.divf %254, %255 : vector<8x8xf32>
      %257 = vector.extract_strided_slice %229 {offsets = [0, 8], sizes = [8, 8], strides = [1, 1]} : vector<8x24xf32> to vector<8x8xf32>
      %258 = vector.extract_strided_slice %248 {offsets = [0, 8], sizes = [8, 8], strides = [1, 1]} : vector<8x24xf32> to vector<8x8xf32>
      %259 = arith.addf %257, %258 : vector<8x8xf32>
      %260 = arith.negf %259 : vector<8x8xf32>
      %261 = math.exp %260 : vector<8x8xf32>
      %cst_93 = arith.constant 1.000000e+00 : f32
      %262 = vector.broadcast %cst_93 : f32 to vector<8x8xf32>
      %263 = arith.addf %262, %261 : vector<8x8xf32>
      %264 = arith.divf %262, %263 : vector<8x8xf32>
      %265 = vector.extract_strided_slice %229 {offsets = [0, 16], sizes = [8, 8], strides = [1, 1]} : vector<8x24xf32> to vector<8x8xf32>
      %266 = vector.extract_strided_slice %248 {offsets = [0, 16], sizes = [8, 8], strides = [1, 1]} : vector<8x24xf32> to vector<8x8xf32>
      %267 = arith.mulf %256, %266 : vector<8x8xf32>
      %268 = arith.addf %265, %267 : vector<8x8xf32>
      %269 = math.tanh %268 : vector<8x8xf32>
      %cst_94 = arith.constant 1.000000e+00 : f32
      %270 = vector.broadcast %cst_94 : f32 to vector<8x8xf32>
      %271 = arith.subf %270, %264 : vector<8x8xf32>
      %272 = arith.mulf %271, %269 : vector<8x8xf32>
      %273 = arith.mulf %264, %236 : vector<8x8xf32>
      %274 = arith.addf %272, %273 : vector<8x8xf32>
      %275 = vector.extract_strided_slice %247 {offsets = [8, 0], sizes = [8, 24], strides = [1, 1]} : vector<32x48xf32> to vector<8x24xf32>
      %276 = vector.extract_strided_slice %229 {offsets = [0, 0], sizes = [8, 8], strides = [1, 1]} : vector<8x24xf32> to vector<8x8xf32>
      %277 = vector.extract_strided_slice %275 {offsets = [0, 0], sizes = [8, 8], strides = [1, 1]} : vector<8x24xf32> to vector<8x8xf32>
      %278 = arith.addf %276, %277 : vector<8x8xf32>
      %279 = arith.negf %278 : vector<8x8xf32>
      %280 = math.exp %279 : vector<8x8xf32>
      %cst_95 = arith.constant 1.000000e+00 : f32
      %281 = vector.broadcast %cst_95 : f32 to vector<8x8xf32>
      %282 = arith.addf %281, %280 : vector<8x8xf32>
      %283 = arith.divf %281, %282 : vector<8x8xf32>
      %284 = vector.extract_strided_slice %229 {offsets = [0, 8], sizes = [8, 8], strides = [1, 1]} : vector<8x24xf32> to vector<8x8xf32>
      %285 = vector.extract_strided_slice %275 {offsets = [0, 8], sizes = [8, 8], strides = [1, 1]} : vector<8x24xf32> to vector<8x8xf32>
      %286 = arith.addf %284, %285 : vector<8x8xf32>
      %287 = arith.negf %286 : vector<8x8xf32>
      %288 = math.exp %287 : vector<8x8xf32>
      %cst_96 = arith.constant 1.000000e+00 : f32
      %289 = vector.broadcast %cst_96 : f32 to vector<8x8xf32>
      %290 = arith.addf %289, %288 : vector<8x8xf32>
      %291 = arith.divf %289, %290 : vector<8x8xf32>
      %292 = vector.extract_strided_slice %229 {offsets = [0, 16], sizes = [8, 8], strides = [1, 1]} : vector<8x24xf32> to vector<8x8xf32>
      %293 = vector.extract_strided_slice %275 {offsets = [0, 16], sizes = [8, 8], strides = [1, 1]} : vector<8x24xf32> to vector<8x8xf32>
      %294 = arith.mulf %283, %293 : vector<8x8xf32>
      %295 = arith.addf %292, %294 : vector<8x8xf32>
      %296 = math.tanh %295 : vector<8x8xf32>
      %cst_97 = arith.constant 1.000000e+00 : f32
      %297 = vector.broadcast %cst_97 : f32 to vector<8x8xf32>
      %298 = arith.subf %297, %291 : vector<8x8xf32>
      %299 = arith.mulf %298, %296 : vector<8x8xf32>
      %300 = arith.mulf %291, %239 : vector<8x8xf32>
      %301 = arith.addf %299, %300 : vector<8x8xf32>
      %302 = vector.extract_strided_slice %247 {offsets = [16, 24], sizes = [8, 24], strides = [1, 1]} : vector<32x48xf32> to vector<8x24xf32>
      %303 = vector.extract_strided_slice %231 {offsets = [0, 0], sizes = [8, 8], strides = [1, 1]} : vector<8x24xf32> to vector<8x8xf32>
      %304 = vector.extract_strided_slice %302 {offsets = [0, 0], sizes = [8, 8], strides = [1, 1]} : vector<8x24xf32> to vector<8x8xf32>
      %305 = arith.addf %303, %304 : vector<8x8xf32>
      %306 = arith.negf %305 : vector<8x8xf32>
      %307 = math.exp %306 : vector<8x8xf32>
      %cst_98 = arith.constant 1.000000e+00 : f32
      %308 = vector.broadcast %cst_98 : f32 to vector<8x8xf32>
      %309 = arith.addf %308, %307 : vector<8x8xf32>
      %310 = arith.divf %308, %309 : vector<8x8xf32>
      %311 = vector.extract_strided_slice %231 {offsets = [0, 8], sizes = [8, 8], strides = [1, 1]} : vector<8x24xf32> to vector<8x8xf32>
      %312 = vector.extract_strided_slice %302 {offsets = [0, 8], sizes = [8, 8], strides = [1, 1]} : vector<8x24xf32> to vector<8x8xf32>
      %313 = arith.addf %311, %312 : vector<8x8xf32>
      %314 = arith.negf %313 : vector<8x8xf32>
      %315 = math.exp %314 : vector<8x8xf32>
      %cst_99 = arith.constant 1.000000e+00 : f32
      %316 = vector.broadcast %cst_99 : f32 to vector<8x8xf32>
      %317 = arith.addf %316, %315 : vector<8x8xf32>
      %318 = arith.divf %316, %317 : vector<8x8xf32>
      %319 = vector.extract_strided_slice %231 {offsets = [0, 16], sizes = [8, 8], strides = [1, 1]} : vector<8x24xf32> to vector<8x8xf32>
      %320 = vector.extract_strided_slice %302 {offsets = [0, 16], sizes = [8, 8], strides = [1, 1]} : vector<8x24xf32> to vector<8x8xf32>
      %321 = arith.mulf %310, %320 : vector<8x8xf32>
      %322 = arith.addf %319, %321 : vector<8x8xf32>
      %323 = math.tanh %322 : vector<8x8xf32>
      %cst_100 = arith.constant 1.000000e+00 : f32
      %324 = vector.broadcast %cst_100 : f32 to vector<8x8xf32>
      %325 = arith.subf %324, %318 : vector<8x8xf32>
      %326 = arith.mulf %325, %323 : vector<8x8xf32>
      %327 = arith.mulf %318, %240 : vector<8x8xf32>
      %328 = arith.addf %326, %327 : vector<8x8xf32>
      %329 = vector.extract_strided_slice %247 {offsets = [24, 24], sizes = [8, 24], strides = [1, 1]} : vector<32x48xf32> to vector<8x24xf32>
      %330 = vector.extract_strided_slice %231 {offsets = [0, 0], sizes = [8, 8], strides = [1, 1]} : vector<8x24xf32> to vector<8x8xf32>
      %331 = vector.extract_strided_slice %329 {offsets = [0, 0], sizes = [8, 8], strides = [1, 1]} : vector<8x24xf32> to vector<8x8xf32>
      %332 = arith.addf %330, %331 : vector<8x8xf32>
      %333 = arith.negf %332 : vector<8x8xf32>
      %334 = math.exp %333 : vector<8x8xf32>
      %cst_101 = arith.constant 1.000000e+00 : f32
      %335 = vector.broadcast %cst_101 : f32 to vector<8x8xf32>
      %336 = arith.addf %335, %334 : vector<8x8xf32>
      %337 = arith.divf %335, %336 : vector<8x8xf32>
      %338 = vector.extract_strided_slice %231 {offsets = [0, 8], sizes = [8, 8], strides = [1, 1]} : vector<8x24xf32> to vector<8x8xf32>
      %339 = vector.extract_strided_slice %329 {offsets = [0, 8], sizes = [8, 8], strides = [1, 1]} : vector<8x24xf32> to vector<8x8xf32>
      %340 = arith.addf %338, %339 : vector<8x8xf32>
      %341 = arith.negf %340 : vector<8x8xf32>
      %342 = math.exp %341 : vector<8x8xf32>
      %cst_102 = arith.constant 1.000000e+00 : f32
      %343 = vector.broadcast %cst_102 : f32 to vector<8x8xf32>
      %344 = arith.addf %343, %342 : vector<8x8xf32>
      %345 = arith.divf %343, %344 : vector<8x8xf32>
      %346 = vector.extract_strided_slice %231 {offsets = [0, 16], sizes = [8, 8], strides = [1, 1]} : vector<8x24xf32> to vector<8x8xf32>
      %347 = vector.extract_strided_slice %329 {offsets = [0, 16], sizes = [8, 8], strides = [1, 1]} : vector<8x24xf32> to vector<8x8xf32>
      %348 = arith.mulf %337, %347 : vector<8x8xf32>
      %349 = arith.addf %346, %348 : vector<8x8xf32>
      %350 = math.tanh %349 : vector<8x8xf32>
      %cst_103 = arith.constant 1.000000e+00 : f32
      %351 = vector.broadcast %cst_103 : f32 to vector<8x8xf32>
      %352 = arith.subf %351, %345 : vector<8x8xf32>
      %353 = arith.mulf %352, %350 : vector<8x8xf32>
      %354 = arith.mulf %345, %243 : vector<8x8xf32>
      %355 = arith.addf %353, %354 : vector<8x8xf32>
      %356 = tpu.concatenate %274, %301, %328, %355 in 0 : vector<8x8xf32>, vector<8x8xf32>, vector<8x8xf32>, vector<8x8xf32> -> vector<32x8xf32>
      %357 = vector.extract_strided_slice %356 {offsets = [0, 0], sizes = [16, 8], strides = [1, 1]} : vector<32x8xf32> to vector<16x8xf32>
      %358 = arith.index_cast %c1_i32 : i32 to index
      %c0_104 = arith.constant 0 : index
      %c0_105 = arith.constant 0 : index
      %359 = vector.load %alloca_23[%358, %c0_104, %c0_105] : memref<8x16x8xf32, #tpu.memory_space<vmem>>, vector<1x16x8xf32>
      %360 = vector.shape_cast %359 : vector<1x16x8xf32> to vector<16x8xf32>
      %361 = vector.shape_cast %357 : vector<16x8xf32> to vector<1x16x8xf32>
      tpu.vector_store %alloca_23[%358, %c0_104, %c0_105], %361 {strides = array<i32>} : memref<8x16x8xf32, #tpu.memory_space<vmem>>, vector<1x16x8xf32>,
      %362 = vector.extract_strided_slice %356 {offsets = [16, 0], sizes = [16, 8], strides = [1, 1]} : vector<32x8xf32> to vector<16x8xf32>
      %363 = arith.index_cast %223 : i32 to index
      %c0_106 = arith.constant 0 : index
      %c0_107 = arith.constant 0 : index
      %364 = vector.load %alloca_24[%363, %c0_106, %c0_107] : memref<8x16x8xf32, #tpu.memory_space<vmem>>, vector<1x16x8xf32>
      %365 = vector.shape_cast %364 : vector<1x16x8xf32> to vector<16x8xf32>
      %366 = vector.shape_cast %362 : vector<16x8xf32> to vector<1x16x8xf32>
      tpu.vector_store %alloca_24[%363, %c0_106, %c0_107], %366 {strides = array<i32>} : memref<8x16x8xf32, #tpu.memory_space<vmem>>, vector<1x16x8xf32>,
      %c2_i32 = arith.constant 2 : i32
      %c7_i32_108 = arith.constant 7 : i32
      %367 = arith.subi %c7_i32_108, %c2_i32 : i32
      %c8_i32_109 = arith.constant 8 : i32
      %368 = arith.muli %c2_i32, %c8_i32_109 : i32
      %369 = tpu.assume_multiple %368, 8 : i32
      %c8_i32_110 = arith.constant 8 : i32
      %370 = arith.muli %367, %c8_i32_110 : i32
      %371 = tpu.assume_multiple %370, 8 : i32
      %372 = arith.index_cast %369 : i32 to index
      %c0_111 = arith.constant 0 : index
      %373 = vector.load %alloca[%372, %c0_111] : memref<64x24xf32, #tpu.memory_space<vmem>>, vector<8x24xf32>
      %374 = arith.index_cast %371 : i32 to index
      %c0_112 = arith.constant 0 : index
      %375 = vector.load %alloca_22[%374, %c0_112] : memref<64x24xf32, #tpu.memory_space<vmem>>, vector<8x24xf32>
      %376 = arith.index_cast %c2_i32 : i32 to index
      %377 = memref.load %arg1[%376] : memref<8xf32, #tpu.memory_space<smem>>
      %378 = arith.index_cast %367 : i32 to index
      %379 = memref.load %arg2[%378] : memref<8xf32, #tpu.memory_space<smem>>
      %380 = vector.extract_strided_slice %356 {offsets = [0, 0], sizes = [8, 8], strides = [1, 1]} : vector<32x8xf32> to vector<8x8xf32>
      %381 = vector.extract_strided_slice %356 {offsets = [8, 0], sizes = [8, 8], strides = [1, 1]} : vector<32x8xf32> to vector<8x8xf32>
      %382 = vector.broadcast %377 : f32 to vector<8x8xf32>
      %383 = arith.mulf %381, %382 : vector<8x8xf32>
      %384 = vector.extract_strided_slice %356 {offsets = [16, 0], sizes = [8, 8], strides = [1, 1]} : vector<32x8xf32> to vector<8x8xf32>
      %385 = vector.extract_strided_slice %356 {offsets = [24, 0], sizes = [8, 8], strides = [1, 1]} : vector<32x8xf32> to vector<8x8xf32>
      %386 = vector.broadcast %379 : f32 to vector<8x8xf32>
      %387 = arith.mulf %385, %386 : vector<8x8xf32>
      %388 = tpu.concatenate %380, %383, %384, %387 in 0 : vector<8x8xf32>, vector<8x8xf32>, vector<8x8xf32>, vector<8x8xf32> -> vector<32x8xf32>
      %cst_113 = arith.constant dense<0.000000e+00> : vector<32x48xf32>
      %389 = tpu.matmul %388, %76, %cst_113 {dimension_numbers = #tpu.dot_dimension_numbers<[1], [0], [0], [1], [0, 0, 1, 1], [], []>} : vector<32x8xf32>, vector<8x48xf32>, vector<32x48xf32> -> vector<32x48xf32>
      %390 = vector.broadcast %77 : vector<1x48xf32> to vector<32x48xf32>
      %391 = arith.addf %389, %390 : vector<32x48xf32>
      %392 = vector.extract_strided_slice %391 {offsets = [0, 0], sizes = [8, 24], strides = [1, 1]} : vector<32x48xf32> to vector<8x24xf32>
      %393 = vector.extract_strided_slice %373 {offsets = [0, 0], sizes = [8, 8], strides = [1, 1]} : vector<8x24xf32> to vector<8x8xf32>
      %394 = vector.extract_strided_slice %392 {offsets = [0, 0], sizes = [8, 8], strides = [1, 1]} : vector<8x24xf32> to vector<8x8xf32>
      %395 = arith.addf %393, %394 : vector<8x8xf32>
      %396 = arith.negf %395 : vector<8x8xf32>
      %397 = math.exp %396 : vector<8x8xf32>
      %cst_114 = arith.constant 1.000000e+00 : f32
      %398 = vector.broadcast %cst_114 : f32 to vector<8x8xf32>
      %399 = arith.addf %398, %397 : vector<8x8xf32>
      %400 = arith.divf %398, %399 : vector<8x8xf32>
      %401 = vector.extract_strided_slice %373 {offsets = [0, 8], sizes = [8, 8], strides = [1, 1]} : vector<8x24xf32> to vector<8x8xf32>
      %402 = vector.extract_strided_slice %392 {offsets = [0, 8], sizes = [8, 8], strides = [1, 1]} : vector<8x24xf32> to vector<8x8xf32>
      %403 = arith.addf %401, %402 : vector<8x8xf32>
      %404 = arith.negf %403 : vector<8x8xf32>
      %405 = math.exp %404 : vector<8x8xf32>
      %cst_115 = arith.constant 1.000000e+00 : f32
      %406 = vector.broadcast %cst_115 : f32 to vector<8x8xf32>
      %407 = arith.addf %406, %405 : vector<8x8xf32>
      %408 = arith.divf %406, %407 : vector<8x8xf32>
      %409 = vector.extract_strided_slice %373 {offsets = [0, 16], sizes = [8, 8], strides = [1, 1]} : vector<8x24xf32> to vector<8x8xf32>
      %410 = vector.extract_strided_slice %392 {offsets = [0, 16], sizes = [8, 8], strides = [1, 1]} : vector<8x24xf32> to vector<8x8xf32>
      %411 = arith.mulf %400, %410 : vector<8x8xf32>
      %412 = arith.addf %409, %411 : vector<8x8xf32>
      %413 = math.tanh %412 : vector<8x8xf32>
      %cst_116 = arith.constant 1.000000e+00 : f32
      %414 = vector.broadcast %cst_116 : f32 to vector<8x8xf32>
      %415 = arith.subf %414, %408 : vector<8x8xf32>
      %416 = arith.mulf %415, %413 : vector<8x8xf32>
      %417 = arith.mulf %408, %380 : vector<8x8xf32>
      %418 = arith.addf %416, %417 : vector<8x8xf32>
      %419 = vector.extract_strided_slice %391 {offsets = [8, 0], sizes = [8, 24], strides = [1, 1]} : vector<32x48xf32> to vector<8x24xf32>
      %420 = vector.extract_strided_slice %373 {offsets = [0, 0], sizes = [8, 8], strides = [1, 1]} : vector<8x24xf32> to vector<8x8xf32>
      %421 = vector.extract_strided_slice %419 {offsets = [0, 0], sizes = [8, 8], strides = [1, 1]} : vector<8x24xf32> to vector<8x8xf32>
      %422 = arith.addf %420, %421 : vector<8x8xf32>
      %423 = arith.negf %422 : vector<8x8xf32>
      %424 = math.exp %423 : vector<8x8xf32>
      %cst_117 = arith.constant 1.000000e+00 : f32
      %425 = vector.broadcast %cst_117 : f32 to vector<8x8xf32>
      %426 = arith.addf %425, %424 : vector<8x8xf32>
      %427 = arith.divf %425, %426 : vector<8x8xf32>
      %428 = vector.extract_strided_slice %373 {offsets = [0, 8], sizes = [8, 8], strides = [1, 1]} : vector<8x24xf32> to vector<8x8xf32>
      %429 = vector.extract_strided_slice %419 {offsets = [0, 8], sizes = [8, 8], strides = [1, 1]} : vector<8x24xf32> to vector<8x8xf32>
      %430 = arith.addf %428, %429 : vector<8x8xf32>
      %431 = arith.negf %430 : vector<8x8xf32>
      %432 = math.exp %431 : vector<8x8xf32>
      %cst_118 = arith.constant 1.000000e+00 : f32
      %433 = vector.broadcast %cst_118 : f32 to vector<8x8xf32>
      %434 = arith.addf %433, %432 : vector<8x8xf32>
      %435 = arith.divf %433, %434 : vector<8x8xf32>
      %436 = vector.extract_strided_slice %373 {offsets = [0, 16], sizes = [8, 8], strides = [1, 1]} : vector<8x24xf32> to vector<8x8xf32>
      %437 = vector.extract_strided_slice %419 {offsets = [0, 16], sizes = [8, 8], strides = [1, 1]} : vector<8x24xf32> to vector<8x8xf32>
      %438 = arith.mulf %427, %437 : vector<8x8xf32>
      %439 = arith.addf %436, %438 : vector<8x8xf32>
      %440 = math.tanh %439 : vector<8x8xf32>
      %cst_119 = arith.constant 1.000000e+00 : f32
      %441 = vector.broadcast %cst_119 : f32 to vector<8x8xf32>
      %442 = arith.subf %441, %435 : vector<8x8xf32>
      %443 = arith.mulf %442, %440 : vector<8x8xf32>
      %444 = arith.mulf %435, %383 : vector<8x8xf32>
      %445 = arith.addf %443, %444 : vector<8x8xf32>
      %446 = vector.extract_strided_slice %391 {offsets = [16, 24], sizes = [8, 24], strides = [1, 1]} : vector<32x48xf32> to vector<8x24xf32>
      %447 = vector.extract_strided_slice %375 {offsets = [0, 0], sizes = [8, 8], strides = [1, 1]} : vector<8x24xf32> to vector<8x8xf32>
      %448 = vector.extract_strided_slice %446 {offsets = [0, 0], sizes = [8, 8], strides = [1, 1]} : vector<8x24xf32> to vector<8x8xf32>
      %449 = arith.addf %447, %448 : vector<8x8xf32>
      %450 = arith.negf %449 : vector<8x8xf32>
      %451 = math.exp %450 : vector<8x8xf32>
      %cst_120 = arith.constant 1.000000e+00 : f32
      %452 = vector.broadcast %cst_120 : f32 to vector<8x8xf32>
      %453 = arith.addf %452, %451 : vector<8x8xf32>
      %454 = arith.divf %452, %453 : vector<8x8xf32>
      %455 = vector.extract_strided_slice %375 {offsets = [0, 8], sizes = [8, 8], strides = [1, 1]} : vector<8x24xf32> to vector<8x8xf32>
      %456 = vector.extract_strided_slice %446 {offsets = [0, 8], sizes = [8, 8], strides = [1, 1]} : vector<8x24xf32> to vector<8x8xf32>
      %457 = arith.addf %455, %456 : vector<8x8xf32>
      %458 = arith.negf %457 : vector<8x8xf32>
      %459 = math.exp %458 : vector<8x8xf32>
      %cst_121 = arith.constant 1.000000e+00 : f32
      %460 = vector.broadcast %cst_121 : f32 to vector<8x8xf32>
      %461 = arith.addf %460, %459 : vector<8x8xf32>
      %462 = arith.divf %460, %461 : vector<8x8xf32>
      %463 = vector.extract_strided_slice %375 {offsets = [0, 16], sizes = [8, 8], strides = [1, 1]} : vector<8x24xf32> to vector<8x8xf32>
      %464 = vector.extract_strided_slice %446 {offsets = [0, 16], sizes = [8, 8], strides = [1, 1]} : vector<8x24xf32> to vector<8x8xf32>
      %465 = arith.mulf %454, %464 : vector<8x8xf32>
      %466 = arith.addf %463, %465 : vector<8x8xf32>
      %467 = math.tanh %466 : vector<8x8xf32>
      %cst_122 = arith.constant 1.000000e+00 : f32
      %468 = vector.broadcast %cst_122 : f32 to vector<8x8xf32>
      %469 = arith.subf %468, %462 : vector<8x8xf32>
      %470 = arith.mulf %469, %467 : vector<8x8xf32>
      %471 = arith.mulf %462, %384 : vector<8x8xf32>
      %472 = arith.addf %470, %471 : vector<8x8xf32>
      %473 = vector.extract_strided_slice %391 {offsets = [24, 24], sizes = [8, 24], strides = [1, 1]} : vector<32x48xf32> to vector<8x24xf32>
      %474 = vector.extract_strided_slice %375 {offsets = [0, 0], sizes = [8, 8], strides = [1, 1]} : vector<8x24xf32> to vector<8x8xf32>
      %475 = vector.extract_strided_slice %473 {offsets = [0, 0], sizes = [8, 8], strides = [1, 1]} : vector<8x24xf32> to vector<8x8xf32>
      %476 = arith.addf %474, %475 : vector<8x8xf32>
      %477 = arith.negf %476 : vector<8x8xf32>
      %478 = math.exp %477 : vector<8x8xf32>
      %cst_123 = arith.constant 1.000000e+00 : f32
      %479 = vector.broadcast %cst_123 : f32 to vector<8x8xf32>
      %480 = arith.addf %479, %478 : vector<8x8xf32>
      %481 = arith.divf %479, %480 : vector<8x8xf32>
      %482 = vector.extract_strided_slice %375 {offsets = [0, 8], sizes = [8, 8], strides = [1, 1]} : vector<8x24xf32> to vector<8x8xf32>
      %483 = vector.extract_strided_slice %473 {offsets = [0, 8], sizes = [8, 8], strides = [1, 1]} : vector<8x24xf32> to vector<8x8xf32>
      %484 = arith.addf %482, %483 : vector<8x8xf32>
      %485 = arith.negf %484 : vector<8x8xf32>
      %486 = math.exp %485 : vector<8x8xf32>
      %cst_124 = arith.constant 1.000000e+00 : f32
      %487 = vector.broadcast %cst_124 : f32 to vector<8x8xf32>
      %488 = arith.addf %487, %486 : vector<8x8xf32>
      %489 = arith.divf %487, %488 : vector<8x8xf32>
      %490 = vector.extract_strided_slice %375 {offsets = [0, 16], sizes = [8, 8], strides = [1, 1]} : vector<8x24xf32> to vector<8x8xf32>
      %491 = vector.extract_strided_slice %473 {offsets = [0, 16], sizes = [8, 8], strides = [1, 1]} : vector<8x24xf32> to vector<8x8xf32>
      %492 = arith.mulf %481, %491 : vector<8x8xf32>
      %493 = arith.addf %490, %492 : vector<8x8xf32>
      %494 = math.tanh %493 : vector<8x8xf32>
      %cst_125 = arith.constant 1.000000e+00 : f32
      %495 = vector.broadcast %cst_125 : f32 to vector<8x8xf32>
      %496 = arith.subf %495, %489 : vector<8x8xf32>
      %497 = arith.mulf %496, %494 : vector<8x8xf32>
      %498 = arith.mulf %489, %387 : vector<8x8xf32>
      %499 = arith.addf %497, %498 : vector<8x8xf32>
      %500 = tpu.concatenate %418, %445, %472, %499 in 0 : vector<8x8xf32>, vector<8x8xf32>, vector<8x8xf32>, vector<8x8xf32> -> vector<32x8xf32>
      %501 = vector.extract_strided_slice %500 {offsets = [0, 0], sizes = [16, 8], strides = [1, 1]} : vector<32x8xf32> to vector<16x8xf32>
      %502 = arith.index_cast %c2_i32 : i32 to index
      %c0_126 = arith.constant 0 : index
      %c0_127 = arith.constant 0 : index
      %503 = vector.load %alloca_23[%502, %c0_126, %c0_127] : memref<8x16x8xf32, #tpu.memory_space<vmem>>, vector<1x16x8xf32>
      %504 = vector.shape_cast %503 : vector<1x16x8xf32> to vector<16x8xf32>
      %505 = vector.shape_cast %501 : vector<16x8xf32> to vector<1x16x8xf32>
      tpu.vector_store %alloca_23[%502, %c0_126, %c0_127], %505 {strides = array<i32>} : memref<8x16x8xf32, #tpu.memory_space<vmem>>, vector<1x16x8xf32>,
      %506 = vector.extract_strided_slice %500 {offsets = [16, 0], sizes = [16, 8], strides = [1, 1]} : vector<32x8xf32> to vector<16x8xf32>
      %507 = arith.index_cast %367 : i32 to index
      %c0_128 = arith.constant 0 : index
      %c0_129 = arith.constant 0 : index
      %508 = vector.load %alloca_24[%507, %c0_128, %c0_129] : memref<8x16x8xf32, #tpu.memory_space<vmem>>, vector<1x16x8xf32>
      %509 = vector.shape_cast %508 : vector<1x16x8xf32> to vector<16x8xf32>
      %510 = vector.shape_cast %506 : vector<16x8xf32> to vector<1x16x8xf32>
      tpu.vector_store %alloca_24[%507, %c0_128, %c0_129], %510 {strides = array<i32>} : memref<8x16x8xf32, #tpu.memory_space<vmem>>, vector<1x16x8xf32>,
      %c3_i32 = arith.constant 3 : i32
      %c7_i32_130 = arith.constant 7 : i32
      %511 = arith.subi %c7_i32_130, %c3_i32 : i32
      %c8_i32_131 = arith.constant 8 : i32
      %512 = arith.muli %c3_i32, %c8_i32_131 : i32
      %513 = tpu.assume_multiple %512, 8 : i32
      %c8_i32_132 = arith.constant 8 : i32
      %514 = arith.muli %511, %c8_i32_132 : i32
      %515 = tpu.assume_multiple %514, 8 : i32
      %516 = arith.index_cast %513 : i32 to index
      %c0_133 = arith.constant 0 : index
      %517 = vector.load %alloca[%516, %c0_133] : memref<64x24xf32, #tpu.memory_space<vmem>>, vector<8x24xf32>
      %518 = arith.index_cast %515 : i32 to index
      %c0_134 = arith.constant 0 : index
      %519 = vector.load %alloca_22[%518, %c0_134] : memref<64x24xf32, #tpu.memory_space<vmem>>, vector<8x24xf32>
      %520 = arith.index_cast %c3_i32 : i32 to index
      %521 = memref.load %arg1[%520] : memref<8xf32, #tpu.memory_space<smem>>
      %522 = arith.index_cast %511 : i32 to index
      %523 = memref.load %arg2[%522] : memref<8xf32, #tpu.memory_space<smem>>
      %524 = vector.extract_strided_slice %500 {offsets = [0, 0], sizes = [8, 8], strides = [1, 1]} : vector<32x8xf32> to vector<8x8xf32>
      %525 = vector.extract_strided_slice %500 {offsets = [8, 0], sizes = [8, 8], strides = [1, 1]} : vector<32x8xf32> to vector<8x8xf32>
      %526 = vector.broadcast %521 : f32 to vector<8x8xf32>
      %527 = arith.mulf %525, %526 : vector<8x8xf32>
      %528 = vector.extract_strided_slice %500 {offsets = [16, 0], sizes = [8, 8], strides = [1, 1]} : vector<32x8xf32> to vector<8x8xf32>
      %529 = vector.extract_strided_slice %500 {offsets = [24, 0], sizes = [8, 8], strides = [1, 1]} : vector<32x8xf32> to vector<8x8xf32>
      %530 = vector.broadcast %523 : f32 to vector<8x8xf32>
      %531 = arith.mulf %529, %530 : vector<8x8xf32>
      %532 = tpu.concatenate %524, %527, %528, %531 in 0 : vector<8x8xf32>, vector<8x8xf32>, vector<8x8xf32>, vector<8x8xf32> -> vector<32x8xf32>
      %cst_135 = arith.constant dense<0.000000e+00> : vector<32x48xf32>
      %533 = tpu.matmul %532, %76, %cst_135 {dimension_numbers = #tpu.dot_dimension_numbers<[1], [0], [0], [1], [0, 0, 1, 1], [], []>} : vector<32x8xf32>, vector<8x48xf32>, vector<32x48xf32> -> vector<32x48xf32>
      %534 = vector.broadcast %77 : vector<1x48xf32> to vector<32x48xf32>
      %535 = arith.addf %533, %534 : vector<32x48xf32>
      %536 = vector.extract_strided_slice %535 {offsets = [0, 0], sizes = [8, 24], strides = [1, 1]} : vector<32x48xf32> to vector<8x24xf32>
      %537 = vector.extract_strided_slice %517 {offsets = [0, 0], sizes = [8, 8], strides = [1, 1]} : vector<8x24xf32> to vector<8x8xf32>
      %538 = vector.extract_strided_slice %536 {offsets = [0, 0], sizes = [8, 8], strides = [1, 1]} : vector<8x24xf32> to vector<8x8xf32>
      %539 = arith.addf %537, %538 : vector<8x8xf32>
      %540 = arith.negf %539 : vector<8x8xf32>
      %541 = math.exp %540 : vector<8x8xf32>
      %cst_136 = arith.constant 1.000000e+00 : f32
      %542 = vector.broadcast %cst_136 : f32 to vector<8x8xf32>
      %543 = arith.addf %542, %541 : vector<8x8xf32>
      %544 = arith.divf %542, %543 : vector<8x8xf32>
      %545 = vector.extract_strided_slice %517 {offsets = [0, 8], sizes = [8, 8], strides = [1, 1]} : vector<8x24xf32> to vector<8x8xf32>
      %546 = vector.extract_strided_slice %536 {offsets = [0, 8], sizes = [8, 8], strides = [1, 1]} : vector<8x24xf32> to vector<8x8xf32>
      %547 = arith.addf %545, %546 : vector<8x8xf32>
      %548 = arith.negf %547 : vector<8x8xf32>
      %549 = math.exp %548 : vector<8x8xf32>
      %cst_137 = arith.constant 1.000000e+00 : f32
      %550 = vector.broadcast %cst_137 : f32 to vector<8x8xf32>
      %551 = arith.addf %550, %549 : vector<8x8xf32>
      %552 = arith.divf %550, %551 : vector<8x8xf32>
      %553 = vector.extract_strided_slice %517 {offsets = [0, 16], sizes = [8, 8], strides = [1, 1]} : vector<8x24xf32> to vector<8x8xf32>
      %554 = vector.extract_strided_slice %536 {offsets = [0, 16], sizes = [8, 8], strides = [1, 1]} : vector<8x24xf32> to vector<8x8xf32>
      %555 = arith.mulf %544, %554 : vector<8x8xf32>
      %556 = arith.addf %553, %555 : vector<8x8xf32>
      %557 = math.tanh %556 : vector<8x8xf32>
      %cst_138 = arith.constant 1.000000e+00 : f32
      %558 = vector.broadcast %cst_138 : f32 to vector<8x8xf32>
      %559 = arith.subf %558, %552 : vector<8x8xf32>
      %560 = arith.mulf %559, %557 : vector<8x8xf32>
      %561 = arith.mulf %552, %524 : vector<8x8xf32>
      %562 = arith.addf %560, %561 : vector<8x8xf32>
      %563 = vector.extract_strided_slice %535 {offsets = [8, 0], sizes = [8, 24], strides = [1, 1]} : vector<32x48xf32> to vector<8x24xf32>
      %564 = vector.extract_strided_slice %517 {offsets = [0, 0], sizes = [8, 8], strides = [1, 1]} : vector<8x24xf32> to vector<8x8xf32>
      %565 = vector.extract_strided_slice %563 {offsets = [0, 0], sizes = [8, 8], strides = [1, 1]} : vector<8x24xf32> to vector<8x8xf32>
      %566 = arith.addf %564, %565 : vector<8x8xf32>
      %567 = arith.negf %566 : vector<8x8xf32>
      %568 = math.exp %567 : vector<8x8xf32>
      %cst_139 = arith.constant 1.000000e+00 : f32
      %569 = vector.broadcast %cst_139 : f32 to vector<8x8xf32>
      %570 = arith.addf %569, %568 : vector<8x8xf32>
      %571 = arith.divf %569, %570 : vector<8x8xf32>
      %572 = vector.extract_strided_slice %517 {offsets = [0, 8], sizes = [8, 8], strides = [1, 1]} : vector<8x24xf32> to vector<8x8xf32>
      %573 = vector.extract_strided_slice %563 {offsets = [0, 8], sizes = [8, 8], strides = [1, 1]} : vector<8x24xf32> to vector<8x8xf32>
      %574 = arith.addf %572, %573 : vector<8x8xf32>
      %575 = arith.negf %574 : vector<8x8xf32>
      %576 = math.exp %575 : vector<8x8xf32>
      %cst_140 = arith.constant 1.000000e+00 : f32
      %577 = vector.broadcast %cst_140 : f32 to vector<8x8xf32>
      %578 = arith.addf %577, %576 : vector<8x8xf32>
      %579 = arith.divf %577, %578 : vector<8x8xf32>
      %580 = vector.extract_strided_slice %517 {offsets = [0, 16], sizes = [8, 8], strides = [1, 1]} : vector<8x24xf32> to vector<8x8xf32>
      %581 = vector.extract_strided_slice %563 {offsets = [0, 16], sizes = [8, 8], strides = [1, 1]} : vector<8x24xf32> to vector<8x8xf32>
      %582 = arith.mulf %571, %581 : vector<8x8xf32>
      %583 = arith.addf %580, %582 : vector<8x8xf32>
      %584 = math.tanh %583 : vector<8x8xf32>
      %cst_141 = arith.constant 1.000000e+00 : f32
      %585 = vector.broadcast %cst_141 : f32 to vector<8x8xf32>
      %586 = arith.subf %585, %579 : vector<8x8xf32>
      %587 = arith.mulf %586, %584 : vector<8x8xf32>
      %588 = arith.mulf %579, %527 : vector<8x8xf32>
      %589 = arith.addf %587, %588 : vector<8x8xf32>
      %590 = vector.extract_strided_slice %535 {offsets = [16, 24], sizes = [8, 24], strides = [1, 1]} : vector<32x48xf32> to vector<8x24xf32>
      %591 = vector.extract_strided_slice %519 {offsets = [0, 0], sizes = [8, 8], strides = [1, 1]} : vector<8x24xf32> to vector<8x8xf32>
      %592 = vector.extract_strided_slice %590 {offsets = [0, 0], sizes = [8, 8], strides = [1, 1]} : vector<8x24xf32> to vector<8x8xf32>
      %593 = arith.addf %591, %592 : vector<8x8xf32>
      %594 = arith.negf %593 : vector<8x8xf32>
      %595 = math.exp %594 : vector<8x8xf32>
      %cst_142 = arith.constant 1.000000e+00 : f32
      %596 = vector.broadcast %cst_142 : f32 to vector<8x8xf32>
      %597 = arith.addf %596, %595 : vector<8x8xf32>
      %598 = arith.divf %596, %597 : vector<8x8xf32>
      %599 = vector.extract_strided_slice %519 {offsets = [0, 8], sizes = [8, 8], strides = [1, 1]} : vector<8x24xf32> to vector<8x8xf32>
      %600 = vector.extract_strided_slice %590 {offsets = [0, 8], sizes = [8, 8], strides = [1, 1]} : vector<8x24xf32> to vector<8x8xf32>
      %601 = arith.addf %599, %600 : vector<8x8xf32>
      %602 = arith.negf %601 : vector<8x8xf32>
      %603 = math.exp %602 : vector<8x8xf32>
      %cst_143 = arith.constant 1.000000e+00 : f32
      %604 = vector.broadcast %cst_143 : f32 to vector<8x8xf32>
      %605 = arith.addf %604, %603 : vector<8x8xf32>
      %606 = arith.divf %604, %605 : vector<8x8xf32>
      %607 = vector.extract_strided_slice %519 {offsets = [0, 16], sizes = [8, 8], strides = [1, 1]} : vector<8x24xf32> to vector<8x8xf32>
      %608 = vector.extract_strided_slice %590 {offsets = [0, 16], sizes = [8, 8], strides = [1, 1]} : vector<8x24xf32> to vector<8x8xf32>
      %609 = arith.mulf %598, %608 : vector<8x8xf32>
      %610 = arith.addf %607, %609 : vector<8x8xf32>
      %611 = math.tanh %610 : vector<8x8xf32>
      %cst_144 = arith.constant 1.000000e+00 : f32
      %612 = vector.broadcast %cst_144 : f32 to vector<8x8xf32>
      %613 = arith.subf %612, %606 : vector<8x8xf32>
      %614 = arith.mulf %613, %611 : vector<8x8xf32>
      %615 = arith.mulf %606, %528 : vector<8x8xf32>
      %616 = arith.addf %614, %615 : vector<8x8xf32>
      %617 = vector.extract_strided_slice %535 {offsets = [24, 24], sizes = [8, 24], strides = [1, 1]} : vector<32x48xf32> to vector<8x24xf32>
      %618 = vector.extract_strided_slice %519 {offsets = [0, 0], sizes = [8, 8], strides = [1, 1]} : vector<8x24xf32> to vector<8x8xf32>
      %619 = vector.extract_strided_slice %617 {offsets = [0, 0], sizes = [8, 8], strides = [1, 1]} : vector<8x24xf32> to vector<8x8xf32>
      %620 = arith.addf %618, %619 : vector<8x8xf32>
      %621 = arith.negf %620 : vector<8x8xf32>
      %622 = math.exp %621 : vector<8x8xf32>
      %cst_145 = arith.constant 1.000000e+00 : f32
      %623 = vector.broadcast %cst_145 : f32 to vector<8x8xf32>
      %624 = arith.addf %623, %622 : vector<8x8xf32>
      %625 = arith.divf %623, %624 : vector<8x8xf32>
      %626 = vector.extract_strided_slice %519 {offsets = [0, 8], sizes = [8, 8], strides = [1, 1]} : vector<8x24xf32> to vector<8x8xf32>
      %627 = vector.extract_strided_slice %617 {offsets = [0, 8], sizes = [8, 8], strides = [1, 1]} : vector<8x24xf32> to vector<8x8xf32>
      %628 = arith.addf %626, %627 : vector<8x8xf32>
      %629 = arith.negf %628 : vector<8x8xf32>
      %630 = math.exp %629 : vector<8x8xf32>
      %cst_146 = arith.constant 1.000000e+00 : f32
      %631 = vector.broadcast %cst_146 : f32 to vector<8x8xf32>
      %632 = arith.addf %631, %630 : vector<8x8xf32>
      %633 = arith.divf %631, %632 : vector<8x8xf32>
      %634 = vector.extract_strided_slice %519 {offsets = [0, 16], sizes = [8, 8], strides = [1, 1]} : vector<8x24xf32> to vector<8x8xf32>
      %635 = vector.extract_strided_slice %617 {offsets = [0, 16], sizes = [8, 8], strides = [1, 1]} : vector<8x24xf32> to vector<8x8xf32>
      %636 = arith.mulf %625, %635 : vector<8x8xf32>
      %637 = arith.addf %634, %636 : vector<8x8xf32>
      %638 = math.tanh %637 : vector<8x8xf32>
      %cst_147 = arith.constant 1.000000e+00 : f32
      %639 = vector.broadcast %cst_147 : f32 to vector<8x8xf32>
      %640 = arith.subf %639, %633 : vector<8x8xf32>
      %641 = arith.mulf %640, %638 : vector<8x8xf32>
      %642 = arith.mulf %633, %531 : vector<8x8xf32>
      %643 = arith.addf %641, %642 : vector<8x8xf32>
      %644 = tpu.concatenate %562, %589, %616, %643 in 0 : vector<8x8xf32>, vector<8x8xf32>, vector<8x8xf32>, vector<8x8xf32> -> vector<32x8xf32>
      %645 = vector.extract_strided_slice %644 {offsets = [0, 0], sizes = [16, 8], strides = [1, 1]} : vector<32x8xf32> to vector<16x8xf32>
      %646 = arith.index_cast %c3_i32 : i32 to index
      %c0_148 = arith.constant 0 : index
      %c0_149 = arith.constant 0 : index
      %647 = vector.load %alloca_23[%646, %c0_148, %c0_149] : memref<8x16x8xf32, #tpu.memory_space<vmem>>, vector<1x16x8xf32>
      %648 = vector.shape_cast %647 : vector<1x16x8xf32> to vector<16x8xf32>
      %649 = vector.shape_cast %645 : vector<16x8xf32> to vector<1x16x8xf32>
      tpu.vector_store %alloca_23[%646, %c0_148, %c0_149], %649 {strides = array<i32>} : memref<8x16x8xf32, #tpu.memory_space<vmem>>, vector<1x16x8xf32>,
      %650 = vector.extract_strided_slice %644 {offsets = [16, 0], sizes = [16, 8], strides = [1, 1]} : vector<32x8xf32> to vector<16x8xf32>
      %651 = arith.index_cast %511 : i32 to index
      %c0_150 = arith.constant 0 : index
      %c0_151 = arith.constant 0 : index
      %652 = vector.load %alloca_24[%651, %c0_150, %c0_151] : memref<8x16x8xf32, #tpu.memory_space<vmem>>, vector<1x16x8xf32>
      %653 = vector.shape_cast %652 : vector<1x16x8xf32> to vector<16x8xf32>
      %654 = vector.shape_cast %650 : vector<16x8xf32> to vector<1x16x8xf32>
      tpu.vector_store %alloca_24[%651, %c0_150, %c0_151], %654 {strides = array<i32>} : memref<8x16x8xf32, #tpu.memory_space<vmem>>, vector<1x16x8xf32>,
      %c4_i32 = arith.constant 4 : i32
      %c7_i32_152 = arith.constant 7 : i32
      %655 = arith.subi %c7_i32_152, %c4_i32 : i32
      %c8_i32_153 = arith.constant 8 : i32
      %656 = arith.muli %c4_i32, %c8_i32_153 : i32
      %657 = tpu.assume_multiple %656, 8 : i32
      %c8_i32_154 = arith.constant 8 : i32
      %658 = arith.muli %655, %c8_i32_154 : i32
      %659 = tpu.assume_multiple %658, 8 : i32
      %660 = arith.index_cast %657 : i32 to index
      %c0_155 = arith.constant 0 : index
      %661 = vector.load %alloca[%660, %c0_155] : memref<64x24xf32, #tpu.memory_space<vmem>>, vector<8x24xf32>
      %662 = arith.index_cast %659 : i32 to index
      %c0_156 = arith.constant 0 : index
      %663 = vector.load %alloca_22[%662, %c0_156] : memref<64x24xf32, #tpu.memory_space<vmem>>, vector<8x24xf32>
      %664 = arith.index_cast %c4_i32 : i32 to index
      %665 = memref.load %arg1[%664] : memref<8xf32, #tpu.memory_space<smem>>
      %666 = arith.index_cast %655 : i32 to index
      %667 = memref.load %arg2[%666] : memref<8xf32, #tpu.memory_space<smem>>
      %668 = vector.extract_strided_slice %644 {offsets = [0, 0], sizes = [8, 8], strides = [1, 1]} : vector<32x8xf32> to vector<8x8xf32>
      %669 = vector.extract_strided_slice %644 {offsets = [8, 0], sizes = [8, 8], strides = [1, 1]} : vector<32x8xf32> to vector<8x8xf32>
      %670 = vector.broadcast %665 : f32 to vector<8x8xf32>
      %671 = arith.mulf %669, %670 : vector<8x8xf32>
      %672 = vector.extract_strided_slice %644 {offsets = [16, 0], sizes = [8, 8], strides = [1, 1]} : vector<32x8xf32> to vector<8x8xf32>
      %673 = vector.extract_strided_slice %644 {offsets = [24, 0], sizes = [8, 8], strides = [1, 1]} : vector<32x8xf32> to vector<8x8xf32>
      %674 = vector.broadcast %667 : f32 to vector<8x8xf32>
      %675 = arith.mulf %673, %674 : vector<8x8xf32>
      %676 = tpu.concatenate %668, %671, %672, %675 in 0 : vector<8x8xf32>, vector<8x8xf32>, vector<8x8xf32>, vector<8x8xf32> -> vector<32x8xf32>
      %cst_157 = arith.constant dense<0.000000e+00> : vector<32x48xf32>
      %677 = tpu.matmul %676, %76, %cst_157 {dimension_numbers = #tpu.dot_dimension_numbers<[1], [0], [0], [1], [0, 0, 1, 1], [], []>} : vector<32x8xf32>, vector<8x48xf32>, vector<32x48xf32> -> vector<32x48xf32>
      %678 = vector.broadcast %77 : vector<1x48xf32> to vector<32x48xf32>
      %679 = arith.addf %677, %678 : vector<32x48xf32>
      %680 = vector.extract_strided_slice %679 {offsets = [0, 0], sizes = [8, 24], strides = [1, 1]} : vector<32x48xf32> to vector<8x24xf32>
      %681 = vector.extract_strided_slice %661 {offsets = [0, 0], sizes = [8, 8], strides = [1, 1]} : vector<8x24xf32> to vector<8x8xf32>
      %682 = vector.extract_strided_slice %680 {offsets = [0, 0], sizes = [8, 8], strides = [1, 1]} : vector<8x24xf32> to vector<8x8xf32>
      %683 = arith.addf %681, %682 : vector<8x8xf32>
      %684 = arith.negf %683 : vector<8x8xf32>
      %685 = math.exp %684 : vector<8x8xf32>
      %cst_158 = arith.constant 1.000000e+00 : f32
      %686 = vector.broadcast %cst_158 : f32 to vector<8x8xf32>
      %687 = arith.addf %686, %685 : vector<8x8xf32>
      %688 = arith.divf %686, %687 : vector<8x8xf32>
      %689 = vector.extract_strided_slice %661 {offsets = [0, 8], sizes = [8, 8], strides = [1, 1]} : vector<8x24xf32> to vector<8x8xf32>
      %690 = vector.extract_strided_slice %680 {offsets = [0, 8], sizes = [8, 8], strides = [1, 1]} : vector<8x24xf32> to vector<8x8xf32>
      %691 = arith.addf %689, %690 : vector<8x8xf32>
      %692 = arith.negf %691 : vector<8x8xf32>
      %693 = math.exp %692 : vector<8x8xf32>
      %cst_159 = arith.constant 1.000000e+00 : f32
      %694 = vector.broadcast %cst_159 : f32 to vector<8x8xf32>
      %695 = arith.addf %694, %693 : vector<8x8xf32>
      %696 = arith.divf %694, %695 : vector<8x8xf32>
      %697 = vector.extract_strided_slice %661 {offsets = [0, 16], sizes = [8, 8], strides = [1, 1]} : vector<8x24xf32> to vector<8x8xf32>
      %698 = vector.extract_strided_slice %680 {offsets = [0, 16], sizes = [8, 8], strides = [1, 1]} : vector<8x24xf32> to vector<8x8xf32>
      %699 = arith.mulf %688, %698 : vector<8x8xf32>
      %700 = arith.addf %697, %699 : vector<8x8xf32>
      %701 = math.tanh %700 : vector<8x8xf32>
      %cst_160 = arith.constant 1.000000e+00 : f32
      %702 = vector.broadcast %cst_160 : f32 to vector<8x8xf32>
      %703 = arith.subf %702, %696 : vector<8x8xf32>
      %704 = arith.mulf %703, %701 : vector<8x8xf32>
      %705 = arith.mulf %696, %668 : vector<8x8xf32>
      %706 = arith.addf %704, %705 : vector<8x8xf32>
      %707 = vector.extract_strided_slice %679 {offsets = [8, 0], sizes = [8, 24], strides = [1, 1]} : vector<32x48xf32> to vector<8x24xf32>
      %708 = vector.extract_strided_slice %661 {offsets = [0, 0], sizes = [8, 8], strides = [1, 1]} : vector<8x24xf32> to vector<8x8xf32>
      %709 = vector.extract_strided_slice %707 {offsets = [0, 0], sizes = [8, 8], strides = [1, 1]} : vector<8x24xf32> to vector<8x8xf32>
      %710 = arith.addf %708, %709 : vector<8x8xf32>
      %711 = arith.negf %710 : vector<8x8xf32>
      %712 = math.exp %711 : vector<8x8xf32>
      %cst_161 = arith.constant 1.000000e+00 : f32
      %713 = vector.broadcast %cst_161 : f32 to vector<8x8xf32>
      %714 = arith.addf %713, %712 : vector<8x8xf32>
      %715 = arith.divf %713, %714 : vector<8x8xf32>
      %716 = vector.extract_strided_slice %661 {offsets = [0, 8], sizes = [8, 8], strides = [1, 1]} : vector<8x24xf32> to vector<8x8xf32>
      %717 = vector.extract_strided_slice %707 {offsets = [0, 8], sizes = [8, 8], strides = [1, 1]} : vector<8x24xf32> to vector<8x8xf32>
      %718 = arith.addf %716, %717 : vector<8x8xf32>
      %719 = arith.negf %718 : vector<8x8xf32>
      %720 = math.exp %719 : vector<8x8xf32>
      %cst_162 = arith.constant 1.000000e+00 : f32
      %721 = vector.broadcast %cst_162 : f32 to vector<8x8xf32>
      %722 = arith.addf %721, %720 : vector<8x8xf32>
      %723 = arith.divf %721, %722 : vector<8x8xf32>
      %724 = vector.extract_strided_slice %661 {offsets = [0, 16], sizes = [8, 8], strides = [1, 1]} : vector<8x24xf32> to vector<8x8xf32>
      %725 = vector.extract_strided_slice %707 {offsets = [0, 16], sizes = [8, 8], strides = [1, 1]} : vector<8x24xf32> to vector<8x8xf32>
      %726 = arith.mulf %715, %725 : vector<8x8xf32>
      %727 = arith.addf %724, %726 : vector<8x8xf32>
      %728 = math.tanh %727 : vector<8x8xf32>
      %cst_163 = arith.constant 1.000000e+00 : f32
      %729 = vector.broadcast %cst_163 : f32 to vector<8x8xf32>
      %730 = arith.subf %729, %723 : vector<8x8xf32>
      %731 = arith.mulf %730, %728 : vector<8x8xf32>
      %732 = arith.mulf %723, %671 : vector<8x8xf32>
      %733 = arith.addf %731, %732 : vector<8x8xf32>
      %734 = vector.extract_strided_slice %679 {offsets = [16, 24], sizes = [8, 24], strides = [1, 1]} : vector<32x48xf32> to vector<8x24xf32>
      %735 = vector.extract_strided_slice %663 {offsets = [0, 0], sizes = [8, 8], strides = [1, 1]} : vector<8x24xf32> to vector<8x8xf32>
      %736 = vector.extract_strided_slice %734 {offsets = [0, 0], sizes = [8, 8], strides = [1, 1]} : vector<8x24xf32> to vector<8x8xf32>
      %737 = arith.addf %735, %736 : vector<8x8xf32>
      %738 = arith.negf %737 : vector<8x8xf32>
      %739 = math.exp %738 : vector<8x8xf32>
      %cst_164 = arith.constant 1.000000e+00 : f32
      %740 = vector.broadcast %cst_164 : f32 to vector<8x8xf32>
      %741 = arith.addf %740, %739 : vector<8x8xf32>
      %742 = arith.divf %740, %741 : vector<8x8xf32>
      %743 = vector.extract_strided_slice %663 {offsets = [0, 8], sizes = [8, 8], strides = [1, 1]} : vector<8x24xf32> to vector<8x8xf32>
      %744 = vector.extract_strided_slice %734 {offsets = [0, 8], sizes = [8, 8], strides = [1, 1]} : vector<8x24xf32> to vector<8x8xf32>
      %745 = arith.addf %743, %744 : vector<8x8xf32>
      %746 = arith.negf %745 : vector<8x8xf32>
      %747 = math.exp %746 : vector<8x8xf32>
      %cst_165 = arith.constant 1.000000e+00 : f32
      %748 = vector.broadcast %cst_165 : f32 to vector<8x8xf32>
      %749 = arith.addf %748, %747 : vector<8x8xf32>
      %750 = arith.divf %748, %749 : vector<8x8xf32>
      %751 = vector.extract_strided_slice %663 {offsets = [0, 16], sizes = [8, 8], strides = [1, 1]} : vector<8x24xf32> to vector<8x8xf32>
      %752 = vector.extract_strided_slice %734 {offsets = [0, 16], sizes = [8, 8], strides = [1, 1]} : vector<8x24xf32> to vector<8x8xf32>
      %753 = arith.mulf %742, %752 : vector<8x8xf32>
      %754 = arith.addf %751, %753 : vector<8x8xf32>
      %755 = math.tanh %754 : vector<8x8xf32>
      %cst_166 = arith.constant 1.000000e+00 : f32
      %756 = vector.broadcast %cst_166 : f32 to vector<8x8xf32>
      %757 = arith.subf %756, %750 : vector<8x8xf32>
      %758 = arith.mulf %757, %755 : vector<8x8xf32>
      %759 = arith.mulf %750, %672 : vector<8x8xf32>
      %760 = arith.addf %758, %759 : vector<8x8xf32>
      %761 = vector.extract_strided_slice %679 {offsets = [24, 24], sizes = [8, 24], strides = [1, 1]} : vector<32x48xf32> to vector<8x24xf32>
      %762 = vector.extract_strided_slice %663 {offsets = [0, 0], sizes = [8, 8], strides = [1, 1]} : vector<8x24xf32> to vector<8x8xf32>
      %763 = vector.extract_strided_slice %761 {offsets = [0, 0], sizes = [8, 8], strides = [1, 1]} : vector<8x24xf32> to vector<8x8xf32>
      %764 = arith.addf %762, %763 : vector<8x8xf32>
      %765 = arith.negf %764 : vector<8x8xf32>
      %766 = math.exp %765 : vector<8x8xf32>
      %cst_167 = arith.constant 1.000000e+00 : f32
      %767 = vector.broadcast %cst_167 : f32 to vector<8x8xf32>
      %768 = arith.addf %767, %766 : vector<8x8xf32>
      %769 = arith.divf %767, %768 : vector<8x8xf32>
      %770 = vector.extract_strided_slice %663 {offsets = [0, 8], sizes = [8, 8], strides = [1, 1]} : vector<8x24xf32> to vector<8x8xf32>
      %771 = vector.extract_strided_slice %761 {offsets = [0, 8], sizes = [8, 8], strides = [1, 1]} : vector<8x24xf32> to vector<8x8xf32>
      %772 = arith.addf %770, %771 : vector<8x8xf32>
      %773 = arith.negf %772 : vector<8x8xf32>
      %774 = math.exp %773 : vector<8x8xf32>
      %cst_168 = arith.constant 1.000000e+00 : f32
      %775 = vector.broadcast %cst_168 : f32 to vector<8x8xf32>
      %776 = arith.addf %775, %774 : vector<8x8xf32>
      %777 = arith.divf %775, %776 : vector<8x8xf32>
      %778 = vector.extract_strided_slice %663 {offsets = [0, 16], sizes = [8, 8], strides = [1, 1]} : vector<8x24xf32> to vector<8x8xf32>
      %779 = vector.extract_strided_slice %761 {offsets = [0, 16], sizes = [8, 8], strides = [1, 1]} : vector<8x24xf32> to vector<8x8xf32>
      %780 = arith.mulf %769, %779 : vector<8x8xf32>
      %781 = arith.addf %778, %780 : vector<8x8xf32>
      %782 = math.tanh %781 : vector<8x8xf32>
      %cst_169 = arith.constant 1.000000e+00 : f32
      %783 = vector.broadcast %cst_169 : f32 to vector<8x8xf32>
      %784 = arith.subf %783, %777 : vector<8x8xf32>
      %785 = arith.mulf %784, %782 : vector<8x8xf32>
      %786 = arith.mulf %777, %675 : vector<8x8xf32>
      %787 = arith.addf %785, %786 : vector<8x8xf32>
      %788 = tpu.concatenate %706, %733, %760, %787 in 0 : vector<8x8xf32>, vector<8x8xf32>, vector<8x8xf32>, vector<8x8xf32> -> vector<32x8xf32>
      %789 = vector.extract_strided_slice %788 {offsets = [0, 0], sizes = [16, 8], strides = [1, 1]} : vector<32x8xf32> to vector<16x8xf32>
      %790 = arith.index_cast %c4_i32 : i32 to index
      %c0_170 = arith.constant 0 : index
      %c0_171 = arith.constant 0 : index
      %791 = vector.load %alloca_23[%790, %c0_170, %c0_171] : memref<8x16x8xf32, #tpu.memory_space<vmem>>, vector<1x16x8xf32>
      %792 = vector.shape_cast %791 : vector<1x16x8xf32> to vector<16x8xf32>
      %793 = vector.shape_cast %789 : vector<16x8xf32> to vector<1x16x8xf32>
      tpu.vector_store %alloca_23[%790, %c0_170, %c0_171], %793 {strides = array<i32>} : memref<8x16x8xf32, #tpu.memory_space<vmem>>, vector<1x16x8xf32>,
      %794 = vector.extract_strided_slice %788 {offsets = [16, 0], sizes = [16, 8], strides = [1, 1]} : vector<32x8xf32> to vector<16x8xf32>
      %795 = arith.index_cast %655 : i32 to index
      %c0_172 = arith.constant 0 : index
      %c0_173 = arith.constant 0 : index
      %796 = vector.load %alloca_24[%795, %c0_172, %c0_173] : memref<8x16x8xf32, #tpu.memory_space<vmem>>, vector<1x16x8xf32>
      %797 = vector.shape_cast %796 : vector<1x16x8xf32> to vector<16x8xf32>
      %798 = vector.shape_cast %794 : vector<16x8xf32> to vector<1x16x8xf32>
      tpu.vector_store %alloca_24[%795, %c0_172, %c0_173], %798 {strides = array<i32>} : memref<8x16x8xf32, #tpu.memory_space<vmem>>, vector<1x16x8xf32>,
      %c5_i32 = arith.constant 5 : i32
      %c7_i32_174 = arith.constant 7 : i32
      %799 = arith.subi %c7_i32_174, %c5_i32 : i32
      %c8_i32_175 = arith.constant 8 : i32
      %800 = arith.muli %c5_i32, %c8_i32_175 : i32
      %801 = tpu.assume_multiple %800, 8 : i32
      %c8_i32_176 = arith.constant 8 : i32
      %802 = arith.muli %799, %c8_i32_176 : i32
      %803 = tpu.assume_multiple %802, 8 : i32
      %804 = arith.index_cast %801 : i32 to index
      %c0_177 = arith.constant 0 : index
      %805 = vector.load %alloca[%804, %c0_177] : memref<64x24xf32, #tpu.memory_space<vmem>>, vector<8x24xf32>
      %806 = arith.index_cast %803 : i32 to index
      %c0_178 = arith.constant 0 : index
      %807 = vector.load %alloca_22[%806, %c0_178] : memref<64x24xf32, #tpu.memory_space<vmem>>, vector<8x24xf32>
      %808 = arith.index_cast %c5_i32 : i32 to index
      %809 = memref.load %arg1[%808] : memref<8xf32, #tpu.memory_space<smem>>
      %810 = arith.index_cast %799 : i32 to index
      %811 = memref.load %arg2[%810] : memref<8xf32, #tpu.memory_space<smem>>
      %812 = vector.extract_strided_slice %788 {offsets = [0, 0], sizes = [8, 8], strides = [1, 1]} : vector<32x8xf32> to vector<8x8xf32>
      %813 = vector.extract_strided_slice %788 {offsets = [8, 0], sizes = [8, 8], strides = [1, 1]} : vector<32x8xf32> to vector<8x8xf32>
      %814 = vector.broadcast %809 : f32 to vector<8x8xf32>
      %815 = arith.mulf %813, %814 : vector<8x8xf32>
      %816 = vector.extract_strided_slice %788 {offsets = [16, 0], sizes = [8, 8], strides = [1, 1]} : vector<32x8xf32> to vector<8x8xf32>
      %817 = vector.extract_strided_slice %788 {offsets = [24, 0], sizes = [8, 8], strides = [1, 1]} : vector<32x8xf32> to vector<8x8xf32>
      %818 = vector.broadcast %811 : f32 to vector<8x8xf32>
      %819 = arith.mulf %817, %818 : vector<8x8xf32>
      %820 = tpu.concatenate %812, %815, %816, %819 in 0 : vector<8x8xf32>, vector<8x8xf32>, vector<8x8xf32>, vector<8x8xf32> -> vector<32x8xf32>
      %cst_179 = arith.constant dense<0.000000e+00> : vector<32x48xf32>
      %821 = tpu.matmul %820, %76, %cst_179 {dimension_numbers = #tpu.dot_dimension_numbers<[1], [0], [0], [1], [0, 0, 1, 1], [], []>} : vector<32x8xf32>, vector<8x48xf32>, vector<32x48xf32> -> vector<32x48xf32>
      %822 = vector.broadcast %77 : vector<1x48xf32> to vector<32x48xf32>
      %823 = arith.addf %821, %822 : vector<32x48xf32>
      %824 = vector.extract_strided_slice %823 {offsets = [0, 0], sizes = [8, 24], strides = [1, 1]} : vector<32x48xf32> to vector<8x24xf32>
      %825 = vector.extract_strided_slice %805 {offsets = [0, 0], sizes = [8, 8], strides = [1, 1]} : vector<8x24xf32> to vector<8x8xf32>
      %826 = vector.extract_strided_slice %824 {offsets = [0, 0], sizes = [8, 8], strides = [1, 1]} : vector<8x24xf32> to vector<8x8xf32>
      %827 = arith.addf %825, %826 : vector<8x8xf32>
      %828 = arith.negf %827 : vector<8x8xf32>
      %829 = math.exp %828 : vector<8x8xf32>
      %cst_180 = arith.constant 1.000000e+00 : f32
      %830 = vector.broadcast %cst_180 : f32 to vector<8x8xf32>
      %831 = arith.addf %830, %829 : vector<8x8xf32>
      %832 = arith.divf %830, %831 : vector<8x8xf32>
      %833 = vector.extract_strided_slice %805 {offsets = [0, 8], sizes = [8, 8], strides = [1, 1]} : vector<8x24xf32> to vector<8x8xf32>
      %834 = vector.extract_strided_slice %824 {offsets = [0, 8], sizes = [8, 8], strides = [1, 1]} : vector<8x24xf32> to vector<8x8xf32>
      %835 = arith.addf %833, %834 : vector<8x8xf32>
      %836 = arith.negf %835 : vector<8x8xf32>
      %837 = math.exp %836 : vector<8x8xf32>
      %cst_181 = arith.constant 1.000000e+00 : f32
      %838 = vector.broadcast %cst_181 : f32 to vector<8x8xf32>
      %839 = arith.addf %838, %837 : vector<8x8xf32>
      %840 = arith.divf %838, %839 : vector<8x8xf32>
      %841 = vector.extract_strided_slice %805 {offsets = [0, 16], sizes = [8, 8], strides = [1, 1]} : vector<8x24xf32> to vector<8x8xf32>
      %842 = vector.extract_strided_slice %824 {offsets = [0, 16], sizes = [8, 8], strides = [1, 1]} : vector<8x24xf32> to vector<8x8xf32>
      %843 = arith.mulf %832, %842 : vector<8x8xf32>
      %844 = arith.addf %841, %843 : vector<8x8xf32>
      %845 = math.tanh %844 : vector<8x8xf32>
      %cst_182 = arith.constant 1.000000e+00 : f32
      %846 = vector.broadcast %cst_182 : f32 to vector<8x8xf32>
      %847 = arith.subf %846, %840 : vector<8x8xf32>
      %848 = arith.mulf %847, %845 : vector<8x8xf32>
      %849 = arith.mulf %840, %812 : vector<8x8xf32>
      %850 = arith.addf %848, %849 : vector<8x8xf32>
      %851 = vector.extract_strided_slice %823 {offsets = [8, 0], sizes = [8, 24], strides = [1, 1]} : vector<32x48xf32> to vector<8x24xf32>
      %852 = vector.extract_strided_slice %805 {offsets = [0, 0], sizes = [8, 8], strides = [1, 1]} : vector<8x24xf32> to vector<8x8xf32>
      %853 = vector.extract_strided_slice %851 {offsets = [0, 0], sizes = [8, 8], strides = [1, 1]} : vector<8x24xf32> to vector<8x8xf32>
      %854 = arith.addf %852, %853 : vector<8x8xf32>
      %855 = arith.negf %854 : vector<8x8xf32>
      %856 = math.exp %855 : vector<8x8xf32>
      %cst_183 = arith.constant 1.000000e+00 : f32
      %857 = vector.broadcast %cst_183 : f32 to vector<8x8xf32>
      %858 = arith.addf %857, %856 : vector<8x8xf32>
      %859 = arith.divf %857, %858 : vector<8x8xf32>
      %860 = vector.extract_strided_slice %805 {offsets = [0, 8], sizes = [8, 8], strides = [1, 1]} : vector<8x24xf32> to vector<8x8xf32>
      %861 = vector.extract_strided_slice %851 {offsets = [0, 8], sizes = [8, 8], strides = [1, 1]} : vector<8x24xf32> to vector<8x8xf32>
      %862 = arith.addf %860, %861 : vector<8x8xf32>
      %863 = arith.negf %862 : vector<8x8xf32>
      %864 = math.exp %863 : vector<8x8xf32>
      %cst_184 = arith.constant 1.000000e+00 : f32
      %865 = vector.broadcast %cst_184 : f32 to vector<8x8xf32>
      %866 = arith.addf %865, %864 : vector<8x8xf32>
      %867 = arith.divf %865, %866 : vector<8x8xf32>
      %868 = vector.extract_strided_slice %805 {offsets = [0, 16], sizes = [8, 8], strides = [1, 1]} : vector<8x24xf32> to vector<8x8xf32>
      %869 = vector.extract_strided_slice %851 {offsets = [0, 16], sizes = [8, 8], strides = [1, 1]} : vector<8x24xf32> to vector<8x8xf32>
      %870 = arith.mulf %859, %869 : vector<8x8xf32>
      %871 = arith.addf %868, %870 : vector<8x8xf32>
      %872 = math.tanh %871 : vector<8x8xf32>
      %cst_185 = arith.constant 1.000000e+00 : f32
      %873 = vector.broadcast %cst_185 : f32 to vector<8x8xf32>
      %874 = arith.subf %873, %867 : vector<8x8xf32>
      %875 = arith.mulf %874, %872 : vector<8x8xf32>
      %876 = arith.mulf %867, %815 : vector<8x8xf32>
      %877 = arith.addf %875, %876 : vector<8x8xf32>
      %878 = vector.extract_strided_slice %823 {offsets = [16, 24], sizes = [8, 24], strides = [1, 1]} : vector<32x48xf32> to vector<8x24xf32>
      %879 = vector.extract_strided_slice %807 {offsets = [0, 0], sizes = [8, 8], strides = [1, 1]} : vector<8x24xf32> to vector<8x8xf32>
      %880 = vector.extract_strided_slice %878 {offsets = [0, 0], sizes = [8, 8], strides = [1, 1]} : vector<8x24xf32> to vector<8x8xf32>
      %881 = arith.addf %879, %880 : vector<8x8xf32>
      %882 = arith.negf %881 : vector<8x8xf32>
      %883 = math.exp %882 : vector<8x8xf32>
      %cst_186 = arith.constant 1.000000e+00 : f32
      %884 = vector.broadcast %cst_186 : f32 to vector<8x8xf32>
      %885 = arith.addf %884, %883 : vector<8x8xf32>
      %886 = arith.divf %884, %885 : vector<8x8xf32>
      %887 = vector.extract_strided_slice %807 {offsets = [0, 8], sizes = [8, 8], strides = [1, 1]} : vector<8x24xf32> to vector<8x8xf32>
      %888 = vector.extract_strided_slice %878 {offsets = [0, 8], sizes = [8, 8], strides = [1, 1]} : vector<8x24xf32> to vector<8x8xf32>
      %889 = arith.addf %887, %888 : vector<8x8xf32>
      %890 = arith.negf %889 : vector<8x8xf32>
      %891 = math.exp %890 : vector<8x8xf32>
      %cst_187 = arith.constant 1.000000e+00 : f32
      %892 = vector.broadcast %cst_187 : f32 to vector<8x8xf32>
      %893 = arith.addf %892, %891 : vector<8x8xf32>
      %894 = arith.divf %892, %893 : vector<8x8xf32>
      %895 = vector.extract_strided_slice %807 {offsets = [0, 16], sizes = [8, 8], strides = [1, 1]} : vector<8x24xf32> to vector<8x8xf32>
      %896 = vector.extract_strided_slice %878 {offsets = [0, 16], sizes = [8, 8], strides = [1, 1]} : vector<8x24xf32> to vector<8x8xf32>
      %897 = arith.mulf %886, %896 : vector<8x8xf32>
      %898 = arith.addf %895, %897 : vector<8x8xf32>
      %899 = math.tanh %898 : vector<8x8xf32>
      %cst_188 = arith.constant 1.000000e+00 : f32
      %900 = vector.broadcast %cst_188 : f32 to vector<8x8xf32>
      %901 = arith.subf %900, %894 : vector<8x8xf32>
      %902 = arith.mulf %901, %899 : vector<8x8xf32>
      %903 = arith.mulf %894, %816 : vector<8x8xf32>
      %904 = arith.addf %902, %903 : vector<8x8xf32>
      %905 = vector.extract_strided_slice %823 {offsets = [24, 24], sizes = [8, 24], strides = [1, 1]} : vector<32x48xf32> to vector<8x24xf32>
      %906 = vector.extract_strided_slice %807 {offsets = [0, 0], sizes = [8, 8], strides = [1, 1]} : vector<8x24xf32> to vector<8x8xf32>
      %907 = vector.extract_strided_slice %905 {offsets = [0, 0], sizes = [8, 8], strides = [1, 1]} : vector<8x24xf32> to vector<8x8xf32>
      %908 = arith.addf %906, %907 : vector<8x8xf32>
      %909 = arith.negf %908 : vector<8x8xf32>
      %910 = math.exp %909 : vector<8x8xf32>
      %cst_189 = arith.constant 1.000000e+00 : f32
      %911 = vector.broadcast %cst_189 : f32 to vector<8x8xf32>
      %912 = arith.addf %911, %910 : vector<8x8xf32>
      %913 = arith.divf %911, %912 : vector<8x8xf32>
      %914 = vector.extract_strided_slice %807 {offsets = [0, 8], sizes = [8, 8], strides = [1, 1]} : vector<8x24xf32> to vector<8x8xf32>
      %915 = vector.extract_strided_slice %905 {offsets = [0, 8], sizes = [8, 8], strides = [1, 1]} : vector<8x24xf32> to vector<8x8xf32>
      %916 = arith.addf %914, %915 : vector<8x8xf32>
      %917 = arith.negf %916 : vector<8x8xf32>
      %918 = math.exp %917 : vector<8x8xf32>
      %cst_190 = arith.constant 1.000000e+00 : f32
      %919 = vector.broadcast %cst_190 : f32 to vector<8x8xf32>
      %920 = arith.addf %919, %918 : vector<8x8xf32>
      %921 = arith.divf %919, %920 : vector<8x8xf32>
      %922 = vector.extract_strided_slice %807 {offsets = [0, 16], sizes = [8, 8], strides = [1, 1]} : vector<8x24xf32> to vector<8x8xf32>
      %923 = vector.extract_strided_slice %905 {offsets = [0, 16], sizes = [8, 8], strides = [1, 1]} : vector<8x24xf32> to vector<8x8xf32>
      %924 = arith.mulf %913, %923 : vector<8x8xf32>
      %925 = arith.addf %922, %924 : vector<8x8xf32>
      %926 = math.tanh %925 : vector<8x8xf32>
      %cst_191 = arith.constant 1.000000e+00 : f32
      %927 = vector.broadcast %cst_191 : f32 to vector<8x8xf32>
      %928 = arith.subf %927, %921 : vector<8x8xf32>
      %929 = arith.mulf %928, %926 : vector<8x8xf32>
      %930 = arith.mulf %921, %819 : vector<8x8xf32>
      %931 = arith.addf %929, %930 : vector<8x8xf32>
      %932 = tpu.concatenate %850, %877, %904, %931 in 0 : vector<8x8xf32>, vector<8x8xf32>, vector<8x8xf32>, vector<8x8xf32> -> vector<32x8xf32>
      %933 = vector.extract_strided_slice %932 {offsets = [0, 0], sizes = [16, 8], strides = [1, 1]} : vector<32x8xf32> to vector<16x8xf32>
      %934 = arith.index_cast %c5_i32 : i32 to index
      %c0_192 = arith.constant 0 : index
      %c0_193 = arith.constant 0 : index
      %935 = vector.load %alloca_23[%934, %c0_192, %c0_193] : memref<8x16x8xf32, #tpu.memory_space<vmem>>, vector<1x16x8xf32>
      %936 = vector.shape_cast %935 : vector<1x16x8xf32> to vector<16x8xf32>
      %937 = vector.shape_cast %933 : vector<16x8xf32> to vector<1x16x8xf32>
      tpu.vector_store %alloca_23[%934, %c0_192, %c0_193], %937 {strides = array<i32>} : memref<8x16x8xf32, #tpu.memory_space<vmem>>, vector<1x16x8xf32>,
      %938 = vector.extract_strided_slice %932 {offsets = [16, 0], sizes = [16, 8], strides = [1, 1]} : vector<32x8xf32> to vector<16x8xf32>
      %939 = arith.index_cast %799 : i32 to index
      %c0_194 = arith.constant 0 : index
      %c0_195 = arith.constant 0 : index
      %940 = vector.load %alloca_24[%939, %c0_194, %c0_195] : memref<8x16x8xf32, #tpu.memory_space<vmem>>, vector<1x16x8xf32>
      %941 = vector.shape_cast %940 : vector<1x16x8xf32> to vector<16x8xf32>
      %942 = vector.shape_cast %938 : vector<16x8xf32> to vector<1x16x8xf32>
      tpu.vector_store %alloca_24[%939, %c0_194, %c0_195], %942 {strides = array<i32>} : memref<8x16x8xf32, #tpu.memory_space<vmem>>, vector<1x16x8xf32>,
      %c6_i32 = arith.constant 6 : i32
      %c7_i32_196 = arith.constant 7 : i32
      %943 = arith.subi %c7_i32_196, %c6_i32 : i32
      %c8_i32_197 = arith.constant 8 : i32
      %944 = arith.muli %c6_i32, %c8_i32_197 : i32
      %945 = tpu.assume_multiple %944, 8 : i32
      %c8_i32_198 = arith.constant 8 : i32
      %946 = arith.muli %943, %c8_i32_198 : i32
      %947 = tpu.assume_multiple %946, 8 : i32
      %948 = arith.index_cast %945 : i32 to index
      %c0_199 = arith.constant 0 : index
      %949 = vector.load %alloca[%948, %c0_199] : memref<64x24xf32, #tpu.memory_space<vmem>>, vector<8x24xf32>
      %950 = arith.index_cast %947 : i32 to index
      %c0_200 = arith.constant 0 : index
      %951 = vector.load %alloca_22[%950, %c0_200] : memref<64x24xf32, #tpu.memory_space<vmem>>, vector<8x24xf32>
      %952 = arith.index_cast %c6_i32 : i32 to index
      %953 = memref.load %arg1[%952] : memref<8xf32, #tpu.memory_space<smem>>
      %954 = arith.index_cast %943 : i32 to index
      %955 = memref.load %arg2[%954] : memref<8xf32, #tpu.memory_space<smem>>
      %956 = vector.extract_strided_slice %932 {offsets = [0, 0], sizes = [8, 8], strides = [1, 1]} : vector<32x8xf32> to vector<8x8xf32>
      %957 = vector.extract_strided_slice %932 {offsets = [8, 0], sizes = [8, 8], strides = [1, 1]} : vector<32x8xf32> to vector<8x8xf32>
      %958 = vector.broadcast %953 : f32 to vector<8x8xf32>
      %959 = arith.mulf %957, %958 : vector<8x8xf32>
      %960 = vector.extract_strided_slice %932 {offsets = [16, 0], sizes = [8, 8], strides = [1, 1]} : vector<32x8xf32> to vector<8x8xf32>
      %961 = vector.extract_strided_slice %932 {offsets = [24, 0], sizes = [8, 8], strides = [1, 1]} : vector<32x8xf32> to vector<8x8xf32>
      %962 = vector.broadcast %955 : f32 to vector<8x8xf32>
      %963 = arith.mulf %961, %962 : vector<8x8xf32>
      %964 = tpu.concatenate %956, %959, %960, %963 in 0 : vector<8x8xf32>, vector<8x8xf32>, vector<8x8xf32>, vector<8x8xf32> -> vector<32x8xf32>
      %cst_201 = arith.constant dense<0.000000e+00> : vector<32x48xf32>
      %965 = tpu.matmul %964, %76, %cst_201 {dimension_numbers = #tpu.dot_dimension_numbers<[1], [0], [0], [1], [0, 0, 1, 1], [], []>} : vector<32x8xf32>, vector<8x48xf32>, vector<32x48xf32> -> vector<32x48xf32>
      %966 = vector.broadcast %77 : vector<1x48xf32> to vector<32x48xf32>
      %967 = arith.addf %965, %966 : vector<32x48xf32>
      %968 = vector.extract_strided_slice %967 {offsets = [0, 0], sizes = [8, 24], strides = [1, 1]} : vector<32x48xf32> to vector<8x24xf32>
      %969 = vector.extract_strided_slice %949 {offsets = [0, 0], sizes = [8, 8], strides = [1, 1]} : vector<8x24xf32> to vector<8x8xf32>
      %970 = vector.extract_strided_slice %968 {offsets = [0, 0], sizes = [8, 8], strides = [1, 1]} : vector<8x24xf32> to vector<8x8xf32>
      %971 = arith.addf %969, %970 : vector<8x8xf32>
      %972 = arith.negf %971 : vector<8x8xf32>
      %973 = math.exp %972 : vector<8x8xf32>
      %cst_202 = arith.constant 1.000000e+00 : f32
      %974 = vector.broadcast %cst_202 : f32 to vector<8x8xf32>
      %975 = arith.addf %974, %973 : vector<8x8xf32>
      %976 = arith.divf %974, %975 : vector<8x8xf32>
      %977 = vector.extract_strided_slice %949 {offsets = [0, 8], sizes = [8, 8], strides = [1, 1]} : vector<8x24xf32> to vector<8x8xf32>
      %978 = vector.extract_strided_slice %968 {offsets = [0, 8], sizes = [8, 8], strides = [1, 1]} : vector<8x24xf32> to vector<8x8xf32>
      %979 = arith.addf %977, %978 : vector<8x8xf32>
      %980 = arith.negf %979 : vector<8x8xf32>
      %981 = math.exp %980 : vector<8x8xf32>
      %cst_203 = arith.constant 1.000000e+00 : f32
      %982 = vector.broadcast %cst_203 : f32 to vector<8x8xf32>
      %983 = arith.addf %982, %981 : vector<8x8xf32>
      %984 = arith.divf %982, %983 : vector<8x8xf32>
      %985 = vector.extract_strided_slice %949 {offsets = [0, 16], sizes = [8, 8], strides = [1, 1]} : vector<8x24xf32> to vector<8x8xf32>
      %986 = vector.extract_strided_slice %968 {offsets = [0, 16], sizes = [8, 8], strides = [1, 1]} : vector<8x24xf32> to vector<8x8xf32>
      %987 = arith.mulf %976, %986 : vector<8x8xf32>
      %988 = arith.addf %985, %987 : vector<8x8xf32>
      %989 = math.tanh %988 : vector<8x8xf32>
      %cst_204 = arith.constant 1.000000e+00 : f32
      %990 = vector.broadcast %cst_204 : f32 to vector<8x8xf32>
      %991 = arith.subf %990, %984 : vector<8x8xf32>
      %992 = arith.mulf %991, %989 : vector<8x8xf32>
      %993 = arith.mulf %984, %956 : vector<8x8xf32>
      %994 = arith.addf %992, %993 : vector<8x8xf32>
      %995 = vector.extract_strided_slice %967 {offsets = [8, 0], sizes = [8, 24], strides = [1, 1]} : vector<32x48xf32> to vector<8x24xf32>
      %996 = vector.extract_strided_slice %949 {offsets = [0, 0], sizes = [8, 8], strides = [1, 1]} : vector<8x24xf32> to vector<8x8xf32>
      %997 = vector.extract_strided_slice %995 {offsets = [0, 0], sizes = [8, 8], strides = [1, 1]} : vector<8x24xf32> to vector<8x8xf32>
      %998 = arith.addf %996, %997 : vector<8x8xf32>
      %999 = arith.negf %998 : vector<8x8xf32>
      %1000 = math.exp %999 : vector<8x8xf32>
      %cst_205 = arith.constant 1.000000e+00 : f32
      %1001 = vector.broadcast %cst_205 : f32 to vector<8x8xf32>
      %1002 = arith.addf %1001, %1000 : vector<8x8xf32>
      %1003 = arith.divf %1001, %1002 : vector<8x8xf32>
      %1004 = vector.extract_strided_slice %949 {offsets = [0, 8], sizes = [8, 8], strides = [1, 1]} : vector<8x24xf32> to vector<8x8xf32>
      %1005 = vector.extract_strided_slice %995 {offsets = [0, 8], sizes = [8, 8], strides = [1, 1]} : vector<8x24xf32> to vector<8x8xf32>
      %1006 = arith.addf %1004, %1005 : vector<8x8xf32>
      %1007 = arith.negf %1006 : vector<8x8xf32>
      %1008 = math.exp %1007 : vector<8x8xf32>
      %cst_206 = arith.constant 1.000000e+00 : f32
      %1009 = vector.broadcast %cst_206 : f32 to vector<8x8xf32>
      %1010 = arith.addf %1009, %1008 : vector<8x8xf32>
      %1011 = arith.divf %1009, %1010 : vector<8x8xf32>
      %1012 = vector.extract_strided_slice %949 {offsets = [0, 16], sizes = [8, 8], strides = [1, 1]} : vector<8x24xf32> to vector<8x8xf32>
      %1013 = vector.extract_strided_slice %995 {offsets = [0, 16], sizes = [8, 8], strides = [1, 1]} : vector<8x24xf32> to vector<8x8xf32>
      %1014 = arith.mulf %1003, %1013 : vector<8x8xf32>
      %1015 = arith.addf %1012, %1014 : vector<8x8xf32>
      %1016 = math.tanh %1015 : vector<8x8xf32>
      %cst_207 = arith.constant 1.000000e+00 : f32
      %1017 = vector.broadcast %cst_207 : f32 to vector<8x8xf32>
      %1018 = arith.subf %1017, %1011 : vector<8x8xf32>
      %1019 = arith.mulf %1018, %1016 : vector<8x8xf32>
      %1020 = arith.mulf %1011, %959 : vector<8x8xf32>
      %1021 = arith.addf %1019, %1020 : vector<8x8xf32>
      %1022 = vector.extract_strided_slice %967 {offsets = [16, 24], sizes = [8, 24], strides = [1, 1]} : vector<32x48xf32> to vector<8x24xf32>
      %1023 = vector.extract_strided_slice %951 {offsets = [0, 0], sizes = [8, 8], strides = [1, 1]} : vector<8x24xf32> to vector<8x8xf32>
      %1024 = vector.extract_strided_slice %1022 {offsets = [0, 0], sizes = [8, 8], strides = [1, 1]} : vector<8x24xf32> to vector<8x8xf32>
      %1025 = arith.addf %1023, %1024 : vector<8x8xf32>
      %1026 = arith.negf %1025 : vector<8x8xf32>
      %1027 = math.exp %1026 : vector<8x8xf32>
      %cst_208 = arith.constant 1.000000e+00 : f32
      %1028 = vector.broadcast %cst_208 : f32 to vector<8x8xf32>
      %1029 = arith.addf %1028, %1027 : vector<8x8xf32>
      %1030 = arith.divf %1028, %1029 : vector<8x8xf32>
      %1031 = vector.extract_strided_slice %951 {offsets = [0, 8], sizes = [8, 8], strides = [1, 1]} : vector<8x24xf32> to vector<8x8xf32>
      %1032 = vector.extract_strided_slice %1022 {offsets = [0, 8], sizes = [8, 8], strides = [1, 1]} : vector<8x24xf32> to vector<8x8xf32>
      %1033 = arith.addf %1031, %1032 : vector<8x8xf32>
      %1034 = arith.negf %1033 : vector<8x8xf32>
      %1035 = math.exp %1034 : vector<8x8xf32>
      %cst_209 = arith.constant 1.000000e+00 : f32
      %1036 = vector.broadcast %cst_209 : f32 to vector<8x8xf32>
      %1037 = arith.addf %1036, %1035 : vector<8x8xf32>
      %1038 = arith.divf %1036, %1037 : vector<8x8xf32>
      %1039 = vector.extract_strided_slice %951 {offsets = [0, 16], sizes = [8, 8], strides = [1, 1]} : vector<8x24xf32> to vector<8x8xf32>
      %1040 = vector.extract_strided_slice %1022 {offsets = [0, 16], sizes = [8, 8], strides = [1, 1]} : vector<8x24xf32> to vector<8x8xf32>
      %1041 = arith.mulf %1030, %1040 : vector<8x8xf32>
      %1042 = arith.addf %1039, %1041 : vector<8x8xf32>
      %1043 = math.tanh %1042 : vector<8x8xf32>
      %cst_210 = arith.constant 1.000000e+00 : f32
      %1044 = vector.broadcast %cst_210 : f32 to vector<8x8xf32>
      %1045 = arith.subf %1044, %1038 : vector<8x8xf32>
      %1046 = arith.mulf %1045, %1043 : vector<8x8xf32>
      %1047 = arith.mulf %1038, %960 : vector<8x8xf32>
      %1048 = arith.addf %1046, %1047 : vector<8x8xf32>
      %1049 = vector.extract_strided_slice %967 {offsets = [24, 24], sizes = [8, 24], strides = [1, 1]} : vector<32x48xf32> to vector<8x24xf32>
      %1050 = vector.extract_strided_slice %951 {offsets = [0, 0], sizes = [8, 8], strides = [1, 1]} : vector<8x24xf32> to vector<8x8xf32>
      %1051 = vector.extract_strided_slice %1049 {offsets = [0, 0], sizes = [8, 8], strides = [1, 1]} : vector<8x24xf32> to vector<8x8xf32>
      %1052 = arith.addf %1050, %1051 : vector<8x8xf32>
      %1053 = arith.negf %1052 : vector<8x8xf32>
      %1054 = math.exp %1053 : vector<8x8xf32>
      %cst_211 = arith.constant 1.000000e+00 : f32
      %1055 = vector.broadcast %cst_211 : f32 to vector<8x8xf32>
      %1056 = arith.addf %1055, %1054 : vector<8x8xf32>
      %1057 = arith.divf %1055, %1056 : vector<8x8xf32>
      %1058 = vector.extract_strided_slice %951 {offsets = [0, 8], sizes = [8, 8], strides = [1, 1]} : vector<8x24xf32> to vector<8x8xf32>
      %1059 = vector.extract_strided_slice %1049 {offsets = [0, 8], sizes = [8, 8], strides = [1, 1]} : vector<8x24xf32> to vector<8x8xf32>
      %1060 = arith.addf %1058, %1059 : vector<8x8xf32>
      %1061 = arith.negf %1060 : vector<8x8xf32>
      %1062 = math.exp %1061 : vector<8x8xf32>
      %cst_212 = arith.constant 1.000000e+00 : f32
      %1063 = vector.broadcast %cst_212 : f32 to vector<8x8xf32>
      %1064 = arith.addf %1063, %1062 : vector<8x8xf32>
      %1065 = arith.divf %1063, %1064 : vector<8x8xf32>
      %1066 = vector.extract_strided_slice %951 {offsets = [0, 16], sizes = [8, 8], strides = [1, 1]} : vector<8x24xf32> to vector<8x8xf32>
      %1067 = vector.extract_strided_slice %1049 {offsets = [0, 16], sizes = [8, 8], strides = [1, 1]} : vector<8x24xf32> to vector<8x8xf32>
      %1068 = arith.mulf %1057, %1067 : vector<8x8xf32>
      %1069 = arith.addf %1066, %1068 : vector<8x8xf32>
      %1070 = math.tanh %1069 : vector<8x8xf32>
      %cst_213 = arith.constant 1.000000e+00 : f32
      %1071 = vector.broadcast %cst_213 : f32 to vector<8x8xf32>
      %1072 = arith.subf %1071, %1065 : vector<8x8xf32>
      %1073 = arith.mulf %1072, %1070 : vector<8x8xf32>
      %1074 = arith.mulf %1065, %963 : vector<8x8xf32>
      %1075 = arith.addf %1073, %1074 : vector<8x8xf32>
      %1076 = tpu.concatenate %994, %1021, %1048, %1075 in 0 : vector<8x8xf32>, vector<8x8xf32>, vector<8x8xf32>, vector<8x8xf32> -> vector<32x8xf32>
      %1077 = vector.extract_strided_slice %1076 {offsets = [0, 0], sizes = [16, 8], strides = [1, 1]} : vector<32x8xf32> to vector<16x8xf32>
      %1078 = arith.index_cast %c6_i32 : i32 to index
      %c0_214 = arith.constant 0 : index
      %c0_215 = arith.constant 0 : index
      %1079 = vector.load %alloca_23[%1078, %c0_214, %c0_215] : memref<8x16x8xf32, #tpu.memory_space<vmem>>, vector<1x16x8xf32>
      %1080 = vector.shape_cast %1079 : vector<1x16x8xf32> to vector<16x8xf32>
      %1081 = vector.shape_cast %1077 : vector<16x8xf32> to vector<1x16x8xf32>
      tpu.vector_store %alloca_23[%1078, %c0_214, %c0_215], %1081 {strides = array<i32>} : memref<8x16x8xf32, #tpu.memory_space<vmem>>, vector<1x16x8xf32>,
      %1082 = vector.extract_strided_slice %1076 {offsets = [16, 0], sizes = [16, 8], strides = [1, 1]} : vector<32x8xf32> to vector<16x8xf32>
      %1083 = arith.index_cast %943 : i32 to index
      %c0_216 = arith.constant 0 : index
      %c0_217 = arith.constant 0 : index
      %1084 = vector.load %alloca_24[%1083, %c0_216, %c0_217] : memref<8x16x8xf32, #tpu.memory_space<vmem>>, vector<1x16x8xf32>
      %1085 = vector.shape_cast %1084 : vector<1x16x8xf32> to vector<16x8xf32>
      %1086 = vector.shape_cast %1082 : vector<16x8xf32> to vector<1x16x8xf32>
      tpu.vector_store %alloca_24[%1083, %c0_216, %c0_217], %1086 {strides = array<i32>} : memref<8x16x8xf32, #tpu.memory_space<vmem>>, vector<1x16x8xf32>,
      %c7_i32_218 = arith.constant 7 : i32
      %c7_i32_219 = arith.constant 7 : i32
      %1087 = arith.subi %c7_i32_219, %c7_i32_218 : i32
      %c8_i32_220 = arith.constant 8 : i32
      %1088 = arith.muli %c7_i32_218, %c8_i32_220 : i32
      %1089 = tpu.assume_multiple %1088, 8 : i32
      %c8_i32_221 = arith.constant 8 : i32
      %1090 = arith.muli %1087, %c8_i32_221 : i32
      %1091 = tpu.assume_multiple %1090, 8 : i32
      %1092 = arith.index_cast %1089 : i32 to index
      %c0_222 = arith.constant 0 : index
      %1093 = vector.load %alloca[%1092, %c0_222] : memref<64x24xf32, #tpu.memory_space<vmem>>, vector<8x24xf32>
      %1094 = arith.index_cast %1091 : i32 to index
      %c0_223 = arith.constant 0 : index
      %1095 = vector.load %alloca_22[%1094, %c0_223] : memref<64x24xf32, #tpu.memory_space<vmem>>, vector<8x24xf32>
      %1096 = arith.index_cast %c7_i32_218 : i32 to index
      %1097 = memref.load %arg1[%1096] : memref<8xf32, #tpu.memory_space<smem>>
      %1098 = arith.index_cast %1087 : i32 to index
      %1099 = memref.load %arg2[%1098] : memref<8xf32, #tpu.memory_space<smem>>
      %1100 = vector.extract_strided_slice %1076 {offsets = [0, 0], sizes = [8, 8], strides = [1, 1]} : vector<32x8xf32> to vector<8x8xf32>
      %1101 = vector.extract_strided_slice %1076 {offsets = [8, 0], sizes = [8, 8], strides = [1, 1]} : vector<32x8xf32> to vector<8x8xf32>
      %1102 = vector.broadcast %1097 : f32 to vector<8x8xf32>
      %1103 = arith.mulf %1101, %1102 : vector<8x8xf32>
      %1104 = vector.extract_strided_slice %1076 {offsets = [16, 0], sizes = [8, 8], strides = [1, 1]} : vector<32x8xf32> to vector<8x8xf32>
      %1105 = vector.extract_strided_slice %1076 {offsets = [24, 0], sizes = [8, 8], strides = [1, 1]} : vector<32x8xf32> to vector<8x8xf32>
      %1106 = vector.broadcast %1099 : f32 to vector<8x8xf32>
      %1107 = arith.mulf %1105, %1106 : vector<8x8xf32>
      %1108 = tpu.concatenate %1100, %1103, %1104, %1107 in 0 : vector<8x8xf32>, vector<8x8xf32>, vector<8x8xf32>, vector<8x8xf32> -> vector<32x8xf32>
      %cst_224 = arith.constant dense<0.000000e+00> : vector<32x48xf32>
      %1109 = tpu.matmul %1108, %76, %cst_224 {dimension_numbers = #tpu.dot_dimension_numbers<[1], [0], [0], [1], [0, 0, 1, 1], [], []>} : vector<32x8xf32>, vector<8x48xf32>, vector<32x48xf32> -> vector<32x48xf32>
      %1110 = vector.broadcast %77 : vector<1x48xf32> to vector<32x48xf32>
      %1111 = arith.addf %1109, %1110 : vector<32x48xf32>
      %1112 = vector.extract_strided_slice %1111 {offsets = [0, 0], sizes = [8, 24], strides = [1, 1]} : vector<32x48xf32> to vector<8x24xf32>
      %1113 = vector.extract_strided_slice %1093 {offsets = [0, 0], sizes = [8, 8], strides = [1, 1]} : vector<8x24xf32> to vector<8x8xf32>
      %1114 = vector.extract_strided_slice %1112 {offsets = [0, 0], sizes = [8, 8], strides = [1, 1]} : vector<8x24xf32> to vector<8x8xf32>
      %1115 = arith.addf %1113, %1114 : vector<8x8xf32>
      %1116 = arith.negf %1115 : vector<8x8xf32>
      %1117 = math.exp %1116 : vector<8x8xf32>
      %cst_225 = arith.constant 1.000000e+00 : f32
      %1118 = vector.broadcast %cst_225 : f32 to vector<8x8xf32>
      %1119 = arith.addf %1118, %1117 : vector<8x8xf32>
      %1120 = arith.divf %1118, %1119 : vector<8x8xf32>
      %1121 = vector.extract_strided_slice %1093 {offsets = [0, 8], sizes = [8, 8], strides = [1, 1]} : vector<8x24xf32> to vector<8x8xf32>
      %1122 = vector.extract_strided_slice %1112 {offsets = [0, 8], sizes = [8, 8], strides = [1, 1]} : vector<8x24xf32> to vector<8x8xf32>
      %1123 = arith.addf %1121, %1122 : vector<8x8xf32>
      %1124 = arith.negf %1123 : vector<8x8xf32>
      %1125 = math.exp %1124 : vector<8x8xf32>
      %cst_226 = arith.constant 1.000000e+00 : f32
      %1126 = vector.broadcast %cst_226 : f32 to vector<8x8xf32>
      %1127 = arith.addf %1126, %1125 : vector<8x8xf32>
      %1128 = arith.divf %1126, %1127 : vector<8x8xf32>
      %1129 = vector.extract_strided_slice %1093 {offsets = [0, 16], sizes = [8, 8], strides = [1, 1]} : vector<8x24xf32> to vector<8x8xf32>
      %1130 = vector.extract_strided_slice %1112 {offsets = [0, 16], sizes = [8, 8], strides = [1, 1]} : vector<8x24xf32> to vector<8x8xf32>
      %1131 = arith.mulf %1120, %1130 : vector<8x8xf32>
      %1132 = arith.addf %1129, %1131 : vector<8x8xf32>
      %1133 = math.tanh %1132 : vector<8x8xf32>
      %cst_227 = arith.constant 1.000000e+00 : f32
      %1134 = vector.broadcast %cst_227 : f32 to vector<8x8xf32>
      %1135 = arith.subf %1134, %1128 : vector<8x8xf32>
      %1136 = arith.mulf %1135, %1133 : vector<8x8xf32>
      %1137 = arith.mulf %1128, %1100 : vector<8x8xf32>
      %1138 = arith.addf %1136, %1137 : vector<8x8xf32>
      %1139 = vector.extract_strided_slice %1111 {offsets = [8, 0], sizes = [8, 24], strides = [1, 1]} : vector<32x48xf32> to vector<8x24xf32>
      %1140 = vector.extract_strided_slice %1093 {offsets = [0, 0], sizes = [8, 8], strides = [1, 1]} : vector<8x24xf32> to vector<8x8xf32>
      %1141 = vector.extract_strided_slice %1139 {offsets = [0, 0], sizes = [8, 8], strides = [1, 1]} : vector<8x24xf32> to vector<8x8xf32>
      %1142 = arith.addf %1140, %1141 : vector<8x8xf32>
      %1143 = arith.negf %1142 : vector<8x8xf32>
      %1144 = math.exp %1143 : vector<8x8xf32>
      %cst_228 = arith.constant 1.000000e+00 : f32
      %1145 = vector.broadcast %cst_228 : f32 to vector<8x8xf32>
      %1146 = arith.addf %1145, %1144 : vector<8x8xf32>
      %1147 = arith.divf %1145, %1146 : vector<8x8xf32>
      %1148 = vector.extract_strided_slice %1093 {offsets = [0, 8], sizes = [8, 8], strides = [1, 1]} : vector<8x24xf32> to vector<8x8xf32>
      %1149 = vector.extract_strided_slice %1139 {offsets = [0, 8], sizes = [8, 8], strides = [1, 1]} : vector<8x24xf32> to vector<8x8xf32>
      %1150 = arith.addf %1148, %1149 : vector<8x8xf32>
      %1151 = arith.negf %1150 : vector<8x8xf32>
      %1152 = math.exp %1151 : vector<8x8xf32>
      %cst_229 = arith.constant 1.000000e+00 : f32
      %1153 = vector.broadcast %cst_229 : f32 to vector<8x8xf32>
      %1154 = arith.addf %1153, %1152 : vector<8x8xf32>
      %1155 = arith.divf %1153, %1154 : vector<8x8xf32>
      %1156 = vector.extract_strided_slice %1093 {offsets = [0, 16], sizes = [8, 8], strides = [1, 1]} : vector<8x24xf32> to vector<8x8xf32>
      %1157 = vector.extract_strided_slice %1139 {offsets = [0, 16], sizes = [8, 8], strides = [1, 1]} : vector<8x24xf32> to vector<8x8xf32>
      %1158 = arith.mulf %1147, %1157 : vector<8x8xf32>
      %1159 = arith.addf %1156, %1158 : vector<8x8xf32>
      %1160 = math.tanh %1159 : vector<8x8xf32>
      %cst_230 = arith.constant 1.000000e+00 : f32
      %1161 = vector.broadcast %cst_230 : f32 to vector<8x8xf32>
      %1162 = arith.subf %1161, %1155 : vector<8x8xf32>
      %1163 = arith.mulf %1162, %1160 : vector<8x8xf32>
      %1164 = arith.mulf %1155, %1103 : vector<8x8xf32>
      %1165 = arith.addf %1163, %1164 : vector<8x8xf32>
      %1166 = vector.extract_strided_slice %1111 {offsets = [16, 24], sizes = [8, 24], strides = [1, 1]} : vector<32x48xf32> to vector<8x24xf32>
      %1167 = vector.extract_strided_slice %1095 {offsets = [0, 0], sizes = [8, 8], strides = [1, 1]} : vector<8x24xf32> to vector<8x8xf32>
      %1168 = vector.extract_strided_slice %1166 {offsets = [0, 0], sizes = [8, 8], strides = [1, 1]} : vector<8x24xf32> to vector<8x8xf32>
      %1169 = arith.addf %1167, %1168 : vector<8x8xf32>
      %1170 = arith.negf %1169 : vector<8x8xf32>
      %1171 = math.exp %1170 : vector<8x8xf32>
      %cst_231 = arith.constant 1.000000e+00 : f32
      %1172 = vector.broadcast %cst_231 : f32 to vector<8x8xf32>
      %1173 = arith.addf %1172, %1171 : vector<8x8xf32>
      %1174 = arith.divf %1172, %1173 : vector<8x8xf32>
      %1175 = vector.extract_strided_slice %1095 {offsets = [0, 8], sizes = [8, 8], strides = [1, 1]} : vector<8x24xf32> to vector<8x8xf32>
      %1176 = vector.extract_strided_slice %1166 {offsets = [0, 8], sizes = [8, 8], strides = [1, 1]} : vector<8x24xf32> to vector<8x8xf32>
      %1177 = arith.addf %1175, %1176 : vector<8x8xf32>
      %1178 = arith.negf %1177 : vector<8x8xf32>
      %1179 = math.exp %1178 : vector<8x8xf32>
      %cst_232 = arith.constant 1.000000e+00 : f32
      %1180 = vector.broadcast %cst_232 : f32 to vector<8x8xf32>
      %1181 = arith.addf %1180, %1179 : vector<8x8xf32>
      %1182 = arith.divf %1180, %1181 : vector<8x8xf32>
      %1183 = vector.extract_strided_slice %1095 {offsets = [0, 16], sizes = [8, 8], strides = [1, 1]} : vector<8x24xf32> to vector<8x8xf32>
      %1184 = vector.extract_strided_slice %1166 {offsets = [0, 16], sizes = [8, 8], strides = [1, 1]} : vector<8x24xf32> to vector<8x8xf32>
      %1185 = arith.mulf %1174, %1184 : vector<8x8xf32>
      %1186 = arith.addf %1183, %1185 : vector<8x8xf32>
      %1187 = math.tanh %1186 : vector<8x8xf32>
      %cst_233 = arith.constant 1.000000e+00 : f32
      %1188 = vector.broadcast %cst_233 : f32 to vector<8x8xf32>
      %1189 = arith.subf %1188, %1182 : vector<8x8xf32>
      %1190 = arith.mulf %1189, %1187 : vector<8x8xf32>
      %1191 = arith.mulf %1182, %1104 : vector<8x8xf32>
      %1192 = arith.addf %1190, %1191 : vector<8x8xf32>
      %1193 = vector.extract_strided_slice %1111 {offsets = [24, 24], sizes = [8, 24], strides = [1, 1]} : vector<32x48xf32> to vector<8x24xf32>
      %1194 = vector.extract_strided_slice %1095 {offsets = [0, 0], sizes = [8, 8], strides = [1, 1]} : vector<8x24xf32> to vector<8x8xf32>
      %1195 = vector.extract_strided_slice %1193 {offsets = [0, 0], sizes = [8, 8], strides = [1, 1]} : vector<8x24xf32> to vector<8x8xf32>
      %1196 = arith.addf %1194, %1195 : vector<8x8xf32>
      %1197 = arith.negf %1196 : vector<8x8xf32>
      %1198 = math.exp %1197 : vector<8x8xf32>
      %cst_234 = arith.constant 1.000000e+00 : f32
      %1199 = vector.broadcast %cst_234 : f32 to vector<8x8xf32>
      %1200 = arith.addf %1199, %1198 : vector<8x8xf32>
      %1201 = arith.divf %1199, %1200 : vector<8x8xf32>
      %1202 = vector.extract_strided_slice %1095 {offsets = [0, 8], sizes = [8, 8], strides = [1, 1]} : vector<8x24xf32> to vector<8x8xf32>
      %1203 = vector.extract_strided_slice %1193 {offsets = [0, 8], sizes = [8, 8], strides = [1, 1]} : vector<8x24xf32> to vector<8x8xf32>
      %1204 = arith.addf %1202, %1203 : vector<8x8xf32>
      %1205 = arith.negf %1204 : vector<8x8xf32>
      %1206 = math.exp %1205 : vector<8x8xf32>
      %cst_235 = arith.constant 1.000000e+00 : f32
      %1207 = vector.broadcast %cst_235 : f32 to vector<8x8xf32>
      %1208 = arith.addf %1207, %1206 : vector<8x8xf32>
      %1209 = arith.divf %1207, %1208 : vector<8x8xf32>
      %1210 = vector.extract_strided_slice %1095 {offsets = [0, 16], sizes = [8, 8], strides = [1, 1]} : vector<8x24xf32> to vector<8x8xf32>
      %1211 = vector.extract_strided_slice %1193 {offsets = [0, 16], sizes = [8, 8], strides = [1, 1]} : vector<8x24xf32> to vector<8x8xf32>
      %1212 = arith.mulf %1201, %1211 : vector<8x8xf32>
      %1213 = arith.addf %1210, %1212 : vector<8x8xf32>
      %1214 = math.tanh %1213 : vector<8x8xf32>
      %cst_236 = arith.constant 1.000000e+00 : f32
      %1215 = vector.broadcast %cst_236 : f32 to vector<8x8xf32>
      %1216 = arith.subf %1215, %1209 : vector<8x8xf32>
      %1217 = arith.mulf %1216, %1214 : vector<8x8xf32>
      %1218 = arith.mulf %1209, %1107 : vector<8x8xf32>
      %1219 = arith.addf %1217, %1218 : vector<8x8xf32>
      %1220 = tpu.concatenate %1138, %1165, %1192, %1219 in 0 : vector<8x8xf32>, vector<8x8xf32>, vector<8x8xf32>, vector<8x8xf32> -> vector<32x8xf32>
      %1221 = vector.extract_strided_slice %1220 {offsets = [0, 0], sizes = [16, 8], strides = [1, 1]} : vector<32x8xf32> to vector<16x8xf32>
      %1222 = arith.index_cast %c7_i32_218 : i32 to index
      %c0_237 = arith.constant 0 : index
      %c0_238 = arith.constant 0 : index
      %1223 = vector.load %alloca_23[%1222, %c0_237, %c0_238] : memref<8x16x8xf32, #tpu.memory_space<vmem>>, vector<1x16x8xf32>
      %1224 = vector.shape_cast %1223 : vector<1x16x8xf32> to vector<16x8xf32>
      %1225 = vector.shape_cast %1221 : vector<16x8xf32> to vector<1x16x8xf32>
      tpu.vector_store %alloca_23[%1222, %c0_237, %c0_238], %1225 {strides = array<i32>} : memref<8x16x8xf32, #tpu.memory_space<vmem>>, vector<1x16x8xf32>,
      %1226 = vector.extract_strided_slice %1220 {offsets = [16, 0], sizes = [16, 8], strides = [1, 1]} : vector<32x8xf32> to vector<16x8xf32>
      %1227 = arith.index_cast %1087 : i32 to index
      %c0_239 = arith.constant 0 : index
      %c0_240 = arith.constant 0 : index
      %1228 = vector.load %alloca_24[%1227, %c0_239, %c0_240] : memref<8x16x8xf32, #tpu.memory_space<vmem>>, vector<1x16x8xf32>
      %1229 = vector.shape_cast %1228 : vector<1x16x8xf32> to vector<16x8xf32>
      %1230 = vector.shape_cast %1226 : vector<16x8xf32> to vector<1x16x8xf32>
      tpu.vector_store %alloca_24[%1227, %c0_239, %c0_240], %1230 {strides = array<i32>} : memref<8x16x8xf32, #tpu.memory_space<vmem>>, vector<1x16x8xf32>,
      %c8_i32_241 = arith.constant 8 : i32
      %c0_242 = arith.constant 0 : index
      %c0_243 = arith.constant 0 : index
      %1231 = vector.load %arg19[%c0_242, %c0_243] : memref<1x32xf32, #tpu.memory_space<vmem>>, vector<1x32xf32>
      %c0_244 = arith.constant 0 : index
      %c0_245 = arith.constant 0 : index
      %c0_246 = arith.constant 0 : index
      %1232 = vector.load %alloca_23[%c0_244, %c0_245, %c0_246] : memref<8x16x8xf32, #tpu.memory_space<vmem>>, vector<8x8x8xf32>
      %c0_247 = arith.constant 0 : index
      %c8_248 = arith.constant 8 : index
      %c0_249 = arith.constant 0 : index
      %1233 = vector.load %alloca_23[%c0_247, %c8_248, %c0_249] : memref<8x16x8xf32, #tpu.memory_space<vmem>>, vector<8x8x8xf32>
      %c0_250 = arith.constant 0 : index
      %c0_251 = arith.constant 0 : index
      %c0_252 = arith.constant 0 : index
      %1234 = vector.load %alloca_24[%c0_250, %c0_251, %c0_252] : memref<8x16x8xf32, #tpu.memory_space<vmem>>, vector<8x8x8xf32>
      %c0_253 = arith.constant 0 : index
      %c8_254 = arith.constant 8 : index
      %c0_255 = arith.constant 0 : index
      %1235 = vector.load %alloca_24[%c0_253, %c8_254, %c0_255] : memref<8x16x8xf32, #tpu.memory_space<vmem>>, vector<8x8x8xf32>
      %1236 = vector.extract_strided_slice %1231 {offsets = [0, 0], sizes = [1, 8], strides = [1, 1]} : vector<1x32xf32> to vector<1x8xf32>
      %1237 = vector.shape_cast %1236 : vector<1x8xf32> to vector<1x1x8xf32>
      %1238 = vector.broadcast %1237 : vector<1x1x8xf32> to vector<8x8x8xf32>
      %1239 = arith.mulf %1232, %1238 : vector<8x8x8xf32>
      %cst_256 = arith.constant dense<0.000000e+00> : vector<8x8xf32>
      %1240 = vector.multi_reduction <add>, %1239, %cst_256 [2] : vector<8x8x8xf32> to vector<8x8xf32>
      %1241 = vector.extract_strided_slice %1231 {offsets = [0, 8], sizes = [1, 8], strides = [1, 1]} : vector<1x32xf32> to vector<1x8xf32>
      %1242 = vector.shape_cast %1241 : vector<1x8xf32> to vector<1x1x8xf32>
      %1243 = vector.broadcast %1242 : vector<1x1x8xf32> to vector<8x8x8xf32>
      %1244 = arith.mulf %1234, %1243 : vector<8x8x8xf32>
      %cst_257 = arith.constant dense<0.000000e+00> : vector<8x8xf32>
      %1245 = vector.multi_reduction <add>, %1244, %cst_257 [2] : vector<8x8x8xf32> to vector<8x8xf32>
      %1246 = arith.addf %1240, %1245 : vector<8x8xf32>
      %1247 = vector.extract_strided_slice %1231 {offsets = [0, 16], sizes = [1, 8], strides = [1, 1]} : vector<1x32xf32> to vector<1x8xf32>
      %1248 = vector.shape_cast %1247 : vector<1x8xf32> to vector<1x1x8xf32>
      %1249 = vector.broadcast %1248 : vector<1x1x8xf32> to vector<8x8x8xf32>
      %1250 = arith.mulf %1233, %1249 : vector<8x8x8xf32>
      %cst_258 = arith.constant dense<0.000000e+00> : vector<8x8xf32>
      %1251 = vector.multi_reduction <add>, %1250, %cst_258 [2] : vector<8x8x8xf32> to vector<8x8xf32>
      %1252 = arith.addf %1246, %1251 : vector<8x8xf32>
      %1253 = vector.extract_strided_slice %1231 {offsets = [0, 24], sizes = [1, 8], strides = [1, 1]} : vector<1x32xf32> to vector<1x8xf32>
      %1254 = vector.shape_cast %1253 : vector<1x8xf32> to vector<1x1x8xf32>
      %1255 = vector.broadcast %1254 : vector<1x1x8xf32> to vector<8x8x8xf32>
      %1256 = arith.mulf %1235, %1255 : vector<8x8x8xf32>
      %cst_259 = arith.constant dense<0.000000e+00> : vector<8x8xf32>
      %1257 = vector.multi_reduction <add>, %1256, %cst_259 [2] : vector<8x8x8xf32> to vector<8x8xf32>
      %1258 = arith.addf %1252, %1257 : vector<8x8xf32>
      %c0_260 = arith.constant 0 : index
      %c0_261 = arith.constant 0 : index
      %1259 = vector.load %arg20[%c0_260, %c0_261] : memref<1x1xf32, #tpu.memory_space<vmem>>, vector<1x1xf32>
      %1260 = vector.broadcast %1259 : vector<1x1xf32> to vector<8x8xf32>
      %1261 = arith.addf %1258, %1260 : vector<8x8xf32>
      %1262 = tpu.transpose %1261, [1, 0] : vector<8x8xf32> -> vector<8x8xf32>
      %cst_262 = arith.constant dense<0xFF800000> : vector<8xf32>
      %1263 = vector.multi_reduction <maximumf>, %1262, %cst_262 [1] : vector<8x8xf32> to vector<8xf32>
      %1264 = vector.shape_cast %1263 : vector<8xf32> to vector<8x1xf32>
      %1265 = vector.broadcast %1264 : vector<8x1xf32> to vector<8x8xf32>
      %1266 = arith.subf %1262, %1265 : vector<8x8xf32>
      %1267 = math.exp %1266 : vector<8x8xf32>
      %cst_263 = arith.constant dense<0.000000e+00> : vector<8xf32>
      %1268 = vector.multi_reduction <add>, %1267, %cst_263 [1] : vector<8x8xf32> to vector<8xf32>
      %1269 = vector.shape_cast %1268 : vector<8xf32> to vector<8x1xf32>
      %1270 = math.log %1269 : vector<8x1xf32>
      %1271 = arith.addf %1264, %1270 : vector<8x1xf32>
      %1272 = vector.broadcast %1271 : vector<8x1xf32> to vector<8x8xf32>
      %1273 = arith.subf %1262, %1272 : vector<8x8xf32>
      %cst_264 = arith.constant 0.000000e+00 : f32
      %1274 = vector.broadcast %cst_264 : f32 to vector<8x120xf32>
      %1275 = tpu.concatenate %1273, %1274 in 1 : vector<8x8xf32>, vector<8x120xf32> -> vector<8x128xf32>
      %c0_265 = arith.constant 0 : index
      %c0_266 = arith.constant 0 : index
      %1276 = vector.load %arg22[%c0_265, %c0_266] : memref<8x128xf32, #tpu.memory_space<vmem>>, vector<8x128xf32>
      tpu.vector_store %arg22[%c0_265, %c0_266], %1275 {strides = array<i32>} : memref<8x128xf32, #tpu.memory_space<vmem>>, vector<8x128xf32>,
      tpu.yield
    }) : () -> ()
    return
  }
}

</mosaic_0001>

<bundles_post_ra>
// kernel: boundary_fine_read_classifier_forward.1
= control target key start
LH: loop header
LB: loop body
LE: loop exit
PB: predicated region body
PF: predicated region fallthrough
CT: control target
= control target key end

     0   :  { %s8168_s0 = inlined_call_operand.vmem [shape: bf16[64,16], index: 0, kind: input, shape index: {}]   ;;  %s8169_s1 = inlined_call_operand.vmem [shape: f32[8], index: 1, kind: input, shape index: {}]   ;;  %s8170_s2 = inlined_call_operand.vmem [shape: f32[8], index: 2, kind: input, shape index: {}]   ;;  %s8171_s3 = inlined_call_operand.vmem [shape: bf16[16,24], index: 3, kind: input, shape index: {}]   ;;  %s8172_s4 = inlined_call_operand.vmem [shape: bf16[16,24], index: 4, kind: input, shape index: {}]   ;;  %s8173_s5 = inlined_call_operand.vmem [shape: f32[1,24], index: 5, kind: input, shape index: {}]   ;;  %s8174_s6 = inlined_call_operand.vmem [shape: f32[1,24], index: 6, kind: input, shape index: {}]   ;;  %s8175_s7 = inlined_call_operand.vmem [shape: f32[8,48], index: 7, kind: input, shape index: {}]   ;;  %s8176_s8 = inlined_call_operand.vmem [shape: f32[1,48], index: 8, kind: input, shape index: {}]   ;;  %s8177_s9 = inlined_call_operand.vmem [shape: bf16[16,24], index: 9, kind: input, shape index: {}]   ;;  %s8178_s10 = inlined_call_operand.vmem [shape: bf16[16,24], index: 10, kind: input, shape index: {}]   ;;  %s8179_s11 = inlined_call_operand.vmem [shape: f32[16,24], index: 11, kind: input, shape index: {}]   ;;  %s8180_s12 = inlined_call_operand.vmem [shape: f32[16,24], index: 12, kind: input, shape index: {}]   ;;  %s8181_s13 = inlined_call_operand.vmem [shape: f32[1,24], index: 13, kind: input, shape index: {}]   ;;  %s8182_s14 = inlined_call_operand.vmem [shape: f32[1,24], index: 14, kind: input, shape index: {}]   ;;  %s8183_s15 = inlined_call_operand.vmem [shape: f32[8,48], index: 15, kind: input, shape index: {}]   ;;  %s8184_s16 = inlined_call_operand.vmem [shape: f32[1,48], index: 16, kind: input, shape index: {}]   ;;  %s8185_s17 = inlined_call_operand.vmem [shape: f32[1,32], index: 17, kind: input, shape index: {}]   ;;  %s8186_s18 = inlined_call_operand.<no memory space> [shape: f32[1,1], index: 18, kind: input, shape index: {}]   ;;  %s8187_s19 = inlined_call_operand.vmem [shape: f32[1,32], index: 19, kind: input, shape index: {}]   ;;  %s8188_s21 = inlined_call_operand.vmem [shape: f32[8,128], index: 21, kind: output, shape index: {0}]   ;;  %s8189_s22 = inlined_call_operand.vmem [shape: f32[8,128], index: 22, kind: output, shape index: {1}]   ;;  %s8190_s20 = inlined_call_operand.<no memory space> [shape: f32[1,1], index: 20, kind: input, shape index: {}]  }
   0x1   :  { %8192 = sst [smem:[#allocation18_spill]] %s8168_s0  ;;  %v28_v0 = vstv %s8186_s18  ;;  %v30_v1 = vstv %s8190_s20 }
   0x2   :  { %8193 = sst [smem:[#allocation19_spill]] %s8169_s1  ;;  %29 = vst [vmem:[#allocation4] sm:$0x1] %v28_v0  ;;  %31 = vst [vmem:[#allocation5] sm:$0x1] %v30_v1 }
   0x3   :  { %8194 = sst [smem:[#allocation20_spill]] %s8170_s2 }
   0x4   :  { %8195 = sst [smem:[#allocation21_spill]] %s8171_s3 }
   0x5   :  { %8196 = sst [smem:[#allocation22_spill]] %s8172_s4 }
   0x6   :  { %8197 = sst [smem:[#allocation23_spill]] %s8173_s5 }
   0x7   :  { %8198 = sst [smem:[#allocation24_spill]] %s8174_s6 }
   0x8   :  { %32 = vsyncpa [#allocation7], 0  ;;  %s8199_s23 = sld [smem:[#allocation19_spill]] }
   0xe   :  { %s42_s1 = sshll.u32 %s8199_s23, 4  ;;  %s43_s1 = int_to_ptr.vmem [resolvable:$true] %s42_s1 }
   0xf   :  { %33 = vsyncpa [#allocation9], 0  ;;  %s8200_s6 = sld [smem:[#allocation20_spill]]  ;;  %s6665_s26 = scalar_lea.vmem %s43_s1, 16 }
  0x10   :  { %p6666_p0 = scmp.ne.s32.totalorder %s43_s1, %s6665_s26  ;;  %p6670_p1 = scmp.lt.s32.totalorder %s43_s1, %s43_s1 }
  0x11   :  { %p6671_p2 = scmp.lt.s32.totalorder %s6665_s26, %s6665_s26 }
  0x13   :  { %p6672_p3 = por %p6671_p2, %p6670_p1 }
  0x15   :  { %s52_s25 = sshll.u32 %s8200_s6, 4  ;;  %p6673_p4 = pnand %p6672_p3, %p6666_p0  ;;  %s53_s25 = int_to_ptr.vmem [resolvable:$true] %s52_s25 }
  0x17   :  { %6676 = shalt.err (!%p6673_p4)
}
  0x18   :  { %s6693_s18 = smov [#allocation6]   ;;  %s6677_s20 = scalar_lea.vmem %s53_s25, 16 }
  0x19   :  { %45 = dma.vmem_to_smem %s43_s1, 16, %s6693_s18, [#allocation7]  }
  0x1a   :  { %p6678_p5 = scmp.ne.s32.totalorder %s53_s25, %s6677_s20  ;;  %p6682_p6 = scmp.lt.s32.totalorder %s53_s25, %s53_s25 }
  0x1b   :  { %p6683_p7 = scmp.lt.s32.totalorder %s6677_s20, %s6677_s20 }
  0x1d   :  { %p6684_p8 = por %p6683_p7, %p6682_p6 }
  0x1f   :  { %p6685_p9 = pnand %p6684_p8, %p6678_p5 }
  0x21   :  { %6688 = shalt.err (!%p6685_p9)
}
  0x22   :  { %s6694_s2 = smov [#allocation8]  }
  0x23   :  { %55 = dma.vmem_to_smem %s53_s25, 16, %s6694_s2, [#allocation9]  }
  0x24   :  { %6689 = dma.done.wait [#allocation7], 16  }
  0x25   :  { %6690 = vsyncadd [#allocation7], 4294967280 }
  0x26   :  { %6691 = dma.done.wait [#allocation9], 16  }
  0x27   :  { %6692 = vsyncadd [#allocation9], 4294967280 }
  0x28   :  { %98 = sfence }
  0x29   :  { %s8201_s28 = sld [smem:[#allocation21_spill]]  ;;  %vm143_vm0 = vcmask 130048   ;;  %v6852_v5 = vld [vmem:[%s8175_s7] sm:$0xff]  ;;  %v6695_v12 = vmov 0.0   ;;  %vm375_vm1 = vcmask 64512   ;;  %vm221_vm2 = vcmask 195584  }
  0x2a   :  { %s8202_s4 = sld [smem:[#allocation18_spill]]  ;;  %v6916_v43 = vld [vmem:[%s8176_s8] ss:$0 sm:$0xff]  ;;  %s6697_s29 = smov 104   ;;  %vm2547_vm3 = vcmask 1041409   ;;  %vm2549_vm4 = vcmask 1042434  }
  0x2b   :  { %s8203_s18 = sld [smem:[#allocation22_spill]]  ;;  %s6698_s30 = smov 88   ;;  %vm2551_vm5 = vcmask 1043459   ;;  %vm2553_vm6 = vcmask 1044484   ;;  %vm2555_vm7 = vcmask 1045509   ;;  %vm2557_vm8 = vcmask 1046534  }
  0x2c   :  { %s363_s20 = sld [smem:[#allocation6]]  ;;  %s6699_s0 = smov 16   ;;  %vm2559_vm9 = vcmask 1047559  }
  0x2d   :  { %s5657_s1 = sld [smem:[#allocation8 + $0x7]]  ;;  %s6700_s23 = smov 120  }
  0x2e   :  { %s8204_s26 = sld [smem:[#allocation23_spill]] }
  0x2f   :  { %v6247_v2 = vld [vmem:[%s8201_s28] sm:$0xff]   ;;  %s8205_s2 = sld [smem:[#allocation24_spill]]  ;;  %s6696_s28 = smov 112  }
  0x30   :  { %v6248_v3 = vld [vmem:[%s8202_s4] sm:$0xff]   ;;  %6003 = vmatprep.subr.bf16.mxu0 %v6247_v2  ;;  %v6249_v4 = vld [vmem:[%s8202_s4 + $0x8] sm:$0xff]   ;;  %v6250_v6 = vld [vmem:[%s8202_s4 + $0x10] sm:$0xff]   ;;  %s5666_s5 = sld [smem:[#allocation8 + $0x6]] }
  0x31   :  { %6004 = vmatpush3.bf16.msra.mxu0 %v6247_v2  ;;  %6005 = vmatprep.mubr.msk.bf16.mxu0 %vm143_vm0, %v6248_v3  ;;  %v6252_v7 = vld [vmem:[%s8203_s18] sm:$0xff]   ;;  %v6254_v9 = vld [vmem:[%s8202_s4 + $0x8] sm:$0xff]   ;;  %v6255_v10 = vld [vmem:[%s8202_s4 + $0x10] sm:$0xff]   ;;  %s5675_s24 = sld [smem:[#allocation6 + $0x2]] }
  0x32   :  { %6023 = vmatprep.subr.mxu0 %v6852_v5  ;;  %v6253_v8 = vld [vmem:[%s8202_s4] sm:$0xff]   ;;  %6013 = vmatprep.subr.bf16.mxu1 %v6252_v7  ;;  %v6251_v11 = vld [vmem:[%s8202_s4 + $0x18] sm:$0xff]   ;;  %v365_v13 = vstv %s363_s20  ;;  %s5676_s6 = sld [smem:[#allocation8 + $0x5]] }
  0x33   :  { %6014 = vmatpush3.bf16.msra.mxu1 %v6252_v7  ;;  %6015 = vmatprep.mubr.msk.bf16.mxu1 %vm143_vm0, %v6253_v8  ;;  %v6256_v14 = vld [vmem:[%s8202_s4 + $0x18] sm:$0xff]   ;;  %v6887_v15 = vmul.f32 0.0, %v365_v13  ;;  %v367_v16 = vstv %s5657_s1  ;;  %s5665_s1 = sld [smem:[#allocation6 + $0x1]] }
  0x34   :  { %6006 = vmatmul.mubr.msk.bf16.vlgmr.msra.gmra.mxu0 %vm143_vm0, %v6249_v4  ;;  %6031 = vmatprep.subr.mxu1 %v6852_v5  ;;  %v6892_v17 = vmul.f32 0.0, %v367_v16  ;;  %v5637_v18 = vld [vmem:[%s8204_s26] ss:$0 sm:$0xff]  ;;  %s5685_s25 = sld [smem:[#allocation6 + $0x3]] }
  0x35   :  { %6024 = vmatpush3.msra.mxu0 %v6852_v5  ;;  %6009 = vmatprep.mubr.msk.bf16.mxu0 %vm143_vm0, %v6250_v6  ;;  %v5647_v24 = vld [vmem:[%s8205_s2] ss:$0 sm:$0xff]  ;;  %s5686_s26 = sld [smem:[#allocation8 + $0x4]] }
  0x36   :  { %6039 = vmatprep.subr.mxu0 %v6852_v5  ;;  %6016 = vmatmul.mubr.msk.bf16.vlgmr.msra.gmra.mxu1 %vm143_vm0, %v6254_v9  ;;  %s5695_s18 = sld [smem:[#allocation6 + $0x4]] }
  0x37   :  { %6019 = vmatprep.mubr.msk.bf16.mxu1 %vm143_vm0, %v6255_v10  ;;  %6032 = vmatpush3.msra.mxu1 %v6852_v5  ;;  %s5696_s20 = sld [smem:[#allocation8 + $0x3]] }
  0x38   :  { %6047 = vmatprep.subr.mxu1 %v6852_v5  ;;  %s5706_s3 = sld [smem:[#allocation8 + $0x2]] }
  0x3c   :  { %6010 = vmatmul.mubr.msk.bf16.gmra.mxu0 %vm143_vm0, %v6251_v11 }
  0x3d   :  { %6025 = vmatprep.mubr.f32.mxu0 %v6695_v12 }
  0x3e   :  { %6020 = vmatmul.mubr.msk.bf16.gmra.mxu1 %vm143_vm0, %v6256_v14 }
  0x44   :  { %6026 = vmatmul.mubr.msk.f32.vlgmr.msra.gmra.mxu0 %vm375_vm1, %v6887_v15 }
  0x45   :  { %6028 = vmatprep.mubr.f32.mxu0 %v6695_v12  ;;  %6040 = vmatpush3.msra.mxu0 %v6852_v5 }
  0x46   :  { %6055 = vmatprep.subr.mxu0 %v6852_v5 }
  0x48   :  { %6029 = vmatmul.mubr.msk.f32.gmra.mxu0 %vm375_vm1, %v6892_v17 }
  0xf4   :  { %v6007_v19 = vpop.f32.mrf.mxu0 }
  0xf5   :  { %v199_v20 = vadd.f32 %v6007_v19, %v5637_v18 }
  0xf6   :  { %v190_v21 = vpop.f32.mrf.mxu0  ;;  %v6017_v27 = vpop.f32.mrf.mxu1 }
  0xf7   :  { %224 = vst.msk [vmem:[#allocation10 + $0x10] sm:$0xff] %vm221_vm2, %v199_v20  ;;  %v191_v22 = vadd.f32 %v5637_v18, %v190_v21  ;;  %v328_v29 = vadd.f32 %v6017_v27, %v5647_v24 }
  0xf8   :  { %v6008_v23 = vpop.f32.mrf.mxu0  ;;  %v319_v31 = vpop.f32.mrf.mxu1 }
  0xf9   :  { %222 = vst.msk [vmem:[#allocation10] sm:$0xff] %vm221_vm2, %v191_v22  ;;  %v202_v25 = vadd.f32 %v6008_v23, %v5637_v18  ;;  %352 = vst.msk [vmem:[#allocation11 + $0x10] sm:$0xff] %vm221_vm2, %v328_v29  ;;  %v320_v33 = vadd.f32 %v5647_v24, %v319_v31 }
  0xfa   :  { %v193_v26 = vpop.f32.mrf.mxu0  ;;  %v6018_v35 = vpop.f32.mrf.mxu1 }
  0xfb   :  { %225 = vst.msk [vmem:[#allocation10 + $0x18] sm:$0xff] %vm221_vm2, %v202_v25  ;;  %v194_v28 = vadd.f32 %v5637_v18, %v193_v26  ;;  %350 = vst.msk [vmem:[#allocation11] sm:$0xff] %vm221_vm2, %v320_v33  ;;  %v331_v37 = vadd.f32 %v6018_v35, %v5647_v24 }
  0xfc   :  { %v6011_v30 = vpop.f32.mrf.mxu0  ;;  %v322_v39 = vpop.f32.mrf.mxu1 }
  0xfd   :  { %223 = vst.msk [vmem:[#allocation10 + $0x8] sm:$0xff] %vm221_vm2, %v194_v28  ;;  %v215_v32 = vadd.f32 %v6011_v30, %v5637_v18  ;;  %353 = vst.msk [vmem:[#allocation11 + $0x18] sm:$0xff] %vm221_vm2, %v331_v37  ;;  %v323_v41 = vadd.f32 %v5647_v24, %v322_v39 }
  0xfe   :  { %v206_v34 = vpop.f32.mrf.mxu0  ;;  %v6021_v44 = vpop.f32.mrf.mxu1 }
  0xff   :  { %228 = vst.msk [vmem:[#allocation10 + $0x30] sm:$0xff] %vm221_vm2, %v215_v32  ;;  %v207_v36 = vadd.f32 %v5637_v18, %v206_v34  ;;  %351 = vst.msk [vmem:[#allocation11 + $0x8] sm:$0xff] %vm221_vm2, %v323_v41  ;;  %v344_v46 = vadd.f32 %v6021_v44, %v5647_v24 }
 0x100   :  { %v6012_v38 = vpop.f32.mrf.mxu0  ;;  %v335_v48 = vpop.f32.mrf.mxu1  ;;  %v360_v61 = vld [vmem:[#allocation10] sm:$0xff] }
 0x101   :  { %226 = vst.msk [vmem:[#allocation10 + $0x20] sm:$0xff] %vm221_vm2, %v207_v36  ;;  %v218_v40 = vadd.f32 %v6012_v38, %v5637_v18  ;;  %356 = vst.msk [vmem:[#allocation11 + $0x30] sm:$0xff] %vm221_vm2, %v344_v46  ;;  %v336_v50 = vadd.f32 %v5647_v24, %v335_v48 }
 0x102   :  { %v209_v42 = vpop.f32.mrf.mxu0  ;;  %v6022_v52 = vpop.f32.mrf.mxu1 }
 0x103   :  { %229 = vst.msk [vmem:[#allocation10 + $0x38] sm:$0xff] %vm221_vm2, %v218_v40  ;;  %v210_v45 = vadd.f32 %v5637_v18, %v209_v42  ;;  %354 = vst.msk [vmem:[#allocation11 + $0x20] sm:$0xff] %vm221_vm2, %v336_v50  ;;  %v347_v53 = vadd.f32 %v6022_v52, %v5647_v24 }
 0x104   :  { %v6027_v47 = vpop.f32.mrf.mxu0  ;;  %v338_v55 = vpop.f32.mrf.mxu1 }
 0x105   :  { %227 = vst.msk [vmem:[#allocation10 + $0x28] sm:$0xff] %vm221_vm2, %v210_v45  ;;  %v457_v49 = vadd.f32 %v6027_v47, %v6916_v43  ;;  %357 = vst.msk [vmem:[#allocation11 + $0x38] sm:$0xff] %vm221_vm2, %v347_v53  ;;  %v339_v58 = vadd.f32 %v5647_v24, %v338_v55 }
 0x106   :  { %v451_v51 = vpop.f32.mrf.mxu0 }
 0x107   :  { %504 = vrot.lane.b32.xlu1 %v457_v49, %s6696_s28  ;;  %v452_v56 = vadd.f32 %v6916_v43, %v451_v51  ;;  %355 = vst.msk [vmem:[#allocation11 + $0x28] sm:$0xff] %vm221_vm2, %v339_v58  ;;  %v496_v62 = vadd.f32 %v457_v49, %v360_v61  ;;  %v607_v49 = vstv %s5665_s1 }
 0x108   :  { %v6030_v54 = vpop.f32.mrf.mxu0 }
 0x109   :  { %v467_v57 = vadd.f32 %v6030_v54, %v6916_v43  ;;  %v5662_v63 = vmul.f32 -1.442695, %v496_v62  ;;  %v470_v0 = vadd.f32 %v452_v56, %v360_v61 }
 0x10a   :  { %v461_v59 = vpop.f32.mrf.mxu0 }
 0x10b   :  { %552 = vrot.lane.b32.xlu0 %v467_v57, %s6697_s29  ;;  %478 = vrot.lane.b32.xlu1 %v452_v56, %s6696_s28  ;;  %v462_v60 = vadd.f32 %v6916_v43, %v461_v59  ;;  %6257 = vpow2.f32 %v5662_v63  ;;  %v5661_v1 = vmul.f32 -1.442695, %v470_v0 }
 0x10c   :  { %v362_v10 = vld [vmem:[#allocation11 + $0x38] sm:$0xff] }
 0x10d   :  { %6259 = vpow2.f32 %v5661_v1 }
 0x10f   :  { %523 = vrot.lane.b32.xlu0 %v462_v60, %s6697_s29  ;;  %533 = vrot.lane.b32.xlu1 %v462_v60, %s6698_s30  ;;  %v609_v60 = vstv %s5666_s5 }
 0x113   :  { %562 = vrot.lane.b32.xlu0 %v467_v57, %s6698_s30 }
 0x118   :  { %v6258_v2 = vpop.eup %6257 }
 0x119   :  { %v500_v3 = vadd.f32 1.0, %v6258_v2 }
 0x11a   :  { %v6260_v4 = vpop.eup %6259 }
 0x11b   :  { %6261 = vrcp.f32 %v500_v3  ;;  %v474_v6 = vadd.f32 1.0, %v6260_v4 }
 0x11d   :  { %6263 = vrcp.f32 %v474_v6 }
 0x128   :  { %v6262_v7 = vpop.eup %6261 }
 0x129   :  { %v514_v45 = vsub.f32 1.0, %v6262_v7  ;;  %v520_v47 = vmul.f32 %v6262_v7, %v6887_v15 }
 0x12a   :  { %v6264_v11 = vpop.eup %6263 }
 0x12b   :  { %v488_v51 = vsub.f32 1.0, %v6264_v11  ;;  %v494_v53 = vmul.f32 0.0, %v6264_v11 }
 0x179   :  { %v505_v8 = vpop.permute.xlu1 %504 }
 0x17a   :  { %v507_v9 = vmul.f32 %v6262_v7, %v505_v8 }
 0x17c   :  { %509 = vrot.lane.b32.xlu0 %v507_v9, %s6699_s0 }
 0x17d   :  { %v553_v12 = vpop.permute.xlu0 %552  ;;  %v479_v13 = vpop.permute.xlu1 %478 }
 0x17e   :  { %v555_v14 = vadd.f32 %v553_v12, %v362_v10  ;;  %v481_v16 = vmul.f32 %v6264_v11, %v479_v13 }
 0x180   :  { %v5664_v18 = vmul.f32 -1.442695, %v555_v14  ;;  %483 = vrot.lane.b32.xlu1 %v481_v16, %s6699_s0 }
 0x181   :  { %v524_v19 = vpop.permute.xlu0 %523  ;;  %v534_v30 = vpop.permute.xlu1 %533 }
 0x182   :  { %6265 = vpow2.f32 %v5664_v18  ;;  %v526_v20 = vadd.f32 %v524_v19, %v362_v10  ;;  %v602_v18 = vld [vmem:[#allocation10 + $0x8] sm:$0xff] }
 0x184   :  { %v5663_v21 = vmul.f32 -1.442695, %v526_v20 }
 0x185   :  { %v563_v27 = vpop.permute.xlu0 %562 }
 0x186   :  { %6267 = vpow2.f32 %v5663_v21 }
 0x18f   :  { %v6266_v22 = vpop.eup %6265 }
 0x190   :  { %v559_v23 = vadd.f32 1.0, %v6266_v22 }
 0x192   :  { %6269 = vrcp.f32 %v559_v23 }
 0x193   :  { %v6268_v24 = vpop.eup %6267 }
 0x194   :  { %v530_v25 = vadd.f32 1.0, %v6268_v24 }
 0x196   :  { %6271 = vrcp.f32 %v530_v25 }
 0x19f   :  { %v6270_v26 = vpop.eup %6269 }
 0x1a0   :  { %v565_v28 = vmul.f32 %v6270_v26, %v563_v27  ;;  %v572_v15 = vsub.f32 1.0, %v6270_v26  ;;  %v578_v58 = vmul.f32 %v6270_v26, %v6892_v17  ;;  %v604_v27 = vld [vmem:[#allocation11 + $0x30] sm:$0xff] }
 0x1a2   :  { %567 = vrot.lane.b32.xlu0 %v565_v28, %s6699_s0 }
 0x1a3   :  { %v6272_v29 = vpop.eup %6271 }
 0x1a4   :  { %v536_v31 = vmul.f32 %v6272_v29, %v534_v30  ;;  %v543_v62 = vsub.f32 1.0, %v6272_v29  ;;  %v549_v0 = vmul.f32 0.0, %v6272_v29 }
 0x1a6   :  { %538 = vrot.lane.b32.xlu1 %v536_v31, %s6699_s0 }
 0x1ee   :  { %v510_v32 = vpop.permute.xlu0 %509 }
 0x1ef   :  { %v512_v33 = vadd.f32 %v510_v32, %v360_v61 }
 0x1f1   :  { %6273 = vtanh.f32 %v512_v33 }
 0x1f2   :  { %v484_v34 = vpop.permute.xlu1 %483 }
 0x1f3   :  { %v486_v35 = vadd.f32 %v484_v34, %v360_v61 }
 0x1f5   :  { %6275 = vtanh.f32 %v486_v35 }
 0x1fe   :  { %v6274_v36 = vpop.eup %6273 }
 0x1ff   :  { %516 = vrot.lane.b32.xlu0 %v6274_v36, %s6700_s23 }
 0x202   :  { %v6276_v37 = vpop.eup %6275 }
 0x203   :  { %490 = vrot.lane.b32.xlu1 %v6276_v37, %s6700_s23 }
 0x214   :  { %v568_v38 = vpop.permute.xlu0 %567 }
 0x215   :  { %v570_v39 = vadd.f32 %v568_v38, %v362_v10 }
 0x217   :  { %6277 = vtanh.f32 %v570_v39 }
 0x218   :  { %v539_v40 = vpop.permute.xlu1 %538 }
 0x219   :  { %v541_v41 = vadd.f32 %v539_v40, %v362_v10 }
 0x21b   :  { %6279 = vtanh.f32 %v541_v41 }
 0x224   :  { %v6278_v42 = vpop.eup %6277 }
 0x225   :  { %574 = vrot.lane.b32.xlu0 %v6278_v42, %s6700_s23 }
 0x228   :  { %v6280_v44 = vpop.eup %6279 }
 0x229   :  { %545 = vrot.lane.b32.xlu1 %v6280_v44, %s6700_s23 }
 0x271   :  { %v517_v46 = vpop.permute.xlu0 %516 }
 0x272   :  { %v519_v48 = vmul.f32 %v517_v46, %v514_v45 }
 0x274   :  { %v6944_v50 = vadd.f32 %v520_v47, %v519_v48 }
 0x275   :  { %v491_v52 = vpop.permute.xlu1 %490 }
 0x276   :  { %v493_v54 = vmul.f32 %v491_v52, %v488_v51  ;;  %v6947_v55 = vmul.f32 %v607_v49, %v6944_v50 }
 0x278   :  { %v6949_v56 = vadd.f32 %v494_v53, %v493_v54  ;;  %613 = vrot.lane.b32.xlu1 %v6947_v55, %s6700_s23 }
 0x27a   :  { %582 = vrot.lane.b32.xlu0 %v6949_v56, %s6700_s23 }
 0x297   :  { %v575_v57 = vpop.permute.xlu0 %574 }
 0x298   :  { %v577_v59 = vmul.f32 %v575_v57, %v572_v15 }
 0x29a   :  { %v6956_v61 = vadd.f32 %v578_v58, %v577_v59 }
 0x29b   :  { %v546_v63 = vpop.permute.xlu1 %545 }
 0x29c   :  { %v548_v1 = vmul.f32 %v546_v63, %v543_v62  ;;  %v6959_v2 = vmul.f32 %v609_v60, %v6956_v61 }
 0x29e   :  { %v6961_v3 = vadd.f32 %v549_v0, %v548_v1  ;;  %615 = vrot.lane.b32.xlu1 %v6959_v2, %s6700_s23 }
 0x2a0   :  { %592 = vrot.lane.b32.xlu0 %v6961_v3, %s6700_s23 }
 0x2ea   :  { %v614_v4 = vpop.permute.xlu1 %613 }
 0x2ec   :  { %v583_v17 = vpop.permute.xlu0 %582 }
 0x2ed   :  { %588 = vst.msk [vmem:[#allocation2] sm:$0xff] %vm375_vm1, %v583_v17  ;;  %6033 = vmatprep.mubr.msk.f32.mxu1 %vm375_vm1, %v583_v17 }
 0x2ee   :  { %6034 = vmatmul.mubr.msk.f32.vlgmr.msra.gmra.mxu1 %vm375_vm1, %v614_v4 }
 0x2ef   :  { %6048 = vmatpush3.msra.mxu1 %v6852_v5 }
 0x2f0   :  { %6063 = vmatprep.subr.mxu1 %v6852_v5 }
 0x310   :  { %v616_v7 = vpop.permute.xlu1 %615 }
 0x312   :  { %v593_v6 = vpop.permute.xlu0 %592 }
 0x313   :  { %599 = vst.msk [vmem:[#allocation3 + $0x70] sm:$0xff] %vm375_vm1, %v593_v6  ;;  %6036 = vmatprep.mubr.msk.f32.mxu1 %vm375_vm1, %v593_v6 }
 0x314   :  { %6037 = vmatmul.mubr.msk.f32.gmra.mxu1 %vm375_vm1, %v616_v7 }
 0x3ae   :  { %v6035_v8 = vpop.f32.mrf.mxu1 }
 0x3af   :  { %v697_v14 = vadd.f32 %v6035_v8, %v6916_v43 }
 0x3b0   :  { %v691_v9 = vpop.f32.mrf.mxu1 }
 0x3b1   :  { %v692_v16 = vadd.f32 %v6916_v43, %v691_v9  ;;  %v736_v19 = vadd.f32 %v697_v14, %v602_v18 }
 0x3b3   :  { %v710_v20 = vadd.f32 %v692_v16, %v602_v18  ;;  %v5672_v21 = vmul.f32 -1.442695, %v736_v19 }
 0x3b5   :  { %v5671_v22 = vmul.f32 -1.442695, %v710_v20  ;;  %6281 = vpow2.f32 %v5672_v21 }
 0x3b7   :  { %6283 = vpow2.f32 %v5671_v22  ;;  %v850_v22 = vstv %s5676_s6  ;;  %s5725_s6 = sld [smem:[#allocation6 + $0x7]] }
 0x3c2   :  { %v6282_v23 = vpop.eup %6281 }
 0x3c3   :  { %v740_v25 = vadd.f32 1.0, %v6282_v23 }
 0x3c4   :  { %v6284_v24 = vpop.eup %6283 }
 0x3c5   :  { %v714_v26 = vadd.f32 1.0, %v6284_v24  ;;  %6285 = vrcp.f32 %v740_v25 }
 0x3c7   :  { %6287 = vrcp.f32 %v714_v26 }
 0x3d2   :  { %v6286_v33 = vpop.eup %6285 }
 0x3d3   :  { %v754_v17 = vsub.f32 1.0, %v6286_v33  ;;  %v760_v6 = vmul.f32 %v6286_v33, %v6947_v55 }
 0x3d4   :  { %v6038_v10 = vpop.f32.mrf.mxu1  ;;  %v6288_v37 = vpop.eup %6287 }
 0x3d5   :  { %v707_v11 = vadd.f32 %v6038_v10, %v6916_v43  ;;  %v728_v8 = vsub.f32 1.0, %v6288_v37  ;;  %v848_v10 = vstv %s5675_s24  ;;  %s5716_s24 = sld [smem:[#allocation8 + $0x1]] }
 0x3d6   :  { %v701_v12 = vpop.f32.mrf.mxu1 }
 0x3d7   :  { %v702_v13 = vadd.f32 %v6916_v43, %v701_v12  ;;  %792 = vrot.lane.b32.xlu0 %v707_v11, %s6697_s29  ;;  %v734_v12 = vmul.f32 %v6288_v37, %v6949_v56 }
 0x3d9   :  { %763 = vrot.lane.b32.xlu1 %v702_v13, %s6697_s29 }
 0x3db   :  { %744 = vrot.lane.b32.xlu0 %v697_v14, %s6696_s28 }
 0x3dd   :  { %718 = vrot.lane.b32.xlu1 %v692_v16, %s6696_s28 }
 0x3df   :  { %802 = vrot.lane.b32.xlu0 %v707_v11, %s6698_s30 }
 0x3e1   :  { %773 = vrot.lane.b32.xlu1 %v702_v13, %s6698_s30 }
 0x449   :  { %v793_v28 = vpop.permute.xlu0 %792 }
 0x44a   :  { %v795_v29 = vadd.f32 %v793_v28, %v604_v27 }
 0x44b   :  { %v764_v30 = vpop.permute.xlu1 %763 }
 0x44c   :  { %v5674_v31 = vmul.f32 -1.442695, %v795_v29  ;;  %v766_v32 = vadd.f32 %v764_v30, %v604_v27 }
 0x44d   :  { %v745_v34 = vpop.permute.xlu0 %744 }
 0x44e   :  { %6289 = vpow2.f32 %v5674_v31  ;;  %v5673_v35 = vmul.f32 -1.442695, %v766_v32  ;;  %v747_v36 = vmul.f32 %v6286_v33, %v745_v34 }
 0x44f   :  { %v719_v38 = vpop.permute.xlu1 %718 }
 0x450   :  { %6291 = vpow2.f32 %v5673_v35  ;;  %v721_v39 = vmul.f32 %v6288_v37, %v719_v38  ;;  %749 = vrot.lane.b32.xlu0 %v747_v36, %s6699_s0  ;;  %v843_v38 = vld [vmem:[#allocation10 + $0x10] sm:$0xff] }
 0x451   :  { %v803_v46 = vpop.permute.xlu0 %802 }
 0x452   :  { %723 = vrot.lane.b32.xlu1 %v721_v39, %s6699_s0 }
 0x453   :  { %v774_v49 = vpop.permute.xlu1 %773 }
 0x45b   :  { %v6290_v40 = vpop.eup %6289 }
 0x45c   :  { %v799_v41 = vadd.f32 1.0, %v6290_v40 }
 0x45d   :  { %v6292_v42 = vpop.eup %6291 }
 0x45e   :  { %6293 = vrcp.f32 %v799_v41  ;;  %v770_v44 = vadd.f32 1.0, %v6292_v42 }
 0x460   :  { %6295 = vrcp.f32 %v770_v44 }
 0x46b   :  { %v6294_v45 = vpop.eup %6293 }
 0x46c   :  { %v805_v47 = vmul.f32 %v6294_v45, %v803_v46  ;;  %v812_v55 = vsub.f32 1.0, %v6294_v45  ;;  %v818_v19 = vmul.f32 %v6294_v45, %v6959_v2 }
 0x46d   :  { %v6296_v48 = vpop.eup %6295 }
 0x46e   :  { %v776_v51 = vmul.f32 %v6296_v48, %v774_v49  ;;  %807 = vrot.lane.b32.xlu0 %v805_v47, %s6699_s0  ;;  %v783_v21 = vsub.f32 1.0, %v6296_v48  ;;  %v789_v24 = vmul.f32 %v6296_v48, %v6961_v3  ;;  %v845_v48 = vld [vmem:[#allocation11 + $0x28] sm:$0xff] }
 0x470   :  { %778 = vrot.lane.b32.xlu1 %v776_v51, %s6699_s0 }
 0x4c2   :  { %v750_v52 = vpop.permute.xlu0 %749 }
 0x4c3   :  { %v752_v53 = vadd.f32 %v750_v52, %v602_v18 }
 0x4c4   :  { %v724_v54 = vpop.permute.xlu1 %723 }
 0x4c5   :  { %6297 = vtanh.f32 %v752_v53  ;;  %v726_v15 = vadd.f32 %v724_v54, %v602_v18 }
 0x4c7   :  { %6299 = vtanh.f32 %v726_v15 }
 0x4d2   :  { %v6298_v57 = vpop.eup %6297 }
 0x4d3   :  { %756 = vrot.lane.b32.xlu0 %v6298_v57, %s6700_s23 }
 0x4d4   :  { %v6300_v58 = vpop.eup %6299 }
 0x4d5   :  { %730 = vrot.lane.b32.xlu1 %v6300_v58, %s6700_s23 }
 0x4e0   :  { %v808_v59 = vpop.permute.xlu0 %807 }
 0x4e1   :  { %v810_v60 = vadd.f32 %v808_v59, %v604_v27 }
 0x4e2   :  { %v779_v62 = vpop.permute.xlu1 %778 }
 0x4e3   :  { %6301 = vtanh.f32 %v810_v60  ;;  %v781_v63 = vadd.f32 %v779_v62, %v604_v27 }
 0x4e5   :  { %6303 = vtanh.f32 %v781_v63 }
 0x4f0   :  { %v6302_v0 = vpop.eup %6301 }
 0x4f1   :  { %814 = vrot.lane.b32.xlu0 %v6302_v0, %s6700_s23 }
 0x4f2   :  { %v6304_v1 = vpop.eup %6303 }
 0x4f3   :  { %785 = vrot.lane.b32.xlu1 %v6304_v1, %s6700_s23 }
 0x545   :  { %v757_v4 = vpop.permute.xlu0 %756 }
 0x546   :  { %v759_v7 = vmul.f32 %v757_v4, %v754_v17 }
 0x547   :  { %v731_v9 = vpop.permute.xlu1 %730 }
 0x548   :  { %v6994_v11 = vadd.f32 %v760_v6, %v759_v7  ;;  %v733_v13 = vmul.f32 %v731_v9, %v728_v8 }
 0x54a   :  { %v6997_v14 = vadd.f32 %v734_v12, %v733_v13  ;;  %v7000_v16 = vmul.f32 %v848_v10, %v6994_v11 }
 0x54c   :  { %854 = vrot.lane.b32.xlu1 %v7000_v16, %s6700_s23  ;;  %822 = vrot.lane.b32.xlu0 %v6997_v14, %s6700_s23 }
 0x563   :  { %v815_v18 = vpop.permute.xlu0 %814 }
 0x564   :  { %v817_v20 = vmul.f32 %v815_v18, %v812_v55 }
 0x565   :  { %v786_v56 = vpop.permute.xlu1 %785 }
 0x566   :  { %v7007_v23 = vadd.f32 %v818_v19, %v817_v20  ;;  %v788_v25 = vmul.f32 %v786_v56, %v783_v21 }
 0x568   :  { %v7010_v26 = vadd.f32 %v789_v24, %v788_v25  ;;  %v7013_v27 = vmul.f32 %v850_v22, %v7007_v23 }
 0x56a   :  { %856 = vrot.lane.b32.xlu1 %v7013_v27, %s6700_s23  ;;  %833 = vrot.lane.b32.xlu0 %v7010_v26, %s6700_s23 }
 0x5be   :  { %v823_v2 = vpop.permute.xlu0 %822  ;;  %v855_v28 = vpop.permute.xlu1 %854 }
 0x5bf   :  { %829 = vst.msk [vmem:[#allocation2 + $0x10] sm:$0xff] %vm375_vm1, %v823_v2  ;;  %6041 = vmatprep.mubr.msk.f32.mxu0 %vm375_vm1, %v823_v2 }
 0x5c0   :  { %6042 = vmatmul.mubr.msk.f32.vlgmr.msra.gmra.mxu0 %vm375_vm1, %v855_v28 }
 0x5c1   :  { %6056 = vmatpush3.msra.mxu0 %v6852_v5 }
 0x5c2   :  { %6071 = vmatprep.subr.mxu0 %v6852_v5 }
 0x5dc   :  { %v834_v3 = vpop.permute.xlu0 %833  ;;  %v857_v29 = vpop.permute.xlu1 %856 }
 0x5dd   :  { %840 = vst.msk [vmem:[#allocation3 + $0x60] sm:$0xff] %vm375_vm1, %v834_v3  ;;  %6044 = vmatprep.mubr.msk.f32.mxu0 %vm375_vm1, %v834_v3 }
 0x5de   :  { %6045 = vmatmul.mubr.msk.f32.gmra.mxu0 %vm375_vm1, %v857_v29 }
 0x680   :  { %v6043_v30 = vpop.f32.mrf.mxu0 }
 0x681   :  { %v938_v36 = vadd.f32 %v6043_v30, %v6916_v43 }
 0x682   :  { %v932_v31 = vpop.f32.mrf.mxu0 }
 0x683   :  { %v933_v37 = vadd.f32 %v6916_v43, %v932_v31  ;;  %v977_v39 = vadd.f32 %v938_v36, %v843_v38 }
 0x685   :  { %v951_v40 = vadd.f32 %v933_v37, %v843_v38  ;;  %v5682_v41 = vmul.f32 -1.442695, %v977_v39 }
 0x687   :  { %v5681_v42 = vmul.f32 -1.442695, %v951_v40  ;;  %6305 = vpow2.f32 %v5682_v41 }
 0x689   :  { %6307 = vpow2.f32 %v5681_v42 }
 0x694   :  { %v6306_v44 = vpop.eup %6305 }
 0x695   :  { %v981_v46 = vadd.f32 1.0, %v6306_v44 }
 0x696   :  { %v6308_v45 = vpop.eup %6307 }
 0x697   :  { %v955_v47 = vadd.f32 1.0, %v6308_v45  ;;  %6309 = vrcp.f32 %v981_v46  ;;  %v1091_v45 = vstv %s5686_s26 }
 0x699   :  { %6311 = vrcp.f32 %v955_v47 }
 0x69e   :  { %v6046_v32 = vpop.f32.mrf.mxu0 }
 0x69f   :  { %v948_v33 = vadd.f32 %v6046_v32, %v6916_v43 }
 0x6a0   :  { %v942_v34 = vpop.f32.mrf.mxu0 }
 0x6a1   :  { %v943_v35 = vadd.f32 %v6916_v43, %v942_v34  ;;  %1033 = vrot.lane.b32.xlu0 %v948_v33, %s6697_s29  ;;  %v1089_v34 = vstv %s5685_s25  ;;  %s2051_s25 = sld [smem:[#allocation8]] }
 0x6a3   :  { %1004 = vrot.lane.b32.xlu1 %v943_v35, %s6697_s29 }
 0x6a4   :  { %v6310_v15 = vpop.eup %6309 }
 0x6a5   :  { %985 = vrot.lane.b32.xlu0 %v938_v36, %s6696_s28  ;;  %v995_v3 = vsub.f32 1.0, %v6310_v15  ;;  %v1001_v30 = vmul.f32 %v6310_v15, %v7000_v16 }
 0x6a6   :  { %v6312_v60 = vpop.eup %6311 }
 0x6a7   :  { %959 = vrot.lane.b32.xlu1 %v933_v37, %s6696_s28  ;;  %v969_v32 = vsub.f32 1.0, %v6312_v60  ;;  %v975_v36 = vmul.f32 %v6312_v60, %v6997_v14 }
 0x6a9   :  { %1043 = vrot.lane.b32.xlu0 %v948_v33, %s6698_s30 }
 0x6ab   :  { %1014 = vrot.lane.b32.xlu1 %v943_v35, %s6698_s30 }
 0x713   :  { %v1034_v49 = vpop.permute.xlu0 %1033 }
 0x714   :  { %v1036_v51 = vadd.f32 %v1034_v49, %v845_v48 }
 0x715   :  { %v1005_v52 = vpop.permute.xlu1 %1004 }
 0x716   :  { %v5684_v53 = vmul.f32 -1.442695, %v1036_v51  ;;  %v1007_v54 = vadd.f32 %v1005_v52, %v845_v48 }
 0x717   :  { %v986_v57 = vpop.permute.xlu0 %985 }
 0x718   :  { %6313 = vpow2.f32 %v5684_v53  ;;  %v5683_v58 = vmul.f32 -1.442695, %v1007_v54  ;;  %v988_v59 = vmul.f32 %v6310_v15, %v986_v57 }
 0x719   :  { %v960_v62 = vpop.permute.xlu1 %959 }
 0x71a   :  { %6315 = vpow2.f32 %v5683_v58  ;;  %v962_v63 = vmul.f32 %v6312_v60, %v960_v62  ;;  %990 = vrot.lane.b32.xlu0 %v988_v59, %s6699_s0 }
 0x71b   :  { %v1044_v7 = vpop.permute.xlu0 %1043 }
 0x71c   :  { %964 = vrot.lane.b32.xlu1 %v962_v63, %s6699_s0  ;;  %v1084_v63 = vld [vmem:[#allocation10 + $0x18] sm:$0xff] }
 0x71d   :  { %v1015_v10 = vpop.permute.xlu1 %1014 }
 0x725   :  { %v6314_v0 = vpop.eup %6313 }
 0x726   :  { %v1040_v1 = vadd.f32 1.0, %v6314_v0 }
 0x727   :  { %v6316_v17 = vpop.eup %6315 }
 0x728   :  { %6317 = vrcp.f32 %v1040_v1  ;;  %v1011_v4 = vadd.f32 1.0, %v6316_v17 }
 0x72a   :  { %6319 = vrcp.f32 %v1011_v4 }
 0x735   :  { %v6318_v6 = vpop.eup %6317 }
 0x736   :  { %v1046_v8 = vmul.f32 %v6318_v6, %v1044_v7  ;;  %v1053_v16 = vsub.f32 1.0, %v6318_v6  ;;  %v1059_v41 = vmul.f32 %v6318_v6, %v7013_v27 }
 0x737   :  { %v6320_v9 = vpop.eup %6319 }
 0x738   :  { %v1017_v12 = vmul.f32 %v6320_v9, %v1015_v10  ;;  %1048 = vrot.lane.b32.xlu0 %v1046_v8, %s6699_s0  ;;  %v1024_v44 = vsub.f32 1.0, %v6320_v9  ;;  %v1030_v47 = vmul.f32 %v6320_v9, %v7010_v26  ;;  %v1086_v10 = vld [vmem:[#allocation11 + $0x20] sm:$0xff] }
 0x73a   :  { %1019 = vrot.lane.b32.xlu1 %v1017_v12, %s6699_s0 }
 0x78c   :  { %v991_v13 = vpop.permute.xlu0 %990 }
 0x78d   :  { %v993_v55 = vadd.f32 %v991_v13, %v843_v38 }
 0x78e   :  { %v965_v18 = vpop.permute.xlu1 %964 }
 0x78f   :  { %6321 = vtanh.f32 %v993_v55  ;;  %v967_v19 = vadd.f32 %v965_v18, %v843_v38 }
 0x791   :  { %6323 = vtanh.f32 %v967_v19 }
 0x79c   :  { %v6322_v20 = vpop.eup %6321 }
 0x79d   :  { %997 = vrot.lane.b32.xlu0 %v6322_v20, %s6700_s23 }
 0x79e   :  { %v6324_v21 = vpop.eup %6323 }
 0x79f   :  { %971 = vrot.lane.b32.xlu1 %v6324_v21, %s6700_s23 }
 0x7aa   :  { %v1049_v56 = vpop.permute.xlu0 %1048 }
 0x7ab   :  { %v1051_v22 = vadd.f32 %v1049_v56, %v845_v48 }
 0x7ac   :  { %v1020_v24 = vpop.permute.xlu1 %1019 }
 0x7ad   :  { %6325 = vtanh.f32 %v1051_v22  ;;  %v1022_v25 = vadd.f32 %v1020_v24, %v845_v48 }
 0x7af   :  { %6327 = vtanh.f32 %v1022_v25 }
 0x7ba   :  { %v6326_v2 = vpop.eup %6325 }
 0x7bb   :  { %1055 = vrot.lane.b32.xlu0 %v6326_v2, %s6700_s23 }
 0x7bc   :  { %v6328_v28 = vpop.eup %6327 }
 0x7bd   :  { %1026 = vrot.lane.b32.xlu1 %v6328_v28, %s6700_s23 }
 0x80f   :  { %v998_v29 = vpop.permute.xlu0 %997 }
 0x810   :  { %v1000_v31 = vmul.f32 %v998_v29, %v995_v3 }
 0x811   :  { %v972_v33 = vpop.permute.xlu1 %971 }
 0x812   :  { %v7046_v35 = vadd.f32 %v1001_v30, %v1000_v31  ;;  %v974_v37 = vmul.f32 %v972_v33, %v969_v32 }
 0x814   :  { %v7049_v38 = vadd.f32 %v975_v36, %v974_v37  ;;  %v7052_v39 = vmul.f32 %v1089_v34, %v7046_v35 }
 0x816   :  { %1095 = vrot.lane.b32.xlu1 %v7052_v39, %s6700_s23  ;;  %1063 = vrot.lane.b32.xlu0 %v7049_v38, %s6700_s23 }
 0x82d   :  { %v1056_v40 = vpop.permute.xlu0 %1055 }
 0x82e   :  { %v1058_v42 = vmul.f32 %v1056_v40, %v1053_v16 }
 0x82f   :  { %v1027_v14 = vpop.permute.xlu1 %1026 }
 0x830   :  { %v7059_v46 = vadd.f32 %v1059_v41, %v1058_v42  ;;  %v1029_v48 = vmul.f32 %v1027_v14, %v1024_v44 }
 0x832   :  { %v7062_v49 = vadd.f32 %v1030_v47, %v1029_v48  ;;  %v7065_v51 = vmul.f32 %v1091_v45, %v7059_v46 }
 0x834   :  { %1097 = vrot.lane.b32.xlu1 %v7065_v51, %s6700_s23  ;;  %1074 = vrot.lane.b32.xlu0 %v7062_v49, %s6700_s23 }
 0x888   :  { %v1064_v27 = vpop.permute.xlu0 %1063  ;;  %v1096_v52 = vpop.permute.xlu1 %1095 }
 0x889   :  { %1070 = vst.msk [vmem:[#allocation2 + $0x20] sm:$0xff] %vm375_vm1, %v1064_v27  ;;  %6049 = vmatprep.mubr.msk.f32.mxu1 %vm375_vm1, %v1064_v27 }
 0x88a   :  { %6050 = vmatmul.mubr.msk.f32.vlgmr.msra.gmra.mxu1 %vm375_vm1, %v1096_v52 }
 0x88b   :  { %6064 = vmatpush3.msra.mxu1 %v6852_v5 }
 0x88c   :  { %6079 = vmatprep.subr.mxu1 %v6852_v5 }
 0x8a6   :  { %v1075_v26 = vpop.permute.xlu0 %1074  ;;  %v1098_v53 = vpop.permute.xlu1 %1097 }
 0x8a7   :  { %1081 = vst.msk [vmem:[#allocation3 + $0x50] sm:$0xff] %vm375_vm1, %v1075_v26  ;;  %6052 = vmatprep.mubr.msk.f32.mxu1 %vm375_vm1, %v1075_v26 }
 0x8a8   :  { %6053 = vmatmul.mubr.msk.f32.gmra.mxu1 %vm375_vm1, %v1098_v53 }
 0x94a   :  { %v6051_v54 = vpop.f32.mrf.mxu1 }
 0x94b   :  { %v1179_v5 = vadd.f32 %v6051_v54, %v6916_v43 }
 0x94c   :  { %v1173_v15 = vpop.f32.mrf.mxu1 }
 0x94d   :  { %v1174_v62 = vadd.f32 %v6916_v43, %v1173_v15  ;;  %v1218_v0 = vadd.f32 %v1179_v5, %v1084_v63 }
 0x94f   :  { %v1192_v1 = vadd.f32 %v1174_v62, %v1084_v63  ;;  %v5692_v17 = vmul.f32 -1.442695, %v1218_v0 }
 0x951   :  { %v5691_v4 = vmul.f32 -1.442695, %v1192_v1  ;;  %6329 = vpow2.f32 %v5692_v17 }
 0x953   :  { %6331 = vpow2.f32 %v5691_v4 }
 0x95e   :  { %v6330_v6 = vpop.eup %6329 }
 0x95f   :  { %v1222_v8 = vadd.f32 1.0, %v6330_v6 }
 0x960   :  { %v6332_v7 = vpop.eup %6331 }
 0x961   :  { %v1196_v9 = vadd.f32 1.0, %v6332_v7  ;;  %6333 = vrcp.f32 %v1222_v8  ;;  %v1332_v8 = vstv %s5696_s20 }
 0x963   :  { %6335 = vrcp.f32 %v1196_v9 }
 0x968   :  { %v6054_v57 = vpop.f32.mrf.mxu1 }
 0x969   :  { %v1189_v58 = vadd.f32 %v6054_v57, %v6916_v43 }
 0x96a   :  { %v1183_v59 = vpop.f32.mrf.mxu1 }
 0x96b   :  { %v1184_v60 = vadd.f32 %v6916_v43, %v1183_v59  ;;  %1274 = vrot.lane.b32.xlu0 %v1189_v58, %s6697_s29 }
 0x96d   :  { %1245 = vrot.lane.b32.xlu1 %v1184_v60, %s6697_s29 }
 0x96e   :  { %v6334_v20 = vpop.eup %6333 }
 0x96f   :  { %1226 = vrot.lane.b32.xlu0 %v1179_v5, %s6696_s28  ;;  %v1236_v53 = vsub.f32 1.0, %v6334_v20  ;;  %v1242_v15 = vmul.f32 %v6334_v20, %v7052_v39 }
 0x970   :  { %v6336_v24 = vpop.eup %6335 }
 0x971   :  { %1200 = vrot.lane.b32.xlu1 %v1174_v62, %s6696_s28  ;;  %v1216_v62 = vmul.f32 %v6336_v24, %v7049_v38 }
 0x973   :  { %1284 = vrot.lane.b32.xlu0 %v1189_v58, %s6698_s30  ;;  %v1210_v58 = vsub.f32 1.0, %v6336_v24 }
 0x975   :  { %1255 = vrot.lane.b32.xlu1 %v1184_v60, %s6698_s30  ;;  %v1330_v60 = vstv %s5695_s18 }
 0x9dd   :  { %v1275_v12 = vpop.permute.xlu0 %1274 }
 0x9de   :  { %v1277_v13 = vadd.f32 %v1275_v12, %v1086_v10 }
 0x9df   :  { %v1246_v55 = vpop.permute.xlu1 %1245 }
 0x9e0   :  { %v5694_v18 = vmul.f32 -1.442695, %v1277_v13  ;;  %v1248_v19 = vadd.f32 %v1246_v55, %v1086_v10 }
 0x9e1   :  { %v1227_v21 = vpop.permute.xlu0 %1226 }
 0x9e2   :  { %6337 = vpow2.f32 %v5694_v18  ;;  %v5693_v56 = vmul.f32 -1.442695, %v1248_v19  ;;  %v1229_v22 = vmul.f32 %v6334_v20, %v1227_v21 }
 0x9e3   :  { %v1201_v25 = vpop.permute.xlu1 %1200 }
 0x9e4   :  { %6339 = vpow2.f32 %v5693_v56  ;;  %v1203_v2 = vmul.f32 %v6336_v24, %v1201_v25  ;;  %1231 = vrot.lane.b32.xlu0 %v1229_v22, %s6699_s0 }
 0x9e5   :  { %v1285_v32 = vpop.permute.xlu0 %1284 }
 0x9e6   :  { %1205 = vrot.lane.b32.xlu1 %v1203_v2, %s6699_s0 }
 0x9e7   :  { %v1256_v36 = vpop.permute.xlu1 %1255 }
 0x9ef   :  { %v6338_v28 = vpop.eup %6337 }
 0x9f0   :  { %v1281_v3 = vadd.f32 1.0, %v6338_v28 }
 0x9f1   :  { %v6340_v29 = vpop.eup %6339 }
 0x9f2   :  { %6341 = vrcp.f32 %v1281_v3  ;;  %v1252_v30 = vadd.f32 1.0, %v6340_v29  ;;  %v1325_v29 = vld [vmem:[#allocation10 + $0x20] sm:$0xff] }
 0x9f4   :  { %6343 = vrcp.f32 %v1252_v30 }
 0x9ff   :  { %v6342_v31 = vpop.eup %6341 }
 0xa00   :  { %v1287_v33 = vmul.f32 %v6342_v31, %v1285_v32  ;;  %v1294_v39 = vsub.f32 1.0, %v6342_v31  ;;  %v1300_v4 = vmul.f32 %v6342_v31, %v7065_v51 }
 0xa01   :  { %v6344_v34 = vpop.eup %6343 }
 0xa02   :  { %v1258_v37 = vmul.f32 %v6344_v34, %v1256_v36  ;;  %1289 = vrot.lane.b32.xlu0 %v1287_v33, %s6699_s0  ;;  %v1265_v7 = vsub.f32 1.0, %v6344_v34 }
 0xa04   :  { %1260 = vrot.lane.b32.xlu1 %v1258_v37, %s6699_s0 }
 0xa56   :  { %v1232_v16 = vpop.permute.xlu0 %1231 }
 0xa57   :  { %v1234_v40 = vadd.f32 %v1232_v16, %v1084_v63 }
 0xa58   :  { %v1206_v41 = vpop.permute.xlu1 %1205 }
 0xa59   :  { %6345 = vtanh.f32 %v1234_v40  ;;  %v1208_v42 = vadd.f32 %v1206_v41, %v1084_v63 }
 0xa5b   :  { %6347 = vtanh.f32 %v1208_v42 }
 0xa66   :  { %v6346_v44 = vpop.eup %6345 }
 0xa67   :  { %1238 = vrot.lane.b32.xlu0 %v6346_v44, %s6700_s23 }
 0xa68   :  { %v6348_v14 = vpop.eup %6347 }
 0xa69   :  { %1212 = vrot.lane.b32.xlu1 %v6348_v14, %s6700_s23 }
 0xa74   :  { %v1290_v45 = vpop.permute.xlu0 %1289 }
 0xa75   :  { %v1292_v47 = vadd.f32 %v1290_v45, %v1086_v10 }
 0xa76   :  { %v1261_v48 = vpop.permute.xlu1 %1260 }
 0xa77   :  { %6349 = vtanh.f32 %v1292_v47  ;;  %v1263_v27 = vadd.f32 %v1261_v48, %v1086_v10  ;;  %v1271_v10 = vmul.f32 %v6344_v34, %v7062_v49  ;;  %v7129_v49 = vld [vmem:[%s8175_s7] sm:$0xff]  ;;  %s5705_s7 = sld [smem:[#allocation6 + $0x5]] }
 0xa79   :  { %6351 = vtanh.f32 %v1263_v27 }
 0xa84   :  { %v6350_v52 = vpop.eup %6349 }
 0xa85   :  { %1296 = vrot.lane.b32.xlu0 %v6350_v52, %s6700_s23 }
 0xa86   :  { %v6352_v26 = vpop.eup %6351 }
 0xa87   :  { %1267 = vrot.lane.b32.xlu1 %v6352_v26, %s6700_s23 }
 0xad9   :  { %v1239_v54 = vpop.permute.xlu0 %1238 }
 0xada   :  { %v1241_v57 = vmul.f32 %v1239_v54, %v1236_v53 }
 0xadb   :  { %v1213_v59 = vpop.permute.xlu1 %1212 }
 0xadc   :  { %v7098_v5 = vadd.f32 %v1242_v15, %v1241_v57  ;;  %v1215_v63 = vmul.f32 %v1213_v59, %v1210_v58 }
 0xade   :  { %v7101_v0 = vadd.f32 %v1216_v62, %v1215_v63  ;;  %v7104_v1 = vmul.f32 %v1330_v60, %v7098_v5 }
 0xae0   :  { %1336 = vrot.lane.b32.xlu1 %v7104_v1, %s6700_s23  ;;  %1304 = vrot.lane.b32.xlu0 %v7101_v0, %s6700_s23 }
 0xaf7   :  { %v1297_v17 = vpop.permute.xlu0 %1296 }
 0xaf8   :  { %v1299_v6 = vmul.f32 %v1297_v17, %v1294_v39 }
 0xaf9   :  { %v1268_v38 = vpop.permute.xlu1 %1267 }
 0xafa   :  { %v7111_v9 = vadd.f32 %v1300_v4, %v1299_v6  ;;  %v1270_v12 = vmul.f32 %v1268_v38, %v1265_v7 }
 0xafc   :  { %v7114_v13 = vadd.f32 %v1271_v10, %v1270_v12  ;;  %v7117_v55 = vmul.f32 %v1332_v8, %v7111_v9 }
 0xafe   :  { %1338 = vrot.lane.b32.xlu1 %v7117_v55, %s6700_s23  ;;  %1315 = vrot.lane.b32.xlu0 %v7114_v13, %s6700_s23 }
 0xb52   :  { %v1305_v51 = vpop.permute.xlu0 %1304  ;;  %v1337_v18 = vpop.permute.xlu1 %1336 }
 0xb53   :  { %1311 = vst.msk [vmem:[#allocation2 + $0x30] sm:$0xff] %vm375_vm1, %v1305_v51  ;;  %6057 = vmatprep.mubr.msk.f32.mxu0 %vm375_vm1, %v1305_v51 }
 0xb54   :  { %6058 = vmatmul.mubr.msk.f32.vlgmr.msra.gmra.mxu0 %vm375_vm1, %v1337_v18 }
 0xb55   :  { %6072 = vmatpush3.msra.mxu0 %v7129_v49 }
 0xb70   :  { %v1316_v19 = vpop.permute.xlu0 %1315  ;;  %v1339_v20 = vpop.permute.xlu1 %1338 }
 0xb71   :  { %1322 = vst.msk [vmem:[#allocation3 + $0x40] sm:$0xff] %vm375_vm1, %v1316_v19  ;;  %6060 = vmatprep.mubr.msk.f32.mxu0 %vm375_vm1, %v1316_v19 }
 0xb72   :  { %6061 = vmatmul.mubr.msk.f32.gmra.mxu0 %vm375_vm1, %v1339_v20 }
 0xc14   :  { %v6059_v21 = vpop.f32.mrf.mxu0 }
 0xc15   :  { %v1420_v28 = vadd.f32 %v6059_v21, %v6916_v43 }
 0xc16   :  { %v1414_v56 = vpop.f32.mrf.mxu0 }
 0xc17   :  { %v1415_v3 = vadd.f32 %v6916_v43, %v1414_v56  ;;  %v1459_v30 = vadd.f32 %v1420_v28, %v1325_v29 }
 0xc19   :  { %v1433_v31 = vadd.f32 %v1415_v3, %v1325_v29  ;;  %v5702_v32 = vmul.f32 -1.442695, %v1459_v30 }
 0xc1b   :  { %v5701_v33 = vmul.f32 -1.442695, %v1433_v31  ;;  %6353 = vpow2.f32 %v5702_v32 }
 0xc1d   :  { %6355 = vpow2.f32 %v5701_v33 }
 0xc28   :  { %v6354_v34 = vpop.eup %6353 }
 0xc29   :  { %v1463_v37 = vadd.f32 1.0, %v6354_v34 }
 0xc2a   :  { %v6356_v36 = vpop.eup %6355 }
 0xc2b   :  { %v1437_v16 = vadd.f32 1.0, %v6356_v36  ;;  %6357 = vrcp.f32 %v1463_v37 }
 0xc2d   :  { %6359 = vrcp.f32 %v1437_v16 }
 0xc32   :  { %v6062_v22 = vpop.f32.mrf.mxu0 }
 0xc33   :  { %v1430_v24 = vadd.f32 %v6062_v22, %v6916_v43 }
 0xc34   :  { %v1424_v25 = vpop.f32.mrf.mxu0 }
 0xc35   :  { %v1425_v2 = vadd.f32 %v6916_v43, %v1424_v25  ;;  %1515 = vrot.lane.b32.xlu0 %v1430_v24, %s6697_s29  ;;  %v1327_v43 = vld [vmem:[#allocation11 + $0x18] sm:$0xff] }
 0xc37   :  { %1486 = vrot.lane.b32.xlu1 %v1425_v2, %s6697_s29 }
 0xc38   :  { %v6358_v45 = vpop.eup %6357 }
 0xc39   :  { %1467 = vrot.lane.b32.xlu0 %v1420_v28, %s6696_s28  ;;  %v1477_v56 = vsub.f32 1.0, %v6358_v45 }
 0xc3a   :  { %v6360_v52 = vpop.eup %6359 }
 0xc3b   :  { %1441 = vrot.lane.b32.xlu1 %v1415_v3, %s6696_s28  ;;  %v1571_v3 = vstv %s5705_s7  ;;  %v1457_v30 = vmul.f32 %v6360_v52, %v7101_v0 }
 0xc3d   :  { %1525 = vrot.lane.b32.xlu0 %v1430_v24, %s6698_s30  ;;  %v1483_v24 = vmul.f32 %v6358_v45, %v7104_v1 }
 0xc3f   :  { %1496 = vrot.lane.b32.xlu1 %v1425_v2, %s6698_s30  ;;  %v1451_v2 = vsub.f32 1.0, %v6360_v52 }
 0xca7   :  { %v1516_v40 = vpop.permute.xlu0 %1515 }
 0xca8   :  { %v1518_v41 = vadd.f32 %v1516_v40, %v1327_v43 }
 0xca9   :  { %v1487_v42 = vpop.permute.xlu1 %1486 }
 0xcaa   :  { %v5704_v44 = vmul.f32 -1.442695, %v1518_v41  ;;  %v1489_v14 = vadd.f32 %v1487_v42, %v1327_v43 }
 0xcab   :  { %v1468_v47 = vpop.permute.xlu0 %1467 }
 0xcac   :  { %6361 = vpow2.f32 %v5704_v44  ;;  %v5703_v48 = vmul.f32 -1.442695, %v1489_v14  ;;  %v1470_v27 = vmul.f32 %v6358_v45, %v1468_v47 }
 0xcad   :  { %v1442_v26 = vpop.permute.xlu1 %1441 }
 0xcae   :  { %6363 = vpow2.f32 %v5703_v48  ;;  %v1444_v53 = vmul.f32 %v6360_v52, %v1442_v26  ;;  %1472 = vrot.lane.b32.xlu0 %v1470_v27, %s6699_s0  ;;  %v7189_v26 = vld [vmem:[%s8176_s8] ss:$0 sm:$0xff]  ;;  %s5715_s8 = sld [smem:[#allocation6 + $0x6]] }
 0xcaf   :  { %v1526_v60 = vpop.permute.xlu0 %1525 }
 0xcb0   :  { %1446 = vrot.lane.b32.xlu1 %v1444_v53, %s6699_s0 }
 0xcb1   :  { %v1497_v39 = vpop.permute.xlu1 %1496 }
 0xcb9   :  { %v6362_v54 = vpop.eup %6361 }
 0xcba   :  { %v1522_v15 = vadd.f32 1.0, %v6362_v54 }
 0xcbb   :  { %v6364_v57 = vpop.eup %6363 }
 0xcbc   :  { %6365 = vrcp.f32 %v1522_v15  ;;  %v1493_v58 = vadd.f32 1.0, %v6364_v57 }
 0xcbe   :  { %6367 = vrcp.f32 %v1493_v58  ;;  %v1566_v58 = vld [vmem:[#allocation10 + $0x28] sm:$0xff] }
 0xcc9   :  { %v6366_v59 = vpop.eup %6365 }
 0xcca   :  { %v1528_v62 = vmul.f32 %v6366_v59, %v1526_v60  ;;  %v1535_v1 = vsub.f32 1.0, %v6366_v59  ;;  %v1541_v36 = vmul.f32 %v6366_v59, %v7117_v55 }
 0xccb   :  { %v6368_v63 = vpop.eup %6367 }
 0xccc   :  { %v1499_v17 = vmul.f32 %v6368_v63, %v1497_v39  ;;  %1530 = vrot.lane.b32.xlu0 %v1528_v62, %s6699_s0  ;;  %v1506_v16 = vsub.f32 1.0, %v6368_v63  ;;  %v1512_v41 = vmul.f32 %v6368_v63, %v7114_v13 }
 0xcce   :  { %1501 = vrot.lane.b32.xlu1 %v1499_v17, %s6699_s0 }
 0xd20   :  { %v1473_v4 = vpop.permute.xlu0 %1472 }
 0xd21   :  { %v1475_v6 = vadd.f32 %v1473_v4, %v1325_v29 }
 0xd22   :  { %v1447_v7 = vpop.permute.xlu1 %1446 }
 0xd23   :  { %6369 = vtanh.f32 %v1475_v6  ;;  %v1449_v38 = vadd.f32 %v1447_v7, %v1325_v29  ;;  %v1568_v7 = vld [vmem:[#allocation11 + $0x10] sm:$0xff] }
 0xd25   :  { %6371 = vtanh.f32 %v1449_v38 }
 0xd30   :  { %v6370_v8 = vpop.eup %6369 }
 0xd31   :  { %1479 = vrot.lane.b32.xlu0 %v6370_v8, %s6700_s23 }
 0xd32   :  { %v6372_v10 = vpop.eup %6371 }
 0xd33   :  { %1453 = vrot.lane.b32.xlu1 %v6372_v10, %s6700_s23 }
 0xd3e   :  { %v1531_v12 = vpop.permute.xlu0 %1530 }
 0xd3f   :  { %v1533_v51 = vadd.f32 %v1531_v12, %v1327_v43 }
 0xd40   :  { %v1502_v18 = vpop.permute.xlu1 %1501 }
 0xd41   :  { %6373 = vtanh.f32 %v1533_v51  ;;  %v1504_v19 = vadd.f32 %v1502_v18, %v1327_v43  ;;  %v1573_v43 = vstv %s5706_s3 }
 0xd43   :  { %6375 = vtanh.f32 %v1504_v19 }
 0xd4e   :  { %v6374_v20 = vpop.eup %6373 }
 0xd4f   :  { %1537 = vrot.lane.b32.xlu0 %v6374_v20, %s6700_s23 }
 0xd50   :  { %v6376_v21 = vpop.eup %6375 }
 0xd51   :  { %1508 = vrot.lane.b32.xlu1 %v6376_v21, %s6700_s23 }
 0xda3   :  { %v1480_v22 = vpop.permute.xlu0 %1479 }
 0xda4   :  { %v1482_v25 = vmul.f32 %v1480_v22, %v1477_v56 }
 0xda5   :  { %v1454_v28 = vpop.permute.xlu1 %1453 }
 0xda6   :  { %v7154_v29 = vadd.f32 %v1483_v24, %v1482_v25  ;;  %v1456_v31 = vmul.f32 %v1454_v28, %v1451_v2 }
 0xda8   :  { %v7157_v32 = vadd.f32 %v1457_v30, %v1456_v31  ;;  %v7160_v33 = vmul.f32 %v1571_v3, %v7154_v29 }
 0xdaa   :  { %1577 = vrot.lane.b32.xlu1 %v7160_v33, %s6700_s23  ;;  %1545 = vrot.lane.b32.xlu0 %v7157_v32, %s6700_s23 }
 0xdc1   :  { %v1538_v34 = vpop.permute.xlu0 %1537 }
 0xdc2   :  { %v1540_v37 = vmul.f32 %v1538_v34, %v1535_v1 }
 0xdc3   :  { %v1509_v0 = vpop.permute.xlu1 %1508 }
 0xdc4   :  { %v7167_v40 = vadd.f32 %v1541_v36, %v1540_v37  ;;  %v1511_v42 = vmul.f32 %v1509_v0, %v1506_v16 }
 0xdc6   :  { %v7170_v44 = vadd.f32 %v1512_v41, %v1511_v42  ;;  %v7173_v14 = vmul.f32 %v1573_v43, %v7167_v40 }
 0xdc8   :  { %1579 = vrot.lane.b32.xlu1 %v7173_v14, %s6700_s23  ;;  %1556 = vrot.lane.b32.xlu0 %v7170_v44, %s6700_s23 }
 0xe1c   :  { %v1546_v55 = vpop.permute.xlu0 %1545  ;;  %v1578_v45 = vpop.permute.xlu1 %1577 }
 0xe1d   :  { %1552 = vst.msk [vmem:[#allocation2 + $0x40] sm:$0xff] %vm375_vm1, %v1546_v55  ;;  %6065 = vmatprep.mubr.msk.f32.mxu1 %vm375_vm1, %v1546_v55 }
 0xe1e   :  { %6066 = vmatmul.mubr.msk.f32.vlgmr.msra.gmra.mxu1 %vm375_vm1, %v1578_v45 }
 0xe1f   :  { %6080 = vmatpush3.msra.mxu1 %v7129_v49 }
 0xe3a   :  { %v1557_v13 = vpop.permute.xlu0 %1556  ;;  %v1580_v47 = vpop.permute.xlu1 %1579 }
 0xe3b   :  { %1563 = vst.msk [vmem:[#allocation3 + $0x30] sm:$0xff] %vm375_vm1, %v1557_v13  ;;  %6068 = vmatprep.mubr.msk.f32.mxu1 %vm375_vm1, %v1557_v13 }
 0xe3c   :  { %6069 = vmatmul.mubr.msk.f32.gmra.mxu1 %vm375_vm1, %v1580_v47 }
 0xede   :  { %v6067_v48 = vpop.f32.mrf.mxu1 }
 0xedf   :  { %v1661_v15 = vadd.f32 %v7189_v26, %v6067_v48 }
 0xee0   :  { %v1655_v27 = vpop.f32.mrf.mxu1 }
 0xee1   :  { %v1656_v57 = vadd.f32 %v7189_v26, %v1655_v27  ;;  %v1700_v59 = vadd.f32 %v1661_v15, %v1566_v58 }
 0xee3   :  { %v1674_v60 = vadd.f32 %v1656_v57, %v1566_v58  ;;  %v5712_v62 = vmul.f32 -1.442695, %v1700_v59 }
 0xee5   :  { %v5711_v63 = vmul.f32 -1.442695, %v1674_v60  ;;  %6377 = vpow2.f32 %v5712_v62 }
 0xee7   :  { %6379 = vpow2.f32 %v5711_v63 }
 0xef2   :  { %v6378_v39 = vpop.eup %6377 }
 0xef3   :  { %v1704_v4 = vadd.f32 1.0, %v6378_v39 }
 0xef4   :  { %v6380_v17 = vpop.eup %6379 }
 0xef5   :  { %v1678_v6 = vadd.f32 1.0, %v6380_v17  ;;  %6381 = vrcp.f32 %v1704_v4 }
 0xef7   :  { %6383 = vrcp.f32 %v1678_v6 }
 0xefc   :  { %v6070_v52 = vpop.f32.mrf.mxu1 }
 0xefd   :  { %v1671_v53 = vadd.f32 %v7189_v26, %v6070_v52 }
 0xefe   :  { %v1665_v54 = vpop.f32.mrf.mxu1 }
 0xeff   :  { %v1666_v49 = vadd.f32 %v7189_v26, %v1665_v54  ;;  %1756 = vrot.lane.b32.xlu0 %v1671_v53, %s6697_s29 }
 0xf01   :  { %1727 = vrot.lane.b32.xlu1 %v1666_v49, %s6697_s29 }
 0xf02   :  { %v6382_v18 = vpop.eup %6381 }
 0xf03   :  { %1708 = vrot.lane.b32.xlu0 %v1661_v15, %s6696_s28 }
 0xf04   :  { %v6384_v56 = vpop.eup %6383 }
 0xf05   :  { %1682 = vrot.lane.b32.xlu1 %v1656_v57, %s6696_s28  ;;  %v1692_v57 = vsub.f32 1.0, %v6384_v56  ;;  %v1698_v62 = vmul.f32 %v6384_v56, %v7157_v32  ;;  %v1814_v32 = vstv %s5716_s24 }
 0xf07   :  { %1766 = vrot.lane.b32.xlu0 %v1671_v53, %s6698_s30  ;;  %v1718_v53 = vsub.f32 1.0, %v6382_v18 }
 0xf09   :  { %1737 = vrot.lane.b32.xlu1 %v1666_v49, %s6698_s30  ;;  %v1724_v49 = vmul.f32 %v6382_v18, %v7160_v33 }
 0xf71   :  { %v1757_v38 = vpop.permute.xlu0 %1756 }
 0xf72   :  { %v1759_v8 = vadd.f32 %v1757_v38, %v1568_v7 }
 0xf73   :  { %v1728_v10 = vpop.permute.xlu1 %1727 }
 0xf74   :  { %v5714_v12 = vmul.f32 -1.442695, %v1759_v8  ;;  %v1730_v51 = vadd.f32 %v1728_v10, %v1568_v7 }
 0xf75   :  { %v1709_v19 = vpop.permute.xlu0 %1708 }
 0xf76   :  { %6385 = vpow2.f32 %v5714_v12  ;;  %v5713_v20 = vmul.f32 -1.442695, %v1730_v51  ;;  %v1711_v21 = vmul.f32 %v6382_v18, %v1709_v19 }
 0xf77   :  { %v1683_v22 = vpop.permute.xlu1 %1682 }
 0xf78   :  { %6387 = vpow2.f32 %v5713_v20  ;;  %v1685_v24 = vmul.f32 %v6384_v56, %v1683_v22  ;;  %1713 = vrot.lane.b32.xlu0 %v1711_v21, %s6699_s0 }
 0xf79   :  { %v1767_v31 = vpop.permute.xlu0 %1766 }
 0xf7a   :  { %1687 = vrot.lane.b32.xlu1 %v1685_v24, %s6699_s0 }
 0xf7b   :  { %v1738_v36 = vpop.permute.xlu1 %1737 }
 0xf83   :  { %v6386_v25 = vpop.eup %6385 }
 0xf84   :  { %v1763_v2 = vadd.f32 1.0, %v6386_v25 }
 0xf85   :  { %v6388_v28 = vpop.eup %6387 }
 0xf86   :  { %6389 = vrcp.f32 %v1763_v2  ;;  %v1734_v3 = vadd.f32 1.0, %v6388_v28 }
 0xf88   :  { %6391 = vrcp.f32 %v1734_v3 }
 0xf93   :  { %v6390_v30 = vpop.eup %6389 }
 0xf94   :  { %v1769_v1 = vmul.f32 %v6390_v30, %v1767_v31  ;;  %v1776_v33 = vsub.f32 1.0, %v6390_v30  ;;  %v1782_v6 = vmul.f32 %v6390_v30, %v7173_v14  ;;  %v1807_v31 = vld [vmem:[#allocation10 + $0x30] sm:$0xff] }
 0xf95   :  { %v6392_v34 = vpop.eup %6391 }
 0xf96   :  { %v1740_v37 = vmul.f32 %v6392_v34, %v1738_v36  ;;  %1771 = vrot.lane.b32.xlu0 %v1769_v1, %s6699_s0  ;;  %v1747_v38 = vsub.f32 1.0, %v6392_v34  ;;  %v1753_v12 = vmul.f32 %v6392_v34, %v7170_v44 }
 0xf98   :  { %1742 = vrot.lane.b32.xlu1 %v1740_v37, %s6699_s0 }
 0xfea   :  { %v1714_v16 = vpop.permute.xlu0 %1713 }
 0xfeb   :  { %v1716_v0 = vadd.f32 %v1714_v16, %v1566_v58 }
 0xfec   :  { %v1688_v43 = vpop.permute.xlu1 %1687 }
 0xfed   :  { %6393 = vtanh.f32 %v1716_v0  ;;  %v1690_v41 = vadd.f32 %v1688_v43, %v1566_v58  ;;  %v1812_v58 = vstv %s5715_s8 }
 0xfef   :  { %6395 = vtanh.f32 %v1690_v41 }
 0xffa   :  { %v6394_v42 = vpop.eup %6393 }
 0xffb   :  { %1720 = vrot.lane.b32.xlu0 %v6394_v42, %s6700_s23  ;;  %v1809_v42 = vld [vmem:[#allocation11 + $0x8] sm:$0xff] }
 0xffc   :  { %v6396_v55 = vpop.eup %6395 }
 0xffd   :  { %1694 = vrot.lane.b32.xlu1 %v6396_v55, %s6700_s23 }
0x1008   :  { %v1772_v45 = vpop.permute.xlu0 %1771 }
0x1009   :  { %v1774_v13 = vadd.f32 %v1772_v45, %v1568_v7 }
0x100a   :  { %v1743_v47 = vpop.permute.xlu1 %1742 }
0x100b   :  { %6397 = vtanh.f32 %v1774_v13  ;;  %v1745_v48 = vadd.f32 %v1743_v47, %v1568_v7 }
0x100d   :  { %6399 = vtanh.f32 %v1745_v48 }
0x1018   :  { %v6398_v27 = vpop.eup %6397 }
0x1019   :  { %1778 = vrot.lane.b32.xlu0 %v6398_v27, %s6700_s23 }
0x101a   :  { %v6400_v52 = vpop.eup %6399 }
0x101b   :  { %1749 = vrot.lane.b32.xlu1 %v6400_v52, %s6700_s23 }
0x106d   :  { %v1721_v54 = vpop.permute.xlu0 %1720 }
0x106e   :  { %v1723_v15 = vmul.f32 %v1721_v54, %v1718_v53 }
0x106f   :  { %v1695_v59 = vpop.permute.xlu1 %1694 }
0x1070   :  { %v7210_v60 = vadd.f32 %v1724_v49, %v1723_v15  ;;  %v1697_v63 = vmul.f32 %v1695_v59, %v1692_v57 }
0x1072   :  { %v7214_v39 = vmul.f32 %v1812_v58, %v7210_v60  ;;  %v7216_v17 = vadd.f32 %v1698_v62, %v1697_v63 }
0x1074   :  { %1818 = vrot.lane.b32.xlu1 %v7214_v39, %s6700_s23  ;;  %1786 = vrot.lane.b32.xlu0 %v7216_v17, %s6700_s23 }
0x108b   :  { %v1779_v4 = vpop.permute.xlu0 %1778 }
0x108c   :  { %v1781_v7 = vmul.f32 %v1779_v4, %v1776_v33 }
0x108d   :  { %v1750_v8 = vpop.permute.xlu1 %1749 }
0x108e   :  { %v7223_v10 = vadd.f32 %v1782_v6, %v1781_v7  ;;  %v1752_v51 = vmul.f32 %v1750_v8, %v1747_v38 }
0x1090   :  { %v7227_v18 = vmul.f32 %v1814_v32, %v7223_v10  ;;  %v7229_v19 = vadd.f32 %v1753_v12, %v1752_v51 }
0x1092   :  { %1820 = vrot.lane.b32.xlu1 %v7227_v18, %s6700_s23  ;;  %1797 = vrot.lane.b32.xlu0 %v7229_v19, %s6700_s23 }
0x10e6   :  { %v1787_v14 = vpop.permute.xlu0 %1786  ;;  %v1819_v20 = vpop.permute.xlu1 %1818 }
0x10e7   :  { %1793 = vst.msk [vmem:[#allocation2 + $0x50] sm:$0xff] %vm375_vm1, %v1787_v14  ;;  %6073 = vmatprep.mubr.msk.f32.mxu0 %vm375_vm1, %v1787_v14 }
0x10e8   :  { %6074 = vmatmul.mubr.msk.f32.vlgmr.msra.gmra.mxu0 %vm375_vm1, %v1819_v20 }
0x1104   :  { %v1798_v44 = vpop.permute.xlu0 %1797  ;;  %v1821_v21 = vpop.permute.xlu1 %1820 }
0x1105   :  { %1804 = vst.msk [vmem:[#allocation3 + $0x20] sm:$0xff] %vm375_vm1, %v1798_v44  ;;  %6076 = vmatprep.mubr.msk.f32.mxu0 %vm375_vm1, %v1798_v44 }
0x1106   :  { %6077 = vmatmul.mubr.msk.f32.gmra.mxu0 %vm375_vm1, %v1821_v21 }
0x11a8   :  { %v6075_v56 = vpop.f32.mrf.mxu0 }
0x11a9   :  { %v1902_v3 = vadd.f32 %v7189_v26, %v6075_v56 }
0x11aa   :  { %v1896_v22 = vpop.f32.mrf.mxu0 }
0x11ab   :  { %v1897_v30 = vadd.f32 %v7189_v26, %v1896_v22  ;;  %v1941_v1 = vadd.f32 %v1902_v3, %v1807_v31 }
0x11ad   :  { %v1915_v34 = vadd.f32 %v1897_v30, %v1807_v31  ;;  %v5722_v36 = vmul.f32 -1.442695, %v1941_v1 }
0x11af   :  { %v5721_v37 = vmul.f32 -1.442695, %v1915_v34  ;;  %6401 = vpow2.f32 %v5722_v36  ;;  %v2052_v34 = vstv %s5725_s6 }
0x11b1   :  { %6403 = vpow2.f32 %v5721_v37 }
0x11bc   :  { %v6402_v16 = vpop.eup %6401 }
0x11bd   :  { %v1945_v43 = vadd.f32 1.0, %v6402_v16 }
0x11be   :  { %v6404_v0 = vpop.eup %6403 }
0x11bf   :  { %v1919_v41 = vadd.f32 1.0, %v6404_v0  ;;  %6405 = vrcp.f32 %v1945_v43 }
0x11c1   :  { %6407 = vrcp.f32 %v1919_v41 }
0x11c6   :  { %v6078_v24 = vpop.f32.mrf.mxu0 }
0x11c7   :  { %v1912_v25 = vadd.f32 %v7189_v26, %v6078_v24 }
0x11c8   :  { %v1906_v2 = vpop.f32.mrf.mxu0 }
0x11c9   :  { %v1907_v28 = vadd.f32 %v7189_v26, %v1906_v2  ;;  %1997 = vrot.lane.b32.xlu0 %v1912_v25, %s6697_s29 }
0x11cb   :  { %1968 = vrot.lane.b32.xlu1 %v1907_v28, %s6697_s29 }
0x11cc   :  { %v6406_v27 = vpop.eup %6405 }
0x11cd   :  { %1949 = vrot.lane.b32.xlu0 %v1902_v3, %s6696_s28 }
0x11ce   :  { %v6408_v49 = vpop.eup %6407 }
0x11cf   :  { %1923 = vrot.lane.b32.xlu1 %v1897_v30, %s6696_s28  ;;  %v1965_v30 = vmul.f32 %v6406_v27, %v7214_v39  ;;  %v1933_v1 = vsub.f32 1.0, %v6408_v49  ;;  %v1939_v16 = vmul.f32 %v6408_v49, %v7216_v17  ;;  %v2054_v17 = vstv %s2051_s25 }
0x11d1   :  { %2007 = vrot.lane.b32.xlu0 %v1912_v25, %s6698_s30 }
0x11d3   :  { %1978 = vrot.lane.b32.xlu1 %v1907_v28, %s6698_s30  ;;  %v1959_v28 = vsub.f32 1.0, %v6406_v27 }
0x123b   :  { %v1998_v55 = vpop.permute.xlu0 %1997 }
0x123c   :  { %v2000_v45 = vadd.f32 %v1998_v55, %v1809_v42 }
0x123d   :  { %v1969_v13 = vpop.permute.xlu1 %1968 }
0x123e   :  { %v5724_v47 = vmul.f32 -1.442695, %v2000_v45  ;;  %v1971_v48 = vadd.f32 %v1969_v13, %v1809_v42 }
0x123f   :  { %v1950_v52 = vpop.permute.xlu0 %1949 }
0x1240   :  { %6409 = vpow2.f32 %v5724_v47  ;;  %v5723_v53 = vmul.f32 -1.442695, %v1971_v48  ;;  %v1952_v54 = vmul.f32 %v6406_v27, %v1950_v52 }
0x1241   :  { %v1924_v15 = vpop.permute.xlu1 %1923 }
0x1242   :  { %6411 = vpow2.f32 %v5723_v53  ;;  %v1926_v57 = vmul.f32 %v6408_v49, %v1924_v15  ;;  %1954 = vrot.lane.b32.xlu0 %v1952_v54, %s6699_s0 }
0x1243   :  { %v2008_v4 = vpop.permute.xlu0 %2007 }
0x1244   :  { %1928 = vrot.lane.b32.xlu1 %v1926_v57, %s6699_s0 }
0x1245   :  { %v1979_v38 = vpop.permute.xlu1 %1978 }
0x124d   :  { %v6410_v58 = vpop.eup %6409 }
0x124e   :  { %v2004_v59 = vadd.f32 1.0, %v6410_v58 }
0x124f   :  { %v6412_v62 = vpop.eup %6411 }
0x1250   :  { %6413 = vrcp.f32 %v2004_v59  ;;  %v1975_v63 = vadd.f32 1.0, %v6412_v62 }
0x1252   :  { %6415 = vrcp.f32 %v1975_v63 }
0x125d   :  { %v6414_v33 = vpop.eup %6413 }
0x125e   :  { %v2010_v6 = vmul.f32 %v6414_v33, %v2008_v4  ;;  %v2017_v39 = vsub.f32 1.0, %v6414_v33  ;;  %v2023_v55 = vmul.f32 %v6414_v33, %v7227_v18 }
0x125f   :  { %v6416_v7 = vpop.eup %6415 }
0x1260   :  { %v1981_v32 = vmul.f32 %v6416_v7, %v1979_v38  ;;  %2012 = vrot.lane.b32.xlu0 %v2010_v6, %s6699_s0  ;;  %v1988_v13 = vsub.f32 1.0, %v6416_v7  ;;  %v1994_v27 = vmul.f32 %v6416_v7, %v7229_v19  ;;  %v2048_v7 = vld [vmem:[#allocation10 + $0x38] sm:$0xff] }
0x1262   :  { %1983 = vrot.lane.b32.xlu1 %v1981_v32, %s6699_s0 }
0x12b4   :  { %v1955_v8 = vpop.permute.xlu0 %1954 }
0x12b5   :  { %v1957_v12 = vadd.f32 %v1955_v8, %v1807_v31 }
0x12b6   :  { %v1929_v51 = vpop.permute.xlu1 %1928 }
0x12b7   :  { %6417 = vtanh.f32 %v1957_v12  ;;  %v1931_v14 = vadd.f32 %v1929_v51, %v1807_v31 }
0x12b9   :  { %6419 = vtanh.f32 %v1931_v14 }
0x12c4   :  { %v6418_v20 = vpop.eup %6417 }
0x12c5   :  { %1961 = vrot.lane.b32.xlu0 %v6418_v20, %s6700_s23 }
0x12c6   :  { %v6420_v44 = vpop.eup %6419 }
0x12c7   :  { %1935 = vrot.lane.b32.xlu1 %v6420_v44, %s6700_s23 }
0x12d2   :  { %v2013_v21 = vpop.permute.xlu0 %2012 }
0x12d3   :  { %v2015_v56 = vadd.f32 %v2013_v21, %v1809_v42 }
0x12d4   :  { %v1984_v22 = vpop.permute.xlu1 %1983 }
0x12d5   :  { %6421 = vtanh.f32 %v2015_v56  ;;  %v1986_v24 = vadd.f32 %v1984_v22, %v1809_v42 }
0x12d7   :  { %6423 = vtanh.f32 %v1986_v24 }
0x12e2   :  { %v6422_v25 = vpop.eup %6421 }
0x12e3   :  { %2019 = vrot.lane.b32.xlu0 %v6422_v25, %s6700_s23 }
0x12e4   :  { %v6424_v2 = vpop.eup %6423 }
0x12e5   :  { %1990 = vrot.lane.b32.xlu1 %v6424_v2, %s6700_s23 }
0x1337   :  { %v1962_v3 = vpop.permute.xlu0 %1961 }
0x1338   :  { %v1964_v31 = vmul.f32 %v1962_v3, %v1959_v28 }
0x1339   :  { %v1936_v36 = vpop.permute.xlu1 %1935 }
0x133a   :  { %v7260_v37 = vadd.f32 %v1965_v30, %v1964_v31  ;;  %v1938_v0 = vmul.f32 %v1936_v36, %v1933_v1 }
0x133c   :  { %v7264_v43 = vmul.f32 %v2052_v34, %v7260_v37  ;;  %v7266_v41 = vadd.f32 %v1939_v16, %v1938_v0 }
0x133e   :  { %2058 = vrot.lane.b32.xlu1 %v7264_v43, %s6700_s23  ;;  %2027 = vrot.lane.b32.xlu0 %v7266_v41, %s6700_s23 }
0x1355   :  { %v2020_v42 = vpop.permute.xlu0 %2019 }
0x1356   :  { %v2022_v45 = vmul.f32 %v2020_v42, %v2017_v39 }
0x1357   :  { %v1991_v47 = vpop.permute.xlu1 %1990 }
0x1358   :  { %v7273_v48 = vadd.f32 %v2023_v55, %v2022_v45  ;;  %v1993_v52 = vmul.f32 %v1991_v47, %v1988_v13 }
0x135a   :  { %v7277_v53 = vmul.f32 %v2054_v17, %v7273_v48  ;;  %v7279_v54 = vadd.f32 %v1994_v27, %v1993_v52 }
0x135c   :  { %2060 = vrot.lane.b32.xlu1 %v7277_v53, %s6700_s23  ;;  %2038 = vrot.lane.b32.xlu0 %v7279_v54, %s6700_s23 }
0x13b0   :  { %v2028_v18 = vpop.permute.xlu0 %2027  ;;  %v2059_v49 = vpop.permute.xlu1 %2058 }
0x13b1   :  { %2034 = vst.msk [vmem:[#allocation2 + $0x60] sm:$0xff] %vm375_vm1, %v2028_v18  ;;  %6081 = vmatprep.mubr.msk.f32.mxu1 %vm375_vm1, %v2028_v18 }
0x13b2   :  { %6082 = vmatmul.mubr.msk.f32.vlgmr.msra.gmra.mxu1 %vm375_vm1, %v2059_v49 }
0x13ce   :  { %v2039_v19 = vpop.permute.xlu0 %2038  ;;  %v2061_v15 = vpop.permute.xlu1 %2060 }
0x13cf   :  { %2045 = vst.msk [vmem:[#allocation3 + $0x10] sm:$0xff] %vm375_vm1, %v2039_v19  ;;  %6084 = vmatprep.mubr.msk.f32.mxu1 %vm375_vm1, %v2039_v19 }
0x13d0   :  { %6085 = vmatmul.mubr.msk.f32.gmra.mxu1 %vm375_vm1, %v2061_v15 }
0x1472   :  { %v6083_v57 = vpop.f32.mrf.mxu1 }
0x1473   :  { %v2142_v4 = vadd.f32 %v7189_v26, %v6083_v57 }
0x1474   :  { %v2136_v58 = vpop.f32.mrf.mxu1 }
0x1475   :  { %v2137_v6 = vadd.f32 %v7189_v26, %v2136_v58  ;;  %v2181_v38 = vadd.f32 %v2142_v4, %v2048_v7 }
0x1477   :  { %v2155_v32 = vadd.f32 %v2137_v6, %v2048_v7  ;;  %v5731_v8 = vmul.f32 -1.442695, %v2181_v38 }
0x1479   :  { %v5730_v12 = vmul.f32 -1.442695, %v2155_v32  ;;  %6425 = vpow2.f32 %v5731_v8 }
0x147b   :  { %6427 = vpow2.f32 %v5730_v12 }
0x1486   :  { %v6426_v51 = vpop.eup %6425 }
0x1487   :  { %v2185_v20 = vadd.f32 1.0, %v6426_v51 }
0x1488   :  { %v6428_v14 = vpop.eup %6427 }
0x1489   :  { %v2159_v44 = vadd.f32 1.0, %v6428_v14  ;;  %6429 = vrcp.f32 %v2185_v20 }
0x148b   :  { %6431 = vrcp.f32 %v2159_v44 }
0x1490   :  { %v6086_v59 = vpop.f32.mrf.mxu1 }
0x1491   :  { %v2152_v62 = vadd.f32 %v7189_v26, %v6086_v59 }
0x1492   :  { %v2146_v63 = vpop.f32.mrf.mxu1 }
0x1493   :  { %v2147_v33 = vadd.f32 %v7189_v26, %v2146_v63  ;;  %2237 = vrot.lane.b32.xlu1 %v2152_v62, %s6697_s29  ;;  %v2049_v26 = vld [vmem:[#allocation11] sm:$0xff] }
0x1495   :  { %2208 = vrot.lane.b32.xlu0 %v2147_v33, %s6697_s29 }
0x1496   :  { %v7301_v2 = vpop.eup %6429 }
0x1497   :  { %2189 = vrot.lane.b32.xlu1 %v2142_v4, %s6696_s28 }
0x1498   :  { %v7304_v31 = vpop.eup %6431 }
0x1499   :  { %2163 = vrot.lane.b32.xlu0 %v2137_v6, %s6696_s28 }
0x149b   :  { %2247 = vrot.lane.b32.xlu1 %v2152_v62, %s6698_s30 }
0x149d   :  { %2218 = vrot.lane.b32.xlu0 %v2147_v33, %s6698_s30  ;;  %s6701_s30 = smov 120  }
0x1505   :  { %v2238_v21 = vpop.permute.xlu1 %2237 }
0x1506   :  { %v2240_v56 = vadd.f32 %v2238_v21, %v2049_v26 }
0x1507   :  { %v2209_v22 = vpop.permute.xlu0 %2208 }
0x1508   :  { %v5733_v24 = vmul.f32 -1.442695, %v2240_v56  ;;  %v2211_v25 = vadd.f32 %v2209_v22, %v2049_v26 }
0x1509   :  { %v2190_v28 = vpop.permute.xlu1 %2189 }
0x150a   :  { %6433 = vpow2.f32 %v5733_v24  ;;  %v5732_v3 = vmul.f32 -1.442695, %v2211_v25  ;;  %v2192_v30 = vmul.f32 %v7301_v2, %v2190_v28 }
0x150b   :  { %v2164_v1 = vpop.permute.xlu0 %2163 }
0x150c   :  { %6435 = vpow2.f32 %v5732_v3  ;;  %v2166_v34 = vmul.f32 %v7304_v31, %v2164_v1  ;;  %2194 = vrot.lane.b32.xlu1 %v2192_v30, %s6699_s0  ;;  %v5734_v30 = vld [vmem:[%s8185_s17] ss:$0 sm:$0xff] }
0x150d   :  { %v2248_v55 = vpop.permute.xlu1 %2247  ;;  %v2287_v1 = vld [vmem:[#allocation2] sm:$0xff] }
0x150e   :  { %2168 = vrot.lane.b32.xlu0 %v2166_v34, %s6699_s0 }
0x150f   :  { %v2219_v17 = vpop.permute.xlu0 %2218 }
0x1517   :  { %v6434_v36 = vpop.eup %6433 }
0x1518   :  { %v2244_v16 = vadd.f32 1.0, %v6434_v36  ;;  %v2289_v36 = vld [vmem:[#allocation2 + $0x20] sm:$0xff] }
0x1519   :  { %v6436_v0 = vpop.eup %6435 }
0x151a   :  { %6437 = vrcp.f32 %v2244_v16  ;;  %v2215_v39 = vadd.f32 1.0, %v6436_v0  ;;  %v2325_v16 = vmul.f32 %v5734_v30, %v2287_v1  ;;  %v2292_v0 = vld [vmem:[#allocation2 + $0x50] sm:$0xff] }
0x151c   :  { %6439 = vrcp.f32 %v2215_v39 }
0x1527   :  { %v6438_v42 = vpop.eup %6437 }
0x1528   :  { %v2250_v45 = vmul.f32 %v6438_v42, %v2248_v55  ;;  %v2290_v55 = vld [vmem:[#allocation2 + $0x30] sm:$0xff] }
0x1529   :  { %v6440_v13 = vpop.eup %6439 }
0x152a   :  { %v2221_v47 = vmul.f32 %v6440_v13, %v2219_v17  ;;  %2252 = vrot.lane.b32.xlu1 %v2250_v45, %s6699_s0  ;;  %v2334_v45 = vsel %vm375_vm1, %v2325_v16, 0.0 }
0x152c   :  { %2223 = vrot.lane.b32.xlu0 %v2221_v47, %s6699_s0  ;;  %s6702_s0 = smov 104   ;;  %v2328_v47 = vmul.f32 %v5734_v30, %v2290_v55 }
0x157e   :  { %v2195_v27 = vpop.permute.xlu1 %2194 }
0x157f   :  { %v2197_v52 = vadd.f32 %v2195_v27, %v2048_v7  ;;  %v2291_v27 = vld [vmem:[#allocation2 + $0x40] sm:$0xff] }
0x1580   :  { %v2169_v18 = vpop.permute.xlu0 %2168 }
0x1581   :  { %6441 = vtanh.f32 %v2197_v52  ;;  %v2171_v49 = vadd.f32 %v2169_v18, %v2048_v7  ;;  %v2234_v7 = vmul.f32 %v6440_v13, %v7279_v54  ;;  %v2343_v18 = vsel %vm375_vm1, %v2328_v47, 0.0 }
0x1583   :  { %6443 = vtanh.f32 %v2171_v49  ;;  %v2329_v49 = vmul.f32 %v5734_v30, %v2291_v27 }
0x158e   :  { %v6442_v19 = vpop.eup %6441 }
0x158f   :  { %2201 = vrot.lane.b32.xlu1 %v6442_v19, %s6700_s23  ;;  %v2293_v19 = vld [vmem:[#allocation2 + $0x60] sm:$0xff] }
0x1590   :  { %v6444_v15 = vpop.eup %6443 }
0x1591   :  { %2175 = vrot.lane.b32.xlu0 %v6444_v15, %s6700_s23  ;;  %v2346_v15 = vsel %vm375_vm1, %v2329_v49, 0.0 }
0x159c   :  { %v2253_v57 = vpop.permute.xlu1 %2252 }
0x159d   :  { %v2255_v58 = vadd.f32 %v2253_v57, %v2049_v26  ;;  %v2331_v57 = vmul.f32 %v5734_v30, %v2293_v19  ;;  %v2310_v19 = vld [vmem:[#allocation3 + $0x70] sm:$0xff] }
0x159e   :  { %v2224_v59 = vpop.permute.xlu0 %2223 }
0x159f   :  { %6445 = vtanh.f32 %v2255_v58  ;;  %v2226_v62 = vadd.f32 %v2224_v59, %v2049_v26  ;;  %v6704_v58 = vmov 0  }
0x15a0   :  { %6451 = vset.pattern.permute.xlu0 %v6704_v58 }
0x15a1   :  { %6447 = vtanh.f32 %v2226_v62  ;;  %v2352_v62 = vsel %vm375_vm1, %v2331_v57, 0.0 }
0x15ac   :  { %v6446_v63 = vpop.eup %6445 }
0x15ad   :  { %2259 = vrot.lane.b32.xlu1 %v6446_v63, %s6700_s23 }
0x15ae   :  { %v6448_v33 = vpop.eup %6447 }
0x15af   :  { %2230 = vrot.lane.b32.xlu0 %v6448_v33, %s6700_s23 }
0x15b1   :  { %594 = vrot.lane.b32.xlu1 %v6956_v61, %s6700_s23 }
0x15b3   :  { %584 = vrot.lane.b32.xlu0 %v6944_v50, %s6700_s23  ;;  %v2199_v50 = vsub.f32 1.0, %v7301_v2 }
0x15b5   :  { %835 = vrot.lane.b32.xlu1 %v7007_v23, %s6700_s23 }
0x15b7   :  { %824 = vrot.lane.b32.xlu0 %v6994_v11, %s6700_s23  ;;  %v2205_v11 = vmul.f32 %v7301_v2, %v7264_v43  ;;  %v2228_v43 = vsub.f32 1.0, %v6440_v13  ;;  %v2330_v13 = vmul.f32 %v5734_v30, %v2292_v0  ;;  %v2309_v0 = vld [vmem:[#allocation3 + $0x60] sm:$0xff] }
0x15b9   :  { %1076 = vrot.lane.b32.xlu1 %v7059_v46, %s6700_s23  ;;  %v2349_v52 = vsel %vm375_vm1, %v2330_v13, 0.0 }
0x15bb   :  { %1065 = vrot.lane.b32.xlu0 %v7046_v35, %s6700_s23  ;;  %v2173_v35 = vsub.f32 1.0, %v7304_v31 }
0x15bd   :  { %1317 = vrot.lane.b32.xlu1 %v7111_v9, %s6700_s23  ;;  %v2179_v9 = vmul.f32 %v7304_v31, %v7266_v41  ;;  %v2288_v31 = vld [vmem:[#allocation2 + $0x10] sm:$0xff] }
0x15be   :  { %v2326_v34 = vmul.f32 %v5734_v30, %v2288_v31 }
0x15bf   :  { %1306 = vrot.lane.b32.xlu0 %v7098_v5, %s6700_s23 }
0x15c0   :  { %v2337_v39 = vsel %vm375_vm1, %v2326_v34, 0.0 }
0x15c1   :  { %1558 = vrot.lane.b32.xlu1 %v7167_v40, %s6700_s23 }
0x15c3   :  { %1547 = vrot.lane.b32.xlu0 %v7154_v29, %s6700_s23 }
0x15c5   :  { %1799 = vrot.lane.b32.xlu1 %v7223_v10, %s6700_s23 }
0x15c7   :  { %1788 = vrot.lane.b32.xlu0 %v7210_v60, %s6700_s23  ;;  %v2257_v60 = vsub.f32 1.0, %v6438_v42 }
0x15c9   :  { %2040 = vrot.lane.b32.xlu1 %v7273_v48, %s6700_s23 }
0x15cb   :  { %2029 = vrot.lane.b32.xlu0 %v7260_v37, %s6700_s23  ;;  %v2263_v37 = vmul.f32 %v6438_v42, %v7277_v53  ;;  %v2327_v42 = vmul.f32 %v5734_v30, %v2289_v36 }
0x15cd   :  { %v2340_v17 = vsel %vm375_vm1, %v2327_v42, 0.0 }
0x1601   :  { %v2202_v61 = vpop.permute.xlu1 %2201 }
0x1602   :  { %v2204_v23 = vmul.f32 %v2202_v61, %v2199_v50  ;;  %v2304_v61 = vld [vmem:[#allocation3 + $0x10] sm:$0xff] }
0x1603   :  { %v2176_v46 = vpop.permute.xlu0 %2175 }
0x1604   :  { %v2206_v5 = vadd.f32 %v2205_v11, %v2204_v23  ;;  %v2178_v29 = vmul.f32 %v2176_v46, %v2173_v35  ;;  %v2305_v23 = vld [vmem:[#allocation3 + $0x20] sm:$0xff] }
0x1606   :  { %v2180_v40 = vadd.f32 %v2179_v9, %v2178_v29  ;;  %2269 = vrot.lane.b32.xlu1 %v2206_v5, %s6700_s23 }
0x1608   :  { %2267 = vrot.lane.b32.xlu0 %v2180_v40, %s6700_s23 }
0x161f   :  { %v2260_v10 = vpop.permute.xlu1 %2259 }
0x1620   :  { %v2262_v48 = vmul.f32 %v2260_v10, %v2257_v60 }
0x1621   :  { %v2231_v4 = vpop.permute.xlu0 %2230 }
0x1622   :  { %v2264_v6 = vadd.f32 %v2263_v37, %v2262_v48  ;;  %v2233_v38 = vmul.f32 %v2231_v4, %v2228_v43  ;;  %v2306_v37 = vld [vmem:[#allocation3 + $0x30] sm:$0xff] }
0x1623   :  { %v595_v32 = vpop.permute.xlu1 %594 }
0x1624   :  { %v2235_v8 = vadd.f32 %v2234_v7, %v2233_v38  ;;  %600 = vst.msk [vmem:[#allocation3 + $0x78] sm:$0xff] %vm375_vm1, %v595_v32  ;;  %2280 = vrot.lane.b32.xlu1 %v2264_v6, %s6700_s23  ;;  %v2308_v38 = vld [vmem:[#allocation3 + $0x50] sm:$0xff] }
0x1625   :  { %v585_v41 = vpop.permute.xlu0 %584 }
0x1626   :  { %589 = vst.msk [vmem:[#allocation2 + $0x8] sm:$0xff] %vm375_vm1, %v585_v41  ;;  %2278 = vrot.lane.b32.xlu0 %v2235_v8, %s6700_s23  ;;  %s6703_s23 = smov 112  }
0x1627   :  { %v836_v12 = vpop.permute.xlu1 %835 }
0x1628   :  { %841 = vst.msk [vmem:[#allocation3 + $0x68] sm:$0xff] %vm375_vm1, %v836_v12  ;;  %2444 = vrot.lane.b32.xlu1 %v5734_v30, %s6702_s0 }
0x1629   :  { %v825_v53 = vpop.permute.xlu0 %824 }
0x162a   :  { %830 = vst.msk [vmem:[#allocation2 + $0x18] sm:$0xff] %vm375_vm1, %v825_v53  ;;  %2358 = vrot.lane.b32.xlu0 %v5734_v30, %s6701_s30 }
0x162b   :  { %v1077_v51 = vpop.permute.xlu1 %1076 }
0x162c   :  { %1082 = vst.msk [vmem:[#allocation3 + $0x58] sm:$0xff] %vm375_vm1, %v1077_v51 }
0x162d   :  { %v1066_v54 = vpop.permute.xlu0 %1065  ;;  %v2295_v5 = vld [vmem:[#allocation2 + $0x8] sm:$0xff] }
0x162e   :  { %1071 = vst.msk [vmem:[#allocation2 + $0x28] sm:$0xff] %vm375_vm1, %v1066_v54  ;;  %2401 = vrot.lane.b32.xlu0 %v5734_v30, %s6703_s23 }
0x162f   :  { %v1318_v14 = vpop.permute.xlu1 %1317  ;;  %v2317_v49 = vld [vmem:[#allocation3 + $0x68] sm:$0xff] }
0x1630   :  { %1323 = vst.msk [vmem:[#allocation3 + $0x48] sm:$0xff] %vm375_vm1, %v1318_v14  ;;  %v2307_v14 = vld [vmem:[#allocation3 + $0x40] sm:$0xff] }
0x1631   :  { %v1307_v20 = vpop.permute.xlu0 %1306  ;;  %v2296_v32 = vld [vmem:[#allocation2 + $0x18] sm:$0xff] }
0x1632   :  { %1312 = vst.msk [vmem:[#allocation2 + $0x38] sm:$0xff] %vm375_vm1, %v1307_v20 }
0x1633   :  { %v1559_v44 = vpop.permute.xlu1 %1558 }
0x1634   :  { %1564 = vst.msk [vmem:[#allocation3 + $0x38] sm:$0xff] %vm375_vm1, %v1559_v44 }
0x1635   :  { %v1548_v26 = vpop.permute.xlu0 %1547  ;;  %v2297_v9 = vld [vmem:[#allocation2 + $0x28] sm:$0xff] }
0x1636   :  { %1553 = vst.msk [vmem:[#allocation2 + $0x48] sm:$0xff] %vm375_vm1, %v1548_v26 }
0x1637   :  { %v1800_v21 = vpop.permute.xlu1 %1799 }
0x1638   :  { %1805 = vst.msk [vmem:[#allocation3 + $0x28] sm:$0xff] %vm375_vm1, %v1800_v21 }
0x1639   :  { %v1789_v56 = vpop.permute.xlu0 %1788 }
0x163a   :  { %1794 = vst.msk [vmem:[#allocation2 + $0x58] sm:$0xff] %vm375_vm1, %v1789_v56 }
0x163b   :  { %v2041_v22 = vpop.permute.xlu1 %2040 }
0x163c   :  { %2046 = vst.msk [vmem:[#allocation3 + $0x18] sm:$0xff] %vm375_vm1, %v2041_v22  ;;  %v2298_v22 = vld [vmem:[#allocation2 + $0x38] sm:$0xff] }
0x163d   :  { %v2030_v24 = vpop.permute.xlu0 %2029  ;;  %v2299_v56 = vld [vmem:[#allocation2 + $0x48] sm:$0xff] }
0x163e   :  { %2035 = vst.msk [vmem:[#allocation2 + $0x68] sm:$0xff] %vm375_vm1, %v2030_v24 }
0x1645   :  { %v2301_v16 = vld [vmem:[#allocation2 + $0x68] sm:$0xff] }
0x164c   :  { %2335 = vadd.xlane.f32.xlu1 %v2334_v45 }
0x164d   :  { %2338 = vadd.xlane.f32.xlu0 %v2337_v39 }
0x1650   :  { %2350 = vadd.xlane.f32.xlu1 %v2349_v52 }
0x1651   :  { %2341 = vadd.xlane.f32.xlu0 %v2340_v17  ;;  %v2313_v17 = vld [vmem:[#allocation3 + $0x28] sm:$0xff] }
0x1655   :  { %2344 = vadd.xlane.f32.xlu0 %v2343_v18 }
0x1659   :  { %2347 = vadd.xlane.f32.xlu0 %v2346_v15 }
0x165d   :  { %2353 = vadd.xlane.f32.xlu0 %v2352_v62  ;;  %v2314_v62 = vld [vmem:[#allocation3 + $0x38] sm:$0xff] }
0x1678   :  { %v2270_v25 = vpop.permute.xlu1 %2269 }
0x1679   :  { %2275 = vst.msk [vmem:[#allocation2 + $0x78] sm:$0xff] %vm375_vm1, %v2270_v25 }
0x167a   :  { %v2268_v2 = vpop.permute.xlu0 %2267 }
0x167b   :  { %2274 = vst.msk [vmem:[#allocation2 + $0x70] sm:$0xff] %vm375_vm1, %v2268_v2 }
0x1680   :  { %v2302_v13 = vld [vmem:[#allocation2 + $0x78] sm:$0xff] }
0x1682   :  { %v2294_v59 = vld [vmem:[#allocation2 + $0x70] sm:$0xff] }
0x1683   :  { %v2332_v63 = vmul.f32 %v5734_v30, %v2294_v59  ;;  %v2312_v30 = vld [vmem:[#allocation3 + $0x18] sm:$0xff] }
0x1685   :  { %v2355_v33 = vsel %vm375_vm1, %v2332_v63, 0.0 }
0x1686   :  { %2356 = vadd.xlane.f32.xlu0 %v2355_v33 }
0x1696   :  { %v2281_v28 = vpop.permute.xlu1 %2280 }
0x1697   :  { %2285 = vst.msk [vmem:[#allocation3 + $0x8] sm:$0xff] %vm375_vm1, %v2281_v28 }
0x1698   :  { %v2279_v3 = vpop.permute.xlu0 %2278 }
0x1699   :  { %2284 = vst.msk [vmem:[#allocation3] sm:$0xff] %vm375_vm1, %v2279_v3  ;;  %v2300_v3 = vld [vmem:[#allocation2 + $0x58] sm:$0xff] }
0x169a   :  { %v7395_v41 = vpop.permute.xlu1 %2444 }
0x169b   :  { %v2448_v36 = vmul.f32 %v7395_v41, %v2312_v30  ;;  %v2449_v18 = vmul.f32 %v7395_v41, %v2313_v17  ;;  %v2453_v58 = vmul.f32 %v7395_v41, %v2317_v49  ;;  %v2513_v30 = vlaneseq }
0x169c   :  { %v7384_v11 = vpop.permute.xlu0 %2358 }
0x169d   :  { %v2362_v46 = vmul.f32 %v7384_v11, %v2304_v61  ;;  %v2363_v60 = vmul.f32 %v7384_v11, %v2305_v23  ;;  %v2364_v7 = vmul.f32 %v7384_v11, %v2306_v37  ;;  %v2366_v51 = vmul.f32 %v7384_v11, %v2308_v38  ;;  %v2315_v61 = vld [vmem:[#allocation3 + $0x48] sm:$0xff] }
0x169e   :  { %v2311_v12 = vld [vmem:[#allocation3 + $0x8] sm:$0xff]  ;;  %v2365_v21 = vmul.f32 %v7384_v11, %v2307_v14  ;;  %v2458_v42 = vsel %vm375_vm1, %v2448_v36, 0.0  ;;  %v2367_v45 = vmul.f32 %v7384_v11, %v2309_v0  ;;  %v2461_v57 = vsel %vm375_vm1, %v2449_v18, 0.0 }
0x169f   :  { %v2372_v40 = vsel %vm375_vm1, %v2362_v46, 0.0  ;;  %v2375_v6 = vsel %vm375_vm1, %v2363_v60, 0.0  ;;  %v2378_v53 = vsel %vm375_vm1, %v2364_v7, 0.0  ;;  %v2447_v20 = vmul.f32 %v7395_v41, %v2311_v12  ;;  %v2316_v46 = vld [vmem:[#allocation3 + $0x58] sm:$0xff] }
0x16a0   :  { %v2303_v50 = vld [vmem:[#allocation3] sm:$0xff]  ;;  %v2402_v10 = vpop.permute.xlu0 %2401  ;;  %2373 = vadd.xlane.f32.xlu1 %v2372_v40  ;;  %v2384_v44 = vsel %vm375_vm1, %v2366_v51, 0.0  ;;  %v2381_v25 = vsel %vm375_vm1, %v2365_v21, 0.0  ;;  %v2387_v27 = vsel %vm375_vm1, %v2367_v45, 0.0  ;;  %v2368_v59 = vmul.f32 %v7384_v11, %v2310_v19 }
0x16a1   :  { %v2361_v35 = vmul.f32 %v7384_v11, %v2303_v50  ;;  %v2404_v48 = vmul.f32 %v2402_v10, %v2295_v5  ;;  %v2406_v43 = vmul.f32 %v2402_v10, %v2297_v9  ;;  %v2405_v54 = vmul.f32 %v2402_v10, %v2296_v32  ;;  %v2318_v9 = vld [vmem:[#allocation3 + $0x78] sm:$0xff] }
0x16a2   :  { %v2455_v24 = vsel %vm375_vm1, %v2447_v20, 0.0  ;;  %v2408_v2 = vmul.f32 %v2402_v10, %v2299_v56  ;;  %v2407_v28 = vmul.f32 %v2402_v10, %v2298_v22  ;;  %v2409_v34 = vmul.f32 %v2402_v10, %v2300_v3 }
0x16a3   :  { %v2369_v29 = vsel %vm375_vm1, %v2361_v35, 0.0  ;;  %v2412_v4 = vsel %vm375_vm1, %v2404_v48, 0.0  ;;  %v2418_v8 = vsel %vm375_vm1, %v2406_v43, 0.0  ;;  %v2415_v26 = vsel %vm375_vm1, %v2405_v54, 0.0 }
0x16a4   :  { %2370 = vadd.xlane.f32.xlu0 %v2369_v29  ;;  %2376 = vadd.xlane.f32.xlu1 %v2375_v6  ;;  %v2424_v31 = vsel %vm375_vm1, %v2408_v2, 0.0  ;;  %v2421_v1 = vsel %vm375_vm1, %v2407_v28, 0.0  ;;  %v2427_v39 = vsel %vm375_vm1, %v2409_v34, 0.0  ;;  %v2410_v55 = vmul.f32 %v2402_v10, %v2301_v16 }
0x16a5   :  { %v2411_v52 = vmul.f32 %v2402_v10, %v2302_v13  ;;  %v2473_v63 = vsel %vm375_vm1, %v2453_v58, 0.0  ;;  %v2390_v33 = vsel %vm375_vm1, %v2368_v59, 0.0  ;;  %v2450_v50 = vmul.f32 %v7395_v41, %v2314_v62  ;;  %v5735_v10 = vld [vmem:[#allocation4] ss:$0 sm:$0xff] }
0x16a6   :  { %v2430_v47 = vsel %vm375_vm1, %v2410_v55, 0.0  ;;  %v2451_v35 = vmul.f32 %v7395_v41, %v2315_v61  ;;  %v2452_v5 = vmul.f32 %v7395_v41, %v2316_v46  ;;  %v2454_v40 = vmul.f32 %v7395_v41, %v2318_v9 }
0x16a7   :  { %v2433_v15 = vsel %vm375_vm1, %v2411_v52, 0.0  ;;  %v2464_v23 = vsel %vm375_vm1, %v2450_v50, 0.0  ;;  %v2516_v34 = vshrl.u32 %v2513_v30, 7 }
0x16a8   :  { %2413 = vadd.xlane.f32.xlu0 %v2412_v4  ;;  %2379 = vadd.xlane.f32.xlu1 %v2378_v53  ;;  %v2467_v11 = vsel %vm375_vm1, %v2451_v35, 0.0  ;;  %v2470_v29 = vsel %vm375_vm1, %v2452_v5, 0.0  ;;  %v2476_v60 = vsel %vm375_vm1, %v2454_v40, 0.0 }
0x16ac   :  { %2419 = vadd.xlane.f32.xlu0 %v2418_v8  ;;  %2416 = vadd.xlane.f32.xlu1 %v2415_v26 }
0x16b0   :  { %2385 = vadd.xlane.f32.xlu0 %v2384_v44  ;;  %2382 = vadd.xlane.f32.xlu1 %v2381_v25 }
0x16b4   :  { %2456 = vadd.xlane.f32.xlu0 %v2455_v24  ;;  %2422 = vadd.xlane.f32.xlu1 %v2421_v1  ;;  %v2514_v1 = vand.u32 127, %v2513_v30 }
0x16b6   :  { %v7428_v52 = vsub.s32 %v2514_v1, %v2516_v34 }
0x16b8   :  { %2425 = vadd.xlane.f32.xlu0 %v2424_v31  ;;  %2459 = vadd.xlane.f32.xlu1 %v2458_v42 }
0x16bc   :  { %2428 = vadd.xlane.f32.xlu0 %v2427_v39  ;;  %2388 = vadd.xlane.f32.xlu1 %v2387_v27 }
0x16c0   :  { %2431 = vadd.xlane.f32.xlu0 %v2430_v47  ;;  %2462 = vadd.xlane.f32.xlu1 %v2461_v57 }
0x16c4   :  { %2434 = vadd.xlane.f32.xlu0 %v2433_v15  ;;  %2391 = vadd.xlane.f32.xlu1 %v2390_v33 }
0x16c8   :  { %2474 = vadd.xlane.f32.xlu0 %v2473_v63  ;;  %2465 = vadd.xlane.f32.xlu1 %v2464_v23 }
0x16cc   :  { %2468 = vadd.xlane.f32.xlu1 %v2467_v11 }
0x16d0   :  { %2471 = vadd.xlane.f32.xlu1 %v2470_v29 }
0x16d4   :  { %2477 = vadd.xlane.f32.xlu1 %v2476_v60 }
0x16d5   :  { %v2336_v7 = vpop.xlane.xlu1 %2335 }
0x16d6   :  { %v2339_v37 = vpop.xlane.xlu0 %2338 }
0x16d9   :  { %v2351_v32 = vpop.xlane.xlu1 %2350 }
0x16da   :  { %v2342_v48 = vpop.xlane.xlu0 %2341 }
0x16de   :  { %2494 = vperm.xlu0 %6451, %v5735_v10   ;;  %v2345_v43 = vpop.xlane.xlu0 %2344 }
0x16e2   :  { %v2348_v4 = vpop.xlane.xlu0 %2347 }
0x16e6   :  { %v2354_v6 = vpop.xlane.xlu0 %2353 }
0x170f   :  { %v2357_v38 = vpop.xlane.xlu0 %2356 }
0x1729   :  { %v2374_v12 = vpop.xlane.xlu1 %2373 }
0x172a   :  { %v2394_v16 = vadd.f32 %v2374_v12, %v2339_v37 }
0x172d   :  { %v2371_v8 = vpop.xlane.xlu0 %2370  ;;  %v2377_v51 = vpop.xlane.xlu1 %2376 }
0x172e   :  { %v2393_v36 = vadd.f32 %v2371_v8, %v2336_v7  ;;  %v2395_v0 = vadd.f32 %v2377_v51, %v2342_v48 }
0x1731   :  { %v2414_v53 = vpop.xlane.xlu0 %2413  ;;  %v2380_v41 = vpop.xlane.xlu1 %2379 }
0x1732   :  { %v2396_v39 = vadd.f32 %v2380_v41, %v2345_v43  ;;  %v2436_v45 = vadd.f32 %v2414_v53, %v2393_v36 }
0x1735   :  { %v2420_v54 = vpop.xlane.xlu0 %2419  ;;  %v2417_v20 = vpop.xlane.xlu1 %2416 }
0x1736   :  { %v2438_v13 = vadd.f32 %v2420_v54, %v2395_v0  ;;  %v2437_v17 = vadd.f32 %v2417_v20, %v2394_v16 }
0x1739   :  { %v2386_v14 = vpop.xlane.xlu0 %2385  ;;  %v2383_v26 = vpop.xlane.xlu1 %2382 }
0x173a   :  { %v2397_v47 = vadd.f32 %v2383_v26, %v2348_v4  ;;  %v2398_v57 = vadd.f32 %v2386_v14, %v2351_v32 }
0x173d   :  { %v2457_v44 = vpop.xlane.xlu0 %2456  ;;  %v2423_v56 = vpop.xlane.xlu1 %2422 }
0x173e   :  { %v2439_v27 = vadd.f32 %v2423_v56, %v2396_v39  ;;  %v2479_v18 = vadd.f32 %v2457_v44, %v2436_v45 }
0x1741   :  { %v2426_v21 = vpop.xlane.xlu0 %2425  ;;  %v2460_v24 = vpop.xlane.xlu1 %2459 }
0x1742   :  { %v2440_v49 = vadd.f32 %v2426_v21, %v2397_v47  ;;  %v2480_v19 = vadd.f32 %v2460_v24, %v2437_v17 }
0x1745   :  { %v2429_v22 = vpop.xlane.xlu0 %2428  ;;  %v2389_v2 = vpop.xlane.xlu1 %2388 }
0x1746   :  { %v2399_v58 = vadd.f32 %v2389_v2, %v2354_v6  ;;  %v2441_v35 = vadd.f32 %v2429_v22, %v2398_v57 }
0x1749   :  { %v2432_v25 = vpop.xlane.xlu0 %2431  ;;  %v2463_v28 = vpop.xlane.xlu1 %2462 }
0x174a   :  { %v2481_v15 = vadd.f32 %v2463_v28, %v2438_v13  ;;  %v2442_v60 = vadd.f32 %v2432_v25, %v2399_v58 }
0x174d   :  { %v2435_v3 = vpop.xlane.xlu0 %2434  ;;  %v2392_v31 = vpop.xlane.xlu1 %2391 }
0x174e   :  { %v2400_v46 = vadd.f32 %v2392_v31, %v2357_v38 }
0x1750   :  { %v2443_v32 = vadd.f32 %v2435_v3, %v2400_v46 }
0x1751   :  { %v2475_v42 = vpop.xlane.xlu0 %2474  ;;  %v2466_v55 = vpop.xlane.xlu1 %2465 }
0x1752   :  { %v2482_v59 = vadd.f32 %v2466_v55, %v2439_v27  ;;  %v2485_v4 = vadd.f32 %v2475_v42, %v2442_v60 }
0x1755   :  { %v2469_v63 = vpop.xlane.xlu1 %2468 }
0x1756   :  { %v2483_v61 = vadd.f32 %v2469_v63, %v2440_v49 }
0x1759   :  { %v2495_v62 = vpop.permute.xlu0 %2494  ;;  %v2472_v10 = vpop.xlane.xlu1 %2471 }
0x175a   :  { %v2497_v33 = vadd.f32 %v2495_v62, %v2479_v18  ;;  %v2498_v50 = vadd.f32 %v2495_v62, %v2480_v19  ;;  %v2499_v23 = vadd.f32 %v2495_v62, %v2481_v15  ;;  %v2500_v11 = vadd.f32 %v2495_v62, %v2482_v59 }
0x175b   :  { %v2501_v5 = vadd.f32 %v2495_v62, %v2483_v61  ;;  %v2484_v37 = vadd.f32 %v2472_v10, %v2441_v35  ;;  %v2503_v53 = vadd.f32 %v2495_v62, %v2485_v4 }
0x175c   :  { %v2518_v9 = vrot.slane %v2497_v33, %v7428_v52  ;;  %v2522_v29 = vrot.slane %v2498_v50, %v7428_v52  ;;  %v2526_v40 = vrot.slane %v2499_v23, %v7428_v52  ;;  %v2530_v48 = vrot.slane %v2500_v11, %v7428_v52 }
0x175d   :  { %v2534_v6 = vrot.slane %v2501_v5, %v7428_v52  ;;  %v2502_v38 = vadd.f32 %v2495_v62, %v2484_v37  ;;  %v2478_v12 = vpop.xlane.xlu1 %2477  ;;  %v2542_v44 = vrot.slane %v2503_v53, %v7428_v52 }
0x175e   :  { %v2548_v43 = vsel %vm2547_vm3, %v2522_v29, %v2518_v9  ;;  %v2486_v54 = vadd.f32 %v2478_v12, %v2443_v32 }
0x175f   :  { %v2550_v7 = vsel %vm2549_vm4, %v2526_v40, %v2548_v43  ;;  %v2538_v51 = vrot.slane %v2502_v38, %v7428_v52 }
0x1760   :  { %v2552_v8 = vsel %vm2551_vm5, %v2530_v48, %v2550_v7  ;;  %v2504_v14 = vadd.f32 %v2495_v62, %v2486_v54 }
0x1761   :  { %v2554_v41 = vsel %vm2553_vm6, %v2534_v6, %v2552_v8 }
0x1762   :  { %v2556_v20 = vsel %vm2555_vm7, %v2538_v51, %v2554_v41  ;;  %v2546_v26 = vrot.slane %v2504_v14, %v7428_v52 }
0x1763   :  { %v2558_v21 = vsel %vm2557_vm8, %v2542_v44, %v2556_v20 }
0x1764   :  { %v2560_v56 = vsel %vm2559_vm9, %v2546_v26, %v2558_v21 }
0x1765   :  { %2562 = vxpose.xlu1.b32.start.end [1/1] (short) (narrow) %v2560_v56, 8 }
0x17e1   :  { %v2578_v22 = vpop.trf.xlu1 }
0x17e2   :  { %v2594_v24 = vsel %vm375_vm1, %v2578_v22, -inf }
0x17e3   :  { %2595 = vmax.xlane.f32.xlu0 %v2594_v24 }
0x186c   :  { %v2596_v25 = vpop.xlane.xlu0 %2595 }
0x186d   :  { %v2597_v2 = vsub.f32 %v2578_v22, %v2596_v25 }
0x186f   :  { %v2598_v28 = vmul.f32 1.442695, %v2597_v2 }
0x1871   :  { %6452 = vpow2.f32 %v2598_v28 }
0x187e   :  { %v6453_v3 = vpop.eup %6452 }
0x187f   :  { %v2600_v30 = vsel %vm375_vm1, %v6453_v3, 0.0 }
0x1880   :  { %2601 = vadd.xlane.f32.xlu1 %v2600_v30 }
0x1909   :  { %v2602_v31 = vpop.xlane.xlu1 %2601 }
0x190a   :  { %6454 = vlog2.f32 %v2602_v31 }
0x1917   :  { %v6455_v1 = vpop.eup %6454 }
0x1918   :  { %v2604_v34 = vmul.f32 0.6931472, %v6455_v1 }
0x191a   :  { %v2605_v36 = vadd.f32 %v2604_v34, %v2596_v25 }
0x191c   :  { %v2606_v16 = vsub.f32 %v2578_v22, %v2605_v36 }
0x191e   :  { %v2607_v0 = vsel %vm375_vm1, %v2606_v16, 0.0 }
0x191f   :  { %2608 = vst [vmem:[%s8188_s21] sm:$0xff] %v2607_v0 }
0x1920   :  { %v2635_v39 = vld [vmem:[%s8179_s11] sm:$0xff]  ;;  %v2610_v55 = vld [vmem:[#allocation2 + $0x10] sm:$0xff]  ;;  %v2869_v13 = vld [vmem:[%s8179_s11 + $0x8] sm:$0xff]  ;;  %s3392_s7 = sld [smem:[#allocation6]]  ;;  %v6705_v48 = vmov 0.0   ;;  %s6706_s11 = smov 112  }
0x1921   :  { %v2609_v42 = vld [vmem:[#allocation2] sm:$0xff]  ;;  %6087 = vmatprep.subr.mxu0 %v2635_v39  ;;  %v2612_v27 = vld [vmem:[#allocation2 + $0x30] sm:$0xff]  ;;  %v6459_v18 = vld [vmem:[%s8202_s4 + $0x8] sm:$0xff]   ;;  %s5788_s1 = sld [smem:[#allocation8 + $0x7]]  ;;  %s6707_s24 = smov 104  }
0x1922   :  { %6089 = vmatprep.mubr.msk.f32.mxu0 %vm375_vm1, %v2609_v42  ;;  %v6457_v45 = vld [vmem:[%s8177_s9] sm:$0xff]   ;;  %6088 = vmatpush3.msra.mxu0 %v2635_v39  ;;  %v6460_v19 = vld [vmem:[%s8202_s4 + $0x10] sm:$0xff]   ;;  %v6461_v62 = vld [vmem:[%s8202_s4 + $0x18] sm:$0xff]   ;;  %s6708_s6 = smov 88   ;;  %s6709_s25 = smov 16  }
0x1923   :  { %v2611_v17 = vld [vmem:[#allocation2 + $0x20] sm:$0xff]  ;;  %6090 = vmatmul.mubr.msk.f32.vlgmr.msra.gmra.mxu0 %vm375_vm1, %v2610_v55  ;;  %6101 = vmatprep.subr.bf16.mxu1 %v6457_v45  ;;  %v2614_v15 = vld [vmem:[#allocation2 + $0x50] sm:$0xff]  ;;  %v3250_v50 = vld [vmem:[%s8180_s12 + $0x8] sm:$0xff]  ;;  %s6710_s28 = smov 120   ;;  %s5796_s29 = sld [smem:[#allocation6 + $0x1]] }
0x1924   :  { %v6458_v47 = vld [vmem:[%s8202_s4] sm:$0xff]   ;;  %6111 = vmatprep.subr.mxu0 %v2869_v13  ;;  %6102 = vmatpush3.bf16.msra.mxu1 %v6457_v45  ;;  %v2616_v63 = vld [vmem:[#allocation2 + $0x70] sm:$0xff]  ;;  %v6464_v60 = vld [vmem:[%s8202_s4 + $0x8] sm:$0xff]   ;;  %s5797_s30 = sld [smem:[#allocation8 + $0x6]] }
0x1925   :  { %6112 = vmatpush3.msra.mxu0 %v2869_v13  ;;  %6092 = vmatprep.mubr.msk.f32.mxu0 %vm375_vm1, %v2611_v17  ;;  %v2613_v49 = vld [vmem:[#allocation2 + $0x40] sm:$0xff]  ;;  %v2618_v61 = vld [vmem:[#allocation3 + $0x10] sm:$0xff]  ;;  %v6466_v37 = vld [vmem:[%s8202_s4 + $0x18] sm:$0xff]   ;;  %s5806_s0 = sld [smem:[#allocation6 + $0x2]] }
0x1926   :  { %6103 = vmatprep.mubr.msk.bf16.mxu1 %vm143_vm0, %v6458_v47  ;;  %v2615_v57 = vld [vmem:[#allocation2 + $0x60] sm:$0xff]  ;;  %v2620_v46 = vld [vmem:[#allocation3 + $0x30] sm:$0xff]  ;;  %v3394_v43 = vstv %s3392_s7  ;;  %s5807_s23 = sld [smem:[#allocation8 + $0x5]] }
0x1927   :  { %6093 = vmatmul.mubr.msk.f32.gmra.mxu0 %vm375_vm1, %v2612_v27  ;;  %6104 = vmatmul.mubr.msk.bf16.vlgmr.msra.gmra.mxu1 %vm143_vm0, %v6459_v18  ;;  %v6462_v58 = vld [vmem:[%s8178_s10] sm:$0xff]   ;;  %v2622_v5 = vld [vmem:[#allocation3 + $0x50] sm:$0xff]  ;;  %v7542_v4 = vmul.f32 0.0, %v3394_v43  ;;  %v3396_v6 = vstv %s5788_s1  ;;  %s5816_s10 = sld [smem:[#allocation6 + $0x3]] }
0x1928   :  { %6095 = vmatprep.mubr.msk.f32.mxu0 %vm375_vm1, %v2613_v49  ;;  %6107 = vmatprep.mubr.msk.bf16.mxu1 %vm143_vm0, %v6460_v19  ;;  %v3041_v59 = vld [vmem:[%s8180_s12] sm:$0xff]  ;;  %v2624_v29 = vld [vmem:[#allocation3 + $0x70] sm:$0xff]  ;;  %v7548_v7 = vmul.f32 0.0, %v3396_v6  ;;  %s5817_s17 = sld [smem:[#allocation8 + $0x4]] }
0x1929   :  { %6139 = vmatprep.subr.bf16.mxu0 %v6462_v58  ;;  %6125 = vmatprep.subr.mxu1 %v3041_v59  ;;  %v2617_v33 = vld [vmem:[#allocation3] sm:$0xff]  ;;  %v6465_v10 = vld [vmem:[%s8202_s4 + $0x10] sm:$0xff]   ;;  %s5827_s18 = sld [smem:[#allocation8 + $0x3]] }
0x192a   :  { %6126 = vmatpush3.msra.mxu1 %v3041_v59  ;;  %v2619_v23 = vld [vmem:[#allocation3 + $0x20] sm:$0xff]  ;;  %s5836_s20 = sld [smem:[#allocation6 + $0x5]] }
0x192b   :  { %6096 = vmatmul.mubr.msk.f32.gmra.mxu0 %vm375_vm1, %v2614_v15  ;;  %6149 = vmatprep.subr.mxu1 %v3250_v50  ;;  %v7498_v35 = vld [vmem:[%s8183_s15] sm:$0xff]  ;;  %s5837_s2 = sld [smem:[#allocation8 + $0x2]] }
0x192c   :  { %6098 = vmatprep.mubr.msk.f32.mxu0 %vm375_vm1, %v2615_v57  ;;  %v2621_v11 = vld [vmem:[#allocation3 + $0x40] sm:$0xff]  ;;  %s5847_s3 = sld [smem:[#allocation8 + $0x1]] }
0x192d   :  { %v2623_v9 = vld [vmem:[#allocation3 + $0x60] sm:$0xff]  ;;  %s5856_s21 = sld [smem:[#allocation6 + $0x7]] }
0x192e   :  { %v6463_v40 = vld [vmem:[%s8202_s4] sm:$0xff]   ;;  %s5079_s1 = sld [smem:[#allocation8]] }
0x192f   :  { %6099 = vmatmul.mubr.msk.f32.gmra.mxu0 %vm375_vm1, %v2616_v63  ;;  %6108 = vmatmul.mubr.msk.bf16.gmra.mxu1 %vm143_vm0, %v6461_v62  ;;  %v5761_v2 = vld [vmem:[%s8181_s13] ss:$0 sm:$0xff] }
0x1930   :  { %6113 = vmatprep.mubr.msk.f32.mxu0 %vm375_vm1, %v2617_v33  ;;  %6127 = vmatprep.mubr.msk.f32.mxu1 %vm375_vm1, %v2609_v42 }
0x1933   :  { %6114 = vmatmul.mubr.msk.f32.vlgmr.msra.gmra.mxu0 %vm375_vm1, %v2618_v61 }
0x1934   :  { %6140 = vmatpush3.bf16.msra.mxu0 %v6462_v58  ;;  %6116 = vmatprep.mubr.msk.f32.mxu0 %vm375_vm1, %v2619_v23 }
0x1935   :  { %6163 = vmatprep.subr.mxu0 %v7498_v35 }
0x1937   :  { %6117 = vmatmul.mubr.msk.f32.gmra.mxu0 %vm375_vm1, %v2620_v46  ;;  %6128 = vmatmul.mubr.msk.f32.vlgmr.msra.gmra.mxu1 %vm375_vm1, %v2610_v55 }
0x1938   :  { %6119 = vmatprep.mubr.msk.f32.mxu0 %vm375_vm1, %v2621_v11  ;;  %6130 = vmatprep.mubr.msk.f32.mxu1 %vm375_vm1, %v2611_v17 }
0x1939   :  { %6150 = vmatpush3.msra.mxu1 %v3250_v50 }
0x193a   :  { %6171 = vmatprep.subr.mxu1 %v7498_v35 }
0x193b   :  { %6120 = vmatmul.mubr.msk.f32.gmra.mxu0 %vm375_vm1, %v2622_v5  ;;  %6131 = vmatmul.mubr.msk.f32.gmra.mxu1 %vm375_vm1, %v2612_v27 }
0x193c   :  { %6122 = vmatprep.mubr.msk.f32.mxu0 %vm375_vm1, %v2623_v9  ;;  %6133 = vmatprep.mubr.msk.f32.mxu1 %vm375_vm1, %v2613_v49 }
0x193f   :  { %6123 = vmatmul.mubr.msk.f32.gmra.mxu0 %vm375_vm1, %v2624_v29  ;;  %6134 = vmatmul.mubr.msk.f32.gmra.mxu1 %vm375_vm1, %v2614_v15 }
0x1940   :  { %6136 = vmatprep.mubr.msk.f32.mxu1 %vm375_vm1, %v2615_v57  ;;  %6141 = vmatprep.mubr.msk.bf16.mxu0 %vm143_vm0, %v6463_v40 }
0x1943   :  { %6137 = vmatmul.mubr.msk.f32.gmra.mxu1 %vm375_vm1, %v2616_v63  ;;  %6142 = vmatmul.mubr.msk.bf16.vlgmr.msra.gmra.mxu0 %vm143_vm0, %v6464_v60 }
0x1944   :  { %6164 = vmatpush3.msra.mxu0 %v7498_v35  ;;  %6151 = vmatprep.mubr.msk.f32.mxu1 %vm375_vm1, %v2617_v33 }
0x1945   :  { %6145 = vmatprep.mubr.msk.bf16.mxu0 %vm143_vm0, %v6465_v10  ;;  %6179 = vmatprep.subr.mxu0 %v7498_v35 }
0x1947   :  { %6152 = vmatmul.mubr.msk.f32.vlgmr.msra.gmra.mxu1 %vm375_vm1, %v2618_v61 }
0x1948   :  { %6154 = vmatprep.mubr.msk.f32.mxu1 %vm375_vm1, %v2619_v23  ;;  %6172 = vmatpush3.msra.mxu1 %v7498_v35 }
0x1949   :  { %6187 = vmatprep.subr.mxu1 %v7498_v35 }
0x194b   :  { %6146 = vmatmul.mubr.msk.bf16.gmra.mxu0 %vm143_vm0, %v6466_v37  ;;  %6155 = vmatmul.mubr.msk.f32.gmra.mxu1 %vm375_vm1, %v2620_v46 }
0x194c   :  { %6157 = vmatprep.mubr.msk.f32.mxu1 %vm375_vm1, %v2621_v11  ;;  %6165 = vmatprep.mubr.f32.mxu0 %v6705_v48 }
0x194f   :  { %6158 = vmatmul.mubr.msk.f32.gmra.mxu1 %vm375_vm1, %v2622_v5 }
0x1950   :  { %6160 = vmatprep.mubr.msk.f32.mxu1 %vm375_vm1, %v2623_v9 }
0x1953   :  { %6161 = vmatmul.mubr.msk.f32.gmra.mxu1 %vm375_vm1, %v2624_v29  ;;  %6166 = vmatmul.mubr.msk.f32.vlgmr.msra.gmra.mxu0 %vm375_vm1, %v7542_v4 }
0x1954   :  { %6168 = vmatprep.mubr.f32.mxu0 %v6705_v48  ;;  %6180 = vmatpush3.msra.mxu0 %v7498_v35 }
0x1955   :  { %6195 = vmatprep.subr.mxu0 %v7498_v35 }
0x1957   :  { %6169 = vmatmul.mubr.msk.f32.gmra.mxu0 %vm375_vm1, %v7548_v7 }
0x19e3   :  { %v6091_v38 = vpop.f32.mrf.mxu0 }
0x19e5   :  { %v2726_v32 = vpop.f32.mrf.mxu0 }
0x19e7   :  { %v6094_v8 = vpop.f32.mrf.mxu0  ;;  %v6105_v12 = vpop.f32.mrf.mxu1 }
0x19e9   :  { %v2736_v53 = vpop.f32.mrf.mxu0  ;;  %v2838_v51 = vpop.f32.mrf.mxu1 }
0x19ea   :  { %v2839_v28 = vadd.f32 %v2838_v51, %v2726_v32  ;;  %v2847_v39 = vadd.f32 %v6105_v12, %v2736_v53  ;;  %v5787_v53 = vld [vmem:[%s8182_s14] ss:$0 sm:$0xff] }
0x19eb   :  { %v6097_v54 = vpop.f32.mrf.mxu0  ;;  %v6106_v41 = vpop.f32.mrf.mxu1 }
0x19ec   :  { %v2850_v1 = vadd.f32 %v6106_v41, %v6094_v8 }
0x19ed   :  { %v2746_v14 = vpop.f32.mrf.mxu0  ;;  %v2841_v20 = vpop.f32.mrf.mxu1 }
0x19ee   :  { %v2842_v22 = vadd.f32 %v6091_v38, %v2841_v20 }
0x19ef   :  { %v6100_v44 = vpop.f32.mrf.mxu0  ;;  %v6109_v26 = vpop.f32.mrf.mxu1 }
0x19f1   :  { %v2756_v21 = vpop.f32.mrf.mxu0  ;;  %v2854_v56 = vpop.f32.mrf.mxu1 }
0x19f2   :  { %v2855_v19 = vadd.f32 %v2854_v56, %v2746_v14  ;;  %v2863_v23 = vadd.f32 %v6109_v26, %v2756_v21 }
0x19f3   :  { %v6110_v24 = vpop.f32.mrf.mxu1  ;;  %v6115_v25 = vpop.f32.mrf.mxu0 }
0x19f4   :  { %v3000_v3 = vadd.f32 %v6115_v25, %v2842_v22  ;;  %v2866_v62 = vadd.f32 %v6110_v24, %v6100_v44 }
0x19f5   :  { %v2857_v30 = vpop.f32.mrf.mxu1  ;;  %v2960_v31 = vpop.f32.mrf.mxu0 }
0x19f6   :  { %v3015_v34 = vadd.f32 %v5761_v2, %v3000_v3  ;;  %v2999_v36 = vadd.f32 %v2960_v31, %v2839_v28  ;;  %v2858_v17 = vadd.f32 %v6097_v54, %v2857_v30 }
0x19f7   :  { %v6118_v16 = vpop.f32.mrf.mxu0  ;;  %v6129_v0 = vpop.f32.mrf.mxu1 }
0x19f8   :  { %3024 = vst.msk [vmem:[#allocation12 + $0x8] sm:$0xff] %vm221_vm2, %v3015_v34  ;;  %v3014_v42 = vadd.f32 %v5761_v2, %v2999_v36  ;;  %v3002_v55 = vadd.f32 %v6118_v16, %v2850_v1 }
0x19f9   :  { %v2970_v45 = vpop.f32.mrf.mxu0  ;;  %v3108_v13 = vpop.f32.mrf.mxu1 }
0x19fa   :  { %3023 = vst.msk [vmem:[#allocation12] sm:$0xff] %vm221_vm2, %v3014_v42  ;;  %v3017_v47 = vadd.f32 %v5761_v2, %v3002_v55  ;;  %v3001_v27 = vadd.f32 %v2970_v45, %v2847_v39 }
0x19fb   :  { %v6121_v18 = vpop.f32.mrf.mxu0  ;;  %v6132_v49 = vpop.f32.mrf.mxu1 }
0x19fc   :  { %3026 = vst.msk [vmem:[#allocation12 + $0x18] sm:$0xff] %vm221_vm2, %v3017_v47  ;;  %v3016_v15 = vadd.f32 %v5761_v2, %v3001_v27  ;;  %v3004_v57 = vadd.f32 %v6121_v18, %v2858_v17 }
0x19fd   :  { %v2980_v58 = vpop.f32.mrf.mxu0  ;;  %v3118_v59 = vpop.f32.mrf.mxu1 }
0x19fe   :  { %3025 = vst.msk [vmem:[#allocation12 + $0x10] sm:$0xff] %vm221_vm2, %v3016_v15  ;;  %v3019_v63 = vadd.f32 %v5761_v2, %v3004_v57  ;;  %v3003_v33 = vadd.f32 %v2980_v58, %v2855_v19 }
0x19ff   :  { %v6124_v50 = vpop.f32.mrf.mxu0  ;;  %v6135_v61 = vpop.f32.mrf.mxu1 }
0x1a00   :  { %3028 = vst.msk [vmem:[#allocation12 + $0x28] sm:$0xff] %vm221_vm2, %v3019_v63  ;;  %v3018_v46 = vadd.f32 %v5761_v2, %v3003_v33  ;;  %v3006_v11 = vadd.f32 %v6124_v50, %v2866_v62 }
0x1a01   :  { %v2990_v5 = vpop.f32.mrf.mxu0  ;;  %v3128_v9 = vpop.f32.mrf.mxu1 }
0x1a02   :  { %3027 = vst.msk [vmem:[#allocation12 + $0x20] sm:$0xff] %vm221_vm2, %v3018_v46  ;;  %v3021_v29 = vadd.f32 %v5761_v2, %v3006_v11  ;;  %v3005_v40 = vadd.f32 %v2990_v5, %v2863_v23  ;;  %v3389_v23 = vld [vmem:[#allocation12] sm:$0xff] }
0x1a03   :  { %v6138_v60 = vpop.f32.mrf.mxu1  ;;  %v6143_v10 = vpop.f32.mrf.mxu0 }
0x1a04   :  { %3030 = vst.msk [vmem:[#allocation12 + $0x38] sm:$0xff] %vm221_vm2, %v3021_v29  ;;  %v3020_v37 = vadd.f32 %v5761_v2, %v3005_v40  ;;  %v3228_v44 = vadd.f32 %v6143_v10, %v3118_v59 }
0x1a05   :  { %v3138_v48 = vpop.f32.mrf.mxu1  ;;  %v3219_v43 = vpop.f32.mrf.mxu0 }
0x1a06   :  { %3029 = vst.msk [vmem:[#allocation12 + $0x30] sm:$0xff] %vm221_vm2, %v3020_v37  ;;  %v3220_v6 = vadd.f32 %v3219_v43, %v3108_v13 }
0x1a07   :  { %v6144_v38 = vpop.f32.mrf.mxu0  ;;  %v6153_v32 = vpop.f32.mrf.mxu1 }
0x1a08   :  { %v3231_v8 = vadd.f32 %v6144_v38, %v6132_v49 }
0x1a09   :  { %v3222_v12 = vpop.f32.mrf.mxu0  ;;  %v3317_v51 = vpop.f32.mrf.mxu1 }
0x1a0a   :  { %v3223_v54 = vadd.f32 %v6129_v0, %v3222_v12  ;;  %v3356_v41 = vadd.f32 %v3317_v51, %v3220_v6  ;;  %v7574_v0 = vld [vmem:[%s8184_s16] ss:$0 sm:$0xff] }
0x1a0b   :  { %v6147_v14 = vpop.f32.mrf.mxu0  ;;  %v6156_v20 = vpop.f32.mrf.mxu1 }
0x1a0c   :  { %v3357_v26 = vadd.f32 %v6153_v32, %v3223_v54  ;;  %v3371_v21 = vadd.f32 %v5787_v53, %v3356_v41  ;;  %v3359_v56 = vadd.f32 %v6156_v20, %v3231_v8  ;;  %v3244_v55 = vadd.f32 %v6147_v14, %v3138_v48 }
0x1a0d   :  { %v3235_v22 = vpop.f32.mrf.mxu0  ;;  %v3327_v24 = vpop.f32.mrf.mxu1 }
0x1a0e   :  { %v3372_v25 = vadd.f32 %v5787_v53, %v3357_v26  ;;  %3379 = vst.msk [vmem:[#allocation13] sm:$0xff] %vm221_vm2, %v3371_v21  ;;  %v3374_v2 = vadd.f32 %v5787_v53, %v3359_v56  ;;  %v3236_v28 = vadd.f32 %v3235_v22, %v3128_v9  ;;  %v3358_v3 = vadd.f32 %v3327_v24, %v3228_v44 }
0x1a0f   :  { %v6148_v30 = vpop.f32.mrf.mxu0  ;;  %v6159_v31 = vpop.f32.mrf.mxu1 }
0x1a10   :  { %3380 = vst.msk [vmem:[#allocation13 + $0x8] sm:$0xff] %vm221_vm2, %v3372_v25  ;;  %3382 = vst.msk [vmem:[#allocation13 + $0x18] sm:$0xff] %vm221_vm2, %v3374_v2  ;;  %v3373_v1 = vadd.f32 %v5787_v53, %v3358_v3  ;;  %v3247_v34 = vadd.f32 %v6148_v30, %v6138_v60 }
0x1a11   :  { %v3238_v36 = vpop.f32.mrf.mxu0  ;;  %v3337_v16 = vpop.f32.mrf.mxu1 }
0x1a12   :  { %3381 = vst.msk [vmem:[#allocation13 + $0x10] sm:$0xff] %vm221_vm2, %v3373_v1  ;;  %v3239_v39 = vadd.f32 %v6135_v61, %v3238_v36  ;;  %v3360_v42 = vadd.f32 %v3337_v16, %v3236_v28 }
0x1a13   :  { %v6162_v45 = vpop.f32.mrf.mxu1  ;;  %v6167_v13 = vpop.f32.mrf.mxu0 }
0x1a14   :  { %v3361_v17 = vadd.f32 %v6159_v31, %v3239_v39  ;;  %v3375_v47 = vadd.f32 %v5787_v53, %v3360_v42  ;;  %v3363_v27 = vadd.f32 %v6162_v45, %v3247_v34  ;;  %v3485_v18 = vadd.f32 %v6167_v13, %v7574_v0 }
0x1a15   :  { %v3347_v49 = vpop.f32.mrf.mxu1  ;;  %v3479_v19 = vpop.f32.mrf.mxu0 }
0x1a16   :  { %v3376_v15 = vadd.f32 %v5787_v53, %v3361_v17  ;;  %3383 = vst.msk [vmem:[#allocation13 + $0x20] sm:$0xff] %vm221_vm2, %v3375_v47  ;;  %v3378_v57 = vadd.f32 %v5787_v53, %v3363_v27  ;;  %v3362_v58 = vadd.f32 %v3347_v49, %v3244_v55  ;;  %3532 = vrot.lane.b32.xlu1 %v3485_v18, %s6706_s11  ;;  %v3635_v49 = vstv %s5796_s29 }
0x1a17   :  { %v6170_v59 = vpop.f32.mrf.mxu0  ;;  %v3480_v63 = vadd.f32 %v7574_v0, %v3479_v19  ;;  %v3524_v46 = vadd.f32 %v3485_v18, %v3389_v23 }
0x1a18   :  { %3384 = vst.msk [vmem:[#allocation13 + $0x28] sm:$0xff] %vm221_vm2, %v3376_v15  ;;  %3386 = vst.msk [vmem:[#allocation13 + $0x38] sm:$0xff] %vm221_vm2, %v3378_v57  ;;  %v3377_v62 = vadd.f32 %v5787_v53, %v3362_v58  ;;  %v3495_v33 = vadd.f32 %v6170_v59, %v7574_v0 }
0x1a19   :  { %v3489_v50 = vpop.f32.mrf.mxu0  ;;  %v5793_v11 = vmul.f32 -1.442695, %v3524_v46  ;;  %v3498_v5 = vadd.f32 %v3480_v63, %v3389_v23 }
0x1a1a   :  { %3385 = vst.msk [vmem:[#allocation13 + $0x30] sm:$0xff] %vm221_vm2, %v3377_v62  ;;  %3580 = vrot.lane.b32.xlu0 %v3495_v33, %s6707_s24  ;;  %3506 = vrot.lane.b32.xlu1 %v3480_v63, %s6706_s11  ;;  %v3490_v61 = vadd.f32 %v7574_v0, %v3489_v50 }
0x1a1b   :  { %6467 = vpow2.f32 %v5793_v11  ;;  %v5792_v9 = vmul.f32 -1.442695, %v3498_v5 }
0x1a1d   :  { %6469 = vpow2.f32 %v5792_v9 }
0x1a1e   :  { %3551 = vrot.lane.b32.xlu0 %v3490_v61, %s6707_s24  ;;  %3561 = vrot.lane.b32.xlu1 %v3490_v61, %s6708_s6 }
0x1a1f   :  { %v3391_v38 = vld [vmem:[#allocation13 + $0x38] sm:$0xff] }
0x1a22   :  { %3590 = vrot.lane.b32.xlu0 %v3495_v33, %s6708_s6 }
0x1a28   :  { %v6468_v29 = vpop.eup %6467 }
0x1a29   :  { %v3528_v40 = vadd.f32 1.0, %v6468_v29 }
0x1a2a   :  { %v6470_v60 = vpop.eup %6469 }
0x1a2b   :  { %6471 = vrcp.f32 %v3528_v40  ;;  %v3502_v10 = vadd.f32 1.0, %v6470_v60 }
0x1a2d   :  { %6473 = vrcp.f32 %v3502_v10 }
0x1a38   :  { %v6472_v37 = vpop.eup %6471 }
0x1a39   :  { %v3542_v17 = vsub.f32 1.0, %v6472_v37  ;;  %v3548_v27 = vmul.f32 %v6472_v37, %v7542_v4 }
0x1a3a   :  { %v6474_v6 = vpop.eup %6473 }
0x1a3b   :  { %v3516_v15 = vsub.f32 1.0, %v6474_v6  ;;  %v3522_v58 = vmul.f32 0.0, %v6474_v6 }
0x1a88   :  { %v3533_v48 = vpop.permute.xlu1 %3532 }
0x1a89   :  { %v3535_v43 = vmul.f32 %v6472_v37, %v3533_v48 }
0x1a8b   :  { %3537 = vrot.lane.b32.xlu0 %v3535_v43, %s6709_s25 }
0x1a8c   :  { %v3581_v32 = vpop.permute.xlu0 %3580  ;;  %v3507_v8 = vpop.permute.xlu1 %3506 }
0x1a8d   :  { %v3583_v12 = vadd.f32 %v3581_v32, %v3391_v38  ;;  %v3509_v53 = vmul.f32 %v6474_v6, %v3507_v8 }
0x1a8f   :  { %v5795_v51 = vmul.f32 -1.442695, %v3583_v12  ;;  %3511 = vrot.lane.b32.xlu1 %v3509_v53, %s6709_s25 }
0x1a90   :  { %v3552_v54 = vpop.permute.xlu0 %3551  ;;  %v3562_v2 = vpop.permute.xlu1 %3561 }
0x1a91   :  { %6475 = vpow2.f32 %v5795_v51  ;;  %v3554_v41 = vadd.f32 %v3552_v54, %v3391_v38  ;;  %v3630_v54 = vld [vmem:[#allocation12 + $0x8] sm:$0xff] }
0x1a93   :  { %v5794_v14 = vmul.f32 -1.442695, %v3554_v41 }
0x1a94   :  { %v3591_v22 = vpop.permute.xlu0 %3590 }
0x1a95   :  { %6477 = vpow2.f32 %v5794_v14 }
0x1a9e   :  { %v6476_v20 = vpop.eup %6475 }
0x1a9f   :  { %v3587_v44 = vadd.f32 1.0, %v6476_v20 }
0x1aa1   :  { %6479 = vrcp.f32 %v3587_v44 }
0x1aa2   :  { %v6478_v26 = vpop.eup %6477 }
0x1aa3   :  { %v3558_v21 = vadd.f32 1.0, %v6478_v26 }
0x1aa5   :  { %6481 = vrcp.f32 %v3558_v21 }
0x1aae   :  { %v6480_v56 = vpop.eup %6479 }
0x1aaf   :  { %v3593_v24 = vmul.f32 %v6480_v56, %v3591_v22  ;;  %v3600_v4 = vsub.f32 1.0, %v6480_v56  ;;  %v3606_v50 = vmul.f32 %v6480_v56, %v7548_v7 }
0x1ab1   :  { %3595 = vrot.lane.b32.xlu0 %v3593_v24, %s6709_s25  ;;  %v3632_v24 = vld [vmem:[#allocation13 + $0x30] sm:$0xff] }
0x1ab2   :  { %v6482_v25 = vpop.eup %6481 }
0x1ab3   :  { %v3564_v28 = vmul.f32 %v6482_v25, %v3562_v2  ;;  %v3571_v11 = vsub.f32 1.0, %v6482_v25  ;;  %v3577_v9 = vmul.f32 0.0, %v6482_v25 }
0x1ab5   :  { %3566 = vrot.lane.b32.xlu1 %v3564_v28, %s6709_s25 }
0x1afd   :  { %v3538_v3 = vpop.permute.xlu0 %3537 }
0x1afe   :  { %v3540_v30 = vadd.f32 %v3538_v3, %v3389_v23 }
0x1b00   :  { %6483 = vtanh.f32 %v3540_v30 }
0x1b01   :  { %v3512_v31 = vpop.permute.xlu1 %3511 }
0x1b02   :  { %v3514_v1 = vadd.f32 %v3512_v31, %v3389_v23  ;;  %v3637_v23 = vstv %s5797_s30 }
0x1b04   :  { %6485 = vtanh.f32 %v3514_v1 }
0x1b0d   :  { %v6484_v34 = vpop.eup %6483 }
0x1b0e   :  { %3544 = vrot.lane.b32.xlu0 %v6484_v34, %s6710_s28 }
0x1b11   :  { %v6486_v36 = vpop.eup %6485 }
0x1b12   :  { %3518 = vrot.lane.b32.xlu1 %v6486_v36, %s6710_s28 }
0x1b23   :  { %v3596_v16 = vpop.permute.xlu0 %3595 }
0x1b24   :  { %v3598_v39 = vadd.f32 %v3596_v16, %v3391_v38 }
0x1b26   :  { %6487 = vtanh.f32 %v3598_v39 }
0x1b27   :  { %v3567_v42 = vpop.permute.xlu1 %3566 }
0x1b28   :  { %v3569_v55 = vadd.f32 %v3567_v42, %v3391_v38 }
0x1b2a   :  { %6489 = vtanh.f32 %v3569_v55 }
0x1b33   :  { %v6488_v45 = vpop.eup %6487 }
0x1b34   :  { %3602 = vrot.lane.b32.xlu0 %v6488_v45, %s6710_s28 }
0x1b37   :  { %v6490_v13 = vpop.eup %6489 }
0x1b38   :  { %3573 = vrot.lane.b32.xlu1 %v6490_v13, %s6710_s28 }
0x1b80   :  { %v3545_v47 = vpop.permute.xlu0 %3544 }
0x1b81   :  { %v3547_v18 = vmul.f32 %v3545_v47, %v3542_v17 }
0x1b83   :  { %v7600_v19 = vadd.f32 %v3548_v27, %v3547_v18 }
0x1b84   :  { %v3519_v57 = vpop.permute.xlu1 %3518 }
0x1b85   :  { %v3521_v59 = vmul.f32 %v3519_v57, %v3516_v15  ;;  %v7603_v62 = vmul.f32 %v3635_v49, %v7600_v19 }
0x1b87   :  { %v7605_v63 = vadd.f32 %v3522_v58, %v3521_v59  ;;  %3641 = vrot.lane.b32.xlu1 %v7603_v62, %s6710_s28 }
0x1b89   :  { %3610 = vrot.lane.b32.xlu0 %v7605_v63, %s6710_s28 }
0x1ba6   :  { %v3603_v33 = vpop.permute.xlu0 %3602 }
0x1ba7   :  { %v3605_v61 = vmul.f32 %v3603_v33, %v3600_v4 }
0x1ba9   :  { %v7612_v46 = vadd.f32 %v3606_v50, %v3605_v61 }
0x1baa   :  { %v3574_v5 = vpop.permute.xlu1 %3573 }
0x1bab   :  { %v3576_v29 = vmul.f32 %v3574_v5, %v3571_v11  ;;  %v7615_v40 = vmul.f32 %v3637_v23, %v7612_v46 }
0x1bad   :  { %v7617_v60 = vadd.f32 %v3577_v9, %v3576_v29  ;;  %3643 = vrot.lane.b32.xlu1 %v7615_v40, %s6710_s28 }
0x1baf   :  { %3620 = vrot.lane.b32.xlu0 %v7617_v60, %s6710_s28 }
0x1bf9   :  { %v3642_v10 = vpop.permute.xlu1 %3641 }
0x1bfb   :  { %v3611_v7 = vpop.permute.xlu0 %3610 }
0x1bfc   :  { %3616 = vst.msk [vmem:[#allocation14] sm:$0xff] %vm375_vm1, %v3611_v7  ;;  %6173 = vmatprep.mubr.msk.f32.mxu1 %vm375_vm1, %v3611_v7 }
0x1bfd   :  { %6174 = vmatmul.mubr.msk.f32.vlgmr.msra.gmra.mxu1 %vm375_vm1, %v3642_v10 }
0x1bfe   :  { %6188 = vmatpush3.msra.mxu1 %v7498_v35 }
0x1bff   :  { %6203 = vmatprep.subr.mxu1 %v7498_v35 }
0x1c1f   :  { %v3644_v48 = vpop.permute.xlu1 %3643 }
0x1c21   :  { %v3621_v37 = vpop.permute.xlu0 %3620 }
0x1c22   :  { %3627 = vst.msk [vmem:[#allocation15 + $0x70] sm:$0xff] %vm375_vm1, %v3621_v37  ;;  %6176 = vmatprep.mubr.msk.f32.mxu1 %vm375_vm1, %v3621_v37 }
0x1c23   :  { %6177 = vmatmul.mubr.msk.f32.gmra.mxu1 %vm375_vm1, %v3644_v48 }
0x1cbd   :  { %v6175_v43 = vpop.f32.mrf.mxu1 }
0x1cbe   :  { %v3725_v53 = vadd.f32 %v6175_v43, %v7574_v0 }
0x1cbf   :  { %v3719_v6 = vpop.f32.mrf.mxu1 }
0x1cc0   :  { %v3720_v51 = vadd.f32 %v7574_v0, %v3719_v6  ;;  %v3764_v41 = vadd.f32 %v3725_v53, %v3630_v54 }
0x1cc2   :  { %v3738_v14 = vadd.f32 %v3720_v51, %v3630_v54  ;;  %v5803_v20 = vmul.f32 -1.442695, %v3764_v41 }
0x1cc4   :  { %v5802_v44 = vmul.f32 -1.442695, %v3738_v14  ;;  %6491 = vpow2.f32 %v5803_v20 }
0x1cc6   :  { %6493 = vpow2.f32 %v5802_v44 }
0x1cd1   :  { %v6492_v26 = vpop.eup %6491 }
0x1cd2   :  { %v3768_v56 = vadd.f32 1.0, %v6492_v26  ;;  %v3878_v26 = vstv %s5807_s23 }
0x1cd3   :  { %v6494_v21 = vpop.eup %6493 }
0x1cd4   :  { %v3742_v22 = vadd.f32 1.0, %v6494_v21  ;;  %6495 = vrcp.f32 %v3768_v56 }
0x1cd6   :  { %6497 = vrcp.f32 %v3742_v22 }
0x1ce1   :  { %v6496_v31 = vpop.eup %6495 }
0x1ce2   :  { %v3782_v10 = vsub.f32 1.0, %v6496_v31  ;;  %v3788_v48 = vmul.f32 %v6496_v31, %v7603_v62 }
0x1ce3   :  { %v6178_v38 = vpop.f32.mrf.mxu1  ;;  %v6498_v16 = vpop.eup %6497 }
0x1ce4   :  { %v3735_v32 = vadd.f32 %v6178_v38, %v7574_v0  ;;  %v3756_v6 = vsub.f32 1.0, %v6498_v16 }
0x1ce5   :  { %v3729_v8 = vpop.f32.mrf.mxu1 }
0x1ce6   :  { %v3730_v12 = vadd.f32 %v7574_v0, %v3729_v8  ;;  %3820 = vrot.lane.b32.xlu0 %v3735_v32, %s6707_s24 }
0x1ce8   :  { %3791 = vrot.lane.b32.xlu1 %v3730_v12, %s6707_s24 }
0x1cea   :  { %3772 = vrot.lane.b32.xlu0 %v3725_v53, %s6706_s11 }
0x1cec   :  { %3746 = vrot.lane.b32.xlu1 %v3720_v51, %s6706_s11 }
0x1cee   :  { %3830 = vrot.lane.b32.xlu0 %v3735_v32, %s6708_s6  ;;  %v3876_v32 = vstv %s5806_s0 }
0x1cf0   :  { %3801 = vrot.lane.b32.xlu1 %v3730_v12, %s6708_s6  ;;  %v3762_v12 = vmul.f32 %v6498_v16, %v7605_v63 }
0x1d58   :  { %v3821_v25 = vpop.permute.xlu0 %3820 }
0x1d59   :  { %v3823_v2 = vadd.f32 %v3821_v25, %v3632_v24 }
0x1d5a   :  { %v3792_v28 = vpop.permute.xlu1 %3791 }
0x1d5b   :  { %v5805_v3 = vmul.f32 -1.442695, %v3823_v2  ;;  %v3794_v30 = vadd.f32 %v3792_v28, %v3632_v24 }
0x1d5c   :  { %v3773_v1 = vpop.permute.xlu0 %3772 }
0x1d5d   :  { %6499 = vpow2.f32 %v5805_v3  ;;  %v5804_v34 = vmul.f32 -1.442695, %v3794_v30  ;;  %v3775_v36 = vmul.f32 %v6496_v31, %v3773_v1 }
0x1d5e   :  { %v3747_v39 = vpop.permute.xlu1 %3746 }
0x1d5f   :  { %6501 = vpow2.f32 %v5804_v34  ;;  %v3749_v42 = vmul.f32 %v6498_v16, %v3747_v39  ;;  %3777 = vrot.lane.b32.xlu0 %v3775_v36, %s6709_s25  ;;  %v3871_v39 = vld [vmem:[#allocation12 + $0x10] sm:$0xff] }
0x1d60   :  { %v3831_v27 = vpop.permute.xlu0 %3830 }
0x1d61   :  { %3751 = vrot.lane.b32.xlu1 %v3749_v42, %s6709_s25 }
0x1d62   :  { %v3802_v15 = vpop.permute.xlu1 %3801 }
0x1d6a   :  { %v6500_v55 = vpop.eup %6499 }
0x1d6b   :  { %v3827_v45 = vadd.f32 1.0, %v6500_v55 }
0x1d6c   :  { %v6502_v13 = vpop.eup %6501 }
0x1d6d   :  { %6503 = vrcp.f32 %v3827_v45  ;;  %v3798_v17 = vadd.f32 1.0, %v6502_v13 }
0x1d6f   :  { %6505 = vrcp.f32 %v3798_v17 }
0x1d7a   :  { %v6504_v47 = vpop.eup %6503 }
0x1d7b   :  { %v3833_v18 = vmul.f32 %v6504_v47, %v3831_v27  ;;  %v3840_v62 = vsub.f32 1.0, %v6504_v47  ;;  %v3846_v14 = vmul.f32 %v6504_v47, %v7615_v40 }
0x1d7c   :  { %v6506_v49 = vpop.eup %6505 }
0x1d7d   :  { %v3804_v57 = vmul.f32 %v6506_v49, %v3802_v15  ;;  %3835 = vrot.lane.b32.xlu0 %v3833_v18, %s6709_s25  ;;  %v3811_v44 = vsub.f32 1.0, %v6506_v49  ;;  %v3817_v56 = vmul.f32 %v6506_v49, %v7617_v60  ;;  %v3873_v15 = vld [vmem:[#allocation13 + $0x28] sm:$0xff] }
0x1d7f   :  { %3806 = vrot.lane.b32.xlu1 %v3804_v57, %s6709_s25 }
0x1dd1   :  { %v3778_v58 = vpop.permute.xlu0 %3777 }
0x1dd2   :  { %v3780_v59 = vadd.f32 %v3778_v58, %v3630_v54 }
0x1dd3   :  { %v3752_v4 = vpop.permute.xlu1 %3751 }
0x1dd4   :  { %6507 = vtanh.f32 %v3780_v59  ;;  %v3754_v33 = vadd.f32 %v3752_v4, %v3630_v54 }
0x1dd6   :  { %6509 = vtanh.f32 %v3754_v33 }
0x1de1   :  { %v6508_v50 = vpop.eup %6507 }
0x1de2   :  { %3784 = vrot.lane.b32.xlu0 %v6508_v50, %s6710_s28 }
0x1de3   :  { %v6510_v61 = vpop.eup %6509 }
0x1de4   :  { %3758 = vrot.lane.b32.xlu1 %v6510_v61, %s6710_s28 }
0x1def   :  { %v3836_v23 = vpop.permute.xlu0 %3835 }
0x1df0   :  { %v3838_v11 = vadd.f32 %v3836_v23, %v3632_v24 }
0x1df1   :  { %v3807_v5 = vpop.permute.xlu1 %3806 }
0x1df2   :  { %6511 = vtanh.f32 %v3838_v11  ;;  %v3809_v9 = vadd.f32 %v3807_v5, %v3632_v24 }
0x1df4   :  { %6513 = vtanh.f32 %v3809_v9 }
0x1dff   :  { %v6512_v29 = vpop.eup %6511 }
0x1e00   :  { %3842 = vrot.lane.b32.xlu0 %v6512_v29, %s6710_s28 }
0x1e01   :  { %v6514_v7 = vpop.eup %6513 }
0x1e02   :  { %3813 = vrot.lane.b32.xlu1 %v6514_v7, %s6710_s28 }
0x1e54   :  { %v3785_v37 = vpop.permute.xlu0 %3784 }
0x1e55   :  { %v3787_v43 = vmul.f32 %v3785_v37, %v3782_v10 }
0x1e56   :  { %v3759_v38 = vpop.permute.xlu1 %3758 }
0x1e57   :  { %v7650_v8 = vadd.f32 %v3788_v48, %v3787_v43  ;;  %v3761_v53 = vmul.f32 %v3759_v38, %v3756_v6 }
0x1e59   :  { %v7653_v51 = vadd.f32 %v3762_v12, %v3761_v53  ;;  %v7656_v54 = vmul.f32 %v3876_v32, %v7650_v8 }
0x1e5b   :  { %3882 = vrot.lane.b32.xlu1 %v7656_v54, %s6710_s28  ;;  %3850 = vrot.lane.b32.xlu0 %v7653_v51, %s6710_s28 }
0x1e72   :  { %v3843_v41 = vpop.permute.xlu0 %3842 }
0x1e73   :  { %v3845_v20 = vmul.f32 %v3843_v41, %v3840_v62 }
0x1e74   :  { %v3814_v63 = vpop.permute.xlu1 %3813 }
0x1e75   :  { %v7663_v21 = vadd.f32 %v3846_v14, %v3845_v20  ;;  %v3816_v22 = vmul.f32 %v3814_v63, %v3811_v44 }
0x1e77   :  { %v7666_v24 = vadd.f32 %v3817_v56, %v3816_v22  ;;  %v7669_v25 = vmul.f32 %v3878_v26, %v7663_v21 }
0x1e79   :  { %3884 = vrot.lane.b32.xlu1 %v7669_v25, %s6710_s28  ;;  %3861 = vrot.lane.b32.xlu0 %v7666_v24, %s6710_s28 }
0x1ecd   :  { %v3851_v40 = vpop.permute.xlu0 %3850  ;;  %v3883_v2 = vpop.permute.xlu1 %3882 }
0x1ece   :  { %3857 = vst.msk [vmem:[#allocation14 + $0x10] sm:$0xff] %vm375_vm1, %v3851_v40  ;;  %6181 = vmatprep.mubr.msk.f32.mxu0 %vm375_vm1, %v3851_v40 }
0x1ecf   :  { %6182 = vmatmul.mubr.msk.f32.vlgmr.msra.gmra.mxu0 %vm375_vm1, %v3883_v2 }
0x1ed0   :  { %6196 = vmatpush3.msra.mxu0 %v7498_v35 }
0x1ed1   :  { %6211 = vmatprep.subr.mxu0 %v7498_v35 }
0x1eeb   :  { %v3862_v60 = vpop.permute.xlu0 %3861  ;;  %v3885_v28 = vpop.permute.xlu1 %3884 }
0x1eec   :  { %3868 = vst.msk [vmem:[#allocation15 + $0x60] sm:$0xff] %vm375_vm1, %v3862_v60  ;;  %6184 = vmatprep.mubr.msk.f32.mxu0 %vm375_vm1, %v3862_v60 }
0x1eed   :  { %6185 = vmatmul.mubr.msk.f32.gmra.mxu0 %vm375_vm1, %v3885_v28 }
0x1f8f   :  { %v6183_v3 = vpop.f32.mrf.mxu0 }
0x1f90   :  { %v3966_v35 = vadd.f32 %v6183_v3, %v7574_v0 }
0x1f91   :  { %v3960_v30 = vpop.f32.mrf.mxu0 }
0x1f92   :  { %v3961_v16 = vadd.f32 %v7574_v0, %v3960_v30  ;;  %v4005_v42 = vadd.f32 %v3966_v35, %v3871_v39 }
0x1f94   :  { %v3979_v55 = vadd.f32 %v3961_v16, %v3871_v39  ;;  %v5813_v45 = vmul.f32 -1.442695, %v4005_v42 }
0x1f96   :  { %v5812_v13 = vmul.f32 -1.442695, %v3979_v55  ;;  %6515 = vpow2.f32 %v5813_v45 }
0x1f98   :  { %6517 = vpow2.f32 %v5812_v13 }
0x1fa3   :  { %v6516_v17 = vpop.eup %6515 }
0x1fa4   :  { %v4009_v27 = vadd.f32 1.0, %v6516_v17 }
0x1fa5   :  { %v6518_v47 = vpop.eup %6517 }
0x1fa6   :  { %v3983_v18 = vadd.f32 1.0, %v6518_v47  ;;  %6519 = vrcp.f32 %v4009_v27  ;;  %v4119_v47 = vstv %s5817_s17 }
0x1fa8   :  { %6521 = vrcp.f32 %v3983_v18 }
0x1fad   :  { %v6186_v31 = vpop.f32.mrf.mxu0 }
0x1fae   :  { %v3976_v1 = vadd.f32 %v6186_v31, %v7574_v0 }
0x1faf   :  { %v3970_v34 = vpop.f32.mrf.mxu0 }
0x1fb0   :  { %v3971_v36 = vadd.f32 %v7574_v0, %v3970_v34  ;;  %4061 = vrot.lane.b32.xlu0 %v3976_v1, %s6707_s24  ;;  %v4117_v34 = vstv %s5816_s10 }
0x1fb2   :  { %4032 = vrot.lane.b32.xlu1 %v3971_v36, %s6707_s24 }
0x1fb3   :  { %v6520_v33 = vpop.eup %6519 }
0x1fb4   :  { %4013 = vrot.lane.b32.xlu0 %v3966_v35, %s6706_s11  ;;  %v4023_v60 = vsub.f32 1.0, %v6520_v33  ;;  %v4029_v3 = vmul.f32 %v6520_v33, %v7656_v54 }
0x1fb5   :  { %v6522_v11 = vpop.eup %6521 }
0x1fb6   :  { %3987 = vrot.lane.b32.xlu1 %v3961_v16, %s6706_s11  ;;  %v3997_v31 = vsub.f32 1.0, %v6522_v11  ;;  %v4003_v35 = vmul.f32 %v6522_v11, %v7653_v51 }
0x1fb8   :  { %4071 = vrot.lane.b32.xlu0 %v3976_v1, %s6708_s6 }
0x1fba   :  { %4042 = vrot.lane.b32.xlu1 %v3971_v36, %s6708_s6 }
0x2022   :  { %v4062_v49 = vpop.permute.xlu0 %4061 }
0x2023   :  { %v4064_v57 = vadd.f32 %v4062_v49, %v3873_v15 }
0x2024   :  { %v4033_v58 = vpop.permute.xlu1 %4032 }
0x2025   :  { %v5815_v59 = vmul.f32 -1.442695, %v4064_v57  ;;  %v4035_v4 = vadd.f32 %v4033_v58, %v3873_v15 }
0x2026   :  { %v4014_v50 = vpop.permute.xlu0 %4013 }
0x2027   :  { %6523 = vpow2.f32 %v5815_v59  ;;  %v5814_v61 = vmul.f32 -1.442695, %v4035_v4  ;;  %v4016_v23 = vmul.f32 %v6520_v33, %v4014_v50 }
0x2028   :  { %v3988_v5 = vpop.permute.xlu1 %3987 }
0x2029   :  { %6525 = vpow2.f32 %v5814_v61  ;;  %v3990_v9 = vmul.f32 %v6522_v11, %v3988_v5  ;;  %4018 = vrot.lane.b32.xlu0 %v4016_v23, %s6709_s25 }
0x202a   :  { %v4072_v43 = vpop.permute.xlu0 %4071 }
0x202b   :  { %3992 = vrot.lane.b32.xlu1 %v3990_v9, %s6709_s25 }
0x202c   :  { %v4043_v32 = vpop.permute.xlu1 %4042 }
0x2034   :  { %v6524_v29 = vpop.eup %6523 }
0x2035   :  { %v4068_v7 = vadd.f32 1.0, %v6524_v29 }
0x2036   :  { %v6526_v10 = vpop.eup %6525 }
0x2037   :  { %6527 = vrcp.f32 %v4068_v7  ;;  %v4039_v37 = vadd.f32 1.0, %v6526_v10  ;;  %v4112_v7 = vld [vmem:[#allocation12 + $0x18] sm:$0xff] }
0x2039   :  { %6529 = vrcp.f32 %v4039_v37 }
0x2044   :  { %v6528_v48 = vpop.eup %6527 }
0x2045   :  { %v4074_v6 = vmul.f32 %v6528_v48, %v4072_v43  ;;  %v4081_v54 = vsub.f32 1.0, %v6528_v48  ;;  %v4087_v45 = vmul.f32 %v6528_v48, %v7669_v25 }
0x2046   :  { %v6530_v38 = vpop.eup %6529 }
0x2047   :  { %v4045_v12 = vmul.f32 %v6530_v38, %v4043_v32  ;;  %4076 = vrot.lane.b32.xlu0 %v4074_v6, %s6709_s25  ;;  %v4052_v17 = vsub.f32 1.0, %v6530_v38  ;;  %v4058_v18 = vmul.f32 %v6530_v38, %v7666_v24  ;;  %v7733_v24 = vld [vmem:[%s8183_s15] sm:$0xff]  ;;  %s5826_s15 = sld [smem:[#allocation6 + $0x4]] }
0x2049   :  { %4047 = vrot.lane.b32.xlu1 %v4045_v12, %s6709_s25 }
0x209b   :  { %v4019_v53 = vpop.permute.xlu0 %4018 }
0x209c   :  { %v4021_v62 = vadd.f32 %v4019_v53, %v3871_v39 }
0x209d   :  { %v3993_v41 = vpop.permute.xlu1 %3992 }
0x209e   :  { %6531 = vtanh.f32 %v4021_v62  ;;  %v3995_v14 = vadd.f32 %v3993_v41, %v3871_v39  ;;  %v4114_v62 = vld [vmem:[#allocation13 + $0x20] sm:$0xff] }
0x20a0   :  { %6533 = vtanh.f32 %v3995_v14 }
0x20ab   :  { %v6532_v20 = vpop.eup %6531 }
0x20ac   :  { %4025 = vrot.lane.b32.xlu0 %v6532_v20, %s6710_s28 }
0x20ad   :  { %v6534_v44 = vpop.eup %6533 }
0x20ae   :  { %3999 = vrot.lane.b32.xlu1 %v6534_v44, %s6710_s28 }
0x20b9   :  { %v4077_v63 = vpop.permute.xlu0 %4076 }
0x20ba   :  { %v4079_v26 = vadd.f32 %v4077_v63, %v3873_v15 }
0x20bb   :  { %v4048_v56 = vpop.permute.xlu1 %4047 }
0x20bc   :  { %6535 = vtanh.f32 %v4079_v26  ;;  %v4050_v22 = vadd.f32 %v4048_v56, %v3873_v15 }
0x20be   :  { %6537 = vtanh.f32 %v4050_v22 }
0x20c9   :  { %v6536_v40 = vpop.eup %6535 }
0x20ca   :  { %4083 = vrot.lane.b32.xlu0 %v6536_v40, %s6710_s28 }
0x20cb   :  { %v6538_v2 = vpop.eup %6537 }
0x20cc   :  { %4054 = vrot.lane.b32.xlu1 %v6538_v2, %s6710_s28 }
0x211e   :  { %v4026_v28 = vpop.permute.xlu0 %4025 }
0x211f   :  { %v4028_v30 = vmul.f32 %v4026_v28, %v4023_v60 }
0x2120   :  { %v4000_v1 = vpop.permute.xlu1 %3999 }
0x2121   :  { %v7702_v36 = vadd.f32 %v4029_v3, %v4028_v30  ;;  %v4002_v16 = vmul.f32 %v4000_v1, %v3997_v31 }
0x2123   :  { %v7705_v39 = vadd.f32 %v4003_v35, %v4002_v16  ;;  %v7708_v42 = vmul.f32 %v4117_v34, %v7702_v36 }
0x2125   :  { %4123 = vrot.lane.b32.xlu1 %v7708_v42, %s6710_s28  ;;  %4091 = vrot.lane.b32.xlu0 %v7705_v39, %s6710_s28 }
0x213c   :  { %v4084_v55 = vpop.permute.xlu0 %4083 }
0x213d   :  { %v4086_v13 = vmul.f32 %v4084_v55, %v4081_v54 }
0x213e   :  { %v4055_v51 = vpop.permute.xlu1 %4054 }
0x213f   :  { %v7715_v27 = vadd.f32 %v4087_v45, %v4086_v13  ;;  %v4057_v49 = vmul.f32 %v4055_v51, %v4052_v17 }
0x2141   :  { %v7718_v15 = vadd.f32 %v4058_v18, %v4057_v49  ;;  %v7721_v57 = vmul.f32 %v4119_v47, %v7715_v27 }
0x2143   :  { %4125 = vrot.lane.b32.xlu1 %v7721_v57, %s6710_s28  ;;  %4102 = vrot.lane.b32.xlu0 %v7718_v15, %s6710_s28 }
0x2197   :  { %v4092_v25 = vpop.permute.xlu0 %4091  ;;  %v4124_v58 = vpop.permute.xlu1 %4123 }
0x2198   :  { %4098 = vst.msk [vmem:[#allocation14 + $0x20] sm:$0xff] %vm375_vm1, %v4092_v25  ;;  %6189 = vmatprep.mubr.msk.f32.mxu1 %vm375_vm1, %v4092_v25 }
0x2199   :  { %6190 = vmatmul.mubr.msk.f32.vlgmr.msra.gmra.mxu1 %vm375_vm1, %v4124_v58 }
0x219a   :  { %6204 = vmatpush3.msra.mxu1 %v7733_v24 }
0x219b   :  { %6219 = vmatprep.subr.mxu1 %v7733_v24 }
0x21b5   :  { %v4103_v59 = vpop.permute.xlu0 %4102  ;;  %v4126_v4 = vpop.permute.xlu1 %4125 }
0x21b6   :  { %4109 = vst.msk [vmem:[#allocation15 + $0x50] sm:$0xff] %vm375_vm1, %v4103_v59  ;;  %6192 = vmatprep.mubr.msk.f32.mxu1 %vm375_vm1, %v4103_v59 }
0x21b7   :  { %6193 = vmatmul.mubr.msk.f32.gmra.mxu1 %vm375_vm1, %v4126_v4 }
0x2259   :  { %v6191_v33 = vpop.f32.mrf.mxu1 }
0x225a   :  { %v4207_v9 = vadd.f32 %v6191_v33, %v7574_v0 }
0x225b   :  { %v4201_v50 = vpop.f32.mrf.mxu1 }
0x225c   :  { %v4202_v29 = vadd.f32 %v7574_v0, %v4201_v50  ;;  %v4246_v10 = vadd.f32 %v4207_v9, %v4112_v7 }
0x225e   :  { %v4220_v37 = vadd.f32 %v4202_v29, %v4112_v7  ;;  %v5823_v48 = vmul.f32 -1.442695, %v4246_v10 }
0x2260   :  { %v5822_v43 = vmul.f32 -1.442695, %v4220_v37  ;;  %6539 = vpow2.f32 %v5823_v48 }
0x2262   :  { %6541 = vpow2.f32 %v5822_v43 }
0x226d   :  { %v6540_v6 = vpop.eup %6539 }
0x226e   :  { %v4250_v32 = vadd.f32 1.0, %v6540_v6 }
0x226f   :  { %v6542_v38 = vpop.eup %6541 }
0x2270   :  { %v4224_v12 = vadd.f32 1.0, %v6542_v38  ;;  %6543 = vrcp.f32 %v4250_v32 }
0x2272   :  { %6545 = vrcp.f32 %v4224_v12 }
0x2277   :  { %v6194_v61 = vpop.f32.mrf.mxu1 }
0x2278   :  { %v4217_v23 = vadd.f32 %v6194_v61, %v7574_v0 }
0x2279   :  { %v4211_v11 = vpop.f32.mrf.mxu1 }
0x227a   :  { %v4212_v5 = vadd.f32 %v7574_v0, %v4211_v11  ;;  %4302 = vrot.lane.b32.xlu0 %v4217_v23, %s6707_s24 }
0x227c   :  { %4273 = vrot.lane.b32.xlu1 %v4212_v5, %s6707_s24 }
0x227d   :  { %v6544_v63 = vpop.eup %6543 }
0x227e   :  { %4254 = vrot.lane.b32.xlu0 %v4207_v9, %s6706_s11  ;;  %v4264_v50 = vsub.f32 1.0, %v6544_v63 }
0x227f   :  { %v6546_v40 = vpop.eup %6545 }
0x2280   :  { %4228 = vrot.lane.b32.xlu1 %v4202_v29, %s6706_s11  ;;  %v4358_v29 = vstv %s5826_s15  ;;  %v4244_v10 = vmul.f32 %v6546_v40, %v7705_v39 }
0x2282   :  { %4312 = vrot.lane.b32.xlu0 %v4217_v23, %s6708_s6  ;;  %v4270_v23 = vmul.f32 %v6544_v63, %v7708_v42 }
0x2284   :  { %4283 = vrot.lane.b32.xlu1 %v4212_v5, %s6708_s6  ;;  %v4238_v5 = vsub.f32 1.0, %v6546_v40 }
0x22ec   :  { %v4303_v53 = vpop.permute.xlu0 %4302 }
0x22ed   :  { %v4305_v41 = vadd.f32 %v4303_v53, %v4114_v62  ;;  %v4360_v53 = vstv %s5827_s18 }
0x22ee   :  { %v4274_v14 = vpop.permute.xlu1 %4273 }
0x22ef   :  { %v5825_v20 = vmul.f32 -1.442695, %v4305_v41  ;;  %v4276_v44 = vadd.f32 %v4274_v14, %v4114_v62 }
0x22f0   :  { %v4255_v26 = vpop.permute.xlu0 %4254 }
0x22f1   :  { %6547 = vpow2.f32 %v5825_v20  ;;  %v5824_v56 = vmul.f32 -1.442695, %v4276_v44  ;;  %v4257_v22 = vmul.f32 %v6544_v63, %v4255_v26 }
0x22f2   :  { %v4229_v2 = vpop.permute.xlu1 %4228 }
0x22f3   :  { %6549 = vpow2.f32 %v5824_v56  ;;  %v4231_v60 = vmul.f32 %v6546_v40, %v4229_v2  ;;  %4259 = vrot.lane.b32.xlu0 %v4257_v22, %s6709_s25 }
0x22f4   :  { %v4313_v34 = vpop.permute.xlu0 %4312 }
0x22f5   :  { %4233 = vrot.lane.b32.xlu1 %v4231_v60, %s6709_s25 }
0x22f6   :  { %v4284_v54 = vpop.permute.xlu1 %4283 }
0x22fe   :  { %v6548_v28 = vpop.eup %6547 }
0x22ff   :  { %v4309_v3 = vadd.f32 1.0, %v6548_v28 }
0x2300   :  { %v6550_v30 = vpop.eup %6549 }
0x2301   :  { %6551 = vrcp.f32 %v4309_v3  ;;  %v4280_v31 = vadd.f32 1.0, %v6550_v30 }
0x2303   :  { %6553 = vrcp.f32 %v4280_v31  ;;  %v4353_v31 = vld [vmem:[#allocation12 + $0x20] sm:$0xff] }
0x230e   :  { %v6552_v1 = vpop.eup %6551 }
0x230f   :  { %v4315_v35 = vmul.f32 %v6552_v1, %v4313_v34  ;;  %v4322_v42 = vsub.f32 1.0, %v6552_v1  ;;  %v4328_v38 = vmul.f32 %v6552_v1, %v7721_v57 }
0x2310   :  { %v6554_v16 = vpop.eup %6553 }
0x2311   :  { %v4286_v55 = vmul.f32 %v6554_v16, %v4284_v54  ;;  %4317 = vrot.lane.b32.xlu0 %v4315_v35, %s6709_s25  ;;  %v4293_v12 = vsub.f32 1.0, %v6554_v16  ;;  %v4299_v41 = vmul.f32 %v6554_v16, %v7718_v15 }
0x2313   :  { %4288 = vrot.lane.b32.xlu1 %v4286_v55, %s6709_s25 }
0x2365   :  { %v4260_v45 = vpop.permute.xlu0 %4259 }
0x2366   :  { %v4262_v13 = vadd.f32 %v4260_v45, %v4112_v7 }
0x2367   :  { %v4234_v17 = vpop.permute.xlu1 %4233 }
0x2368   :  { %6555 = vtanh.f32 %v4262_v13  ;;  %v4236_v51 = vadd.f32 %v4234_v17, %v4112_v7 }
0x236a   :  { %6557 = vtanh.f32 %v4236_v51 }
0x2375   :  { %v6556_v47 = vpop.eup %6555 }
0x2376   :  { %4266 = vrot.lane.b32.xlu0 %v6556_v47, %s6710_s28 }
0x2377   :  { %v6558_v18 = vpop.eup %6557 }
0x2378   :  { %4240 = vrot.lane.b32.xlu1 %v6558_v18, %s6710_s28 }
0x2383   :  { %v4318_v49 = vpop.permute.xlu0 %4317 }
0x2384   :  { %v4320_v25 = vadd.f32 %v4318_v49, %v4114_v62 }
0x2385   :  { %v4289_v58 = vpop.permute.xlu1 %4288 }
0x2386   :  { %6559 = vtanh.f32 %v4320_v25  ;;  %v4291_v59 = vadd.f32 %v4289_v58, %v4114_v62 }
0x2388   :  { %6561 = vtanh.f32 %v4291_v59 }
0x2393   :  { %v6560_v4 = vpop.eup %6559 }
0x2394   :  { %4324 = vrot.lane.b32.xlu0 %v6560_v4, %s6710_s28 }
0x2395   :  { %v6562_v33 = vpop.eup %6561 }
0x2396   :  { %4295 = vrot.lane.b32.xlu1 %v6562_v33, %s6710_s28 }
0x23e8   :  { %v4267_v61 = vpop.permute.xlu0 %4266 }
0x23e9   :  { %v4269_v11 = vmul.f32 %v4267_v61, %v4264_v50 }
0x23ea   :  { %v4241_v9 = vpop.permute.xlu1 %4240 }
0x23eb   :  { %v7759_v7 = vadd.f32 %v4270_v23, %v4269_v11  ;;  %v4243_v37 = vmul.f32 %v4241_v9, %v4238_v5 }
0x23ed   :  { %v7762_v48 = vadd.f32 %v4244_v10, %v4243_v37  ;;  %v7765_v43 = vmul.f32 %v4358_v29, %v7759_v7 }
0x23ef   :  { %4364 = vrot.lane.b32.xlu1 %v7765_v43, %s6710_s28  ;;  %4332 = vrot.lane.b32.xlu0 %v7762_v48, %s6710_s28 }
0x2406   :  { %v4325_v6 = vpop.permute.xlu0 %4324 }
0x2407   :  { %v4327_v32 = vmul.f32 %v4325_v6, %v4322_v42 }
0x2408   :  { %v4296_v39 = vpop.permute.xlu1 %4295 }
0x2409   :  { %v7772_v62 = vadd.f32 %v4328_v38, %v4327_v32  ;;  %v4298_v14 = vmul.f32 %v4296_v39, %v4293_v12 }
0x240b   :  { %v7775_v20 = vadd.f32 %v4299_v41, %v4298_v14  ;;  %v7778_v44 = vmul.f32 %v4360_v53, %v7772_v62 }
0x240d   :  { %4366 = vrot.lane.b32.xlu1 %v7778_v44, %s6710_s28  ;;  %4343 = vrot.lane.b32.xlu0 %v7775_v20, %s6710_s28 }
0x2461   :  { %v4333_v57 = vpop.permute.xlu0 %4332  ;;  %v4365_v63 = vpop.permute.xlu1 %4364 }
0x2462   :  { %4339 = vst.msk [vmem:[#allocation14 + $0x30] sm:$0xff] %vm375_vm1, %v4333_v57  ;;  %6197 = vmatprep.mubr.msk.f32.mxu0 %vm375_vm1, %v4333_v57 }
0x2463   :  { %6198 = vmatmul.mubr.msk.f32.vlgmr.msra.gmra.mxu0 %vm375_vm1, %v4365_v63 }
0x2464   :  { %6212 = vmatpush3.msra.mxu0 %v7733_v24 }
0x247f   :  { %v4344_v15 = vpop.permute.xlu0 %4343  ;;  %v4367_v26 = vpop.permute.xlu1 %4366 }
0x2480   :  { %4350 = vst.msk [vmem:[#allocation15 + $0x40] sm:$0xff] %vm375_vm1, %v4344_v15  ;;  %6200 = vmatprep.mubr.msk.f32.mxu0 %vm375_vm1, %v4344_v15 }
0x2481   :  { %6201 = vmatmul.mubr.msk.f32.gmra.mxu0 %vm375_vm1, %v4367_v26 }
0x2523   :  { %v6199_v56 = vpop.f32.mrf.mxu0 }
0x2524   :  { %v4448_v3 = vadd.f32 %v6199_v56, %v7574_v0 }
0x2525   :  { %v4442_v22 = vpop.f32.mrf.mxu0 }
0x2526   :  { %v4443_v30 = vadd.f32 %v7574_v0, %v4442_v22  ;;  %v4487_v1 = vadd.f32 %v4448_v3, %v4353_v31 }
0x2528   :  { %v4461_v34 = vadd.f32 %v4443_v30, %v4353_v31  ;;  %v5833_v35 = vmul.f32 -1.442695, %v4487_v1 }
0x252a   :  { %v5832_v16 = vmul.f32 -1.442695, %v4461_v34  ;;  %6563 = vpow2.f32 %v5833_v35 }
0x252c   :  { %6565 = vpow2.f32 %v5832_v16 }
0x2537   :  { %v6564_v54 = vpop.eup %6563 }
0x2538   :  { %v4491_v45 = vadd.f32 1.0, %v6564_v54 }
0x2539   :  { %v6566_v55 = vpop.eup %6565 }
0x253a   :  { %v4465_v13 = vadd.f32 1.0, %v6566_v55  ;;  %6567 = vrcp.f32 %v4491_v45 }
0x253c   :  { %6569 = vrcp.f32 %v4465_v13 }
0x2541   :  { %v6202_v40 = vpop.f32.mrf.mxu0 }
0x2542   :  { %v4458_v2 = vadd.f32 %v6202_v40, %v7574_v0 }
0x2543   :  { %v4452_v60 = vpop.f32.mrf.mxu0 }
0x2544   :  { %v4453_v28 = vadd.f32 %v7574_v0, %v4452_v60  ;;  %4543 = vrot.lane.b32.xlu0 %v4458_v2, %s6707_s24  ;;  %v4355_v0 = vld [vmem:[#allocation13 + $0x18] sm:$0xff] }
0x2546   :  { %4514 = vrot.lane.b32.xlu1 %v4453_v28, %s6707_s24 }
0x2547   :  { %v6568_v25 = vpop.eup %6567 }
0x2548   :  { %4495 = vrot.lane.b32.xlu0 %v4448_v3, %s6706_s11  ;;  %v4505_v40 = vsub.f32 1.0, %v6568_v25  ;;  %v4511_v60 = vmul.f32 %v6568_v25, %v7765_v43 }
0x2549   :  { %v6570_v33 = vpop.eup %6569 }
0x254a   :  { %4469 = vrot.lane.b32.xlu1 %v4443_v30, %s6706_s11  ;;  %v4479_v3 = vsub.f32 1.0, %v6570_v33  ;;  %v4485_v34 = vmul.f32 %v6570_v33, %v7762_v48 }
0x254c   :  { %4553 = vrot.lane.b32.xlu0 %v4458_v2, %s6708_s6 }
0x254e   :  { %4524 = vrot.lane.b32.xlu1 %v4453_v28, %s6708_s6 }
0x25b6   :  { %v4544_v17 = vpop.permute.xlu0 %4543 }
0x25b7   :  { %v4546_v51 = vadd.f32 %v4544_v17, %v4355_v0  ;;  %v4601_v17 = vstv %s5837_s2 }
0x25b8   :  { %v4515_v47 = vpop.permute.xlu1 %4514 }
0x25b9   :  { %v5835_v18 = vmul.f32 -1.442695, %v4546_v51  ;;  %v4517_v49 = vadd.f32 %v4515_v47, %v4355_v0 }
0x25ba   :  { %v4496_v58 = vpop.permute.xlu0 %4495 }
0x25bb   :  { %6571 = vpow2.f32 %v5835_v18  ;;  %v5834_v59 = vmul.f32 -1.442695, %v4517_v49  ;;  %v4498_v4 = vmul.f32 %v6568_v25, %v4496_v58 }
0x25bc   :  { %v4470_v50 = vpop.permute.xlu1 %4469 }
0x25bd   :  { %6573 = vpow2.f32 %v5834_v59  ;;  %v4472_v61 = vmul.f32 %v6570_v33, %v4470_v50  ;;  %4500 = vrot.lane.b32.xlu0 %v4498_v4, %s6709_s25 }
0x25be   :  { %v4554_v10 = vpop.permute.xlu0 %4553 }
0x25bf   :  { %4474 = vrot.lane.b32.xlu1 %v4472_v61, %s6709_s25  ;;  %v7845_v61 = vld [vmem:[%s8184_s16] ss:$0 sm:$0xff]  ;;  %s5846_s16 = sld [smem:[#allocation6 + $0x6]] }
0x25c0   :  { %v4525_v6 = vpop.permute.xlu1 %4524 }
0x25c8   :  { %v6572_v23 = vpop.eup %6571 }
0x25c9   :  { %v4550_v11 = vadd.f32 1.0, %v6572_v23 }
0x25ca   :  { %v6574_v5 = vpop.eup %6573 }
0x25cb   :  { %6575 = vrcp.f32 %v4550_v11  ;;  %v4521_v9 = vadd.f32 1.0, %v6574_v5 }
0x25cd   :  { %6577 = vrcp.f32 %v4521_v9 }
0x25d8   :  { %v6576_v29 = vpop.eup %6575 }
0x25d9   :  { %v4556_v37 = vmul.f32 %v6576_v29, %v4554_v10  ;;  %v4563_v43 = vsub.f32 1.0, %v6576_v29  ;;  %v4569_v45 = vmul.f32 %v6576_v29, %v7778_v44  ;;  %v4594_v29 = vld [vmem:[#allocation12 + $0x28] sm:$0xff] }
0x25da   :  { %v6578_v42 = vpop.eup %6577 }
0x25db   :  { %v4527_v38 = vmul.f32 %v6578_v42, %v4525_v6  ;;  %4558 = vrot.lane.b32.xlu0 %v4556_v37, %s6709_s25  ;;  %v4540_v47 = vmul.f32 %v6578_v42, %v7775_v20 }
0x25dd   :  { %4529 = vrot.lane.b32.xlu1 %v4527_v38, %s6709_s25 }
0x262f   :  { %v4501_v32 = vpop.permute.xlu0 %4500 }
0x2630   :  { %v4503_v12 = vadd.f32 %v4501_v32, %v4353_v31 }
0x2631   :  { %v4475_v39 = vpop.permute.xlu1 %4474 }
0x2632   :  { %6579 = vtanh.f32 %v4503_v12  ;;  %v4477_v53 = vadd.f32 %v4475_v39, %v4353_v31  ;;  %v4599_v31 = vstv %s5836_s20 }
0x2634   :  { %6581 = vtanh.f32 %v4477_v53  ;;  %v4596_v53 = vld [vmem:[#allocation13 + $0x10] sm:$0xff] }
0x263f   :  { %v6580_v41 = vpop.eup %6579 }
0x2640   :  { %4507 = vrot.lane.b32.xlu0 %v6580_v41, %s6710_s28 }
0x2641   :  { %v6582_v14 = vpop.eup %6581 }
0x2642   :  { %4481 = vrot.lane.b32.xlu1 %v6582_v14, %s6710_s28 }
0x264d   :  { %v4559_v57 = vpop.permute.xlu0 %4558 }
0x264e   :  { %v4561_v63 = vadd.f32 %v4559_v57, %v4355_v0 }
0x264f   :  { %v4530_v15 = vpop.permute.xlu1 %4529 }
0x2650   :  { %6583 = vtanh.f32 %v4561_v63  ;;  %v4532_v26 = vadd.f32 %v4530_v15, %v4355_v0  ;;  %v4534_v0 = vsub.f32 1.0, %v6578_v42 }
0x2652   :  { %6585 = vtanh.f32 %v4532_v26 }
0x265d   :  { %v6584_v56 = vpop.eup %6583 }
0x265e   :  { %4565 = vrot.lane.b32.xlu0 %v6584_v56, %s6710_s28 }
0x265f   :  { %v6586_v22 = vpop.eup %6585 }
0x2660   :  { %4536 = vrot.lane.b32.xlu1 %v6586_v22, %s6710_s28 }
0x26b2   :  { %v4508_v2 = vpop.permute.xlu0 %4507 }
0x26b3   :  { %v4510_v28 = vmul.f32 %v4508_v2, %v4505_v40 }
0x26b4   :  { %v4482_v30 = vpop.permute.xlu1 %4481 }
0x26b5   :  { %v7810_v1 = vadd.f32 %v4511_v60, %v4510_v28  ;;  %v4484_v35 = vmul.f32 %v4482_v30, %v4479_v3 }
0x26b7   :  { %v7813_v16 = vadd.f32 %v4485_v34, %v4484_v35  ;;  %v7816_v54 = vmul.f32 %v4599_v31, %v7810_v1 }
0x26b9   :  { %4605 = vrot.lane.b32.xlu1 %v7816_v54, %s6710_s28  ;;  %4573 = vrot.lane.b32.xlu0 %v7813_v16, %s6710_s28 }
0x26d0   :  { %v4566_v55 = vpop.permute.xlu0 %4565 }
0x26d1   :  { %v4568_v13 = vmul.f32 %v4566_v55, %v4563_v43 }
0x26d2   :  { %v4537_v48 = vpop.permute.xlu1 %4536 }
0x26d3   :  { %v7823_v51 = vadd.f32 %v4569_v45, %v4568_v13  ;;  %v4539_v18 = vmul.f32 %v4537_v48, %v4534_v0 }
0x26d5   :  { %v7826_v49 = vadd.f32 %v4540_v47, %v4539_v18  ;;  %v7829_v25 = vmul.f32 %v4601_v17, %v7823_v51 }
0x26d7   :  { %4607 = vrot.lane.b32.xlu1 %v7829_v25, %s6710_s28  ;;  %4584 = vrot.lane.b32.xlu0 %v7826_v49, %s6710_s28 }
0x272b   :  { %v4574_v44 = vpop.permute.xlu0 %4573  ;;  %v4606_v58 = vpop.permute.xlu1 %4605 }
0x272c   :  { %4580 = vst.msk [vmem:[#allocation14 + $0x40] sm:$0xff] %vm375_vm1, %v4574_v44  ;;  %6205 = vmatprep.mubr.msk.f32.mxu1 %vm375_vm1, %v4574_v44 }
0x272d   :  { %6206 = vmatmul.mubr.msk.f32.vlgmr.msra.gmra.mxu1 %vm375_vm1, %v4606_v58 }
0x272e   :  { %6220 = vmatpush3.msra.mxu1 %v7733_v24 }
0x2749   :  { %v4585_v20 = vpop.permute.xlu0 %4584  ;;  %v4608_v59 = vpop.permute.xlu1 %4607 }
0x274a   :  { %4591 = vst.msk [vmem:[#allocation15 + $0x30] sm:$0xff] %vm375_vm1, %v4585_v20  ;;  %6208 = vmatprep.mubr.msk.f32.mxu1 %vm375_vm1, %v4585_v20 }
0x274b   :  { %6209 = vmatmul.mubr.msk.f32.gmra.mxu1 %vm375_vm1, %v4608_v59 }
0x27ed   :  { %v6207_v4 = vpop.f32.mrf.mxu1 }
0x27ee   :  { %v4689_v5 = vadd.f32 %v7845_v61, %v6207_v4 }
0x27ef   :  { %v4683_v33 = vpop.f32.mrf.mxu1 }
0x27f0   :  { %v4684_v9 = vadd.f32 %v7845_v61, %v4683_v33  ;;  %v4728_v10 = vadd.f32 %v4689_v5, %v4594_v29 }
0x27f2   :  { %v4702_v37 = vadd.f32 %v4684_v9, %v4594_v29  ;;  %v5843_v42 = vmul.f32 -1.442695, %v4728_v10  ;;  %v4840_v10 = vstv %s5846_s16 }
0x27f4   :  { %v5842_v6 = vmul.f32 -1.442695, %v4702_v37  ;;  %6587 = vpow2.f32 %v5843_v42 }
0x27f6   :  { %6589 = vpow2.f32 %v5842_v6 }
0x2801   :  { %v6588_v38 = vpop.eup %6587 }
0x2802   :  { %v4732_v12 = vadd.f32 1.0, %v6588_v38 }
0x2803   :  { %v6590_v32 = vpop.eup %6589 }
0x2804   :  { %v4706_v39 = vadd.f32 1.0, %v6590_v32  ;;  %6591 = vrcp.f32 %v4732_v12 }
0x2806   :  { %6593 = vrcp.f32 %v4706_v39 }
0x280b   :  { %v6210_v50 = vpop.f32.mrf.mxu1 }
0x280c   :  { %v4699_v23 = vadd.f32 %v7845_v61, %v6210_v50 }
0x280d   :  { %v4693_v11 = vpop.f32.mrf.mxu1 }
0x280e   :  { %v4694_v24 = vadd.f32 %v7845_v61, %v4693_v11  ;;  %4784 = vrot.lane.b32.xlu0 %v4699_v23, %s6707_s24 }
0x2810   :  { %4755 = vrot.lane.b32.xlu1 %v4694_v24, %s6707_s24 }
0x2811   :  { %v6592_v26 = vpop.eup %6591 }
0x2812   :  { %4736 = vrot.lane.b32.xlu0 %v4689_v5, %s6706_s11  ;;  %v4746_v11 = vsub.f32 1.0, %v6592_v26  ;;  %v4752_v5 = vmul.f32 %v6592_v26, %v7816_v54 }
0x2813   :  { %v6594_v2 = vpop.eup %6593 }
0x2814   :  { %4710 = vrot.lane.b32.xlu1 %v4684_v9, %s6706_s11  ;;  %v4726_v6 = vmul.f32 %v6594_v2, %v7813_v16  ;;  %v4842_v16 = vstv %s5847_s3 }
0x2816   :  { %4794 = vrot.lane.b32.xlu0 %v4699_v23, %s6708_s6 }
0x2818   :  { %4765 = vrot.lane.b32.xlu1 %v4694_v24, %s6708_s6 }
0x2880   :  { %v4785_v41 = vpop.permute.xlu0 %4784 }
0x2881   :  { %v4787_v14 = vadd.f32 %v4785_v41, %v4596_v53 }
0x2882   :  { %v4756_v57 = vpop.permute.xlu1 %4755 }
0x2883   :  { %v5845_v63 = vmul.f32 -1.442695, %v4787_v14  ;;  %v4758_v15 = vadd.f32 %v4756_v57, %v4596_v53 }
0x2884   :  { %v4737_v56 = vpop.permute.xlu0 %4736 }
0x2885   :  { %6595 = vpow2.f32 %v5845_v63  ;;  %v5844_v22 = vmul.f32 -1.442695, %v4758_v15  ;;  %v4739_v40 = vmul.f32 %v6592_v26, %v4737_v56 }
0x2886   :  { %v4711_v60 = vpop.permute.xlu1 %4710 }
0x2887   :  { %6597 = vpow2.f32 %v5844_v22  ;;  %v4713_v28 = vmul.f32 %v6594_v2, %v4711_v60  ;;  %4741 = vrot.lane.b32.xlu0 %v4739_v40, %s6709_s25 }
0x2888   :  { %v4795_v43 = vpop.permute.xlu0 %4794 }
0x2889   :  { %4715 = vrot.lane.b32.xlu1 %v4713_v28, %s6709_s25 }
0x288a   :  { %v4766_v13 = vpop.permute.xlu1 %4765 }
0x2892   :  { %v6596_v3 = vpop.eup %6595 }
0x2893   :  { %v4791_v30 = vadd.f32 1.0, %v6596_v3 }
0x2894   :  { %v6598_v31 = vpop.eup %6597 }
0x2895   :  { %6599 = vrcp.f32 %v4791_v30  ;;  %v4762_v34 = vadd.f32 1.0, %v6598_v31 }
0x2897   :  { %6601 = vrcp.f32 %v4762_v34 }
0x28a2   :  { %v6600_v35 = vpop.eup %6599 }
0x28a3   :  { %v4797_v55 = vmul.f32 %v6600_v35, %v4795_v43  ;;  %v4804_v54 = vsub.f32 1.0, %v6600_v35 }
0x28a4   :  { %v6602_v45 = vpop.eup %6601 }
0x28a5   :  { %v4768_v0 = vmul.f32 %v6602_v45, %v4766_v13  ;;  %4799 = vrot.lane.b32.xlu0 %v4797_v55, %s6709_s25  ;;  %v4775_v14 = vsub.f32 1.0, %v6602_v45  ;;  %v4781_v15 = vmul.f32 %v6602_v45, %v7826_v49  ;;  %v4835_v55 = vld [vmem:[#allocation12 + $0x30] sm:$0xff] }
0x28a7   :  { %4770 = vrot.lane.b32.xlu1 %v4768_v0, %s6709_s25 }
0x28f9   :  { %v4742_v48 = vpop.permute.xlu0 %4741 }
0x28fa   :  { %v4744_v17 = vadd.f32 %v4742_v48, %v4594_v29 }
0x28fb   :  { %v4716_v47 = vpop.permute.xlu1 %4715 }
0x28fc   :  { %6603 = vtanh.f32 %v4744_v17  ;;  %v4718_v18 = vadd.f32 %v4716_v47, %v4594_v29  ;;  %v4720_v29 = vsub.f32 1.0, %v6594_v2 }
0x28fe   :  { %6605 = vtanh.f32 %v4718_v18 }
0x2909   :  { %v6604_v44 = vpop.eup %6603 }
0x290a   :  { %4748 = vrot.lane.b32.xlu0 %v6604_v44, %s6710_s28 }
0x290b   :  { %v6606_v58 = vpop.eup %6605 }
0x290c   :  { %4722 = vrot.lane.b32.xlu1 %v6606_v58, %s6710_s28 }
0x2917   :  { %v4800_v20 = vpop.permute.xlu0 %4799 }
0x2918   :  { %v4802_v59 = vadd.f32 %v4800_v20, %v4596_v53  ;;  %v4837_v20 = vld [vmem:[#allocation13 + $0x8] sm:$0xff] }
0x2919   :  { %v4771_v4 = vpop.permute.xlu1 %4770 }
0x291a   :  { %6607 = vtanh.f32 %v4802_v59  ;;  %v4773_v33 = vadd.f32 %v4771_v4, %v4596_v53  ;;  %v4810_v53 = vmul.f32 %v6600_v35, %v7829_v25 }
0x291c   :  { %6609 = vtanh.f32 %v4773_v33 }
0x2927   :  { %v6608_v50 = vpop.eup %6607 }
0x2928   :  { %4806 = vrot.lane.b32.xlu0 %v6608_v50, %s6710_s28 }
0x2929   :  { %v6610_v23 = vpop.eup %6609 }
0x292a   :  { %4777 = vrot.lane.b32.xlu1 %v6610_v23, %s6710_s28 }
0x297c   :  { %v4749_v24 = vpop.permute.xlu0 %4748 }
0x297d   :  { %v4751_v9 = vmul.f32 %v4749_v24, %v4746_v11 }
0x297e   :  { %v4723_v37 = vpop.permute.xlu1 %4722 }
0x297f   :  { %v7866_v42 = vadd.f32 %v4752_v5, %v4751_v9  ;;  %v4725_v38 = vmul.f32 %v4723_v37, %v4720_v29 }
0x2981   :  { %v7870_v32 = vmul.f32 %v4840_v10, %v7866_v42  ;;  %v7872_v12 = vadd.f32 %v4726_v6, %v4725_v38 }
0x2983   :  { %4846 = vrot.lane.b32.xlu1 %v7870_v32, %s6710_s28  ;;  %4814 = vrot.lane.b32.xlu0 %v7872_v12, %s6710_s28 }
0x299a   :  { %v4807_v39 = vpop.permute.xlu0 %4806 }
0x299b   :  { %v4809_v41 = vmul.f32 %v4807_v39, %v4804_v54 }
0x299c   :  { %v4778_v57 = vpop.permute.xlu1 %4777 }
0x299d   :  { %v7879_v63 = vadd.f32 %v4810_v53, %v4809_v41  ;;  %v4780_v26 = vmul.f32 %v4778_v57, %v4775_v14 }
0x299f   :  { %v7883_v56 = vmul.f32 %v4842_v16, %v7879_v63  ;;  %v7885_v22 = vadd.f32 %v4781_v15, %v4780_v26 }
0x29a1   :  { %4848 = vrot.lane.b32.xlu1 %v7883_v56, %s6710_s28  ;;  %4825 = vrot.lane.b32.xlu0 %v7885_v22, %s6710_s28 }
0x29f5   :  { %v4815_v25 = vpop.permute.xlu0 %4814  ;;  %v4847_v40 = vpop.permute.xlu1 %4846 }
0x29f6   :  { %4821 = vst.msk [vmem:[#allocation14 + $0x50] sm:$0xff] %vm375_vm1, %v4815_v25  ;;  %6213 = vmatprep.mubr.msk.f32.mxu0 %vm375_vm1, %v4815_v25 }
0x29f7   :  { %6214 = vmatmul.mubr.msk.f32.vlgmr.msra.gmra.mxu0 %vm375_vm1, %v4847_v40 }
0x2a13   :  { %v4826_v49 = vpop.permute.xlu0 %4825  ;;  %v4849_v2 = vpop.permute.xlu1 %4848 }
0x2a14   :  { %4832 = vst.msk [vmem:[#allocation15 + $0x20] sm:$0xff] %vm375_vm1, %v4826_v49  ;;  %6216 = vmatprep.mubr.msk.f32.mxu0 %vm375_vm1, %v4826_v49 }
0x2a15   :  { %6217 = vmatmul.mubr.msk.f32.gmra.mxu0 %vm375_vm1, %v4849_v2 }
0x2ab7   :  { %v6215_v60 = vpop.f32.mrf.mxu0 }
0x2ab8   :  { %v4930_v35 = vadd.f32 %v7845_v61, %v6215_v60 }
0x2ab9   :  { %v4924_v28 = vpop.f32.mrf.mxu0 }
0x2aba   :  { %v4925_v43 = vadd.f32 %v7845_v61, %v4924_v28  ;;  %v4969_v45 = vadd.f32 %v4930_v35, %v4835_v55 }
0x2abc   :  { %v4943_v13 = vadd.f32 %v4925_v43, %v4835_v55  ;;  %v5853_v0 = vmul.f32 -1.442695, %v4969_v45 }
0x2abe   :  { %v5852_v48 = vmul.f32 -1.442695, %v4943_v13  ;;  %6611 = vpow2.f32 %v5853_v0  ;;  %v5080_v0 = vstv %s5856_s21 }
0x2ac0   :  { %6613 = vpow2.f32 %v5852_v48 }
0x2acb   :  { %v6612_v17 = vpop.eup %6611 }
0x2acc   :  { %v4973_v18 = vadd.f32 1.0, %v6612_v17 }
0x2acd   :  { %v6614_v47 = vpop.eup %6613 }
0x2ace   :  { %v4947_v44 = vadd.f32 1.0, %v6614_v47  ;;  %6615 = vrcp.f32 %v4973_v18 }
0x2ad0   :  { %6617 = vrcp.f32 %v4947_v44 }
0x2ad5   :  { %v6218_v3 = vpop.f32.mrf.mxu0 }
0x2ad6   :  { %v4940_v30 = vadd.f32 %v7845_v61, %v6218_v3 }
0x2ad7   :  { %v4934_v31 = vpop.f32.mrf.mxu0 }
0x2ad8   :  { %v4935_v34 = vadd.f32 %v7845_v61, %v4934_v31  ;;  %5025 = vrot.lane.b32.xlu0 %v4940_v30, %s6707_s24 }
0x2ada   :  { %4996 = vrot.lane.b32.xlu1 %v4935_v34, %s6707_s24 }
0x2adb   :  { %v6616_v23 = vpop.eup %6615 }
0x2adc   :  { %4977 = vrot.lane.b32.xlu0 %v4930_v35, %s6706_s11  ;;  %v4987_v35 = vsub.f32 1.0, %v6616_v23 }
0x2add   :  { %v6618_v9 = vpop.eup %6617 }
0x2ade   :  { %4951 = vrot.lane.b32.xlu1 %v4925_v43, %s6706_s11  ;;  %v4961_v13 = vsub.f32 1.0, %v6618_v9  ;;  %v4967_v47 = vmul.f32 %v6618_v9, %v7872_v12  ;;  %v5082_v12 = vstv %s5079_s1 }
0x2ae0   :  { %5035 = vrot.lane.b32.xlu0 %v4940_v30, %s6708_s6 }
0x2ae2   :  { %5006 = vrot.lane.b32.xlu1 %v4935_v34, %s6708_s6 }
0x2b4a   :  { %v5026_v58 = vpop.permute.xlu0 %5025 }
0x2b4b   :  { %v5028_v59 = vadd.f32 %v5026_v58, %v4837_v20 }
0x2b4c   :  { %v4997_v4 = vpop.permute.xlu1 %4996 }
0x2b4d   :  { %v5855_v33 = vmul.f32 -1.442695, %v5028_v59  ;;  %v4999_v50 = vadd.f32 %v4997_v4, %v4837_v20 }
0x2b4e   :  { %v4978_v11 = vpop.permute.xlu0 %4977 }
0x2b4f   :  { %6619 = vpow2.f32 %v5855_v33  ;;  %v5854_v24 = vmul.f32 -1.442695, %v4999_v50  ;;  %v4980_v5 = vmul.f32 %v6616_v23, %v4978_v11 }
0x2b50   :  { %v4952_v29 = vpop.permute.xlu1 %4951 }
0x2b51   :  { %6621 = vpow2.f32 %v5854_v24  ;;  %v4954_v10 = vmul.f32 %v6618_v9, %v4952_v29  ;;  %4982 = vrot.lane.b32.xlu0 %v4980_v5, %s6709_s25 }
0x2b52   :  { %v5036_v53 = vpop.permute.xlu0 %5035 }
0x2b53   :  { %4956 = vrot.lane.b32.xlu1 %v4954_v10, %s6709_s25 }
0x2b54   :  { %v5007_v16 = vpop.permute.xlu1 %5006 }
0x2b5c   :  { %v6620_v37 = vpop.eup %6619 }
0x2b5d   :  { %v5032_v6 = vadd.f32 1.0, %v6620_v37 }
0x2b5e   :  { %v6622_v38 = vpop.eup %6621 }
0x2b5f   :  { %6623 = vrcp.f32 %v5032_v6  ;;  %v5003_v54 = vadd.f32 1.0, %v6622_v38 }
0x2b61   :  { %6625 = vrcp.f32 %v5003_v54 }
0x2b6c   :  { %v6624_v39 = vpop.eup %6623 }
0x2b6d   :  { %v5038_v41 = vmul.f32 %v6624_v39, %v5036_v53  ;;  %v5051_v59 = vmul.f32 %v6624_v39, %v7883_v56 }
0x2b6e   :  { %v6626_v14 = vpop.eup %6625 }
0x2b6f   :  { %v5009_v57 = vmul.f32 %v6626_v14, %v5007_v16  ;;  %5040 = vrot.lane.b32.xlu0 %v5038_v41, %s6709_s25  ;;  %v5016_v33 = vsub.f32 1.0, %v6626_v14  ;;  %v5022_v11 = vmul.f32 %v6626_v14, %v7885_v22  ;;  %v5076_v16 = vld [vmem:[#allocation12 + $0x38] sm:$0xff] }
0x2b71   :  { %5011 = vrot.lane.b32.xlu1 %v5009_v57, %s6709_s25 }
0x2bc3   :  { %v4983_v15 = vpop.permute.xlu0 %4982 }
0x2bc4   :  { %v4985_v26 = vadd.f32 %v4983_v15, %v4835_v55 }
0x2bc5   :  { %v4957_v25 = vpop.permute.xlu1 %4956 }
0x2bc6   :  { %6627 = vtanh.f32 %v4985_v26  ;;  %v4959_v40 = vadd.f32 %v4957_v25, %v4835_v55  ;;  %v4993_v55 = vmul.f32 %v6616_v23, %v7870_v32  ;;  %v5045_v32 = vsub.f32 1.0, %v6624_v39 }
0x2bc8   :  { %6629 = vtanh.f32 %v4959_v40 }
0x2bd3   :  { %v6628_v49 = vpop.eup %6627 }
0x2bd4   :  { %4989 = vrot.lane.b32.xlu0 %v6628_v49, %s6710_s28 }
0x2bd5   :  { %v6630_v2 = vpop.eup %6629 }
0x2bd6   :  { %4963 = vrot.lane.b32.xlu1 %v6630_v2, %s6710_s28  ;;  %v7957_v2 = vld [vmem:[#allocation13] sm:$0xff] }
0x2be1   :  { %v5041_v60 = vpop.permute.xlu0 %5040 }
0x2be2   :  { %v5043_v28 = vadd.f32 %v5041_v60, %v4837_v20 }
0x2be3   :  { %v5012_v3 = vpop.permute.xlu1 %5011 }
0x2be4   :  { %6631 = vtanh.f32 %v5043_v28  ;;  %v5014_v30 = vadd.f32 %v5012_v3, %v4837_v20 }
0x2be6   :  { %6633 = vtanh.f32 %v5014_v30 }
0x2bf1   :  { %v6632_v31 = vpop.eup %6631 }
0x2bf2   :  { %5047 = vrot.lane.b32.xlu0 %v6632_v31, %s6710_s28 }
0x2bf3   :  { %v6634_v34 = vpop.eup %6633 }
0x2bf4   :  { %5018 = vrot.lane.b32.xlu1 %v6634_v34, %s6710_s28 }
0x2c46   :  { %v4990_v43 = vpop.permute.xlu0 %4989 }
0x2c47   :  { %v4992_v45 = vmul.f32 %v4990_v43, %v4987_v35 }
0x2c48   :  { %v4964_v48 = vpop.permute.xlu1 %4963 }
0x2c49   :  { %v7916_v17 = vadd.f32 %v4993_v55, %v4992_v45  ;;  %v4966_v18 = vmul.f32 %v4964_v48, %v4961_v13 }
0x2c4b   :  { %v7920_v44 = vmul.f32 %v5080_v0, %v7916_v17  ;;  %v7922_v58 = vadd.f32 %v4967_v47, %v4966_v18 }
0x2c4d   :  { %5086 = vrot.lane.b32.xlu1 %v7920_v44, %s6710_s28  ;;  %5055 = vrot.lane.b32.xlu0 %v7922_v58, %s6710_s28 }
0x2c64   :  { %v5048_v20 = vpop.permute.xlu0 %5047 }
0x2c65   :  { %v5050_v4 = vmul.f32 %v5048_v20, %v5045_v32 }
0x2c66   :  { %v5019_v50 = vpop.permute.xlu1 %5018 }
0x2c67   :  { %v7929_v23 = vadd.f32 %v5051_v59, %v5050_v4  ;;  %v5021_v24 = vmul.f32 %v5019_v50, %v5016_v33 }
0x2c69   :  { %v7933_v5 = vmul.f32 %v5082_v12, %v7929_v23  ;;  %v7935_v9 = vadd.f32 %v5022_v11, %v5021_v24 }
0x2c6b   :  { %5088 = vrot.lane.b32.xlu1 %v7933_v5, %s6710_s28  ;;  %5066 = vrot.lane.b32.xlu0 %v7935_v9, %s6710_s28 }
0x2cbf   :  { %v5056_v56 = vpop.permute.xlu0 %5055  ;;  %v5087_v29 = vpop.permute.xlu1 %5086 }
0x2cc0   :  { %5062 = vst.msk [vmem:[#allocation14 + $0x60] sm:$0xff] %vm375_vm1, %v5056_v56  ;;  %6221 = vmatprep.mubr.msk.f32.mxu1 %vm375_vm1, %v5056_v56 }
0x2cc1   :  { %6222 = vmatmul.mubr.msk.f32.vlgmr.msra.gmra.mxu1 %vm375_vm1, %v5087_v29 }
0x2cdd   :  { %v5067_v22 = vpop.permute.xlu0 %5066  ;;  %v5089_v10 = vpop.permute.xlu1 %5088 }
0x2cde   :  { %5073 = vst.msk [vmem:[#allocation15 + $0x10] sm:$0xff] %vm375_vm1, %v5067_v22  ;;  %6224 = vmatprep.mubr.msk.f32.mxu1 %vm375_vm1, %v5067_v22 }
0x2cdf   :  { %6225 = vmatmul.mubr.msk.f32.gmra.mxu1 %vm375_vm1, %v5089_v10 }
0x2d81   :  { %v6223_v37 = vpop.f32.mrf.mxu1 }
0x2d82   :  { %v5170_v41 = vadd.f32 %v7845_v61, %v6223_v37 }
0x2d83   :  { %v5164_v6 = vpop.f32.mrf.mxu1 }
0x2d84   :  { %v5165_v14 = vadd.f32 %v7845_v61, %v5164_v6  ;;  %v5209_v40 = vadd.f32 %v5170_v41, %v5076_v16 }
0x2d86   :  { %v5183_v57 = vadd.f32 %v5165_v14, %v5076_v16  ;;  %v5862_v49 = vmul.f32 -1.442695, %v5209_v40 }
0x2d88   :  { %v5861_v15 = vmul.f32 -1.442695, %v5183_v57 }
0x2d8a   :  { %6635 = vpow2.f32 %v5861_v15 }
0x2d97   :  { %v6636_v26 = vpop.eup %6635 }
0x2d98   :  { %v5187_v25 = vadd.f32 1.0, %v6636_v26 }
0x2d9a   :  { %6637 = vrcp.f32 %v5187_v25 }
0x2d9b   :  { %6639 = vpow2.f32 %v5862_v49 }
0x2d9f   :  { %v6226_v38 = vpop.f32.mrf.mxu1 }
0x2da0   :  { %v5180_v54 = vadd.f32 %v7845_v61, %v6226_v38 }
0x2da1   :  { %v5174_v39 = vpop.f32.mrf.mxu1 }
0x2da2   :  { %v5175_v53 = vadd.f32 %v7845_v61, %v5174_v39  ;;  %5265 = vrot.lane.b32.xlu1 %v5180_v54, %s6707_s24 }
0x2da4   :  { %5236 = vrot.lane.b32.xlu0 %v5175_v53, %s6707_s24 }
0x2da6   :  { %5275 = vrot.lane.b32.xlu1 %v5180_v54, %s6708_s6 }
0x2da7   :  { %v7961_v35 = vpop.eup %6637 }
0x2da8   :  { %5246 = vrot.lane.b32.xlu0 %v5175_v53, %s6708_s6  ;;  %v6640_v45 = vpop.eup %6639  ;;  %v5207_v39 = vmul.f32 %v7961_v35, %v7922_v58 }
0x2da9   :  { %v5213_v47 = vadd.f32 1.0, %v6640_v45 }
0x2daa   :  { %5217 = vrot.lane.b32.xlu1 %v5170_v41, %s6706_s11 }
0x2dac   :  { %5191 = vrot.lane.b32.xlu0 %v5165_v14, %s6706_s11 }
0x2e14   :  { %v5266_v60 = vpop.permute.xlu1 %5265 }
0x2e15   :  { %v5268_v28 = vadd.f32 %v5266_v60, %v7957_v2 }
0x2e16   :  { %v5237_v3 = vpop.permute.xlu0 %5236 }
0x2e17   :  { %v5864_v61 = vmul.f32 -1.442695, %v5268_v28  ;;  %v5239_v30 = vadd.f32 %v5237_v3, %v7957_v2 }
0x2e18   :  { %v5276_v32 = vpop.permute.xlu1 %5275 }
0x2e19   :  { %6641 = vpow2.f32 %v5864_v61  ;;  %v5863_v31 = vmul.f32 -1.442695, %v5239_v30 }
0x2e1a   :  { %v5247_v34 = vpop.permute.xlu0 %5246 }
0x2e1b   :  { %6643 = vpow2.f32 %v5863_v31 }
0x2e1c   :  { %v5218_v33 = vpop.permute.xlu1 %5217 }
0x2e1e   :  { %v5192_v43 = vpop.permute.xlu0 %5191 }
0x2e1f   :  { %v5194_v55 = vmul.f32 %v7961_v35, %v5192_v43 }
0x2e21   :  { %5196 = vrot.lane.b32.xlu0 %v5194_v55, %s6709_s25 }
0x2e26   :  { %v6642_v13 = vpop.eup %6641 }
0x2e27   :  { %v5272_v0 = vadd.f32 1.0, %v6642_v13 }
0x2e28   :  { %v6644_v48 = vpop.eup %6643 }
0x2e29   :  { %6645 = vrcp.f32 %v5272_v0  ;;  %v5243_v18 = vadd.f32 1.0, %v6644_v48  ;;  %v5315_v0 = vld [vmem:[#allocation14] sm:$0xff] }
0x2e2b   :  { %6647 = vrcp.f32 %v5243_v18 }
0x2e2c   :  { %6649 = vrcp.f32 %v5213_v47  ;;  %v5332_v47 = vld [vmem:[#allocation15 + $0x10] sm:$0xff] }
0x2e36   :  { %v7965_v20 = vpop.eup %6645 }
0x2e37   :  { %v5278_v59 = vmul.f32 %v7965_v20, %v5276_v32  ;;  %v5285_v58 = vsub.f32 1.0, %v7965_v20  ;;  %v5291_v49 = vmul.f32 %v7965_v20, %v7933_v5  ;;  %v5333_v32 = vld [vmem:[#allocation15 + $0x20] sm:$0xff] }
0x2e38   :  { %v7968_v4 = vpop.eup %6647 }
0x2e39   :  { %v5249_v12 = vmul.f32 %v7968_v4, %v5247_v34  ;;  %5280 = vrot.lane.b32.xlu1 %v5278_v59, %s6709_s25  ;;  %v7972_v50 = vpop.eup %6649 }
0x2e3a   :  { %v5220_v11 = vmul.f32 %v7972_v50, %v5218_v33  ;;  %v5227_v28 = vsub.f32 1.0, %v7972_v50  ;;  %v5233_v30 = vmul.f32 %v7972_v50, %v7920_v44  ;;  %v5334_v33 = vld [vmem:[#allocation15 + $0x30] sm:$0xff] }
0x2e3d   :  { %5222 = vrot.lane.b32.xlu1 %v5220_v11, %s6709_s25 }
0x2e93   :  { %v5197_v24 = vpop.permute.xlu0 %5196 }
0x2e94   :  { %v5199_v56 = vadd.f32 %v5197_v24, %v5076_v16 }
0x2e96   :  { %6651 = vtanh.f32 %v5199_v56 }
0x2ea3   :  { %v6652_v29 = vpop.eup %6651 }
0x2ea4   :  { %5203 = vrot.lane.b32.xlu0 %v6652_v29, %s6710_s28 }
0x2ea8   :  { %5251 = vrot.lane.b32.xlu0 %v5249_v12, %s6709_s25 }
0x2eab   :  { %v5281_v22 = vpop.permute.xlu1 %5280 }
0x2eac   :  { %v5283_v10 = vadd.f32 %v5281_v22, %v7957_v2  ;;  %3852 = vrot.lane.b32.xlu0 %v7650_v8, %s6710_s28 }
0x2eae   :  { %6653 = vtanh.f32 %v5283_v10 }
0x2eaf   :  { %v5223_v37 = vpop.permute.xlu1 %5222 }
0x2eb0   :  { %v5225_v6 = vadd.f32 %v5223_v37, %v5076_v16  ;;  %4334 = vrot.lane.b32.xlu0 %v7759_v7, %s6710_s28  ;;  %v7996_v7 = vld [vmem:[%s8187_s19] ss:$0 sm:$0xff] }
0x2eb1   :  { %v5353_v48 = vmul.f32 %v7996_v7, %v5315_v0 }
0x2eb2   :  { %6655 = vtanh.f32 %v5225_v6 }
0x2eb3   :  { %v5361_v18 = vsel %vm375_vm1, %v5353_v48, 0.0 }
0x2eb4   :  { %4827 = vrot.lane.b32.xlu0 %v7879_v63, %s6710_s28 }
0x2eb8   :  { %4816 = vrot.lane.b32.xlu0 %v7866_v42, %s6710_s28  ;;  %v5318_v42 = vld [vmem:[#allocation14 + $0x30] sm:$0xff] }
0x2ebb   :  { %v6654_v38 = vpop.eup %6653 }
0x2ebc   :  { %5287 = vrot.lane.b32.xlu1 %v6654_v38, %s6710_s28  ;;  %4345 = vrot.lane.b32.xlu0 %v7772_v62, %s6710_s28  ;;  %v5317_v62 = vld [vmem:[#allocation14 + $0x20] sm:$0xff] }
0x2ebd   :  { %v5319_v38 = vld [vmem:[#allocation14 + $0x40] sm:$0xff] }
0x2ebf   :  { %v6656_v8 = vpop.eup %6655 }
0x2ec0   :  { %5229 = vrot.lane.b32.xlu1 %v6656_v8, %s6710_s28  ;;  %4104 = vrot.lane.b32.xlu0 %v7715_v27, %s6710_s28 }
0x2ec4   :  { %3612 = vrot.lane.b32.xlu1 %v7600_v19, %s6710_s28  ;;  %5385 = vrot.lane.b32.xlu0 %v7996_v7, %s6710_s28  ;;  %v5316_v19 = vld [vmem:[#allocation14 + $0x10] sm:$0xff] }
0x2ec5   :  { %v5354_v27 = vmul.f32 %v7996_v7, %v5316_v19 }
0x2ec8   :  { %4093 = vrot.lane.b32.xlu1 %v7702_v36, %s6710_s28  ;;  %3622 = vrot.lane.b32.xlu0 %v7612_v46, %s6710_s28  ;;  %v5364_v36 = vsel %vm375_vm1, %v5354_v27, 0.0  ;;  %v5355_v46 = vmul.f32 %v7996_v7, %v5317_v62  ;;  %v5335_v27 = vld [vmem:[#allocation15 + $0x40] sm:$0xff] }
0x2eca   :  { %v5367_v63 = vsel %vm375_vm1, %v5355_v46, 0.0  ;;  %v5357_v46 = vmul.f32 %v7996_v7, %v5319_v38 }
0x2ecc   :  { %5068 = vrot.lane.b32.xlu1 %v7929_v23, %s6710_s28  ;;  %5471 = vrot.lane.b32.xlu0 %v7996_v7, %s6707_s24  ;;  %v5356_v23 = vmul.f32 %v7996_v7, %v5318_v42 }
0x2ed0   :  { %4575 = vrot.lane.b32.xlu1 %v7810_v1, %s6710_s28  ;;  %v5370_v1 = vsel %vm375_vm1, %v5356_v23, 0.0  ;;  %v5373_v23 = vsel %vm375_vm1, %v5357_v46, 0.0 }
0x2ed4   :  { %4586 = vrot.lane.b32.xlu1 %v7823_v51, %s6710_s28  ;;  %v5201_v51 = vsub.f32 1.0, %v7961_v35 }
0x2eeb   :  { %5365 = vadd.xlane.f32.xlu0 %v5364_v36 }
0x2eef   :  { %5368 = vadd.xlane.f32.xlu0 %v5367_v63  ;;  %v5320_v63 = vld [vmem:[#allocation14 + $0x50] sm:$0xff] }
0x2ef3   :  { %5371 = vadd.xlane.f32.xlu0 %v5370_v1 }
0x2f16   :  { %v5204_v54 = vpop.permute.xlu0 %5203 }
0x2f17   :  { %v5206_v53 = vmul.f32 %v5204_v54, %v5201_v51  ;;  %v5358_v51 = vmul.f32 %v7996_v7, %v5320_v63 }
0x2f19   :  { %v5208_v41 = vadd.f32 %v5207_v39, %v5206_v53  ;;  %v5376_v39 = vsel %vm375_vm1, %v5358_v51, 0.0 }
0x2f1a   :  { %v8023_v14 = vpop.permute.xlu0 %5251 }
0x2f1b   :  { %5295 = vrot.lane.b32.xlu1 %v5208_v41, %s6710_s28  ;;  %v5254_v41 = vadd.f32 %v8023_v14, %v7957_v2  ;;  %v5338_v14 = vld [vmem:[#allocation15 + $0x70] sm:$0xff] }
0x2f1d   :  { %6657 = vtanh.f32 %v5254_v41 }
0x2f1e   :  { %v3853_v16 = vpop.permute.xlu0 %3852 }
0x2f1f   :  { %3858 = vst.msk [vmem:[#allocation14 + $0x18] sm:$0xff] %vm375_vm1, %v3853_v16  ;;  %5057 = vrot.lane.b32.xlu1 %v7916_v17, %s6710_s28 }
0x2f22   :  { %v4335_v57 = vpop.permute.xlu0 %4334 }
0x2f23   :  { %4340 = vst.msk [vmem:[#allocation14 + $0x38] sm:$0xff] %vm375_vm1, %v4335_v57 }
0x2f26   :  { %v4828_v15 = vpop.permute.xlu0 %4827  ;;  %v5324_v6 = vld [vmem:[#allocation14 + $0x18] sm:$0xff] }
0x2f27   :  { %4833 = vst.msk [vmem:[#allocation15 + $0x28] sm:$0xff] %vm375_vm1, %v4828_v15 }
0x2f2a   :  { %v4817_v26 = vpop.permute.xlu0 %4816  ;;  %v5326_v54 = vld [vmem:[#allocation14 + $0x38] sm:$0xff] }
0x2f2b   :  { %4822 = vst.msk [vmem:[#allocation14 + $0x58] sm:$0xff] %vm375_vm1, %v4817_v26 }
0x2f2e   :  { %v5288_v25 = vpop.permute.xlu1 %5287  ;;  %v4346_v40 = vpop.permute.xlu0 %4345 }
0x2f2f   :  { %v5290_v60 = vmul.f32 %v5288_v25, %v5285_v58  ;;  %4351 = vst.msk [vmem:[#allocation15 + $0x48] sm:$0xff] %vm375_vm1, %v4346_v40  ;;  %v5337_v58 = vld [vmem:[#allocation15 + $0x60] sm:$0xff] }
0x2f31   :  { %v8036_v17 = vadd.f32 %v5291_v49, %v5290_v60  ;;  %v5341_v49 = vld [vmem:[#allocation15 + $0x28] sm:$0xff] }
0x2f32   :  { %v5230_v3 = vpop.permute.xlu1 %5229  ;;  %v4105_v61 = vpop.permute.xlu0 %4104 }
0x2f33   :  { %v5232_v31 = vmul.f32 %v5230_v3, %v5227_v28  ;;  %4110 = vst.msk [vmem:[#allocation15 + $0x58] sm:$0xff] %vm375_vm1, %v4105_v61 }
0x2f35   :  { %v5234_v34 = vadd.f32 %v5233_v30, %v5232_v31  ;;  %v6658_v30 = vpop.eup %6657 }
0x2f36   :  { %v3613_v35 = vpop.permute.xlu1 %3612  ;;  %v8042_v43 = vpop.permute.xlu0 %5385 }
0x2f37   :  { %3617 = vst.msk [vmem:[#allocation14 + $0x8] sm:$0xff] %vm375_vm1, %v3613_v35  ;;  %5297 = vrot.lane.b32.xlu1 %v5234_v34, %s6710_s28  ;;  %v5390_v59 = vmul.f32 %v8042_v43, %v5333_v32  ;;  %v5391_v50 = vmul.f32 %v8042_v43, %v5334_v33  ;;  %v5392_v42 = vmul.f32 %v8042_v43, %v5335_v27  ;;  %v5343_v35 = vld [vmem:[#allocation15 + $0x48] sm:$0xff] }
0x2f38   :  { %v5394_v40 = vmul.f32 %v8042_v43, %v5337_v58  ;;  %v5395_v3 = vmul.f32 %v8042_v43, %v5338_v14 }
0x2f39   :  { %v5402_v12 = vsel %vm375_vm1, %v5390_v59, 0.0  ;;  %v5405_v11 = vsel %vm375_vm1, %v5391_v50, 0.0  ;;  %v5408_v1 = vsel %vm375_vm1, %v5392_v42, 0.0 }
0x2f3a   :  { %v4094_v5 = vpop.permute.xlu1 %4093  ;;  %v3623_v55 = vpop.permute.xlu0 %3622  ;;  %v5414_v60 = vsel %vm375_vm1, %v5394_v40, 0.0  ;;  %v5417_v31 = vsel %vm375_vm1, %v5395_v3, 0.0 }
0x2f3b   :  { %4099 = vst.msk [vmem:[#allocation14 + $0x28] sm:$0xff] %vm375_vm1, %v4094_v5  ;;  %3628 = vst.msk [vmem:[#allocation15 + $0x78] sm:$0xff] %vm375_vm1, %v3623_v55  ;;  %3863 = vrot.lane.b32.xlu1 %v7663_v21, %s6710_s28  ;;  %v5389_v21 = vmul.f32 %v8042_v43, %v5332_v47 }
0x2f3d   :  { %v5399_v20 = vsel %vm375_vm1, %v5389_v21, 0.0 }
0x2f3e   :  { %v5069_v44 = vpop.permute.xlu1 %5068  ;;  %v5323_v37 = vld [vmem:[#allocation14 + $0x8] sm:$0xff]  ;;  %v8082_v57 = vpop.permute.xlu0 %5471 }
0x2f3f   :  { %5074 = vst.msk [vmem:[#allocation15 + $0x18] sm:$0xff] %vm375_vm1, %v5069_v44  ;;  %5428 = vrot.lane.b32.xlu1 %v7996_v7, %s6706_s11  ;;  %v5476_v2 = vmul.f32 %v8082_v57, %v5341_v49  ;;  %v5478_v55 = vmul.f32 %v8082_v57, %v5343_v35  ;;  %v5344_v44 = vld [vmem:[#allocation15 + $0x58] sm:$0xff] }
0x2f41   :  { %v5488_v28 = vsel %vm375_vm1, %v5476_v2, 0.0 }
0x2f42   :  { %v4576_v45 = vpop.permute.xlu1 %4575  ;;  %v5346_v0 = vld [vmem:[#allocation15 + $0x78] sm:$0xff]  ;;  %v5325_v21 = vld [vmem:[#allocation14 + $0x28] sm:$0xff] }
0x2f43   :  { %4581 = vst.msk [vmem:[#allocation14 + $0x48] sm:$0xff] %vm375_vm1, %v4576_v45  ;;  %v5494_v45 = vsel %vm375_vm1, %v5478_v55, 0.0  ;;  %v5481_v47 = vmul.f32 %v8082_v57, %v5346_v0 }
0x2f46   :  { %v4587_v13 = vpop.permute.xlu1 %4586  ;;  %v5340_v16 = vld [vmem:[#allocation15 + $0x18] sm:$0xff] }
0x2f47   :  { %4592 = vst.msk [vmem:[#allocation15 + $0x38] sm:$0xff] %vm375_vm1, %v4587_v13  ;;  %v5475_v26 = vmul.f32 %v8082_v57, %v5340_v16  ;;  %v5479_v13 = vmul.f32 %v8082_v57, %v5344_v44 }
0x2f49   :  { %v5485_v25 = vsel %vm375_vm1, %v5475_v26, 0.0  ;;  %v5497_v48 = vsel %vm375_vm1, %v5479_v13, 0.0 }
0x2f4e   :  { %v5342_v61 = vld [vmem:[#allocation15 + $0x38] sm:$0xff] }
0x2f4f   :  { %v5477_v34 = vmul.f32 %v8082_v57, %v5342_v61 }
0x2f51   :  { %v5491_v5 = vsel %vm375_vm1, %v5477_v34, 0.0 }
0x2f63   :  { %5362 = vadd.xlane.f32.xlu1 %v5361_v18  ;;  %v5503_v18 = vsel %vm375_vm1, %v5481_v47, 0.0 }
0x2f67   :  { %5400 = vadd.xlane.f32.xlu1 %v5399_v20  ;;  %v5336_v20 = vld [vmem:[#allocation15 + $0x50] sm:$0xff] }
0x2f68   :  { %v5393_v33 = vmul.f32 %v8042_v43, %v5336_v20 }
0x2f6b   :  { %5403 = vadd.xlane.f32.xlu1 %v5402_v12  ;;  %v5411_v12 = vsel %vm375_vm1, %v5393_v33, 0.0 }
0x2f6f   :  { %5406 = vadd.xlane.f32.xlu1 %v5405_v11 }
0x2f74   :  { %v8108_v50 = vpop.xlane.xlu0 %5365 }
0x2f78   :  { %v8110_v11 = vpop.xlane.xlu0 %5368 }
0x2f8d   :  { %v5296_v24 = vpop.permute.xlu1 %5295 }
0x2f8e   :  { %5302 = vst.msk [vmem:[#allocation14 + $0x70] sm:$0xff] %vm375_vm1, %v5296_v24  ;;  %v8112_v24 = vpop.xlane.xlu0 %5371 }
0x2f91   :  { %v5058_v56 = vpop.permute.xlu1 %5057 }
0x2f92   :  { %5063 = vst.msk [vmem:[#allocation14 + $0x68] sm:$0xff] %vm375_vm1, %v5058_v56 }
0x2f95   :  { %v5322_v42 = vld [vmem:[#allocation14 + $0x70] sm:$0xff] }
0x2f99   :  { %v5329_v51 = vld [vmem:[#allocation14 + $0x68] sm:$0xff] }
0x2fa9   :  { %v5298_v29 = vpop.permute.xlu1 %5297 }
0x2faa   :  { %5303 = vst.msk [vmem:[#allocation14 + $0x78] sm:$0xff] %vm375_vm1, %v5298_v29 }
0x2fad   :  { %v3864_v22 = vpop.permute.xlu1 %3863 }
0x2fae   :  { %3869 = vst.msk [vmem:[#allocation15 + $0x68] sm:$0xff] %vm375_vm1, %v3864_v22  ;;  %v5256_v22 = vsub.f32 1.0, %v7968_v4 }
0x2fb1   :  { %v8067_v10 = vpop.permute.xlu1 %5428 }
0x2fb2   :  { %v5431_v8 = vmul.f32 %v8067_v10, %v5323_v37  ;;  %v5432_v19 = vmul.f32 %v8067_v10, %v5324_v6  ;;  %v5434_v53 = vmul.f32 %v8067_v10, %v5326_v54  ;;  %v5433_v32 = vmul.f32 %v8067_v10, %v5325_v21 }
0x2fb3   :  { %v5262_v6 = vmul.f32 %v7968_v4, %v7935_v9  ;;  %v5360_v9 = vmul.f32 %v7996_v7, %v5322_v42  ;;  %v5328_v4 = vld [vmem:[#allocation14 + $0x58] sm:$0xff] }
0x2fb4   :  { %v5439_v62 = vsel %vm375_vm1, %v5431_v8, 0.0  ;;  %v5442_v36 = vsel %vm375_vm1, %v5432_v19, 0.0  ;;  %v5448_v15 = vsel %vm375_vm1, %v5434_v53, 0.0  ;;  %v5445_v59 = vsel %vm375_vm1, %v5433_v32, 0.0  ;;  %v5330_v53 = vld [vmem:[#allocation14 + $0x78] sm:$0xff] }
0x2fb5   :  { %5440 = vadd.xlane.f32.xlu0 %v5439_v62  ;;  %5443 = vadd.xlane.f32.xlu1 %v5442_v36  ;;  %v6711_v19 = vmov 0   ;;  %v5327_v62 = vld [vmem:[#allocation14 + $0x48] sm:$0xff] }
0x2fb6   :  { %6456 = vset.pattern.permute.xlu0 %v6711_v19  ;;  %v5435_v46 = vmul.f32 %v8067_v10, %v5327_v62 }
0x2fb8   :  { %v5451_v63 = vsel %vm375_vm1, %v5435_v46, 0.0 }
0x2fb9   :  { %5374 = vadd.xlane.f32.xlu0 %v5373_v23  ;;  %5409 = vadd.xlane.f32.xlu1 %v5408_v1  ;;  %v5382_v23 = vsel %vm375_vm1, %v5360_v9, 0.0  ;;  %v5436_v1 = vmul.f32 %v8067_v10, %v5328_v4 }
0x2fbb   :  { %v5454_v54 = vsel %vm375_vm1, %v5436_v1, 0.0 }
0x2fbd   :  { %5377 = vadd.xlane.f32.xlu1 %v5376_v39  ;;  %v5437_v39 = vmul.f32 %v8067_v10, %v5329_v51 }
0x2fbf   :  { %v5457_v16 = vsel %vm375_vm1, %v5437_v39, 0.0 }
0x2fc1   :  { %5449 = vadd.xlane.f32.xlu1 %v5448_v15  ;;  %v5438_v15 = vmul.f32 %v8067_v10, %v5330_v53 }
0x2fc3   :  { %v5460_v58 = vsel %vm375_vm1, %v5438_v15, 0.0 }
0x2fc5   :  { %5486 = vadd.xlane.f32.xlu1 %v5485_v25 }
0x2fc9   :  { %5415 = vadd.xlane.f32.xlu1 %v5414_v60 }
0x2fcd   :  { %5489 = vadd.xlane.f32.xlu1 %v5488_v28 }
0x2fcf   :  { %5258 = vrot.lane.b32.xlu0 %v6658_v30, %s6710_s28  ;;  %v5866_v30 = vld [vmem:[#allocation5] ss:$0 sm:$0xff] }
0x2fd1   :  { %5418 = vadd.xlane.f32.xlu1 %v5417_v31 }
0x2fd5   :  { %5492 = vadd.xlane.f32.xlu1 %v5491_v5 }
0x2fd9   :  { %5495 = vadd.xlane.f32.xlu1 %v5494_v45 }
0x2fdd   :  { %5498 = vadd.xlane.f32.xlu1 %v5497_v48 }
0x2fe1   :  { %5504 = vadd.xlane.f32.xlu1 %v5503_v18 }
0x2fec   :  { %v5363_v31 = vpop.xlane.xlu1 %5362 }
0x2fee   :  { %5446 = vadd.xlane.f32.xlu0 %v5445_v59 }
0x2ff0   :  { %v5401_v34 = vpop.xlane.xlu1 %5400 }
0x2ff2   :  { %5412 = vadd.xlane.f32.xlu0 %v5411_v12 }
0x2ff4   :  { %v5404_v35 = vpop.xlane.xlu1 %5403 }
0x2ff8   :  { %v5407_v5 = vpop.xlane.xlu1 %5406 }
0x2ff9   :  { %v5423_v62 = vadd.f32 %v5407_v5, %v8112_v24 }
0x3008   :  { %5308 = vrot.lane.b32.xlu0 %v8036_v17, %s6710_s28  ;;  %v5321_v17 = vld [vmem:[#allocation14 + $0x60] sm:$0xff] }
0x3009   :  { %v5359_v27 = vmul.f32 %v7996_v7, %v5321_v17  ;;  %v5345_v7 = vld [vmem:[#allocation15 + $0x68] sm:$0xff] }
0x300a   :  { %v5480_v25 = vmul.f32 %v8082_v57, %v5345_v7 }
0x300b   :  { %v5379_v36 = vsel %vm375_vm1, %v5359_v27, 0.0  ;;  %v5421_v27 = vadd.f32 %v5401_v34, %v8108_v50 }
0x300c   :  { %v5500_v49 = vsel %vm375_vm1, %v5480_v25, 0.0 }
0x303e   :  { %v8114_v56 = vpop.xlane.xlu0 %5440  ;;  %v5444_v55 = vpop.xlane.xlu1 %5443 }
0x3042   :  { %v8116_v29 = vpop.xlane.xlu0 %5374 }
0x3046   :  { %v5259_v37 = vpop.permute.xlu0 %5258 }
0x3047   :  { %v5261_v38 = vmul.f32 %v5259_v37, %v5256_v22 }
0x3049   :  { %v5263_v8 = vadd.f32 %v5262_v6, %v5261_v38  ;;  %v5422_v38 = vadd.f32 %v5404_v35, %v8110_v11 }
0x304b   :  { %5306 = vrot.lane.b32.xlu0 %v5263_v8, %s6710_s28 }
0x306a   :  { %5380 = vadd.xlane.f32.xlu0 %v5379_v36 }
0x306e   :  { %5452 = vadd.xlane.f32.xlu0 %v5451_v63 }
0x3072   :  { %5383 = vadd.xlane.f32.xlu0 %v5382_v23  ;;  %v5464_v23 = vadd.f32 %v5444_v55, %v5421_v27 }
0x3076   :  { %5455 = vadd.xlane.f32.xlu0 %v5454_v54 }
0x3077   :  { %v5447_v41 = vpop.xlane.xlu0 %5446 }
0x3078   :  { %v5465_v46 = vadd.f32 %v5447_v41, %v5422_v38 }
0x307a   :  { %5458 = vadd.xlane.f32.xlu0 %v5457_v16 }
0x307b   :  { %v5413_v26 = vpop.xlane.xlu0 %5412 }
0x307e   :  { %5461 = vadd.xlane.f32.xlu0 %v5460_v58 }
0x307f   :  { %v5309_v40 = vpop.permute.xlu0 %5308 }
0x3080   :  { %5313 = vst.msk [vmem:[#allocation15 + $0x8] sm:$0xff] %vm375_vm1, %v5309_v40 }
0x3082   :  { %5501 = vadd.xlane.f32.xlu0 %v5500_v49 }
0x3087   :  { %v5339_v60 = vld [vmem:[#allocation15 + $0x8] sm:$0xff] }
0x3088   :  { %v5474_v2 = vmul.f32 %v8082_v57, %v5339_v60  ;;  %v5410_v57 = vpop.xlane.xlu1 %5409 }
0x3089   :  { %v5424_v19 = vadd.f32 %v5410_v57, %v8116_v29 }
0x308a   :  { %v5482_v14 = vsel %vm375_vm1, %v5474_v2, 0.0 }
0x308b   :  { %5483 = vadd.xlane.f32.xlu0 %v5482_v14 }
0x308c   :  { %v5378_v44 = vpop.xlane.xlu1 %5377 }
0x308d   :  { %v5425_v17 = vadd.f32 %v5413_v26, %v5378_v44 }
0x3090   :  { %v5450_v13 = vpop.xlane.xlu1 %5449 }
0x3091   :  { %v5466_v1 = vadd.f32 %v5450_v13, %v5423_v62 }
0x3094   :  { %v5487_v48 = vpop.xlane.xlu1 %5486 }
0x3095   :  { %v5507_v11 = vadd.f32 %v5487_v48, %v5464_v23 }
0x3098   :  { %v5416_v18 = vpop.xlane.xlu1 %5415 }
0x30bd   :  { %v5307_v10 = vpop.permute.xlu0 %5306 }
0x30be   :  { %5312 = vst.msk [vmem:[#allocation15] sm:$0xff] %vm375_vm1, %v5307_v10 }
0x30c5   :  { %v5331_v28 = vld [vmem:[#allocation15] sm:$0xff] }
0x30c6   :  { %v5388_v3 = vmul.f32 %v8042_v43, %v5331_v28  ;;  %v5490_v43 = vpop.xlane.xlu1 %5489 }
0x30c7   :  { %v5508_v53 = vadd.f32 %v5490_v43, %v5465_v46 }
0x30c8   :  { %v5396_v61 = vsel %vm375_vm1, %v5388_v3, 0.0 }
0x30c9   :  { %5397 = vadd.xlane.f32.xlu0 %v5396_v61 }
0x30ca   :  { %v5419_v20 = vpop.xlane.xlu1 %5418 }
0x30ce   :  { %v5493_v33 = vpop.xlane.xlu1 %5492 }
0x30cf   :  { %v5509_v39 = vadd.f32 %v5493_v33, %v5466_v1 }
0x30d2   :  { %v5496_v37 = vpop.xlane.xlu1 %5495 }
0x30d6   :  { %v5499_v36 = vpop.xlane.xlu1 %5498 }
0x30da   :  { %v5505_v24 = vpop.xlane.xlu1 %5504 }
0x30df   :  { %5521 = vperm.xlu0 %6456, %v5866_v30  }
0x30f3   :  { %v5381_v45 = vpop.xlane.xlu0 %5380 }
0x30f4   :  { %v5426_v51 = vadd.f32 %v5416_v18, %v5381_v45 }
0x30f7   :  { %v5453_v0 = vpop.xlane.xlu0 %5452 }
0x30f8   :  { %v5467_v63 = vadd.f32 %v5453_v0, %v5424_v19 }
0x30fa   :  { %v5510_v16 = vadd.f32 %v5496_v37, %v5467_v63 }
0x30fb   :  { %v5384_v47 = vpop.xlane.xlu0 %5383 }
0x30fc   :  { %v5427_v9 = vadd.f32 %v5419_v20, %v5384_v47 }
0x30ff   :  { %v5456_v21 = vpop.xlane.xlu0 %5455 }
0x3100   :  { %v5468_v4 = vadd.f32 %v5456_v21, %v5425_v17 }
0x3102   :  { %v5511_v15 = vadd.f32 %v5499_v36, %v5468_v4 }
0x3103   :  { %v5459_v32 = vpop.xlane.xlu0 %5458 }
0x3104   :  { %v5469_v50 = vadd.f32 %v5459_v32, %v5426_v51 }
0x3107   :  { %v5462_v59 = vpop.xlane.xlu0 %5461 }
0x3108   :  { %v5470_v54 = vadd.f32 %v5462_v59, %v5427_v9 }
0x310a   :  { %v5513_v25 = vadd.f32 %v5505_v24, %v5470_v54 }
0x310b   :  { %v5502_v12 = vpop.xlane.xlu0 %5501 }
0x310c   :  { %v5512_v40 = vadd.f32 %v5502_v12, %v5469_v50 }
0x3114   :  { %v5484_v22 = vpop.xlane.xlu0 %5483 }
0x3152   :  { %v5398_v6 = vpop.xlane.xlu0 %5397 }
0x3153   :  { %v5420_v8 = vadd.f32 %v5398_v6, %v5363_v31 }
0x3155   :  { %v5463_v42 = vadd.f32 %v8114_v56, %v5420_v8 }
0x3157   :  { %v5506_v29 = vadd.f32 %v5484_v22, %v5463_v42 }
0x315a   :  { %v5522_v7 = vpop.permute.xlu0 %5521 }
0x315b   :  { %v5524_v26 = vadd.f32 %v5522_v7, %v5506_v29  ;;  %v5525_v41 = vadd.f32 %v5522_v7, %v5507_v11  ;;  %v5526_v58 = vadd.f32 %v5522_v7, %v5508_v53  ;;  %v5527_v56 = vadd.f32 %v5522_v7, %v5509_v39 }
0x315c   :  { %v5528_v49 = vadd.f32 %v5522_v7, %v5510_v16  ;;  %v5529_v60 = vadd.f32 %v5522_v7, %v5511_v15  ;;  %v5530_v28 = vadd.f32 %v5522_v7, %v5512_v40  ;;  %v5531_v3 = vadd.f32 %v5522_v7, %v5513_v25 }
0x315d   :  { %v5543_v2 = vrot.slane %v5524_v26, %v7428_v52  ;;  %v5547_v14 = vrot.slane %v5525_v41, %v7428_v52  ;;  %v5551_v10 = vrot.slane %v5526_v58, %v7428_v52  ;;  %v5555_v61 = vrot.slane %v5527_v56, %v7428_v52 }
0x315e   :  { %v5559_v31 = vrot.slane %v5528_v49, %v7428_v52  ;;  %v5563_v35 = vrot.slane %v5529_v60, %v7428_v52  ;;  %v5567_v55 = vrot.slane %v5530_v28, %v7428_v52  ;;  %v5571_v44 = vrot.slane %v5531_v3, %v7428_v52 }
0x315f   :  { %v5572_v30 = vsel %vm2547_vm3, %v5547_v14, %v5543_v2 }
0x3160   :  { %v5573_v34 = vsel %vm2549_vm4, %v5551_v10, %v5572_v30 }
0x3161   :  { %v5574_v5 = vsel %vm2551_vm5, %v5555_v61, %v5573_v34 }
0x3162   :  { %v5575_v57 = vsel %vm2553_vm6, %v5559_v31, %v5574_v5 }
0x3163   :  { %v5576_v45 = vsel %vm2555_vm7, %v5563_v35, %v5575_v57 }
0x3164   :  { %v5577_v13 = vsel %vm2557_vm8, %v5567_v55, %v5576_v45 }
0x3165   :  { %v5578_v0 = vsel %vm2559_vm9, %v5571_v44, %v5577_v13 }
0x3166   :  { %5580 = vxpose.xlu1.b32.start.end [1/1] (short) (narrow) %v5578_v0, 8 }
0x31e2   :  { %v5596_v48 = vpop.trf.xlu1 }
0x31e3   :  { %v5612_v47 = vsel %vm375_vm1, %v5596_v48, -inf }
0x31e4   :  { %5613 = vmax.xlane.f32.xlu0 %v5612_v47 }
0x326d   :  { %v5614_v18 = vpop.xlane.xlu0 %5613 }
0x326e   :  { %v5615_v21 = vsub.f32 %v5596_v48, %v5614_v18 }
0x3270   :  { %v5616_v43 = vmul.f32 1.442695, %v5615_v21 }
0x3272   :  { %6659 = vpow2.f32 %v5616_v43 }
0x327f   :  { %v6660_v32 = vpop.eup %6659 }
0x3280   :  { %v5618_v20 = vsel %vm375_vm1, %v6660_v32, 0.0 }
0x3281   :  { %5619 = vadd.xlane.f32.xlu1 %v5618_v20 }
0x330a   :  { %v5620_v52 = vpop.xlane.xlu1 %5619 }
0x330b   :  { %6661 = vlog2.f32 %v5620_v52 }
0x3318   :  { %v6662_v59 = vpop.eup %6661 }
0x3319   :  { %v5622_v33 = vmul.f32 0.6931472, %v6662_v59 }
0x331b   :  { %v5623_v12 = vadd.f32 %v5622_v33, %v5614_v18 }
0x331d   :  { %v5624_v22 = vsub.f32 %v5596_v48, %v5623_v12 }
0x331f   :  { %v5625_v37 = vsel %vm375_vm1, %v5624_v22, 0.0 }
0x3320   :  { %5626 = vst [vmem:[%s8189_s22] sm:$0xff] %v5625_v37 }
0x3321   :  { %5635 = vsyncpa [#allocation7], 1 }
0x3322   :  { %5636 = vsyncpa [#allocation9], 1 }

</bundles_post_ra>
